<compile_context>
chip_gen: v7x
topology: tpu7x:2x2x1
jax: 0.10.0
libtpu: 0.0.40
codegen_flags: <defaults>
</compile_context>

<pallas_src>
import numpy as np
import jax
import jax.numpy as jnp
from jax import lax
from jax.experimental import pallas as pl
from jax.experimental.pallas import tpu as pltpu


# ------------------------------------------------------------------ kernel

def make_conv_block_kernel(C_in, C_out, kH, kW, H_out, W_out, use_act, eps):
    """Returns a Pallas kernel computing ReLU(InstanceNorm(Conv2d)) for one
    sample.  All shape parameters are static Python ints (loops unrolled)."""

    ckk = C_in * kH * kW
    inv_hw = 1.0 / float(H_out * W_out)

    def kernel(xpad_ref, w_ref, b_ref, out_ref):
        # xpad_ref: (1, C_in, H_out + kH - 1, W_out + kW - 1)  reflect-padded
        #           input block in VMEM (lane axis = width).
        # w_ref:    (C_out * C_in * kH * kW,) flat f32 conv weights in SMEM.
        # b_ref:    (C_out,) f32 conv bias in SMEM.
        # out_ref:  (1, C_out, H_out, W_out)
        xp = xpad_ref[0]                       # (C_in, Hp, Wp)

        # One f32 accumulator plane per output channel (small: C_out*H*W*4 B).
        accs = [jnp.zeros((H_out, W_out), jnp.float32) for _ in range(C_out)]

        # ---- conv as per-tap scalar-weight VPU MACs ----
        # Slice each shifted window ONCE per (dh, dw) tap for all channels,
        # then reuse it across C_in (cheap leading-axis index) and C_out.
        for dh in range(kH):
            for dw in range(kW):
                win_all = xp[:, dh:dh + H_out, dw:dw + W_out]   # (C_in, H, W)
                for ci in range(C_in):
                    win = win_all[ci]                           # (H, W)
                    base = (ci * kH + dh) * kW + dw
                    for co in range(C_out):
                        wgt = w_ref[co * ckk + base]            # SMEM scalar
                        accs[co] = accs[co] + wgt * win

        # ---- fused bias + InstanceNorm2d (affine=False, biased var) + ReLU --
        for co in range(C_out):
            y = accs[co] + b_ref[co]
            mean = jnp.sum(y) * inv_hw
            yc = y - mean
            var = jnp.sum(yc * yc) * inv_hw
            z = yc * lax.rsqrt(var + eps)
            if use_act:
                z = jnp.maximum(z, 0.0)
            out_ref[0, co] = z.astype(out_ref.dtype)

    return kernel


# ------------------------------------------------------------------ wrapper

def conv_block_forward(x, weight, bias, *, padding=1, use_act=True, eps=1e-5):
    """ConvBlock forward (down=True path): reflect-padded Conv2d (stride=1)
    -> InstanceNorm2d -> ReLU, with conv+norm+act fused in one Pallas kernel.

    x:      (N, C_in, H, W)  float32, NCHW (PyTorch convention, kept as-is)
    weight: (C_out, C_in, kH, kW)  PyTorch OIHW conv weight
    bias:   (C_out,)
    """
    N, C_in, H, W = x.shape
    C_out, C_in_w, kH, kW = weight.shape
    assert C_in_w == C_in, "grouped conv not part of ConvBlock"

    # Reflect pad (padding_mode='reflect').  Cheap for small pad; see TODO
    # above about fusing it with halo'd H-tiling for large images.
    if padding > 0:
        x_pad = jnp.pad(
            x, ((0, 0), (0, 0), (padding, padding), (padding, padding)),
            mode="reflect")
    else:
        x_pad = x
    Hp, Wp = H + 2 * padding, W + 2 * padding
    H_out, W_out = Hp - kH + 1, Wp - kW + 1

    w_flat = weight.astype(jnp.float32).reshape(-1)     # (C_out*C_in*kH*kW,)
    b = bias.astype(jnp.float32)                        # (C_out,)

    kernel = make_conv_block_kernel(C_in, C_out, kH, kW, H_out, W_out,
                                    use_act, eps)

    out = pl.pallas_call(
        kernel,
        out_shape=jax.ShapeDtypeStruct((N, C_out, H_out, W_out), x.dtype),
        grid_spec=pltpu.PrefetchScalarGridSpec(
            num_scalar_prefetch=0,
            grid=(N,),
            in_specs=[
                # one padded sample per grid step (lane axis = width)
                pl.BlockSpec((1, C_in, Hp, Wp), lambda n: (n, 0, 0, 0)),
                # small conv weights / bias resident in SMEM (no double-buffer)
                pl.BlockSpec(memory_space=pltpu.MemorySpace.SMEM),
                pl.BlockSpec(memory_space=pltpu.MemorySpace.SMEM),
            ],
            out_specs=pl.BlockSpec((1, C_out, H_out, W_out),
                                   lambda n: (n, 0, 0, 0)),
        ),
        compiler_params=pltpu.CompilerParams(
            dimension_semantics=("parallel",)),   # batch shards across v7x TCs
    )(x_pad, w_flat, b)
    return out


# ------------------------------------------------------------------ main

if __name__ == "__main__":
    # Small shapes consistent with ConvBlock(in_channels=4, out_channels=8,
    # kernel_size=3, stride=1, padding=1), down=True, use_act=True.
    N, C_in, C_out, H, W = 2, 4, 8, 16, 16
    kH = kW = 3
    padding = 1
    eps = 1e-5

    key = jax.random.PRNGKey(0)
    k1, k2, k3 = jax.random.split(key, 3)
    x = jax.random.normal(k1, (N, C_in, H, W), jnp.float32)
    weight = 0.1 * jax.random.normal(k2, (C_out, C_in, kH, kW), jnp.float32)
    bias = 0.1 * jax.random.normal(k3, (C_out,), jnp.float32)

    out = conv_block_forward(x, weight, bias, padding=padding,
                             use_act=True, eps=eps)
    out = jax.block_until_ready(out)

    # ---- pure-JAX reference: reflect-pad conv + InstanceNorm2d + ReLU ----
    x_pad = jnp.pad(x, ((0, 0), (0, 0), (padding, padding), (padding, padding)),
                    mode="reflect")
    y = lax.conv_general_dilated(
        x_pad, weight, window_strides=(1, 1), padding="VALID",
        dimension_numbers=("NCHW", "OIHW", "NCHW")) + bias[None, :, None, None]
    mean = jnp.mean(y, axis=(2, 3), keepdims=True)
    var = jnp.mean((y - mean) ** 2, axis=(2, 3), keepdims=True)   # biased var
    ref = jnp.maximum((y - mean) * lax.rsqrt(var + eps), 0.0)

    np.testing.assert_allclose(np.asarray(out), np.asarray(ref),
                               rtol=1e-3, atol=1e-3)
    print("KERNEL_OK")
</pallas_src>

<mosaic_0001>
module attributes {stable_mosaic.version = 11 : i64} {
  func.func @kernel(%arg0: i32, %arg1: memref<1x4x18x18xf32, #tpu.memory_space<vmem>>, %arg2: memref<288xf32, #tpu.memory_space<smem>>, %arg3: memref<8xf32, #tpu.memory_space<smem>>, %arg4: memref<1x8x16x16xf32, #tpu.memory_space<vmem>>) attributes {dimension_semantics = [#tpu.dimension_semantics<parallel>], iteration_bounds = array<i64: 2>, scalar_prefetch = 0 : i64, scratch_operands = 0 : i64, tpu.core_type = #tpu.core_type<tc>, window_params = [{transform_indices = @transform_0, window_bounds = array<i64: 1, 4, 18, 18>}, {transform_indices = @transform_1, window_bounds = array<i64: 288>}, {transform_indices = @transform_2, window_bounds = array<i64: 8>}, {transform_indices = @transform_3, window_bounds = array<i64: 1, 8, 16, 16>}]} {
    %c0 = arith.constant 0 : index
    %c0_0 = arith.constant 0 : index
    %c0_1 = arith.constant 0 : index
    %c0_2 = arith.constant 0 : index
    %0 = vector.load %arg1[%c0, %c0_0, %c0_1, %c0_2] : memref<1x4x18x18xf32, #tpu.memory_space<vmem>>, vector<1x4x18x18xf32>
    %1 = vector.shape_cast %0 : vector<1x4x18x18xf32> to vector<4x18x18xf32>
    %cst = arith.constant 0.000000e+00 : f32
    %2 = vector.broadcast %cst : f32 to vector<16x16xf32>
    %cst_3 = arith.constant 0.000000e+00 : f32
    %3 = vector.broadcast %cst_3 : f32 to vector<16x16xf32>
    %cst_4 = arith.constant 0.000000e+00 : f32
    %4 = vector.broadcast %cst_4 : f32 to vector<16x16xf32>
    %cst_5 = arith.constant 0.000000e+00 : f32
    %5 = vector.broadcast %cst_5 : f32 to vector<16x16xf32>
    %cst_6 = arith.constant 0.000000e+00 : f32
    %6 = vector.broadcast %cst_6 : f32 to vector<16x16xf32>
    %cst_7 = arith.constant 0.000000e+00 : f32
    %7 = vector.broadcast %cst_7 : f32 to vector<16x16xf32>
    %cst_8 = arith.constant 0.000000e+00 : f32
    %8 = vector.broadcast %cst_8 : f32 to vector<16x16xf32>
    %cst_9 = arith.constant 0.000000e+00 : f32
    %9 = vector.broadcast %cst_9 : f32 to vector<16x16xf32>
    %10 = vector.extract_strided_slice %1 {offsets = [0, 0, 0], sizes = [4, 16, 16], strides = [1, 1, 1]} : vector<4x18x18xf32> to vector<4x16x16xf32>
    %11 = vector.extract_strided_slice %10 {offsets = [0, 0, 0], sizes = [1, 16, 16], strides = [1, 1, 1]} : vector<4x16x16xf32> to vector<1x16x16xf32>
    %12 = vector.shape_cast %11 : vector<1x16x16xf32> to vector<16x16xf32>
    %c0_10 = arith.constant 0 : index
    %13 = memref.load %arg2[%c0_10] : memref<288xf32, #tpu.memory_space<smem>>
    %14 = vector.broadcast %13 : f32 to vector<16x16xf32>
    %15 = arith.mulf %14, %12 : vector<16x16xf32>
    %16 = arith.addf %2, %15 : vector<16x16xf32>
    %c36 = arith.constant 36 : index
    %17 = memref.load %arg2[%c36] : memref<288xf32, #tpu.memory_space<smem>>
    %18 = vector.broadcast %17 : f32 to vector<16x16xf32>
    %19 = arith.mulf %18, %12 : vector<16x16xf32>
    %20 = arith.addf %3, %19 : vector<16x16xf32>
    %c72 = arith.constant 72 : index
    %21 = memref.load %arg2[%c72] : memref<288xf32, #tpu.memory_space<smem>>
    %22 = vector.broadcast %21 : f32 to vector<16x16xf32>
    %23 = arith.mulf %22, %12 : vector<16x16xf32>
    %24 = arith.addf %4, %23 : vector<16x16xf32>
    %c108 = arith.constant 108 : index
    %25 = memref.load %arg2[%c108] : memref<288xf32, #tpu.memory_space<smem>>
    %26 = vector.broadcast %25 : f32 to vector<16x16xf32>
    %27 = arith.mulf %26, %12 : vector<16x16xf32>
    %28 = arith.addf %5, %27 : vector<16x16xf32>
    %c144 = arith.constant 144 : index
    %29 = memref.load %arg2[%c144] : memref<288xf32, #tpu.memory_space<smem>>
    %30 = vector.broadcast %29 : f32 to vector<16x16xf32>
    %31 = arith.mulf %30, %12 : vector<16x16xf32>
    %32 = arith.addf %6, %31 : vector<16x16xf32>
    %c180 = arith.constant 180 : index
    %33 = memref.load %arg2[%c180] : memref<288xf32, #tpu.memory_space<smem>>
    %34 = vector.broadcast %33 : f32 to vector<16x16xf32>
    %35 = arith.mulf %34, %12 : vector<16x16xf32>
    %36 = arith.addf %7, %35 : vector<16x16xf32>
    %c216 = arith.constant 216 : index
    %37 = memref.load %arg2[%c216] : memref<288xf32, #tpu.memory_space<smem>>
    %38 = vector.broadcast %37 : f32 to vector<16x16xf32>
    %39 = arith.mulf %38, %12 : vector<16x16xf32>
    %40 = arith.addf %8, %39 : vector<16x16xf32>
    %c252 = arith.constant 252 : index
    %41 = memref.load %arg2[%c252] : memref<288xf32, #tpu.memory_space<smem>>
    %42 = vector.broadcast %41 : f32 to vector<16x16xf32>
    %43 = arith.mulf %42, %12 : vector<16x16xf32>
    %44 = arith.addf %9, %43 : vector<16x16xf32>
    %45 = vector.extract_strided_slice %10 {offsets = [1, 0, 0], sizes = [1, 16, 16], strides = [1, 1, 1]} : vector<4x16x16xf32> to vector<1x16x16xf32>
    %46 = vector.shape_cast %45 : vector<1x16x16xf32> to vector<16x16xf32>
    %c9 = arith.constant 9 : index
    %47 = memref.load %arg2[%c9] : memref<288xf32, #tpu.memory_space<smem>>
    %48 = vector.broadcast %47 : f32 to vector<16x16xf32>
    %49 = arith.mulf %48, %46 : vector<16x16xf32>
    %50 = arith.addf %16, %49 : vector<16x16xf32>
    %c45 = arith.constant 45 : index
    %51 = memref.load %arg2[%c45] : memref<288xf32, #tpu.memory_space<smem>>
    %52 = vector.broadcast %51 : f32 to vector<16x16xf32>
    %53 = arith.mulf %52, %46 : vector<16x16xf32>
    %54 = arith.addf %20, %53 : vector<16x16xf32>
    %c81 = arith.constant 81 : index
    %55 = memref.load %arg2[%c81] : memref<288xf32, #tpu.memory_space<smem>>
    %56 = vector.broadcast %55 : f32 to vector<16x16xf32>
    %57 = arith.mulf %56, %46 : vector<16x16xf32>
    %58 = arith.addf %24, %57 : vector<16x16xf32>
    %c117 = arith.constant 117 : index
    %59 = memref.load %arg2[%c117] : memref<288xf32, #tpu.memory_space<smem>>
    %60 = vector.broadcast %59 : f32 to vector<16x16xf32>
    %61 = arith.mulf %60, %46 : vector<16x16xf32>
    %62 = arith.addf %28, %61 : vector<16x16xf32>
    %c153 = arith.constant 153 : index
    %63 = memref.load %arg2[%c153] : memref<288xf32, #tpu.memory_space<smem>>
    %64 = vector.broadcast %63 : f32 to vector<16x16xf32>
    %65 = arith.mulf %64, %46 : vector<16x16xf32>
    %66 = arith.addf %32, %65 : vector<16x16xf32>
    %c189 = arith.constant 189 : index
    %67 = memref.load %arg2[%c189] : memref<288xf32, #tpu.memory_space<smem>>
    %68 = vector.broadcast %67 : f32 to vector<16x16xf32>
    %69 = arith.mulf %68, %46 : vector<16x16xf32>
    %70 = arith.addf %36, %69 : vector<16x16xf32>
    %c225 = arith.constant 225 : index
    %71 = memref.load %arg2[%c225] : memref<288xf32, #tpu.memory_space<smem>>
    %72 = vector.broadcast %71 : f32 to vector<16x16xf32>
    %73 = arith.mulf %72, %46 : vector<16x16xf32>
    %74 = arith.addf %40, %73 : vector<16x16xf32>
    %c261 = arith.constant 261 : index
    %75 = memref.load %arg2[%c261] : memref<288xf32, #tpu.memory_space<smem>>
    %76 = vector.broadcast %75 : f32 to vector<16x16xf32>
    %77 = arith.mulf %76, %46 : vector<16x16xf32>
    %78 = arith.addf %44, %77 : vector<16x16xf32>
    %79 = vector.extract_strided_slice %10 {offsets = [2, 0, 0], sizes = [1, 16, 16], strides = [1, 1, 1]} : vector<4x16x16xf32> to vector<1x16x16xf32>
    %80 = vector.shape_cast %79 : vector<1x16x16xf32> to vector<16x16xf32>
    %c18 = arith.constant 18 : index
    %81 = memref.load %arg2[%c18] : memref<288xf32, #tpu.memory_space<smem>>
    %82 = vector.broadcast %81 : f32 to vector<16x16xf32>
    %83 = arith.mulf %82, %80 : vector<16x16xf32>
    %84 = arith.addf %50, %83 : vector<16x16xf32>
    %c54 = arith.constant 54 : index
    %85 = memref.load %arg2[%c54] : memref<288xf32, #tpu.memory_space<smem>>
    %86 = vector.broadcast %85 : f32 to vector<16x16xf32>
    %87 = arith.mulf %86, %80 : vector<16x16xf32>
    %88 = arith.addf %54, %87 : vector<16x16xf32>
    %c90 = arith.constant 90 : index
    %89 = memref.load %arg2[%c90] : memref<288xf32, #tpu.memory_space<smem>>
    %90 = vector.broadcast %89 : f32 to vector<16x16xf32>
    %91 = arith.mulf %90, %80 : vector<16x16xf32>
    %92 = arith.addf %58, %91 : vector<16x16xf32>
    %c126 = arith.constant 126 : index
    %93 = memref.load %arg2[%c126] : memref<288xf32, #tpu.memory_space<smem>>
    %94 = vector.broadcast %93 : f32 to vector<16x16xf32>
    %95 = arith.mulf %94, %80 : vector<16x16xf32>
    %96 = arith.addf %62, %95 : vector<16x16xf32>
    %c162 = arith.constant 162 : index
    %97 = memref.load %arg2[%c162] : memref<288xf32, #tpu.memory_space<smem>>
    %98 = vector.broadcast %97 : f32 to vector<16x16xf32>
    %99 = arith.mulf %98, %80 : vector<16x16xf32>
    %100 = arith.addf %66, %99 : vector<16x16xf32>
    %c198 = arith.constant 198 : index
    %101 = memref.load %arg2[%c198] : memref<288xf32, #tpu.memory_space<smem>>
    %102 = vector.broadcast %101 : f32 to vector<16x16xf32>
    %103 = arith.mulf %102, %80 : vector<16x16xf32>
    %104 = arith.addf %70, %103 : vector<16x16xf32>
    %c234 = arith.constant 234 : index
    %105 = memref.load %arg2[%c234] : memref<288xf32, #tpu.memory_space<smem>>
    %106 = vector.broadcast %105 : f32 to vector<16x16xf32>
    %107 = arith.mulf %106, %80 : vector<16x16xf32>
    %108 = arith.addf %74, %107 : vector<16x16xf32>
    %c270 = arith.constant 270 : index
    %109 = memref.load %arg2[%c270] : memref<288xf32, #tpu.memory_space<smem>>
    %110 = vector.broadcast %109 : f32 to vector<16x16xf32>
    %111 = arith.mulf %110, %80 : vector<16x16xf32>
    %112 = arith.addf %78, %111 : vector<16x16xf32>
    %113 = vector.extract_strided_slice %10 {offsets = [3, 0, 0], sizes = [1, 16, 16], strides = [1, 1, 1]} : vector<4x16x16xf32> to vector<1x16x16xf32>
    %114 = vector.shape_cast %113 : vector<1x16x16xf32> to vector<16x16xf32>
    %c27 = arith.constant 27 : index
    %115 = memref.load %arg2[%c27] : memref<288xf32, #tpu.memory_space<smem>>
    %116 = vector.broadcast %115 : f32 to vector<16x16xf32>
    %117 = arith.mulf %116, %114 : vector<16x16xf32>
    %118 = arith.addf %84, %117 : vector<16x16xf32>
    %c63 = arith.constant 63 : index
    %119 = memref.load %arg2[%c63] : memref<288xf32, #tpu.memory_space<smem>>
    %120 = vector.broadcast %119 : f32 to vector<16x16xf32>
    %121 = arith.mulf %120, %114 : vector<16x16xf32>
    %122 = arith.addf %88, %121 : vector<16x16xf32>
    %c99 = arith.constant 99 : index
    %123 = memref.load %arg2[%c99] : memref<288xf32, #tpu.memory_space<smem>>
    %124 = vector.broadcast %123 : f32 to vector<16x16xf32>
    %125 = arith.mulf %124, %114 : vector<16x16xf32>
    %126 = arith.addf %92, %125 : vector<16x16xf32>
    %c135 = arith.constant 135 : index
    %127 = memref.load %arg2[%c135] : memref<288xf32, #tpu.memory_space<smem>>
    %128 = vector.broadcast %127 : f32 to vector<16x16xf32>
    %129 = arith.mulf %128, %114 : vector<16x16xf32>
    %130 = arith.addf %96, %129 : vector<16x16xf32>
    %c171 = arith.constant 171 : index
    %131 = memref.load %arg2[%c171] : memref<288xf32, #tpu.memory_space<smem>>
    %132 = vector.broadcast %131 : f32 to vector<16x16xf32>
    %133 = arith.mulf %132, %114 : vector<16x16xf32>
    %134 = arith.addf %100, %133 : vector<16x16xf32>
    %c207 = arith.constant 207 : index
    %135 = memref.load %arg2[%c207] : memref<288xf32, #tpu.memory_space<smem>>
    %136 = vector.broadcast %135 : f32 to vector<16x16xf32>
    %137 = arith.mulf %136, %114 : vector<16x16xf32>
    %138 = arith.addf %104, %137 : vector<16x16xf32>
    %c243 = arith.constant 243 : index
    %139 = memref.load %arg2[%c243] : memref<288xf32, #tpu.memory_space<smem>>
    %140 = vector.broadcast %139 : f32 to vector<16x16xf32>
    %141 = arith.mulf %140, %114 : vector<16x16xf32>
    %142 = arith.addf %108, %141 : vector<16x16xf32>
    %c279 = arith.constant 279 : index
    %143 = memref.load %arg2[%c279] : memref<288xf32, #tpu.memory_space<smem>>
    %144 = vector.broadcast %143 : f32 to vector<16x16xf32>
    %145 = arith.mulf %144, %114 : vector<16x16xf32>
    %146 = arith.addf %112, %145 : vector<16x16xf32>
    %147 = vector.extract_strided_slice %1 {offsets = [0, 0, 1], sizes = [4, 16, 16], strides = [1, 1, 1]} : vector<4x18x18xf32> to vector<4x16x16xf32>
    %148 = vector.extract_strided_slice %147 {offsets = [0, 0, 0], sizes = [1, 16, 16], strides = [1, 1, 1]} : vector<4x16x16xf32> to vector<1x16x16xf32>
    %149 = vector.shape_cast %148 : vector<1x16x16xf32> to vector<16x16xf32>
    %c1 = arith.constant 1 : index
    %150 = memref.load %arg2[%c1] : memref<288xf32, #tpu.memory_space<smem>>
    %151 = vector.broadcast %150 : f32 to vector<16x16xf32>
    %152 = arith.mulf %151, %149 : vector<16x16xf32>
    %153 = arith.addf %118, %152 : vector<16x16xf32>
    %c37 = arith.constant 37 : index
    %154 = memref.load %arg2[%c37] : memref<288xf32, #tpu.memory_space<smem>>
    %155 = vector.broadcast %154 : f32 to vector<16x16xf32>
    %156 = arith.mulf %155, %149 : vector<16x16xf32>
    %157 = arith.addf %122, %156 : vector<16x16xf32>
    %c73 = arith.constant 73 : index
    %158 = memref.load %arg2[%c73] : memref<288xf32, #tpu.memory_space<smem>>
    %159 = vector.broadcast %158 : f32 to vector<16x16xf32>
    %160 = arith.mulf %159, %149 : vector<16x16xf32>
    %161 = arith.addf %126, %160 : vector<16x16xf32>
    %c109 = arith.constant 109 : index
    %162 = memref.load %arg2[%c109] : memref<288xf32, #tpu.memory_space<smem>>
    %163 = vector.broadcast %162 : f32 to vector<16x16xf32>
    %164 = arith.mulf %163, %149 : vector<16x16xf32>
    %165 = arith.addf %130, %164 : vector<16x16xf32>
    %c145 = arith.constant 145 : index
    %166 = memref.load %arg2[%c145] : memref<288xf32, #tpu.memory_space<smem>>
    %167 = vector.broadcast %166 : f32 to vector<16x16xf32>
    %168 = arith.mulf %167, %149 : vector<16x16xf32>
    %169 = arith.addf %134, %168 : vector<16x16xf32>
    %c181 = arith.constant 181 : index
    %170 = memref.load %arg2[%c181] : memref<288xf32, #tpu.memory_space<smem>>
    %171 = vector.broadcast %170 : f32 to vector<16x16xf32>
    %172 = arith.mulf %171, %149 : vector<16x16xf32>
    %173 = arith.addf %138, %172 : vector<16x16xf32>
    %c217 = arith.constant 217 : index
    %174 = memref.load %arg2[%c217] : memref<288xf32, #tpu.memory_space<smem>>
    %175 = vector.broadcast %174 : f32 to vector<16x16xf32>
    %176 = arith.mulf %175, %149 : vector<16x16xf32>
    %177 = arith.addf %142, %176 : vector<16x16xf32>
    %c253 = arith.constant 253 : index
    %178 = memref.load %arg2[%c253] : memref<288xf32, #tpu.memory_space<smem>>
    %179 = vector.broadcast %178 : f32 to vector<16x16xf32>
    %180 = arith.mulf %179, %149 : vector<16x16xf32>
    %181 = arith.addf %146, %180 : vector<16x16xf32>
    %182 = vector.extract_strided_slice %147 {offsets = [1, 0, 0], sizes = [1, 16, 16], strides = [1, 1, 1]} : vector<4x16x16xf32> to vector<1x16x16xf32>
    %183 = vector.shape_cast %182 : vector<1x16x16xf32> to vector<16x16xf32>
    %c10 = arith.constant 10 : index
    %184 = memref.load %arg2[%c10] : memref<288xf32, #tpu.memory_space<smem>>
    %185 = vector.broadcast %184 : f32 to vector<16x16xf32>
    %186 = arith.mulf %185, %183 : vector<16x16xf32>
    %187 = arith.addf %153, %186 : vector<16x16xf32>
    %c46 = arith.constant 46 : index
    %188 = memref.load %arg2[%c46] : memref<288xf32, #tpu.memory_space<smem>>
    %189 = vector.broadcast %188 : f32 to vector<16x16xf32>
    %190 = arith.mulf %189, %183 : vector<16x16xf32>
    %191 = arith.addf %157, %190 : vector<16x16xf32>
    %c82 = arith.constant 82 : index
    %192 = memref.load %arg2[%c82] : memref<288xf32, #tpu.memory_space<smem>>
    %193 = vector.broadcast %192 : f32 to vector<16x16xf32>
    %194 = arith.mulf %193, %183 : vector<16x16xf32>
    %195 = arith.addf %161, %194 : vector<16x16xf32>
    %c118 = arith.constant 118 : index
    %196 = memref.load %arg2[%c118] : memref<288xf32, #tpu.memory_space<smem>>
    %197 = vector.broadcast %196 : f32 to vector<16x16xf32>
    %198 = arith.mulf %197, %183 : vector<16x16xf32>
    %199 = arith.addf %165, %198 : vector<16x16xf32>
    %c154 = arith.constant 154 : index
    %200 = memref.load %arg2[%c154] : memref<288xf32, #tpu.memory_space<smem>>
    %201 = vector.broadcast %200 : f32 to vector<16x16xf32>
    %202 = arith.mulf %201, %183 : vector<16x16xf32>
    %203 = arith.addf %169, %202 : vector<16x16xf32>
    %c190 = arith.constant 190 : index
    %204 = memref.load %arg2[%c190] : memref<288xf32, #tpu.memory_space<smem>>
    %205 = vector.broadcast %204 : f32 to vector<16x16xf32>
    %206 = arith.mulf %205, %183 : vector<16x16xf32>
    %207 = arith.addf %173, %206 : vector<16x16xf32>
    %c226 = arith.constant 226 : index
    %208 = memref.load %arg2[%c226] : memref<288xf32, #tpu.memory_space<smem>>
    %209 = vector.broadcast %208 : f32 to vector<16x16xf32>
    %210 = arith.mulf %209, %183 : vector<16x16xf32>
    %211 = arith.addf %177, %210 : vector<16x16xf32>
    %c262 = arith.constant 262 : index
    %212 = memref.load %arg2[%c262] : memref<288xf32, #tpu.memory_space<smem>>
    %213 = vector.broadcast %212 : f32 to vector<16x16xf32>
    %214 = arith.mulf %213, %183 : vector<16x16xf32>
    %215 = arith.addf %181, %214 : vector<16x16xf32>
    %216 = vector.extract_strided_slice %147 {offsets = [2, 0, 0], sizes = [1, 16, 16], strides = [1, 1, 1]} : vector<4x16x16xf32> to vector<1x16x16xf32>
    %217 = vector.shape_cast %216 : vector<1x16x16xf32> to vector<16x16xf32>
    %c19 = arith.constant 19 : index
    %218 = memref.load %arg2[%c19] : memref<288xf32, #tpu.memory_space<smem>>
    %219 = vector.broadcast %218 : f32 to vector<16x16xf32>
    %220 = arith.mulf %219, %217 : vector<16x16xf32>
    %221 = arith.addf %187, %220 : vector<16x16xf32>
    %c55 = arith.constant 55 : index
    %222 = memref.load %arg2[%c55] : memref<288xf32, #tpu.memory_space<smem>>
    %223 = vector.broadcast %222 : f32 to vector<16x16xf32>
    %224 = arith.mulf %223, %217 : vector<16x16xf32>
    %225 = arith.addf %191, %224 : vector<16x16xf32>
    %c91 = arith.constant 91 : index
    %226 = memref.load %arg2[%c91] : memref<288xf32, #tpu.memory_space<smem>>
    %227 = vector.broadcast %226 : f32 to vector<16x16xf32>
    %228 = arith.mulf %227, %217 : vector<16x16xf32>
    %229 = arith.addf %195, %228 : vector<16x16xf32>
    %c127 = arith.constant 127 : index
    %230 = memref.load %arg2[%c127] : memref<288xf32, #tpu.memory_space<smem>>
    %231 = vector.broadcast %230 : f32 to vector<16x16xf32>
    %232 = arith.mulf %231, %217 : vector<16x16xf32>
    %233 = arith.addf %199, %232 : vector<16x16xf32>
    %c163 = arith.constant 163 : index
    %234 = memref.load %arg2[%c163] : memref<288xf32, #tpu.memory_space<smem>>
    %235 = vector.broadcast %234 : f32 to vector<16x16xf32>
    %236 = arith.mulf %235, %217 : vector<16x16xf32>
    %237 = arith.addf %203, %236 : vector<16x16xf32>
    %c199 = arith.constant 199 : index
    %238 = memref.load %arg2[%c199] : memref<288xf32, #tpu.memory_space<smem>>
    %239 = vector.broadcast %238 : f32 to vector<16x16xf32>
    %240 = arith.mulf %239, %217 : vector<16x16xf32>
    %241 = arith.addf %207, %240 : vector<16x16xf32>
    %c235 = arith.constant 235 : index
    %242 = memref.load %arg2[%c235] : memref<288xf32, #tpu.memory_space<smem>>
    %243 = vector.broadcast %242 : f32 to vector<16x16xf32>
    %244 = arith.mulf %243, %217 : vector<16x16xf32>
    %245 = arith.addf %211, %244 : vector<16x16xf32>
    %c271 = arith.constant 271 : index
    %246 = memref.load %arg2[%c271] : memref<288xf32, #tpu.memory_space<smem>>
    %247 = vector.broadcast %246 : f32 to vector<16x16xf32>
    %248 = arith.mulf %247, %217 : vector<16x16xf32>
    %249 = arith.addf %215, %248 : vector<16x16xf32>
    %250 = vector.extract_strided_slice %147 {offsets = [3, 0, 0], sizes = [1, 16, 16], strides = [1, 1, 1]} : vector<4x16x16xf32> to vector<1x16x16xf32>
    %251 = vector.shape_cast %250 : vector<1x16x16xf32> to vector<16x16xf32>
    %c28 = arith.constant 28 : index
    %252 = memref.load %arg2[%c28] : memref<288xf32, #tpu.memory_space<smem>>
    %253 = vector.broadcast %252 : f32 to vector<16x16xf32>
    %254 = arith.mulf %253, %251 : vector<16x16xf32>
    %255 = arith.addf %221, %254 : vector<16x16xf32>
    %c64 = arith.constant 64 : index
    %256 = memref.load %arg2[%c64] : memref<288xf32, #tpu.memory_space<smem>>
    %257 = vector.broadcast %256 : f32 to vector<16x16xf32>
    %258 = arith.mulf %257, %251 : vector<16x16xf32>
    %259 = arith.addf %225, %258 : vector<16x16xf32>
    %c100 = arith.constant 100 : index
    %260 = memref.load %arg2[%c100] : memref<288xf32, #tpu.memory_space<smem>>
    %261 = vector.broadcast %260 : f32 to vector<16x16xf32>
    %262 = arith.mulf %261, %251 : vector<16x16xf32>
    %263 = arith.addf %229, %262 : vector<16x16xf32>
    %c136 = arith.constant 136 : index
    %264 = memref.load %arg2[%c136] : memref<288xf32, #tpu.memory_space<smem>>
    %265 = vector.broadcast %264 : f32 to vector<16x16xf32>
    %266 = arith.mulf %265, %251 : vector<16x16xf32>
    %267 = arith.addf %233, %266 : vector<16x16xf32>
    %c172 = arith.constant 172 : index
    %268 = memref.load %arg2[%c172] : memref<288xf32, #tpu.memory_space<smem>>
    %269 = vector.broadcast %268 : f32 to vector<16x16xf32>
    %270 = arith.mulf %269, %251 : vector<16x16xf32>
    %271 = arith.addf %237, %270 : vector<16x16xf32>
    %c208 = arith.constant 208 : index
    %272 = memref.load %arg2[%c208] : memref<288xf32, #tpu.memory_space<smem>>
    %273 = vector.broadcast %272 : f32 to vector<16x16xf32>
    %274 = arith.mulf %273, %251 : vector<16x16xf32>
    %275 = arith.addf %241, %274 : vector<16x16xf32>
    %c244 = arith.constant 244 : index
    %276 = memref.load %arg2[%c244] : memref<288xf32, #tpu.memory_space<smem>>
    %277 = vector.broadcast %276 : f32 to vector<16x16xf32>
    %278 = arith.mulf %277, %251 : vector<16x16xf32>
    %279 = arith.addf %245, %278 : vector<16x16xf32>
    %c280 = arith.constant 280 : index
    %280 = memref.load %arg2[%c280] : memref<288xf32, #tpu.memory_space<smem>>
    %281 = vector.broadcast %280 : f32 to vector<16x16xf32>
    %282 = arith.mulf %281, %251 : vector<16x16xf32>
    %283 = arith.addf %249, %282 : vector<16x16xf32>
    %284 = vector.extract_strided_slice %1 {offsets = [0, 0, 2], sizes = [4, 16, 16], strides = [1, 1, 1]} : vector<4x18x18xf32> to vector<4x16x16xf32>
    %285 = vector.extract_strided_slice %284 {offsets = [0, 0, 0], sizes = [1, 16, 16], strides = [1, 1, 1]} : vector<4x16x16xf32> to vector<1x16x16xf32>
    %286 = vector.shape_cast %285 : vector<1x16x16xf32> to vector<16x16xf32>
    %c2 = arith.constant 2 : index
    %287 = memref.load %arg2[%c2] : memref<288xf32, #tpu.memory_space<smem>>
    %288 = vector.broadcast %287 : f32 to vector<16x16xf32>
    %289 = arith.mulf %288, %286 : vector<16x16xf32>
    %290 = arith.addf %255, %289 : vector<16x16xf32>
    %c38 = arith.constant 38 : index
    %291 = memref.load %arg2[%c38] : memref<288xf32, #tpu.memory_space<smem>>
    %292 = vector.broadcast %291 : f32 to vector<16x16xf32>
    %293 = arith.mulf %292, %286 : vector<16x16xf32>
    %294 = arith.addf %259, %293 : vector<16x16xf32>
    %c74 = arith.constant 74 : index
    %295 = memref.load %arg2[%c74] : memref<288xf32, #tpu.memory_space<smem>>
    %296 = vector.broadcast %295 : f32 to vector<16x16xf32>
    %297 = arith.mulf %296, %286 : vector<16x16xf32>
    %298 = arith.addf %263, %297 : vector<16x16xf32>
    %c110 = arith.constant 110 : index
    %299 = memref.load %arg2[%c110] : memref<288xf32, #tpu.memory_space<smem>>
    %300 = vector.broadcast %299 : f32 to vector<16x16xf32>
    %301 = arith.mulf %300, %286 : vector<16x16xf32>
    %302 = arith.addf %267, %301 : vector<16x16xf32>
    %c146 = arith.constant 146 : index
    %303 = memref.load %arg2[%c146] : memref<288xf32, #tpu.memory_space<smem>>
    %304 = vector.broadcast %303 : f32 to vector<16x16xf32>
    %305 = arith.mulf %304, %286 : vector<16x16xf32>
    %306 = arith.addf %271, %305 : vector<16x16xf32>
    %c182 = arith.constant 182 : index
    %307 = memref.load %arg2[%c182] : memref<288xf32, #tpu.memory_space<smem>>
    %308 = vector.broadcast %307 : f32 to vector<16x16xf32>
    %309 = arith.mulf %308, %286 : vector<16x16xf32>
    %310 = arith.addf %275, %309 : vector<16x16xf32>
    %c218 = arith.constant 218 : index
    %311 = memref.load %arg2[%c218] : memref<288xf32, #tpu.memory_space<smem>>
    %312 = vector.broadcast %311 : f32 to vector<16x16xf32>
    %313 = arith.mulf %312, %286 : vector<16x16xf32>
    %314 = arith.addf %279, %313 : vector<16x16xf32>
    %c254 = arith.constant 254 : index
    %315 = memref.load %arg2[%c254] : memref<288xf32, #tpu.memory_space<smem>>
    %316 = vector.broadcast %315 : f32 to vector<16x16xf32>
    %317 = arith.mulf %316, %286 : vector<16x16xf32>
    %318 = arith.addf %283, %317 : vector<16x16xf32>
    %319 = vector.extract_strided_slice %284 {offsets = [1, 0, 0], sizes = [1, 16, 16], strides = [1, 1, 1]} : vector<4x16x16xf32> to vector<1x16x16xf32>
    %320 = vector.shape_cast %319 : vector<1x16x16xf32> to vector<16x16xf32>
    %c11 = arith.constant 11 : index
    %321 = memref.load %arg2[%c11] : memref<288xf32, #tpu.memory_space<smem>>
    %322 = vector.broadcast %321 : f32 to vector<16x16xf32>
    %323 = arith.mulf %322, %320 : vector<16x16xf32>
    %324 = arith.addf %290, %323 : vector<16x16xf32>
    %c47 = arith.constant 47 : index
    %325 = memref.load %arg2[%c47] : memref<288xf32, #tpu.memory_space<smem>>
    %326 = vector.broadcast %325 : f32 to vector<16x16xf32>
    %327 = arith.mulf %326, %320 : vector<16x16xf32>
    %328 = arith.addf %294, %327 : vector<16x16xf32>
    %c83 = arith.constant 83 : index
    %329 = memref.load %arg2[%c83] : memref<288xf32, #tpu.memory_space<smem>>
    %330 = vector.broadcast %329 : f32 to vector<16x16xf32>
    %331 = arith.mulf %330, %320 : vector<16x16xf32>
    %332 = arith.addf %298, %331 : vector<16x16xf32>
    %c119 = arith.constant 119 : index
    %333 = memref.load %arg2[%c119] : memref<288xf32, #tpu.memory_space<smem>>
    %334 = vector.broadcast %333 : f32 to vector<16x16xf32>
    %335 = arith.mulf %334, %320 : vector<16x16xf32>
    %336 = arith.addf %302, %335 : vector<16x16xf32>
    %c155 = arith.constant 155 : index
    %337 = memref.load %arg2[%c155] : memref<288xf32, #tpu.memory_space<smem>>
    %338 = vector.broadcast %337 : f32 to vector<16x16xf32>
    %339 = arith.mulf %338, %320 : vector<16x16xf32>
    %340 = arith.addf %306, %339 : vector<16x16xf32>
    %c191 = arith.constant 191 : index
    %341 = memref.load %arg2[%c191] : memref<288xf32, #tpu.memory_space<smem>>
    %342 = vector.broadcast %341 : f32 to vector<16x16xf32>
    %343 = arith.mulf %342, %320 : vector<16x16xf32>
    %344 = arith.addf %310, %343 : vector<16x16xf32>
    %c227 = arith.constant 227 : index
    %345 = memref.load %arg2[%c227] : memref<288xf32, #tpu.memory_space<smem>>
    %346 = vector.broadcast %345 : f32 to vector<16x16xf32>
    %347 = arith.mulf %346, %320 : vector<16x16xf32>
    %348 = arith.addf %314, %347 : vector<16x16xf32>
    %c263 = arith.constant 263 : index
    %349 = memref.load %arg2[%c263] : memref<288xf32, #tpu.memory_space<smem>>
    %350 = vector.broadcast %349 : f32 to vector<16x16xf32>
    %351 = arith.mulf %350, %320 : vector<16x16xf32>
    %352 = arith.addf %318, %351 : vector<16x16xf32>
    %353 = vector.extract_strided_slice %284 {offsets = [2, 0, 0], sizes = [1, 16, 16], strides = [1, 1, 1]} : vector<4x16x16xf32> to vector<1x16x16xf32>
    %354 = vector.shape_cast %353 : vector<1x16x16xf32> to vector<16x16xf32>
    %c20 = arith.constant 20 : index
    %355 = memref.load %arg2[%c20] : memref<288xf32, #tpu.memory_space<smem>>
    %356 = vector.broadcast %355 : f32 to vector<16x16xf32>
    %357 = arith.mulf %356, %354 : vector<16x16xf32>
    %358 = arith.addf %324, %357 : vector<16x16xf32>
    %c56 = arith.constant 56 : index
    %359 = memref.load %arg2[%c56] : memref<288xf32, #tpu.memory_space<smem>>
    %360 = vector.broadcast %359 : f32 to vector<16x16xf32>
    %361 = arith.mulf %360, %354 : vector<16x16xf32>
    %362 = arith.addf %328, %361 : vector<16x16xf32>
    %c92 = arith.constant 92 : index
    %363 = memref.load %arg2[%c92] : memref<288xf32, #tpu.memory_space<smem>>
    %364 = vector.broadcast %363 : f32 to vector<16x16xf32>
    %365 = arith.mulf %364, %354 : vector<16x16xf32>
    %366 = arith.addf %332, %365 : vector<16x16xf32>
    %c128 = arith.constant 128 : index
    %367 = memref.load %arg2[%c128] : memref<288xf32, #tpu.memory_space<smem>>
    %368 = vector.broadcast %367 : f32 to vector<16x16xf32>
    %369 = arith.mulf %368, %354 : vector<16x16xf32>
    %370 = arith.addf %336, %369 : vector<16x16xf32>
    %c164 = arith.constant 164 : index
    %371 = memref.load %arg2[%c164] : memref<288xf32, #tpu.memory_space<smem>>
    %372 = vector.broadcast %371 : f32 to vector<16x16xf32>
    %373 = arith.mulf %372, %354 : vector<16x16xf32>
    %374 = arith.addf %340, %373 : vector<16x16xf32>
    %c200 = arith.constant 200 : index
    %375 = memref.load %arg2[%c200] : memref<288xf32, #tpu.memory_space<smem>>
    %376 = vector.broadcast %375 : f32 to vector<16x16xf32>
    %377 = arith.mulf %376, %354 : vector<16x16xf32>
    %378 = arith.addf %344, %377 : vector<16x16xf32>
    %c236 = arith.constant 236 : index
    %379 = memref.load %arg2[%c236] : memref<288xf32, #tpu.memory_space<smem>>
    %380 = vector.broadcast %379 : f32 to vector<16x16xf32>
    %381 = arith.mulf %380, %354 : vector<16x16xf32>
    %382 = arith.addf %348, %381 : vector<16x16xf32>
    %c272 = arith.constant 272 : index
    %383 = memref.load %arg2[%c272] : memref<288xf32, #tpu.memory_space<smem>>
    %384 = vector.broadcast %383 : f32 to vector<16x16xf32>
    %385 = arith.mulf %384, %354 : vector<16x16xf32>
    %386 = arith.addf %352, %385 : vector<16x16xf32>
    %387 = vector.extract_strided_slice %284 {offsets = [3, 0, 0], sizes = [1, 16, 16], strides = [1, 1, 1]} : vector<4x16x16xf32> to vector<1x16x16xf32>
    %388 = vector.shape_cast %387 : vector<1x16x16xf32> to vector<16x16xf32>
    %c29 = arith.constant 29 : index
    %389 = memref.load %arg2[%c29] : memref<288xf32, #tpu.memory_space<smem>>
    %390 = vector.broadcast %389 : f32 to vector<16x16xf32>
    %391 = arith.mulf %390, %388 : vector<16x16xf32>
    %392 = arith.addf %358, %391 : vector<16x16xf32>
    %c65 = arith.constant 65 : index
    %393 = memref.load %arg2[%c65] : memref<288xf32, #tpu.memory_space<smem>>
    %394 = vector.broadcast %393 : f32 to vector<16x16xf32>
    %395 = arith.mulf %394, %388 : vector<16x16xf32>
    %396 = arith.addf %362, %395 : vector<16x16xf32>
    %c101 = arith.constant 101 : index
    %397 = memref.load %arg2[%c101] : memref<288xf32, #tpu.memory_space<smem>>
    %398 = vector.broadcast %397 : f32 to vector<16x16xf32>
    %399 = arith.mulf %398, %388 : vector<16x16xf32>
    %400 = arith.addf %366, %399 : vector<16x16xf32>
    %c137 = arith.constant 137 : index
    %401 = memref.load %arg2[%c137] : memref<288xf32, #tpu.memory_space<smem>>
    %402 = vector.broadcast %401 : f32 to vector<16x16xf32>
    %403 = arith.mulf %402, %388 : vector<16x16xf32>
    %404 = arith.addf %370, %403 : vector<16x16xf32>
    %c173 = arith.constant 173 : index
    %405 = memref.load %arg2[%c173] : memref<288xf32, #tpu.memory_space<smem>>
    %406 = vector.broadcast %405 : f32 to vector<16x16xf32>
    %407 = arith.mulf %406, %388 : vector<16x16xf32>
    %408 = arith.addf %374, %407 : vector<16x16xf32>
    %c209 = arith.constant 209 : index
    %409 = memref.load %arg2[%c209] : memref<288xf32, #tpu.memory_space<smem>>
    %410 = vector.broadcast %409 : f32 to vector<16x16xf32>
    %411 = arith.mulf %410, %388 : vector<16x16xf32>
    %412 = arith.addf %378, %411 : vector<16x16xf32>
    %c245 = arith.constant 245 : index
    %413 = memref.load %arg2[%c245] : memref<288xf32, #tpu.memory_space<smem>>
    %414 = vector.broadcast %413 : f32 to vector<16x16xf32>
    %415 = arith.mulf %414, %388 : vector<16x16xf32>
    %416 = arith.addf %382, %415 : vector<16x16xf32>
    %c281 = arith.constant 281 : index
    %417 = memref.load %arg2[%c281] : memref<288xf32, #tpu.memory_space<smem>>
    %418 = vector.broadcast %417 : f32 to vector<16x16xf32>
    %419 = arith.mulf %418, %388 : vector<16x16xf32>
    %420 = arith.addf %386, %419 : vector<16x16xf32>
    %421 = vector.extract_strided_slice %1 {offsets = [0, 1, 0], sizes = [4, 16, 16], strides = [1, 1, 1]} : vector<4x18x18xf32> to vector<4x16x16xf32>
    %422 = vector.extract_strided_slice %421 {offsets = [0, 0, 0], sizes = [1, 16, 16], strides = [1, 1, 1]} : vector<4x16x16xf32> to vector<1x16x16xf32>
    %423 = vector.shape_cast %422 : vector<1x16x16xf32> to vector<16x16xf32>
    %c3 = arith.constant 3 : index
    %424 = memref.load %arg2[%c3] : memref<288xf32, #tpu.memory_space<smem>>
    %425 = vector.broadcast %424 : f32 to vector<16x16xf32>
    %426 = arith.mulf %425, %423 : vector<16x16xf32>
    %427 = arith.addf %392, %426 : vector<16x16xf32>
    %c39 = arith.constant 39 : index
    %428 = memref.load %arg2[%c39] : memref<288xf32, #tpu.memory_space<smem>>
    %429 = vector.broadcast %428 : f32 to vector<16x16xf32>
    %430 = arith.mulf %429, %423 : vector<16x16xf32>
    %431 = arith.addf %396, %430 : vector<16x16xf32>
    %c75 = arith.constant 75 : index
    %432 = memref.load %arg2[%c75] : memref<288xf32, #tpu.memory_space<smem>>
    %433 = vector.broadcast %432 : f32 to vector<16x16xf32>
    %434 = arith.mulf %433, %423 : vector<16x16xf32>
    %435 = arith.addf %400, %434 : vector<16x16xf32>
    %c111 = arith.constant 111 : index
    %436 = memref.load %arg2[%c111] : memref<288xf32, #tpu.memory_space<smem>>
    %437 = vector.broadcast %436 : f32 to vector<16x16xf32>
    %438 = arith.mulf %437, %423 : vector<16x16xf32>
    %439 = arith.addf %404, %438 : vector<16x16xf32>
    %c147 = arith.constant 147 : index
    %440 = memref.load %arg2[%c147] : memref<288xf32, #tpu.memory_space<smem>>
    %441 = vector.broadcast %440 : f32 to vector<16x16xf32>
    %442 = arith.mulf %441, %423 : vector<16x16xf32>
    %443 = arith.addf %408, %442 : vector<16x16xf32>
    %c183 = arith.constant 183 : index
    %444 = memref.load %arg2[%c183] : memref<288xf32, #tpu.memory_space<smem>>
    %445 = vector.broadcast %444 : f32 to vector<16x16xf32>
    %446 = arith.mulf %445, %423 : vector<16x16xf32>
    %447 = arith.addf %412, %446 : vector<16x16xf32>
    %c219 = arith.constant 219 : index
    %448 = memref.load %arg2[%c219] : memref<288xf32, #tpu.memory_space<smem>>
    %449 = vector.broadcast %448 : f32 to vector<16x16xf32>
    %450 = arith.mulf %449, %423 : vector<16x16xf32>
    %451 = arith.addf %416, %450 : vector<16x16xf32>
    %c255 = arith.constant 255 : index
    %452 = memref.load %arg2[%c255] : memref<288xf32, #tpu.memory_space<smem>>
    %453 = vector.broadcast %452 : f32 to vector<16x16xf32>
    %454 = arith.mulf %453, %423 : vector<16x16xf32>
    %455 = arith.addf %420, %454 : vector<16x16xf32>
    %456 = vector.extract_strided_slice %421 {offsets = [1, 0, 0], sizes = [1, 16, 16], strides = [1, 1, 1]} : vector<4x16x16xf32> to vector<1x16x16xf32>
    %457 = vector.shape_cast %456 : vector<1x16x16xf32> to vector<16x16xf32>
    %c12 = arith.constant 12 : index
    %458 = memref.load %arg2[%c12] : memref<288xf32, #tpu.memory_space<smem>>
    %459 = vector.broadcast %458 : f32 to vector<16x16xf32>
    %460 = arith.mulf %459, %457 : vector<16x16xf32>
    %461 = arith.addf %427, %460 : vector<16x16xf32>
    %c48 = arith.constant 48 : index
    %462 = memref.load %arg2[%c48] : memref<288xf32, #tpu.memory_space<smem>>
    %463 = vector.broadcast %462 : f32 to vector<16x16xf32>
    %464 = arith.mulf %463, %457 : vector<16x16xf32>
    %465 = arith.addf %431, %464 : vector<16x16xf32>
    %c84 = arith.constant 84 : index
    %466 = memref.load %arg2[%c84] : memref<288xf32, #tpu.memory_space<smem>>
    %467 = vector.broadcast %466 : f32 to vector<16x16xf32>
    %468 = arith.mulf %467, %457 : vector<16x16xf32>
    %469 = arith.addf %435, %468 : vector<16x16xf32>
    %c120 = arith.constant 120 : index
    %470 = memref.load %arg2[%c120] : memref<288xf32, #tpu.memory_space<smem>>
    %471 = vector.broadcast %470 : f32 to vector<16x16xf32>
    %472 = arith.mulf %471, %457 : vector<16x16xf32>
    %473 = arith.addf %439, %472 : vector<16x16xf32>
    %c156 = arith.constant 156 : index
    %474 = memref.load %arg2[%c156] : memref<288xf32, #tpu.memory_space<smem>>
    %475 = vector.broadcast %474 : f32 to vector<16x16xf32>
    %476 = arith.mulf %475, %457 : vector<16x16xf32>
    %477 = arith.addf %443, %476 : vector<16x16xf32>
    %c192 = arith.constant 192 : index
    %478 = memref.load %arg2[%c192] : memref<288xf32, #tpu.memory_space<smem>>
    %479 = vector.broadcast %478 : f32 to vector<16x16xf32>
    %480 = arith.mulf %479, %457 : vector<16x16xf32>
    %481 = arith.addf %447, %480 : vector<16x16xf32>
    %c228 = arith.constant 228 : index
    %482 = memref.load %arg2[%c228] : memref<288xf32, #tpu.memory_space<smem>>
    %483 = vector.broadcast %482 : f32 to vector<16x16xf32>
    %484 = arith.mulf %483, %457 : vector<16x16xf32>
    %485 = arith.addf %451, %484 : vector<16x16xf32>
    %c264 = arith.constant 264 : index
    %486 = memref.load %arg2[%c264] : memref<288xf32, #tpu.memory_space<smem>>
    %487 = vector.broadcast %486 : f32 to vector<16x16xf32>
    %488 = arith.mulf %487, %457 : vector<16x16xf32>
    %489 = arith.addf %455, %488 : vector<16x16xf32>
    %490 = vector.extract_strided_slice %421 {offsets = [2, 0, 0], sizes = [1, 16, 16], strides = [1, 1, 1]} : vector<4x16x16xf32> to vector<1x16x16xf32>
    %491 = vector.shape_cast %490 : vector<1x16x16xf32> to vector<16x16xf32>
    %c21 = arith.constant 21 : index
    %492 = memref.load %arg2[%c21] : memref<288xf32, #tpu.memory_space<smem>>
    %493 = vector.broadcast %492 : f32 to vector<16x16xf32>
    %494 = arith.mulf %493, %491 : vector<16x16xf32>
    %495 = arith.addf %461, %494 : vector<16x16xf32>
    %c57 = arith.constant 57 : index
    %496 = memref.load %arg2[%c57] : memref<288xf32, #tpu.memory_space<smem>>
    %497 = vector.broadcast %496 : f32 to vector<16x16xf32>
    %498 = arith.mulf %497, %491 : vector<16x16xf32>
    %499 = arith.addf %465, %498 : vector<16x16xf32>
    %c93 = arith.constant 93 : index
    %500 = memref.load %arg2[%c93] : memref<288xf32, #tpu.memory_space<smem>>
    %501 = vector.broadcast %500 : f32 to vector<16x16xf32>
    %502 = arith.mulf %501, %491 : vector<16x16xf32>
    %503 = arith.addf %469, %502 : vector<16x16xf32>
    %c129 = arith.constant 129 : index
    %504 = memref.load %arg2[%c129] : memref<288xf32, #tpu.memory_space<smem>>
    %505 = vector.broadcast %504 : f32 to vector<16x16xf32>
    %506 = arith.mulf %505, %491 : vector<16x16xf32>
    %507 = arith.addf %473, %506 : vector<16x16xf32>
    %c165 = arith.constant 165 : index
    %508 = memref.load %arg2[%c165] : memref<288xf32, #tpu.memory_space<smem>>
    %509 = vector.broadcast %508 : f32 to vector<16x16xf32>
    %510 = arith.mulf %509, %491 : vector<16x16xf32>
    %511 = arith.addf %477, %510 : vector<16x16xf32>
    %c201 = arith.constant 201 : index
    %512 = memref.load %arg2[%c201] : memref<288xf32, #tpu.memory_space<smem>>
    %513 = vector.broadcast %512 : f32 to vector<16x16xf32>
    %514 = arith.mulf %513, %491 : vector<16x16xf32>
    %515 = arith.addf %481, %514 : vector<16x16xf32>
    %c237 = arith.constant 237 : index
    %516 = memref.load %arg2[%c237] : memref<288xf32, #tpu.memory_space<smem>>
    %517 = vector.broadcast %516 : f32 to vector<16x16xf32>
    %518 = arith.mulf %517, %491 : vector<16x16xf32>
    %519 = arith.addf %485, %518 : vector<16x16xf32>
    %c273 = arith.constant 273 : index
    %520 = memref.load %arg2[%c273] : memref<288xf32, #tpu.memory_space<smem>>
    %521 = vector.broadcast %520 : f32 to vector<16x16xf32>
    %522 = arith.mulf %521, %491 : vector<16x16xf32>
    %523 = arith.addf %489, %522 : vector<16x16xf32>
    %524 = vector.extract_strided_slice %421 {offsets = [3, 0, 0], sizes = [1, 16, 16], strides = [1, 1, 1]} : vector<4x16x16xf32> to vector<1x16x16xf32>
    %525 = vector.shape_cast %524 : vector<1x16x16xf32> to vector<16x16xf32>
    %c30 = arith.constant 30 : index
    %526 = memref.load %arg2[%c30] : memref<288xf32, #tpu.memory_space<smem>>
    %527 = vector.broadcast %526 : f32 to vector<16x16xf32>
    %528 = arith.mulf %527, %525 : vector<16x16xf32>
    %529 = arith.addf %495, %528 : vector<16x16xf32>
    %c66 = arith.constant 66 : index
    %530 = memref.load %arg2[%c66] : memref<288xf32, #tpu.memory_space<smem>>
    %531 = vector.broadcast %530 : f32 to vector<16x16xf32>
    %532 = arith.mulf %531, %525 : vector<16x16xf32>
    %533 = arith.addf %499, %532 : vector<16x16xf32>
    %c102 = arith.constant 102 : index
    %534 = memref.load %arg2[%c102] : memref<288xf32, #tpu.memory_space<smem>>
    %535 = vector.broadcast %534 : f32 to vector<16x16xf32>
    %536 = arith.mulf %535, %525 : vector<16x16xf32>
    %537 = arith.addf %503, %536 : vector<16x16xf32>
    %c138 = arith.constant 138 : index
    %538 = memref.load %arg2[%c138] : memref<288xf32, #tpu.memory_space<smem>>
    %539 = vector.broadcast %538 : f32 to vector<16x16xf32>
    %540 = arith.mulf %539, %525 : vector<16x16xf32>
    %541 = arith.addf %507, %540 : vector<16x16xf32>
    %c174 = arith.constant 174 : index
    %542 = memref.load %arg2[%c174] : memref<288xf32, #tpu.memory_space<smem>>
    %543 = vector.broadcast %542 : f32 to vector<16x16xf32>
    %544 = arith.mulf %543, %525 : vector<16x16xf32>
    %545 = arith.addf %511, %544 : vector<16x16xf32>
    %c210 = arith.constant 210 : index
    %546 = memref.load %arg2[%c210] : memref<288xf32, #tpu.memory_space<smem>>
    %547 = vector.broadcast %546 : f32 to vector<16x16xf32>
    %548 = arith.mulf %547, %525 : vector<16x16xf32>
    %549 = arith.addf %515, %548 : vector<16x16xf32>
    %c246 = arith.constant 246 : index
    %550 = memref.load %arg2[%c246] : memref<288xf32, #tpu.memory_space<smem>>
    %551 = vector.broadcast %550 : f32 to vector<16x16xf32>
    %552 = arith.mulf %551, %525 : vector<16x16xf32>
    %553 = arith.addf %519, %552 : vector<16x16xf32>
    %c282 = arith.constant 282 : index
    %554 = memref.load %arg2[%c282] : memref<288xf32, #tpu.memory_space<smem>>
    %555 = vector.broadcast %554 : f32 to vector<16x16xf32>
    %556 = arith.mulf %555, %525 : vector<16x16xf32>
    %557 = arith.addf %523, %556 : vector<16x16xf32>
    %558 = vector.extract_strided_slice %1 {offsets = [0, 1, 1], sizes = [4, 16, 16], strides = [1, 1, 1]} : vector<4x18x18xf32> to vector<4x16x16xf32>
    %559 = vector.extract_strided_slice %558 {offsets = [0, 0, 0], sizes = [1, 16, 16], strides = [1, 1, 1]} : vector<4x16x16xf32> to vector<1x16x16xf32>
    %560 = vector.shape_cast %559 : vector<1x16x16xf32> to vector<16x16xf32>
    %c4 = arith.constant 4 : index
    %561 = memref.load %arg2[%c4] : memref<288xf32, #tpu.memory_space<smem>>
    %562 = vector.broadcast %561 : f32 to vector<16x16xf32>
    %563 = arith.mulf %562, %560 : vector<16x16xf32>
    %564 = arith.addf %529, %563 : vector<16x16xf32>
    %c40 = arith.constant 40 : index
    %565 = memref.load %arg2[%c40] : memref<288xf32, #tpu.memory_space<smem>>
    %566 = vector.broadcast %565 : f32 to vector<16x16xf32>
    %567 = arith.mulf %566, %560 : vector<16x16xf32>
    %568 = arith.addf %533, %567 : vector<16x16xf32>
    %c76 = arith.constant 76 : index
    %569 = memref.load %arg2[%c76] : memref<288xf32, #tpu.memory_space<smem>>
    %570 = vector.broadcast %569 : f32 to vector<16x16xf32>
    %571 = arith.mulf %570, %560 : vector<16x16xf32>
    %572 = arith.addf %537, %571 : vector<16x16xf32>
    %c112 = arith.constant 112 : index
    %573 = memref.load %arg2[%c112] : memref<288xf32, #tpu.memory_space<smem>>
    %574 = vector.broadcast %573 : f32 to vector<16x16xf32>
    %575 = arith.mulf %574, %560 : vector<16x16xf32>
    %576 = arith.addf %541, %575 : vector<16x16xf32>
    %c148 = arith.constant 148 : index
    %577 = memref.load %arg2[%c148] : memref<288xf32, #tpu.memory_space<smem>>
    %578 = vector.broadcast %577 : f32 to vector<16x16xf32>
    %579 = arith.mulf %578, %560 : vector<16x16xf32>
    %580 = arith.addf %545, %579 : vector<16x16xf32>
    %c184 = arith.constant 184 : index
    %581 = memref.load %arg2[%c184] : memref<288xf32, #tpu.memory_space<smem>>
    %582 = vector.broadcast %581 : f32 to vector<16x16xf32>
    %583 = arith.mulf %582, %560 : vector<16x16xf32>
    %584 = arith.addf %549, %583 : vector<16x16xf32>
    %c220 = arith.constant 220 : index
    %585 = memref.load %arg2[%c220] : memref<288xf32, #tpu.memory_space<smem>>
    %586 = vector.broadcast %585 : f32 to vector<16x16xf32>
    %587 = arith.mulf %586, %560 : vector<16x16xf32>
    %588 = arith.addf %553, %587 : vector<16x16xf32>
    %c256 = arith.constant 256 : index
    %589 = memref.load %arg2[%c256] : memref<288xf32, #tpu.memory_space<smem>>
    %590 = vector.broadcast %589 : f32 to vector<16x16xf32>
    %591 = arith.mulf %590, %560 : vector<16x16xf32>
    %592 = arith.addf %557, %591 : vector<16x16xf32>
    %593 = vector.extract_strided_slice %558 {offsets = [1, 0, 0], sizes = [1, 16, 16], strides = [1, 1, 1]} : vector<4x16x16xf32> to vector<1x16x16xf32>
    %594 = vector.shape_cast %593 : vector<1x16x16xf32> to vector<16x16xf32>
    %c13 = arith.constant 13 : index
    %595 = memref.load %arg2[%c13] : memref<288xf32, #tpu.memory_space<smem>>
    %596 = vector.broadcast %595 : f32 to vector<16x16xf32>
    %597 = arith.mulf %596, %594 : vector<16x16xf32>
    %598 = arith.addf %564, %597 : vector<16x16xf32>
    %c49 = arith.constant 49 : index
    %599 = memref.load %arg2[%c49] : memref<288xf32, #tpu.memory_space<smem>>
    %600 = vector.broadcast %599 : f32 to vector<16x16xf32>
    %601 = arith.mulf %600, %594 : vector<16x16xf32>
    %602 = arith.addf %568, %601 : vector<16x16xf32>
    %c85 = arith.constant 85 : index
    %603 = memref.load %arg2[%c85] : memref<288xf32, #tpu.memory_space<smem>>
    %604 = vector.broadcast %603 : f32 to vector<16x16xf32>
    %605 = arith.mulf %604, %594 : vector<16x16xf32>
    %606 = arith.addf %572, %605 : vector<16x16xf32>
    %c121 = arith.constant 121 : index
    %607 = memref.load %arg2[%c121] : memref<288xf32, #tpu.memory_space<smem>>
    %608 = vector.broadcast %607 : f32 to vector<16x16xf32>
    %609 = arith.mulf %608, %594 : vector<16x16xf32>
    %610 = arith.addf %576, %609 : vector<16x16xf32>
    %c157 = arith.constant 157 : index
    %611 = memref.load %arg2[%c157] : memref<288xf32, #tpu.memory_space<smem>>
    %612 = vector.broadcast %611 : f32 to vector<16x16xf32>
    %613 = arith.mulf %612, %594 : vector<16x16xf32>
    %614 = arith.addf %580, %613 : vector<16x16xf32>
    %c193 = arith.constant 193 : index
    %615 = memref.load %arg2[%c193] : memref<288xf32, #tpu.memory_space<smem>>
    %616 = vector.broadcast %615 : f32 to vector<16x16xf32>
    %617 = arith.mulf %616, %594 : vector<16x16xf32>
    %618 = arith.addf %584, %617 : vector<16x16xf32>
    %c229 = arith.constant 229 : index
    %619 = memref.load %arg2[%c229] : memref<288xf32, #tpu.memory_space<smem>>
    %620 = vector.broadcast %619 : f32 to vector<16x16xf32>
    %621 = arith.mulf %620, %594 : vector<16x16xf32>
    %622 = arith.addf %588, %621 : vector<16x16xf32>
    %c265 = arith.constant 265 : index
    %623 = memref.load %arg2[%c265] : memref<288xf32, #tpu.memory_space<smem>>
    %624 = vector.broadcast %623 : f32 to vector<16x16xf32>
    %625 = arith.mulf %624, %594 : vector<16x16xf32>
    %626 = arith.addf %592, %625 : vector<16x16xf32>
    %627 = vector.extract_strided_slice %558 {offsets = [2, 0, 0], sizes = [1, 16, 16], strides = [1, 1, 1]} : vector<4x16x16xf32> to vector<1x16x16xf32>
    %628 = vector.shape_cast %627 : vector<1x16x16xf32> to vector<16x16xf32>
    %c22 = arith.constant 22 : index
    %629 = memref.load %arg2[%c22] : memref<288xf32, #tpu.memory_space<smem>>
    %630 = vector.broadcast %629 : f32 to vector<16x16xf32>
    %631 = arith.mulf %630, %628 : vector<16x16xf32>
    %632 = arith.addf %598, %631 : vector<16x16xf32>
    %c58 = arith.constant 58 : index
    %633 = memref.load %arg2[%c58] : memref<288xf32, #tpu.memory_space<smem>>
    %634 = vector.broadcast %633 : f32 to vector<16x16xf32>
    %635 = arith.mulf %634, %628 : vector<16x16xf32>
    %636 = arith.addf %602, %635 : vector<16x16xf32>
    %c94 = arith.constant 94 : index
    %637 = memref.load %arg2[%c94] : memref<288xf32, #tpu.memory_space<smem>>
    %638 = vector.broadcast %637 : f32 to vector<16x16xf32>
    %639 = arith.mulf %638, %628 : vector<16x16xf32>
    %640 = arith.addf %606, %639 : vector<16x16xf32>
    %c130 = arith.constant 130 : index
    %641 = memref.load %arg2[%c130] : memref<288xf32, #tpu.memory_space<smem>>
    %642 = vector.broadcast %641 : f32 to vector<16x16xf32>
    %643 = arith.mulf %642, %628 : vector<16x16xf32>
    %644 = arith.addf %610, %643 : vector<16x16xf32>
    %c166 = arith.constant 166 : index
    %645 = memref.load %arg2[%c166] : memref<288xf32, #tpu.memory_space<smem>>
    %646 = vector.broadcast %645 : f32 to vector<16x16xf32>
    %647 = arith.mulf %646, %628 : vector<16x16xf32>
    %648 = arith.addf %614, %647 : vector<16x16xf32>
    %c202 = arith.constant 202 : index
    %649 = memref.load %arg2[%c202] : memref<288xf32, #tpu.memory_space<smem>>
    %650 = vector.broadcast %649 : f32 to vector<16x16xf32>
    %651 = arith.mulf %650, %628 : vector<16x16xf32>
    %652 = arith.addf %618, %651 : vector<16x16xf32>
    %c238 = arith.constant 238 : index
    %653 = memref.load %arg2[%c238] : memref<288xf32, #tpu.memory_space<smem>>
    %654 = vector.broadcast %653 : f32 to vector<16x16xf32>
    %655 = arith.mulf %654, %628 : vector<16x16xf32>
    %656 = arith.addf %622, %655 : vector<16x16xf32>
    %c274 = arith.constant 274 : index
    %657 = memref.load %arg2[%c274] : memref<288xf32, #tpu.memory_space<smem>>
    %658 = vector.broadcast %657 : f32 to vector<16x16xf32>
    %659 = arith.mulf %658, %628 : vector<16x16xf32>
    %660 = arith.addf %626, %659 : vector<16x16xf32>
    %661 = vector.extract_strided_slice %558 {offsets = [3, 0, 0], sizes = [1, 16, 16], strides = [1, 1, 1]} : vector<4x16x16xf32> to vector<1x16x16xf32>
    %662 = vector.shape_cast %661 : vector<1x16x16xf32> to vector<16x16xf32>
    %c31 = arith.constant 31 : index
    %663 = memref.load %arg2[%c31] : memref<288xf32, #tpu.memory_space<smem>>
    %664 = vector.broadcast %663 : f32 to vector<16x16xf32>
    %665 = arith.mulf %664, %662 : vector<16x16xf32>
    %666 = arith.addf %632, %665 : vector<16x16xf32>
    %c67 = arith.constant 67 : index
    %667 = memref.load %arg2[%c67] : memref<288xf32, #tpu.memory_space<smem>>
    %668 = vector.broadcast %667 : f32 to vector<16x16xf32>
    %669 = arith.mulf %668, %662 : vector<16x16xf32>
    %670 = arith.addf %636, %669 : vector<16x16xf32>
    %c103 = arith.constant 103 : index
    %671 = memref.load %arg2[%c103] : memref<288xf32, #tpu.memory_space<smem>>
    %672 = vector.broadcast %671 : f32 to vector<16x16xf32>
    %673 = arith.mulf %672, %662 : vector<16x16xf32>
    %674 = arith.addf %640, %673 : vector<16x16xf32>
    %c139 = arith.constant 139 : index
    %675 = memref.load %arg2[%c139] : memref<288xf32, #tpu.memory_space<smem>>
    %676 = vector.broadcast %675 : f32 to vector<16x16xf32>
    %677 = arith.mulf %676, %662 : vector<16x16xf32>
    %678 = arith.addf %644, %677 : vector<16x16xf32>
    %c175 = arith.constant 175 : index
    %679 = memref.load %arg2[%c175] : memref<288xf32, #tpu.memory_space<smem>>
    %680 = vector.broadcast %679 : f32 to vector<16x16xf32>
    %681 = arith.mulf %680, %662 : vector<16x16xf32>
    %682 = arith.addf %648, %681 : vector<16x16xf32>
    %c211 = arith.constant 211 : index
    %683 = memref.load %arg2[%c211] : memref<288xf32, #tpu.memory_space<smem>>
    %684 = vector.broadcast %683 : f32 to vector<16x16xf32>
    %685 = arith.mulf %684, %662 : vector<16x16xf32>
    %686 = arith.addf %652, %685 : vector<16x16xf32>
    %c247 = arith.constant 247 : index
    %687 = memref.load %arg2[%c247] : memref<288xf32, #tpu.memory_space<smem>>
    %688 = vector.broadcast %687 : f32 to vector<16x16xf32>
    %689 = arith.mulf %688, %662 : vector<16x16xf32>
    %690 = arith.addf %656, %689 : vector<16x16xf32>
    %c283 = arith.constant 283 : index
    %691 = memref.load %arg2[%c283] : memref<288xf32, #tpu.memory_space<smem>>
    %692 = vector.broadcast %691 : f32 to vector<16x16xf32>
    %693 = arith.mulf %692, %662 : vector<16x16xf32>
    %694 = arith.addf %660, %693 : vector<16x16xf32>
    %695 = vector.extract_strided_slice %1 {offsets = [0, 1, 2], sizes = [4, 16, 16], strides = [1, 1, 1]} : vector<4x18x18xf32> to vector<4x16x16xf32>
    %696 = vector.extract_strided_slice %695 {offsets = [0, 0, 0], sizes = [1, 16, 16], strides = [1, 1, 1]} : vector<4x16x16xf32> to vector<1x16x16xf32>
    %697 = vector.shape_cast %696 : vector<1x16x16xf32> to vector<16x16xf32>
    %c5 = arith.constant 5 : index
    %698 = memref.load %arg2[%c5] : memref<288xf32, #tpu.memory_space<smem>>
    %699 = vector.broadcast %698 : f32 to vector<16x16xf32>
    %700 = arith.mulf %699, %697 : vector<16x16xf32>
    %701 = arith.addf %666, %700 : vector<16x16xf32>
    %c41 = arith.constant 41 : index
    %702 = memref.load %arg2[%c41] : memref<288xf32, #tpu.memory_space<smem>>
    %703 = vector.broadcast %702 : f32 to vector<16x16xf32>
    %704 = arith.mulf %703, %697 : vector<16x16xf32>
    %705 = arith.addf %670, %704 : vector<16x16xf32>
    %c77 = arith.constant 77 : index
    %706 = memref.load %arg2[%c77] : memref<288xf32, #tpu.memory_space<smem>>
    %707 = vector.broadcast %706 : f32 to vector<16x16xf32>
    %708 = arith.mulf %707, %697 : vector<16x16xf32>
    %709 = arith.addf %674, %708 : vector<16x16xf32>
    %c113 = arith.constant 113 : index
    %710 = memref.load %arg2[%c113] : memref<288xf32, #tpu.memory_space<smem>>
    %711 = vector.broadcast %710 : f32 to vector<16x16xf32>
    %712 = arith.mulf %711, %697 : vector<16x16xf32>
    %713 = arith.addf %678, %712 : vector<16x16xf32>
    %c149 = arith.constant 149 : index
    %714 = memref.load %arg2[%c149] : memref<288xf32, #tpu.memory_space<smem>>
    %715 = vector.broadcast %714 : f32 to vector<16x16xf32>
    %716 = arith.mulf %715, %697 : vector<16x16xf32>
    %717 = arith.addf %682, %716 : vector<16x16xf32>
    %c185 = arith.constant 185 : index
    %718 = memref.load %arg2[%c185] : memref<288xf32, #tpu.memory_space<smem>>
    %719 = vector.broadcast %718 : f32 to vector<16x16xf32>
    %720 = arith.mulf %719, %697 : vector<16x16xf32>
    %721 = arith.addf %686, %720 : vector<16x16xf32>
    %c221 = arith.constant 221 : index
    %722 = memref.load %arg2[%c221] : memref<288xf32, #tpu.memory_space<smem>>
    %723 = vector.broadcast %722 : f32 to vector<16x16xf32>
    %724 = arith.mulf %723, %697 : vector<16x16xf32>
    %725 = arith.addf %690, %724 : vector<16x16xf32>
    %c257 = arith.constant 257 : index
    %726 = memref.load %arg2[%c257] : memref<288xf32, #tpu.memory_space<smem>>
    %727 = vector.broadcast %726 : f32 to vector<16x16xf32>
    %728 = arith.mulf %727, %697 : vector<16x16xf32>
    %729 = arith.addf %694, %728 : vector<16x16xf32>
    %730 = vector.extract_strided_slice %695 {offsets = [1, 0, 0], sizes = [1, 16, 16], strides = [1, 1, 1]} : vector<4x16x16xf32> to vector<1x16x16xf32>
    %731 = vector.shape_cast %730 : vector<1x16x16xf32> to vector<16x16xf32>
    %c14 = arith.constant 14 : index
    %732 = memref.load %arg2[%c14] : memref<288xf32, #tpu.memory_space<smem>>
    %733 = vector.broadcast %732 : f32 to vector<16x16xf32>
    %734 = arith.mulf %733, %731 : vector<16x16xf32>
    %735 = arith.addf %701, %734 : vector<16x16xf32>
    %c50 = arith.constant 50 : index
    %736 = memref.load %arg2[%c50] : memref<288xf32, #tpu.memory_space<smem>>
    %737 = vector.broadcast %736 : f32 to vector<16x16xf32>
    %738 = arith.mulf %737, %731 : vector<16x16xf32>
    %739 = arith.addf %705, %738 : vector<16x16xf32>
    %c86 = arith.constant 86 : index
    %740 = memref.load %arg2[%c86] : memref<288xf32, #tpu.memory_space<smem>>
    %741 = vector.broadcast %740 : f32 to vector<16x16xf32>
    %742 = arith.mulf %741, %731 : vector<16x16xf32>
    %743 = arith.addf %709, %742 : vector<16x16xf32>
    %c122 = arith.constant 122 : index
    %744 = memref.load %arg2[%c122] : memref<288xf32, #tpu.memory_space<smem>>
    %745 = vector.broadcast %744 : f32 to vector<16x16xf32>
    %746 = arith.mulf %745, %731 : vector<16x16xf32>
    %747 = arith.addf %713, %746 : vector<16x16xf32>
    %c158 = arith.constant 158 : index
    %748 = memref.load %arg2[%c158] : memref<288xf32, #tpu.memory_space<smem>>
    %749 = vector.broadcast %748 : f32 to vector<16x16xf32>
    %750 = arith.mulf %749, %731 : vector<16x16xf32>
    %751 = arith.addf %717, %750 : vector<16x16xf32>
    %c194 = arith.constant 194 : index
    %752 = memref.load %arg2[%c194] : memref<288xf32, #tpu.memory_space<smem>>
    %753 = vector.broadcast %752 : f32 to vector<16x16xf32>
    %754 = arith.mulf %753, %731 : vector<16x16xf32>
    %755 = arith.addf %721, %754 : vector<16x16xf32>
    %c230 = arith.constant 230 : index
    %756 = memref.load %arg2[%c230] : memref<288xf32, #tpu.memory_space<smem>>
    %757 = vector.broadcast %756 : f32 to vector<16x16xf32>
    %758 = arith.mulf %757, %731 : vector<16x16xf32>
    %759 = arith.addf %725, %758 : vector<16x16xf32>
    %c266 = arith.constant 266 : index
    %760 = memref.load %arg2[%c266] : memref<288xf32, #tpu.memory_space<smem>>
    %761 = vector.broadcast %760 : f32 to vector<16x16xf32>
    %762 = arith.mulf %761, %731 : vector<16x16xf32>
    %763 = arith.addf %729, %762 : vector<16x16xf32>
    %764 = vector.extract_strided_slice %695 {offsets = [2, 0, 0], sizes = [1, 16, 16], strides = [1, 1, 1]} : vector<4x16x16xf32> to vector<1x16x16xf32>
    %765 = vector.shape_cast %764 : vector<1x16x16xf32> to vector<16x16xf32>
    %c23 = arith.constant 23 : index
    %766 = memref.load %arg2[%c23] : memref<288xf32, #tpu.memory_space<smem>>
    %767 = vector.broadcast %766 : f32 to vector<16x16xf32>
    %768 = arith.mulf %767, %765 : vector<16x16xf32>
    %769 = arith.addf %735, %768 : vector<16x16xf32>
    %c59 = arith.constant 59 : index
    %770 = memref.load %arg2[%c59] : memref<288xf32, #tpu.memory_space<smem>>
    %771 = vector.broadcast %770 : f32 to vector<16x16xf32>
    %772 = arith.mulf %771, %765 : vector<16x16xf32>
    %773 = arith.addf %739, %772 : vector<16x16xf32>
    %c95 = arith.constant 95 : index
    %774 = memref.load %arg2[%c95] : memref<288xf32, #tpu.memory_space<smem>>
    %775 = vector.broadcast %774 : f32 to vector<16x16xf32>
    %776 = arith.mulf %775, %765 : vector<16x16xf32>
    %777 = arith.addf %743, %776 : vector<16x16xf32>
    %c131 = arith.constant 131 : index
    %778 = memref.load %arg2[%c131] : memref<288xf32, #tpu.memory_space<smem>>
    %779 = vector.broadcast %778 : f32 to vector<16x16xf32>
    %780 = arith.mulf %779, %765 : vector<16x16xf32>
    %781 = arith.addf %747, %780 : vector<16x16xf32>
    %c167 = arith.constant 167 : index
    %782 = memref.load %arg2[%c167] : memref<288xf32, #tpu.memory_space<smem>>
    %783 = vector.broadcast %782 : f32 to vector<16x16xf32>
    %784 = arith.mulf %783, %765 : vector<16x16xf32>
    %785 = arith.addf %751, %784 : vector<16x16xf32>
    %c203 = arith.constant 203 : index
    %786 = memref.load %arg2[%c203] : memref<288xf32, #tpu.memory_space<smem>>
    %787 = vector.broadcast %786 : f32 to vector<16x16xf32>
    %788 = arith.mulf %787, %765 : vector<16x16xf32>
    %789 = arith.addf %755, %788 : vector<16x16xf32>
    %c239 = arith.constant 239 : index
    %790 = memref.load %arg2[%c239] : memref<288xf32, #tpu.memory_space<smem>>
    %791 = vector.broadcast %790 : f32 to vector<16x16xf32>
    %792 = arith.mulf %791, %765 : vector<16x16xf32>
    %793 = arith.addf %759, %792 : vector<16x16xf32>
    %c275 = arith.constant 275 : index
    %794 = memref.load %arg2[%c275] : memref<288xf32, #tpu.memory_space<smem>>
    %795 = vector.broadcast %794 : f32 to vector<16x16xf32>
    %796 = arith.mulf %795, %765 : vector<16x16xf32>
    %797 = arith.addf %763, %796 : vector<16x16xf32>
    %798 = vector.extract_strided_slice %695 {offsets = [3, 0, 0], sizes = [1, 16, 16], strides = [1, 1, 1]} : vector<4x16x16xf32> to vector<1x16x16xf32>
    %799 = vector.shape_cast %798 : vector<1x16x16xf32> to vector<16x16xf32>
    %c32 = arith.constant 32 : index
    %800 = memref.load %arg2[%c32] : memref<288xf32, #tpu.memory_space<smem>>
    %801 = vector.broadcast %800 : f32 to vector<16x16xf32>
    %802 = arith.mulf %801, %799 : vector<16x16xf32>
    %803 = arith.addf %769, %802 : vector<16x16xf32>
    %c68 = arith.constant 68 : index
    %804 = memref.load %arg2[%c68] : memref<288xf32, #tpu.memory_space<smem>>
    %805 = vector.broadcast %804 : f32 to vector<16x16xf32>
    %806 = arith.mulf %805, %799 : vector<16x16xf32>
    %807 = arith.addf %773, %806 : vector<16x16xf32>
    %c104 = arith.constant 104 : index
    %808 = memref.load %arg2[%c104] : memref<288xf32, #tpu.memory_space<smem>>
    %809 = vector.broadcast %808 : f32 to vector<16x16xf32>
    %810 = arith.mulf %809, %799 : vector<16x16xf32>
    %811 = arith.addf %777, %810 : vector<16x16xf32>
    %c140 = arith.constant 140 : index
    %812 = memref.load %arg2[%c140] : memref<288xf32, #tpu.memory_space<smem>>
    %813 = vector.broadcast %812 : f32 to vector<16x16xf32>
    %814 = arith.mulf %813, %799 : vector<16x16xf32>
    %815 = arith.addf %781, %814 : vector<16x16xf32>
    %c176 = arith.constant 176 : index
    %816 = memref.load %arg2[%c176] : memref<288xf32, #tpu.memory_space<smem>>
    %817 = vector.broadcast %816 : f32 to vector<16x16xf32>
    %818 = arith.mulf %817, %799 : vector<16x16xf32>
    %819 = arith.addf %785, %818 : vector<16x16xf32>
    %c212 = arith.constant 212 : index
    %820 = memref.load %arg2[%c212] : memref<288xf32, #tpu.memory_space<smem>>
    %821 = vector.broadcast %820 : f32 to vector<16x16xf32>
    %822 = arith.mulf %821, %799 : vector<16x16xf32>
    %823 = arith.addf %789, %822 : vector<16x16xf32>
    %c248 = arith.constant 248 : index
    %824 = memref.load %arg2[%c248] : memref<288xf32, #tpu.memory_space<smem>>
    %825 = vector.broadcast %824 : f32 to vector<16x16xf32>
    %826 = arith.mulf %825, %799 : vector<16x16xf32>
    %827 = arith.addf %793, %826 : vector<16x16xf32>
    %c284 = arith.constant 284 : index
    %828 = memref.load %arg2[%c284] : memref<288xf32, #tpu.memory_space<smem>>
    %829 = vector.broadcast %828 : f32 to vector<16x16xf32>
    %830 = arith.mulf %829, %799 : vector<16x16xf32>
    %831 = arith.addf %797, %830 : vector<16x16xf32>
    %832 = vector.extract_strided_slice %1 {offsets = [0, 2, 0], sizes = [4, 16, 16], strides = [1, 1, 1]} : vector<4x18x18xf32> to vector<4x16x16xf32>
    %833 = vector.extract_strided_slice %832 {offsets = [0, 0, 0], sizes = [1, 16, 16], strides = [1, 1, 1]} : vector<4x16x16xf32> to vector<1x16x16xf32>
    %834 = vector.shape_cast %833 : vector<1x16x16xf32> to vector<16x16xf32>
    %c6 = arith.constant 6 : index
    %835 = memref.load %arg2[%c6] : memref<288xf32, #tpu.memory_space<smem>>
    %836 = vector.broadcast %835 : f32 to vector<16x16xf32>
    %837 = arith.mulf %836, %834 : vector<16x16xf32>
    %838 = arith.addf %803, %837 : vector<16x16xf32>
    %c42 = arith.constant 42 : index
    %839 = memref.load %arg2[%c42] : memref<288xf32, #tpu.memory_space<smem>>
    %840 = vector.broadcast %839 : f32 to vector<16x16xf32>
    %841 = arith.mulf %840, %834 : vector<16x16xf32>
    %842 = arith.addf %807, %841 : vector<16x16xf32>
    %c78 = arith.constant 78 : index
    %843 = memref.load %arg2[%c78] : memref<288xf32, #tpu.memory_space<smem>>
    %844 = vector.broadcast %843 : f32 to vector<16x16xf32>
    %845 = arith.mulf %844, %834 : vector<16x16xf32>
    %846 = arith.addf %811, %845 : vector<16x16xf32>
    %c114 = arith.constant 114 : index
    %847 = memref.load %arg2[%c114] : memref<288xf32, #tpu.memory_space<smem>>
    %848 = vector.broadcast %847 : f32 to vector<16x16xf32>
    %849 = arith.mulf %848, %834 : vector<16x16xf32>
    %850 = arith.addf %815, %849 : vector<16x16xf32>
    %c150 = arith.constant 150 : index
    %851 = memref.load %arg2[%c150] : memref<288xf32, #tpu.memory_space<smem>>
    %852 = vector.broadcast %851 : f32 to vector<16x16xf32>
    %853 = arith.mulf %852, %834 : vector<16x16xf32>
    %854 = arith.addf %819, %853 : vector<16x16xf32>
    %c186 = arith.constant 186 : index
    %855 = memref.load %arg2[%c186] : memref<288xf32, #tpu.memory_space<smem>>
    %856 = vector.broadcast %855 : f32 to vector<16x16xf32>
    %857 = arith.mulf %856, %834 : vector<16x16xf32>
    %858 = arith.addf %823, %857 : vector<16x16xf32>
    %c222 = arith.constant 222 : index
    %859 = memref.load %arg2[%c222] : memref<288xf32, #tpu.memory_space<smem>>
    %860 = vector.broadcast %859 : f32 to vector<16x16xf32>
    %861 = arith.mulf %860, %834 : vector<16x16xf32>
    %862 = arith.addf %827, %861 : vector<16x16xf32>
    %c258 = arith.constant 258 : index
    %863 = memref.load %arg2[%c258] : memref<288xf32, #tpu.memory_space<smem>>
    %864 = vector.broadcast %863 : f32 to vector<16x16xf32>
    %865 = arith.mulf %864, %834 : vector<16x16xf32>
    %866 = arith.addf %831, %865 : vector<16x16xf32>
    %867 = vector.extract_strided_slice %832 {offsets = [1, 0, 0], sizes = [1, 16, 16], strides = [1, 1, 1]} : vector<4x16x16xf32> to vector<1x16x16xf32>
    %868 = vector.shape_cast %867 : vector<1x16x16xf32> to vector<16x16xf32>
    %c15 = arith.constant 15 : index
    %869 = memref.load %arg2[%c15] : memref<288xf32, #tpu.memory_space<smem>>
    %870 = vector.broadcast %869 : f32 to vector<16x16xf32>
    %871 = arith.mulf %870, %868 : vector<16x16xf32>
    %872 = arith.addf %838, %871 : vector<16x16xf32>
    %c51 = arith.constant 51 : index
    %873 = memref.load %arg2[%c51] : memref<288xf32, #tpu.memory_space<smem>>
    %874 = vector.broadcast %873 : f32 to vector<16x16xf32>
    %875 = arith.mulf %874, %868 : vector<16x16xf32>
    %876 = arith.addf %842, %875 : vector<16x16xf32>
    %c87 = arith.constant 87 : index
    %877 = memref.load %arg2[%c87] : memref<288xf32, #tpu.memory_space<smem>>
    %878 = vector.broadcast %877 : f32 to vector<16x16xf32>
    %879 = arith.mulf %878, %868 : vector<16x16xf32>
    %880 = arith.addf %846, %879 : vector<16x16xf32>
    %c123 = arith.constant 123 : index
    %881 = memref.load %arg2[%c123] : memref<288xf32, #tpu.memory_space<smem>>
    %882 = vector.broadcast %881 : f32 to vector<16x16xf32>
    %883 = arith.mulf %882, %868 : vector<16x16xf32>
    %884 = arith.addf %850, %883 : vector<16x16xf32>
    %c159 = arith.constant 159 : index
    %885 = memref.load %arg2[%c159] : memref<288xf32, #tpu.memory_space<smem>>
    %886 = vector.broadcast %885 : f32 to vector<16x16xf32>
    %887 = arith.mulf %886, %868 : vector<16x16xf32>
    %888 = arith.addf %854, %887 : vector<16x16xf32>
    %c195 = arith.constant 195 : index
    %889 = memref.load %arg2[%c195] : memref<288xf32, #tpu.memory_space<smem>>
    %890 = vector.broadcast %889 : f32 to vector<16x16xf32>
    %891 = arith.mulf %890, %868 : vector<16x16xf32>
    %892 = arith.addf %858, %891 : vector<16x16xf32>
    %c231 = arith.constant 231 : index
    %893 = memref.load %arg2[%c231] : memref<288xf32, #tpu.memory_space<smem>>
    %894 = vector.broadcast %893 : f32 to vector<16x16xf32>
    %895 = arith.mulf %894, %868 : vector<16x16xf32>
    %896 = arith.addf %862, %895 : vector<16x16xf32>
    %c267 = arith.constant 267 : index
    %897 = memref.load %arg2[%c267] : memref<288xf32, #tpu.memory_space<smem>>
    %898 = vector.broadcast %897 : f32 to vector<16x16xf32>
    %899 = arith.mulf %898, %868 : vector<16x16xf32>
    %900 = arith.addf %866, %899 : vector<16x16xf32>
    %901 = vector.extract_strided_slice %832 {offsets = [2, 0, 0], sizes = [1, 16, 16], strides = [1, 1, 1]} : vector<4x16x16xf32> to vector<1x16x16xf32>
    %902 = vector.shape_cast %901 : vector<1x16x16xf32> to vector<16x16xf32>
    %c24 = arith.constant 24 : index
    %903 = memref.load %arg2[%c24] : memref<288xf32, #tpu.memory_space<smem>>
    %904 = vector.broadcast %903 : f32 to vector<16x16xf32>
    %905 = arith.mulf %904, %902 : vector<16x16xf32>
    %906 = arith.addf %872, %905 : vector<16x16xf32>
    %c60 = arith.constant 60 : index
    %907 = memref.load %arg2[%c60] : memref<288xf32, #tpu.memory_space<smem>>
    %908 = vector.broadcast %907 : f32 to vector<16x16xf32>
    %909 = arith.mulf %908, %902 : vector<16x16xf32>
    %910 = arith.addf %876, %909 : vector<16x16xf32>
    %c96 = arith.constant 96 : index
    %911 = memref.load %arg2[%c96] : memref<288xf32, #tpu.memory_space<smem>>
    %912 = vector.broadcast %911 : f32 to vector<16x16xf32>
    %913 = arith.mulf %912, %902 : vector<16x16xf32>
    %914 = arith.addf %880, %913 : vector<16x16xf32>
    %c132 = arith.constant 132 : index
    %915 = memref.load %arg2[%c132] : memref<288xf32, #tpu.memory_space<smem>>
    %916 = vector.broadcast %915 : f32 to vector<16x16xf32>
    %917 = arith.mulf %916, %902 : vector<16x16xf32>
    %918 = arith.addf %884, %917 : vector<16x16xf32>
    %c168 = arith.constant 168 : index
    %919 = memref.load %arg2[%c168] : memref<288xf32, #tpu.memory_space<smem>>
    %920 = vector.broadcast %919 : f32 to vector<16x16xf32>
    %921 = arith.mulf %920, %902 : vector<16x16xf32>
    %922 = arith.addf %888, %921 : vector<16x16xf32>
    %c204 = arith.constant 204 : index
    %923 = memref.load %arg2[%c204] : memref<288xf32, #tpu.memory_space<smem>>
    %924 = vector.broadcast %923 : f32 to vector<16x16xf32>
    %925 = arith.mulf %924, %902 : vector<16x16xf32>
    %926 = arith.addf %892, %925 : vector<16x16xf32>
    %c240 = arith.constant 240 : index
    %927 = memref.load %arg2[%c240] : memref<288xf32, #tpu.memory_space<smem>>
    %928 = vector.broadcast %927 : f32 to vector<16x16xf32>
    %929 = arith.mulf %928, %902 : vector<16x16xf32>
    %930 = arith.addf %896, %929 : vector<16x16xf32>
    %c276 = arith.constant 276 : index
    %931 = memref.load %arg2[%c276] : memref<288xf32, #tpu.memory_space<smem>>
    %932 = vector.broadcast %931 : f32 to vector<16x16xf32>
    %933 = arith.mulf %932, %902 : vector<16x16xf32>
    %934 = arith.addf %900, %933 : vector<16x16xf32>
    %935 = vector.extract_strided_slice %832 {offsets = [3, 0, 0], sizes = [1, 16, 16], strides = [1, 1, 1]} : vector<4x16x16xf32> to vector<1x16x16xf32>
    %936 = vector.shape_cast %935 : vector<1x16x16xf32> to vector<16x16xf32>
    %c33 = arith.constant 33 : index
    %937 = memref.load %arg2[%c33] : memref<288xf32, #tpu.memory_space<smem>>
    %938 = vector.broadcast %937 : f32 to vector<16x16xf32>
    %939 = arith.mulf %938, %936 : vector<16x16xf32>
    %940 = arith.addf %906, %939 : vector<16x16xf32>
    %c69 = arith.constant 69 : index
    %941 = memref.load %arg2[%c69] : memref<288xf32, #tpu.memory_space<smem>>
    %942 = vector.broadcast %941 : f32 to vector<16x16xf32>
    %943 = arith.mulf %942, %936 : vector<16x16xf32>
    %944 = arith.addf %910, %943 : vector<16x16xf32>
    %c105 = arith.constant 105 : index
    %945 = memref.load %arg2[%c105] : memref<288xf32, #tpu.memory_space<smem>>
    %946 = vector.broadcast %945 : f32 to vector<16x16xf32>
    %947 = arith.mulf %946, %936 : vector<16x16xf32>
    %948 = arith.addf %914, %947 : vector<16x16xf32>
    %c141 = arith.constant 141 : index
    %949 = memref.load %arg2[%c141] : memref<288xf32, #tpu.memory_space<smem>>
    %950 = vector.broadcast %949 : f32 to vector<16x16xf32>
    %951 = arith.mulf %950, %936 : vector<16x16xf32>
    %952 = arith.addf %918, %951 : vector<16x16xf32>
    %c177 = arith.constant 177 : index
    %953 = memref.load %arg2[%c177] : memref<288xf32, #tpu.memory_space<smem>>
    %954 = vector.broadcast %953 : f32 to vector<16x16xf32>
    %955 = arith.mulf %954, %936 : vector<16x16xf32>
    %956 = arith.addf %922, %955 : vector<16x16xf32>
    %c213 = arith.constant 213 : index
    %957 = memref.load %arg2[%c213] : memref<288xf32, #tpu.memory_space<smem>>
    %958 = vector.broadcast %957 : f32 to vector<16x16xf32>
    %959 = arith.mulf %958, %936 : vector<16x16xf32>
    %960 = arith.addf %926, %959 : vector<16x16xf32>
    %c249 = arith.constant 249 : index
    %961 = memref.load %arg2[%c249] : memref<288xf32, #tpu.memory_space<smem>>
    %962 = vector.broadcast %961 : f32 to vector<16x16xf32>
    %963 = arith.mulf %962, %936 : vector<16x16xf32>
    %964 = arith.addf %930, %963 : vector<16x16xf32>
    %c285 = arith.constant 285 : index
    %965 = memref.load %arg2[%c285] : memref<288xf32, #tpu.memory_space<smem>>
    %966 = vector.broadcast %965 : f32 to vector<16x16xf32>
    %967 = arith.mulf %966, %936 : vector<16x16xf32>
    %968 = arith.addf %934, %967 : vector<16x16xf32>
    %969 = vector.extract_strided_slice %1 {offsets = [0, 2, 1], sizes = [4, 16, 16], strides = [1, 1, 1]} : vector<4x18x18xf32> to vector<4x16x16xf32>
    %970 = vector.extract_strided_slice %969 {offsets = [0, 0, 0], sizes = [1, 16, 16], strides = [1, 1, 1]} : vector<4x16x16xf32> to vector<1x16x16xf32>
    %971 = vector.shape_cast %970 : vector<1x16x16xf32> to vector<16x16xf32>
    %c7 = arith.constant 7 : index
    %972 = memref.load %arg2[%c7] : memref<288xf32, #tpu.memory_space<smem>>
    %973 = vector.broadcast %972 : f32 to vector<16x16xf32>
    %974 = arith.mulf %973, %971 : vector<16x16xf32>
    %975 = arith.addf %940, %974 : vector<16x16xf32>
    %c43 = arith.constant 43 : index
    %976 = memref.load %arg2[%c43] : memref<288xf32, #tpu.memory_space<smem>>
    %977 = vector.broadcast %976 : f32 to vector<16x16xf32>
    %978 = arith.mulf %977, %971 : vector<16x16xf32>
    %979 = arith.addf %944, %978 : vector<16x16xf32>
    %c79 = arith.constant 79 : index
    %980 = memref.load %arg2[%c79] : memref<288xf32, #tpu.memory_space<smem>>
    %981 = vector.broadcast %980 : f32 to vector<16x16xf32>
    %982 = arith.mulf %981, %971 : vector<16x16xf32>
    %983 = arith.addf %948, %982 : vector<16x16xf32>
    %c115 = arith.constant 115 : index
    %984 = memref.load %arg2[%c115] : memref<288xf32, #tpu.memory_space<smem>>
    %985 = vector.broadcast %984 : f32 to vector<16x16xf32>
    %986 = arith.mulf %985, %971 : vector<16x16xf32>
    %987 = arith.addf %952, %986 : vector<16x16xf32>
    %c151 = arith.constant 151 : index
    %988 = memref.load %arg2[%c151] : memref<288xf32, #tpu.memory_space<smem>>
    %989 = vector.broadcast %988 : f32 to vector<16x16xf32>
    %990 = arith.mulf %989, %971 : vector<16x16xf32>
    %991 = arith.addf %956, %990 : vector<16x16xf32>
    %c187 = arith.constant 187 : index
    %992 = memref.load %arg2[%c187] : memref<288xf32, #tpu.memory_space<smem>>
    %993 = vector.broadcast %992 : f32 to vector<16x16xf32>
    %994 = arith.mulf %993, %971 : vector<16x16xf32>
    %995 = arith.addf %960, %994 : vector<16x16xf32>
    %c223 = arith.constant 223 : index
    %996 = memref.load %arg2[%c223] : memref<288xf32, #tpu.memory_space<smem>>
    %997 = vector.broadcast %996 : f32 to vector<16x16xf32>
    %998 = arith.mulf %997, %971 : vector<16x16xf32>
    %999 = arith.addf %964, %998 : vector<16x16xf32>
    %c259 = arith.constant 259 : index
    %1000 = memref.load %arg2[%c259] : memref<288xf32, #tpu.memory_space<smem>>
    %1001 = vector.broadcast %1000 : f32 to vector<16x16xf32>
    %1002 = arith.mulf %1001, %971 : vector<16x16xf32>
    %1003 = arith.addf %968, %1002 : vector<16x16xf32>
    %1004 = vector.extract_strided_slice %969 {offsets = [1, 0, 0], sizes = [1, 16, 16], strides = [1, 1, 1]} : vector<4x16x16xf32> to vector<1x16x16xf32>
    %1005 = vector.shape_cast %1004 : vector<1x16x16xf32> to vector<16x16xf32>
    %c16 = arith.constant 16 : index
    %1006 = memref.load %arg2[%c16] : memref<288xf32, #tpu.memory_space<smem>>
    %1007 = vector.broadcast %1006 : f32 to vector<16x16xf32>
    %1008 = arith.mulf %1007, %1005 : vector<16x16xf32>
    %1009 = arith.addf %975, %1008 : vector<16x16xf32>
    %c52 = arith.constant 52 : index
    %1010 = memref.load %arg2[%c52] : memref<288xf32, #tpu.memory_space<smem>>
    %1011 = vector.broadcast %1010 : f32 to vector<16x16xf32>
    %1012 = arith.mulf %1011, %1005 : vector<16x16xf32>
    %1013 = arith.addf %979, %1012 : vector<16x16xf32>
    %c88 = arith.constant 88 : index
    %1014 = memref.load %arg2[%c88] : memref<288xf32, #tpu.memory_space<smem>>
    %1015 = vector.broadcast %1014 : f32 to vector<16x16xf32>
    %1016 = arith.mulf %1015, %1005 : vector<16x16xf32>
    %1017 = arith.addf %983, %1016 : vector<16x16xf32>
    %c124 = arith.constant 124 : index
    %1018 = memref.load %arg2[%c124] : memref<288xf32, #tpu.memory_space<smem>>
    %1019 = vector.broadcast %1018 : f32 to vector<16x16xf32>
    %1020 = arith.mulf %1019, %1005 : vector<16x16xf32>
    %1021 = arith.addf %987, %1020 : vector<16x16xf32>
    %c160 = arith.constant 160 : index
    %1022 = memref.load %arg2[%c160] : memref<288xf32, #tpu.memory_space<smem>>
    %1023 = vector.broadcast %1022 : f32 to vector<16x16xf32>
    %1024 = arith.mulf %1023, %1005 : vector<16x16xf32>
    %1025 = arith.addf %991, %1024 : vector<16x16xf32>
    %c196 = arith.constant 196 : index
    %1026 = memref.load %arg2[%c196] : memref<288xf32, #tpu.memory_space<smem>>
    %1027 = vector.broadcast %1026 : f32 to vector<16x16xf32>
    %1028 = arith.mulf %1027, %1005 : vector<16x16xf32>
    %1029 = arith.addf %995, %1028 : vector<16x16xf32>
    %c232 = arith.constant 232 : index
    %1030 = memref.load %arg2[%c232] : memref<288xf32, #tpu.memory_space<smem>>
    %1031 = vector.broadcast %1030 : f32 to vector<16x16xf32>
    %1032 = arith.mulf %1031, %1005 : vector<16x16xf32>
    %1033 = arith.addf %999, %1032 : vector<16x16xf32>
    %c268 = arith.constant 268 : index
    %1034 = memref.load %arg2[%c268] : memref<288xf32, #tpu.memory_space<smem>>
    %1035 = vector.broadcast %1034 : f32 to vector<16x16xf32>
    %1036 = arith.mulf %1035, %1005 : vector<16x16xf32>
    %1037 = arith.addf %1003, %1036 : vector<16x16xf32>
    %1038 = vector.extract_strided_slice %969 {offsets = [2, 0, 0], sizes = [1, 16, 16], strides = [1, 1, 1]} : vector<4x16x16xf32> to vector<1x16x16xf32>
    %1039 = vector.shape_cast %1038 : vector<1x16x16xf32> to vector<16x16xf32>
    %c25 = arith.constant 25 : index
    %1040 = memref.load %arg2[%c25] : memref<288xf32, #tpu.memory_space<smem>>
    %1041 = vector.broadcast %1040 : f32 to vector<16x16xf32>
    %1042 = arith.mulf %1041, %1039 : vector<16x16xf32>
    %1043 = arith.addf %1009, %1042 : vector<16x16xf32>
    %c61 = arith.constant 61 : index
    %1044 = memref.load %arg2[%c61] : memref<288xf32, #tpu.memory_space<smem>>
    %1045 = vector.broadcast %1044 : f32 to vector<16x16xf32>
    %1046 = arith.mulf %1045, %1039 : vector<16x16xf32>
    %1047 = arith.addf %1013, %1046 : vector<16x16xf32>
    %c97 = arith.constant 97 : index
    %1048 = memref.load %arg2[%c97] : memref<288xf32, #tpu.memory_space<smem>>
    %1049 = vector.broadcast %1048 : f32 to vector<16x16xf32>
    %1050 = arith.mulf %1049, %1039 : vector<16x16xf32>
    %1051 = arith.addf %1017, %1050 : vector<16x16xf32>
    %c133 = arith.constant 133 : index
    %1052 = memref.load %arg2[%c133] : memref<288xf32, #tpu.memory_space<smem>>
    %1053 = vector.broadcast %1052 : f32 to vector<16x16xf32>
    %1054 = arith.mulf %1053, %1039 : vector<16x16xf32>
    %1055 = arith.addf %1021, %1054 : vector<16x16xf32>
    %c169 = arith.constant 169 : index
    %1056 = memref.load %arg2[%c169] : memref<288xf32, #tpu.memory_space<smem>>
    %1057 = vector.broadcast %1056 : f32 to vector<16x16xf32>
    %1058 = arith.mulf %1057, %1039 : vector<16x16xf32>
    %1059 = arith.addf %1025, %1058 : vector<16x16xf32>
    %c205 = arith.constant 205 : index
    %1060 = memref.load %arg2[%c205] : memref<288xf32, #tpu.memory_space<smem>>
    %1061 = vector.broadcast %1060 : f32 to vector<16x16xf32>
    %1062 = arith.mulf %1061, %1039 : vector<16x16xf32>
    %1063 = arith.addf %1029, %1062 : vector<16x16xf32>
    %c241 = arith.constant 241 : index
    %1064 = memref.load %arg2[%c241] : memref<288xf32, #tpu.memory_space<smem>>
    %1065 = vector.broadcast %1064 : f32 to vector<16x16xf32>
    %1066 = arith.mulf %1065, %1039 : vector<16x16xf32>
    %1067 = arith.addf %1033, %1066 : vector<16x16xf32>
    %c277 = arith.constant 277 : index
    %1068 = memref.load %arg2[%c277] : memref<288xf32, #tpu.memory_space<smem>>
    %1069 = vector.broadcast %1068 : f32 to vector<16x16xf32>
    %1070 = arith.mulf %1069, %1039 : vector<16x16xf32>
    %1071 = arith.addf %1037, %1070 : vector<16x16xf32>
    %1072 = vector.extract_strided_slice %969 {offsets = [3, 0, 0], sizes = [1, 16, 16], strides = [1, 1, 1]} : vector<4x16x16xf32> to vector<1x16x16xf32>
    %1073 = vector.shape_cast %1072 : vector<1x16x16xf32> to vector<16x16xf32>
    %c34 = arith.constant 34 : index
    %1074 = memref.load %arg2[%c34] : memref<288xf32, #tpu.memory_space<smem>>
    %1075 = vector.broadcast %1074 : f32 to vector<16x16xf32>
    %1076 = arith.mulf %1075, %1073 : vector<16x16xf32>
    %1077 = arith.addf %1043, %1076 : vector<16x16xf32>
    %c70 = arith.constant 70 : index
    %1078 = memref.load %arg2[%c70] : memref<288xf32, #tpu.memory_space<smem>>
    %1079 = vector.broadcast %1078 : f32 to vector<16x16xf32>
    %1080 = arith.mulf %1079, %1073 : vector<16x16xf32>
    %1081 = arith.addf %1047, %1080 : vector<16x16xf32>
    %c106 = arith.constant 106 : index
    %1082 = memref.load %arg2[%c106] : memref<288xf32, #tpu.memory_space<smem>>
    %1083 = vector.broadcast %1082 : f32 to vector<16x16xf32>
    %1084 = arith.mulf %1083, %1073 : vector<16x16xf32>
    %1085 = arith.addf %1051, %1084 : vector<16x16xf32>
    %c142 = arith.constant 142 : index
    %1086 = memref.load %arg2[%c142] : memref<288xf32, #tpu.memory_space<smem>>
    %1087 = vector.broadcast %1086 : f32 to vector<16x16xf32>
    %1088 = arith.mulf %1087, %1073 : vector<16x16xf32>
    %1089 = arith.addf %1055, %1088 : vector<16x16xf32>
    %c178 = arith.constant 178 : index
    %1090 = memref.load %arg2[%c178] : memref<288xf32, #tpu.memory_space<smem>>
    %1091 = vector.broadcast %1090 : f32 to vector<16x16xf32>
    %1092 = arith.mulf %1091, %1073 : vector<16x16xf32>
    %1093 = arith.addf %1059, %1092 : vector<16x16xf32>
    %c214 = arith.constant 214 : index
    %1094 = memref.load %arg2[%c214] : memref<288xf32, #tpu.memory_space<smem>>
    %1095 = vector.broadcast %1094 : f32 to vector<16x16xf32>
    %1096 = arith.mulf %1095, %1073 : vector<16x16xf32>
    %1097 = arith.addf %1063, %1096 : vector<16x16xf32>
    %c250 = arith.constant 250 : index
    %1098 = memref.load %arg2[%c250] : memref<288xf32, #tpu.memory_space<smem>>
    %1099 = vector.broadcast %1098 : f32 to vector<16x16xf32>
    %1100 = arith.mulf %1099, %1073 : vector<16x16xf32>
    %1101 = arith.addf %1067, %1100 : vector<16x16xf32>
    %c286 = arith.constant 286 : index
    %1102 = memref.load %arg2[%c286] : memref<288xf32, #tpu.memory_space<smem>>
    %1103 = vector.broadcast %1102 : f32 to vector<16x16xf32>
    %1104 = arith.mulf %1103, %1073 : vector<16x16xf32>
    %1105 = arith.addf %1071, %1104 : vector<16x16xf32>
    %1106 = vector.extract_strided_slice %1 {offsets = [0, 2, 2], sizes = [4, 16, 16], strides = [1, 1, 1]} : vector<4x18x18xf32> to vector<4x16x16xf32>
    %1107 = vector.extract_strided_slice %1106 {offsets = [0, 0, 0], sizes = [1, 16, 16], strides = [1, 1, 1]} : vector<4x16x16xf32> to vector<1x16x16xf32>
    %1108 = vector.shape_cast %1107 : vector<1x16x16xf32> to vector<16x16xf32>
    %c8 = arith.constant 8 : index
    %1109 = memref.load %arg2[%c8] : memref<288xf32, #tpu.memory_space<smem>>
    %1110 = vector.broadcast %1109 : f32 to vector<16x16xf32>
    %1111 = arith.mulf %1110, %1108 : vector<16x16xf32>
    %1112 = arith.addf %1077, %1111 : vector<16x16xf32>
    %c44 = arith.constant 44 : index
    %1113 = memref.load %arg2[%c44] : memref<288xf32, #tpu.memory_space<smem>>
    %1114 = vector.broadcast %1113 : f32 to vector<16x16xf32>
    %1115 = arith.mulf %1114, %1108 : vector<16x16xf32>
    %1116 = arith.addf %1081, %1115 : vector<16x16xf32>
    %c80 = arith.constant 80 : index
    %1117 = memref.load %arg2[%c80] : memref<288xf32, #tpu.memory_space<smem>>
    %1118 = vector.broadcast %1117 : f32 to vector<16x16xf32>
    %1119 = arith.mulf %1118, %1108 : vector<16x16xf32>
    %1120 = arith.addf %1085, %1119 : vector<16x16xf32>
    %c116 = arith.constant 116 : index
    %1121 = memref.load %arg2[%c116] : memref<288xf32, #tpu.memory_space<smem>>
    %1122 = vector.broadcast %1121 : f32 to vector<16x16xf32>
    %1123 = arith.mulf %1122, %1108 : vector<16x16xf32>
    %1124 = arith.addf %1089, %1123 : vector<16x16xf32>
    %c152 = arith.constant 152 : index
    %1125 = memref.load %arg2[%c152] : memref<288xf32, #tpu.memory_space<smem>>
    %1126 = vector.broadcast %1125 : f32 to vector<16x16xf32>
    %1127 = arith.mulf %1126, %1108 : vector<16x16xf32>
    %1128 = arith.addf %1093, %1127 : vector<16x16xf32>
    %c188 = arith.constant 188 : index
    %1129 = memref.load %arg2[%c188] : memref<288xf32, #tpu.memory_space<smem>>
    %1130 = vector.broadcast %1129 : f32 to vector<16x16xf32>
    %1131 = arith.mulf %1130, %1108 : vector<16x16xf32>
    %1132 = arith.addf %1097, %1131 : vector<16x16xf32>
    %c224 = arith.constant 224 : index
    %1133 = memref.load %arg2[%c224] : memref<288xf32, #tpu.memory_space<smem>>
    %1134 = vector.broadcast %1133 : f32 to vector<16x16xf32>
    %1135 = arith.mulf %1134, %1108 : vector<16x16xf32>
    %1136 = arith.addf %1101, %1135 : vector<16x16xf32>
    %c260 = arith.constant 260 : index
    %1137 = memref.load %arg2[%c260] : memref<288xf32, #tpu.memory_space<smem>>
    %1138 = vector.broadcast %1137 : f32 to vector<16x16xf32>
    %1139 = arith.mulf %1138, %1108 : vector<16x16xf32>
    %1140 = arith.addf %1105, %1139 : vector<16x16xf32>
    %1141 = vector.extract_strided_slice %1106 {offsets = [1, 0, 0], sizes = [1, 16, 16], strides = [1, 1, 1]} : vector<4x16x16xf32> to vector<1x16x16xf32>
    %1142 = vector.shape_cast %1141 : vector<1x16x16xf32> to vector<16x16xf32>
    %c17 = arith.constant 17 : index
    %1143 = memref.load %arg2[%c17] : memref<288xf32, #tpu.memory_space<smem>>
    %1144 = vector.broadcast %1143 : f32 to vector<16x16xf32>
    %1145 = arith.mulf %1144, %1142 : vector<16x16xf32>
    %1146 = arith.addf %1112, %1145 : vector<16x16xf32>
    %c53 = arith.constant 53 : index
    %1147 = memref.load %arg2[%c53] : memref<288xf32, #tpu.memory_space<smem>>
    %1148 = vector.broadcast %1147 : f32 to vector<16x16xf32>
    %1149 = arith.mulf %1148, %1142 : vector<16x16xf32>
    %1150 = arith.addf %1116, %1149 : vector<16x16xf32>
    %c89 = arith.constant 89 : index
    %1151 = memref.load %arg2[%c89] : memref<288xf32, #tpu.memory_space<smem>>
    %1152 = vector.broadcast %1151 : f32 to vector<16x16xf32>
    %1153 = arith.mulf %1152, %1142 : vector<16x16xf32>
    %1154 = arith.addf %1120, %1153 : vector<16x16xf32>
    %c125 = arith.constant 125 : index
    %1155 = memref.load %arg2[%c125] : memref<288xf32, #tpu.memory_space<smem>>
    %1156 = vector.broadcast %1155 : f32 to vector<16x16xf32>
    %1157 = arith.mulf %1156, %1142 : vector<16x16xf32>
    %1158 = arith.addf %1124, %1157 : vector<16x16xf32>
    %c161 = arith.constant 161 : index
    %1159 = memref.load %arg2[%c161] : memref<288xf32, #tpu.memory_space<smem>>
    %1160 = vector.broadcast %1159 : f32 to vector<16x16xf32>
    %1161 = arith.mulf %1160, %1142 : vector<16x16xf32>
    %1162 = arith.addf %1128, %1161 : vector<16x16xf32>
    %c197 = arith.constant 197 : index
    %1163 = memref.load %arg2[%c197] : memref<288xf32, #tpu.memory_space<smem>>
    %1164 = vector.broadcast %1163 : f32 to vector<16x16xf32>
    %1165 = arith.mulf %1164, %1142 : vector<16x16xf32>
    %1166 = arith.addf %1132, %1165 : vector<16x16xf32>
    %c233 = arith.constant 233 : index
    %1167 = memref.load %arg2[%c233] : memref<288xf32, #tpu.memory_space<smem>>
    %1168 = vector.broadcast %1167 : f32 to vector<16x16xf32>
    %1169 = arith.mulf %1168, %1142 : vector<16x16xf32>
    %1170 = arith.addf %1136, %1169 : vector<16x16xf32>
    %c269 = arith.constant 269 : index
    %1171 = memref.load %arg2[%c269] : memref<288xf32, #tpu.memory_space<smem>>
    %1172 = vector.broadcast %1171 : f32 to vector<16x16xf32>
    %1173 = arith.mulf %1172, %1142 : vector<16x16xf32>
    %1174 = arith.addf %1140, %1173 : vector<16x16xf32>
    %1175 = vector.extract_strided_slice %1106 {offsets = [2, 0, 0], sizes = [1, 16, 16], strides = [1, 1, 1]} : vector<4x16x16xf32> to vector<1x16x16xf32>
    %1176 = vector.shape_cast %1175 : vector<1x16x16xf32> to vector<16x16xf32>
    %c26 = arith.constant 26 : index
    %1177 = memref.load %arg2[%c26] : memref<288xf32, #tpu.memory_space<smem>>
    %1178 = vector.broadcast %1177 : f32 to vector<16x16xf32>
    %1179 = arith.mulf %1178, %1176 : vector<16x16xf32>
    %1180 = arith.addf %1146, %1179 : vector<16x16xf32>
    %c62 = arith.constant 62 : index
    %1181 = memref.load %arg2[%c62] : memref<288xf32, #tpu.memory_space<smem>>
    %1182 = vector.broadcast %1181 : f32 to vector<16x16xf32>
    %1183 = arith.mulf %1182, %1176 : vector<16x16xf32>
    %1184 = arith.addf %1150, %1183 : vector<16x16xf32>
    %c98 = arith.constant 98 : index
    %1185 = memref.load %arg2[%c98] : memref<288xf32, #tpu.memory_space<smem>>
    %1186 = vector.broadcast %1185 : f32 to vector<16x16xf32>
    %1187 = arith.mulf %1186, %1176 : vector<16x16xf32>
    %1188 = arith.addf %1154, %1187 : vector<16x16xf32>
    %c134 = arith.constant 134 : index
    %1189 = memref.load %arg2[%c134] : memref<288xf32, #tpu.memory_space<smem>>
    %1190 = vector.broadcast %1189 : f32 to vector<16x16xf32>
    %1191 = arith.mulf %1190, %1176 : vector<16x16xf32>
    %1192 = arith.addf %1158, %1191 : vector<16x16xf32>
    %c170 = arith.constant 170 : index
    %1193 = memref.load %arg2[%c170] : memref<288xf32, #tpu.memory_space<smem>>
    %1194 = vector.broadcast %1193 : f32 to vector<16x16xf32>
    %1195 = arith.mulf %1194, %1176 : vector<16x16xf32>
    %1196 = arith.addf %1162, %1195 : vector<16x16xf32>
    %c206 = arith.constant 206 : index
    %1197 = memref.load %arg2[%c206] : memref<288xf32, #tpu.memory_space<smem>>
    %1198 = vector.broadcast %1197 : f32 to vector<16x16xf32>
    %1199 = arith.mulf %1198, %1176 : vector<16x16xf32>
    %1200 = arith.addf %1166, %1199 : vector<16x16xf32>
    %c242 = arith.constant 242 : index
    %1201 = memref.load %arg2[%c242] : memref<288xf32, #tpu.memory_space<smem>>
    %1202 = vector.broadcast %1201 : f32 to vector<16x16xf32>
    %1203 = arith.mulf %1202, %1176 : vector<16x16xf32>
    %1204 = arith.addf %1170, %1203 : vector<16x16xf32>
    %c278 = arith.constant 278 : index
    %1205 = memref.load %arg2[%c278] : memref<288xf32, #tpu.memory_space<smem>>
    %1206 = vector.broadcast %1205 : f32 to vector<16x16xf32>
    %1207 = arith.mulf %1206, %1176 : vector<16x16xf32>
    %1208 = arith.addf %1174, %1207 : vector<16x16xf32>
    %1209 = vector.extract_strided_slice %1106 {offsets = [3, 0, 0], sizes = [1, 16, 16], strides = [1, 1, 1]} : vector<4x16x16xf32> to vector<1x16x16xf32>
    %1210 = vector.shape_cast %1209 : vector<1x16x16xf32> to vector<16x16xf32>
    %c35 = arith.constant 35 : index
    %1211 = memref.load %arg2[%c35] : memref<288xf32, #tpu.memory_space<smem>>
    %1212 = vector.broadcast %1211 : f32 to vector<16x16xf32>
    %1213 = arith.mulf %1212, %1210 : vector<16x16xf32>
    %1214 = arith.addf %1180, %1213 : vector<16x16xf32>
    %c71 = arith.constant 71 : index
    %1215 = memref.load %arg2[%c71] : memref<288xf32, #tpu.memory_space<smem>>
    %1216 = vector.broadcast %1215 : f32 to vector<16x16xf32>
    %1217 = arith.mulf %1216, %1210 : vector<16x16xf32>
    %1218 = arith.addf %1184, %1217 : vector<16x16xf32>
    %c107 = arith.constant 107 : index
    %1219 = memref.load %arg2[%c107] : memref<288xf32, #tpu.memory_space<smem>>
    %1220 = vector.broadcast %1219 : f32 to vector<16x16xf32>
    %1221 = arith.mulf %1220, %1210 : vector<16x16xf32>
    %1222 = arith.addf %1188, %1221 : vector<16x16xf32>
    %c143 = arith.constant 143 : index
    %1223 = memref.load %arg2[%c143] : memref<288xf32, #tpu.memory_space<smem>>
    %1224 = vector.broadcast %1223 : f32 to vector<16x16xf32>
    %1225 = arith.mulf %1224, %1210 : vector<16x16xf32>
    %1226 = arith.addf %1192, %1225 : vector<16x16xf32>
    %c179 = arith.constant 179 : index
    %1227 = memref.load %arg2[%c179] : memref<288xf32, #tpu.memory_space<smem>>
    %1228 = vector.broadcast %1227 : f32 to vector<16x16xf32>
    %1229 = arith.mulf %1228, %1210 : vector<16x16xf32>
    %1230 = arith.addf %1196, %1229 : vector<16x16xf32>
    %c215 = arith.constant 215 : index
    %1231 = memref.load %arg2[%c215] : memref<288xf32, #tpu.memory_space<smem>>
    %1232 = vector.broadcast %1231 : f32 to vector<16x16xf32>
    %1233 = arith.mulf %1232, %1210 : vector<16x16xf32>
    %1234 = arith.addf %1200, %1233 : vector<16x16xf32>
    %c251 = arith.constant 251 : index
    %1235 = memref.load %arg2[%c251] : memref<288xf32, #tpu.memory_space<smem>>
    %1236 = vector.broadcast %1235 : f32 to vector<16x16xf32>
    %1237 = arith.mulf %1236, %1210 : vector<16x16xf32>
    %1238 = arith.addf %1204, %1237 : vector<16x16xf32>
    %c287 = arith.constant 287 : index
    %1239 = memref.load %arg2[%c287] : memref<288xf32, #tpu.memory_space<smem>>
    %1240 = vector.broadcast %1239 : f32 to vector<16x16xf32>
    %1241 = arith.mulf %1240, %1210 : vector<16x16xf32>
    %1242 = arith.addf %1208, %1241 : vector<16x16xf32>
    %c0_11 = arith.constant 0 : index
    %1243 = memref.load %arg3[%c0_11] : memref<8xf32, #tpu.memory_space<smem>>
    %1244 = vector.broadcast %1243 : f32 to vector<16x16xf32>
    %1245 = arith.addf %1214, %1244 : vector<16x16xf32>
    %1246 = vector.shape_cast %1245 : vector<16x16xf32> to vector<1x16x16xf32>
    %cst_12 = arith.constant dense<0.000000e+00> : vector<1xf32>
    %1247 = vector.multi_reduction <add>, %1246, %cst_12 [1, 2] : vector<1x16x16xf32> to vector<1xf32>
    %1248 = vector.shape_cast %1247 : vector<1xf32> to vector<1x1x1xf32>
    %1249 = vector.extract %1248[0, 0, 0] : f32 from vector<1x1x1xf32>
    %cst_13 = arith.constant 3.906250e-03 : f32
    %1250 = arith.mulf %1249, %cst_13 : f32
    %1251 = vector.broadcast %1250 : f32 to vector<16x16xf32>
    %1252 = arith.subf %1245, %1251 : vector<16x16xf32>
    %1253 = arith.mulf %1252, %1252 : vector<16x16xf32>
    %1254 = vector.shape_cast %1253 : vector<16x16xf32> to vector<1x16x16xf32>
    %cst_14 = arith.constant dense<0.000000e+00> : vector<1xf32>
    %1255 = vector.multi_reduction <add>, %1254, %cst_14 [1, 2] : vector<1x16x16xf32> to vector<1xf32>
    %1256 = vector.shape_cast %1255 : vector<1xf32> to vector<1x1x1xf32>
    %1257 = vector.extract %1256[0, 0, 0] : f32 from vector<1x1x1xf32>
    %cst_15 = arith.constant 3.906250e-03 : f32
    %1258 = arith.mulf %1257, %cst_15 : f32
    %cst_16 = arith.constant 9.99999974E-6 : f32
    %1259 = arith.addf %1258, %cst_16 : f32
    %1260 = math.rsqrt %1259 : f32
    %1261 = vector.broadcast %1260 : f32 to vector<16x16xf32>
    %1262 = arith.mulf %1252, %1261 : vector<16x16xf32>
    %cst_17 = arith.constant 0.000000e+00 : f32
    %1263 = vector.broadcast %cst_17 : f32 to vector<16x16xf32>
    %1264 = arith.maximumf %1262, %1263 : vector<16x16xf32>
    %c0_18 = arith.constant 0 : index
    %c0_19 = arith.constant 0 : index
    %c0_20 = arith.constant 0 : index
    %c0_21 = arith.constant 0 : index
    %1265 = vector.load %arg4[%c0_18, %c0_19, %c0_20, %c0_21] : memref<1x8x16x16xf32, #tpu.memory_space<vmem>>, vector<1x1x16x16xf32>
    %1266 = vector.shape_cast %1265 : vector<1x1x16x16xf32> to vector<16x16xf32>
    %1267 = vector.shape_cast %1264 : vector<16x16xf32> to vector<1x1x16x16xf32>
    tpu.vector_store %arg4[%c0_18, %c0_19, %c0_20, %c0_21], %1267 {strides = array<i32>} : memref<1x8x16x16xf32, #tpu.memory_space<vmem>>, vector<1x1x16x16xf32>,
    %c1_22 = arith.constant 1 : index
    %1268 = memref.load %arg3[%c1_22] : memref<8xf32, #tpu.memory_space<smem>>
    %1269 = vector.broadcast %1268 : f32 to vector<16x16xf32>
    %1270 = arith.addf %1218, %1269 : vector<16x16xf32>
    %1271 = vector.shape_cast %1270 : vector<16x16xf32> to vector<1x16x16xf32>
    %cst_23 = arith.constant dense<0.000000e+00> : vector<1xf32>
    %1272 = vector.multi_reduction <add>, %1271, %cst_23 [1, 2] : vector<1x16x16xf32> to vector<1xf32>
    %1273 = vector.shape_cast %1272 : vector<1xf32> to vector<1x1x1xf32>
    %1274 = vector.extract %1273[0, 0, 0] : f32 from vector<1x1x1xf32>
    %cst_24 = arith.constant 3.906250e-03 : f32
    %1275 = arith.mulf %1274, %cst_24 : f32
    %1276 = vector.broadcast %1275 : f32 to vector<16x16xf32>
    %1277 = arith.subf %1270, %1276 : vector<16x16xf32>
    %1278 = arith.mulf %1277, %1277 : vector<16x16xf32>
    %1279 = vector.shape_cast %1278 : vector<16x16xf32> to vector<1x16x16xf32>
    %cst_25 = arith.constant dense<0.000000e+00> : vector<1xf32>
    %1280 = vector.multi_reduction <add>, %1279, %cst_25 [1, 2] : vector<1x16x16xf32> to vector<1xf32>
    %1281 = vector.shape_cast %1280 : vector<1xf32> to vector<1x1x1xf32>
    %1282 = vector.extract %1281[0, 0, 0] : f32 from vector<1x1x1xf32>
    %cst_26 = arith.constant 3.906250e-03 : f32
    %1283 = arith.mulf %1282, %cst_26 : f32
    %cst_27 = arith.constant 9.99999974E-6 : f32
    %1284 = arith.addf %1283, %cst_27 : f32
    %1285 = math.rsqrt %1284 : f32
    %1286 = vector.broadcast %1285 : f32 to vector<16x16xf32>
    %1287 = arith.mulf %1277, %1286 : vector<16x16xf32>
    %cst_28 = arith.constant 0.000000e+00 : f32
    %1288 = vector.broadcast %cst_28 : f32 to vector<16x16xf32>
    %1289 = arith.maximumf %1287, %1288 : vector<16x16xf32>
    %c0_29 = arith.constant 0 : index
    %c1_30 = arith.constant 1 : index
    %c0_31 = arith.constant 0 : index
    %c0_32 = arith.constant 0 : index
    %1290 = vector.load %arg4[%c0_29, %c1_30, %c0_31, %c0_32] : memref<1x8x16x16xf32, #tpu.memory_space<vmem>>, vector<1x1x16x16xf32>
    %1291 = vector.shape_cast %1290 : vector<1x1x16x16xf32> to vector<16x16xf32>
    %1292 = vector.shape_cast %1289 : vector<16x16xf32> to vector<1x1x16x16xf32>
    tpu.vector_store %arg4[%c0_29, %c1_30, %c0_31, %c0_32], %1292 {strides = array<i32>} : memref<1x8x16x16xf32, #tpu.memory_space<vmem>>, vector<1x1x16x16xf32>,
    %c2_33 = arith.constant 2 : index
    %1293 = memref.load %arg3[%c2_33] : memref<8xf32, #tpu.memory_space<smem>>
    %1294 = vector.broadcast %1293 : f32 to vector<16x16xf32>
    %1295 = arith.addf %1222, %1294 : vector<16x16xf32>
    %1296 = vector.shape_cast %1295 : vector<16x16xf32> to vector<1x16x16xf32>
    %cst_34 = arith.constant dense<0.000000e+00> : vector<1xf32>
    %1297 = vector.multi_reduction <add>, %1296, %cst_34 [1, 2] : vector<1x16x16xf32> to vector<1xf32>
    %1298 = vector.shape_cast %1297 : vector<1xf32> to vector<1x1x1xf32>
    %1299 = vector.extract %1298[0, 0, 0] : f32 from vector<1x1x1xf32>
    %cst_35 = arith.constant 3.906250e-03 : f32
    %1300 = arith.mulf %1299, %cst_35 : f32
    %1301 = vector.broadcast %1300 : f32 to vector<16x16xf32>
    %1302 = arith.subf %1295, %1301 : vector<16x16xf32>
    %1303 = arith.mulf %1302, %1302 : vector<16x16xf32>
    %1304 = vector.shape_cast %1303 : vector<16x16xf32> to vector<1x16x16xf32>
    %cst_36 = arith.constant dense<0.000000e+00> : vector<1xf32>
    %1305 = vector.multi_reduction <add>, %1304, %cst_36 [1, 2] : vector<1x16x16xf32> to vector<1xf32>
    %1306 = vector.shape_cast %1305 : vector<1xf32> to vector<1x1x1xf32>
    %1307 = vector.extract %1306[0, 0, 0] : f32 from vector<1x1x1xf32>
    %cst_37 = arith.constant 3.906250e-03 : f32
    %1308 = arith.mulf %1307, %cst_37 : f32
    %cst_38 = arith.constant 9.99999974E-6 : f32
    %1309 = arith.addf %1308, %cst_38 : f32
    %1310 = math.rsqrt %1309 : f32
    %1311 = vector.broadcast %1310 : f32 to vector<16x16xf32>
    %1312 = arith.mulf %1302, %1311 : vector<16x16xf32>
    %cst_39 = arith.constant 0.000000e+00 : f32
    %1313 = vector.broadcast %cst_39 : f32 to vector<16x16xf32>
    %1314 = arith.maximumf %1312, %1313 : vector<16x16xf32>
    %c0_40 = arith.constant 0 : index
    %c2_41 = arith.constant 2 : index
    %c0_42 = arith.constant 0 : index
    %c0_43 = arith.constant 0 : index
    %1315 = vector.load %arg4[%c0_40, %c2_41, %c0_42, %c0_43] : memref<1x8x16x16xf32, #tpu.memory_space<vmem>>, vector<1x1x16x16xf32>
    %1316 = vector.shape_cast %1315 : vector<1x1x16x16xf32> to vector<16x16xf32>
    %1317 = vector.shape_cast %1314 : vector<16x16xf32> to vector<1x1x16x16xf32>
    tpu.vector_store %arg4[%c0_40, %c2_41, %c0_42, %c0_43], %1317 {strides = array<i32>} : memref<1x8x16x16xf32, #tpu.memory_space<vmem>>, vector<1x1x16x16xf32>,
    %c3_44 = arith.constant 3 : index
    %1318 = memref.load %arg3[%c3_44] : memref<8xf32, #tpu.memory_space<smem>>
    %1319 = vector.broadcast %1318 : f32 to vector<16x16xf32>
    %1320 = arith.addf %1226, %1319 : vector<16x16xf32>
    %1321 = vector.shape_cast %1320 : vector<16x16xf32> to vector<1x16x16xf32>
    %cst_45 = arith.constant dense<0.000000e+00> : vector<1xf32>
    %1322 = vector.multi_reduction <add>, %1321, %cst_45 [1, 2] : vector<1x16x16xf32> to vector<1xf32>
    %1323 = vector.shape_cast %1322 : vector<1xf32> to vector<1x1x1xf32>
    %1324 = vector.extract %1323[0, 0, 0] : f32 from vector<1x1x1xf32>
    %cst_46 = arith.constant 3.906250e-03 : f32
    %1325 = arith.mulf %1324, %cst_46 : f32
    %1326 = vector.broadcast %1325 : f32 to vector<16x16xf32>
    %1327 = arith.subf %1320, %1326 : vector<16x16xf32>
    %1328 = arith.mulf %1327, %1327 : vector<16x16xf32>
    %1329 = vector.shape_cast %1328 : vector<16x16xf32> to vector<1x16x16xf32>
    %cst_47 = arith.constant dense<0.000000e+00> : vector<1xf32>
    %1330 = vector.multi_reduction <add>, %1329, %cst_47 [1, 2] : vector<1x16x16xf32> to vector<1xf32>
    %1331 = vector.shape_cast %1330 : vector<1xf32> to vector<1x1x1xf32>
    %1332 = vector.extract %1331[0, 0, 0] : f32 from vector<1x1x1xf32>
    %cst_48 = arith.constant 3.906250e-03 : f32
    %1333 = arith.mulf %1332, %cst_48 : f32
    %cst_49 = arith.constant 9.99999974E-6 : f32
    %1334 = arith.addf %1333, %cst_49 : f32
    %1335 = math.rsqrt %1334 : f32
    %1336 = vector.broadcast %1335 : f32 to vector<16x16xf32>
    %1337 = arith.mulf %1327, %1336 : vector<16x16xf32>
    %cst_50 = arith.constant 0.000000e+00 : f32
    %1338 = vector.broadcast %cst_50 : f32 to vector<16x16xf32>
    %1339 = arith.maximumf %1337, %1338 : vector<16x16xf32>
    %c0_51 = arith.constant 0 : index
    %c3_52 = arith.constant 3 : index
    %c0_53 = arith.constant 0 : index
    %c0_54 = arith.constant 0 : index
    %1340 = vector.load %arg4[%c0_51, %c3_52, %c0_53, %c0_54] : memref<1x8x16x16xf32, #tpu.memory_space<vmem>>, vector<1x1x16x16xf32>
    %1341 = vector.shape_cast %1340 : vector<1x1x16x16xf32> to vector<16x16xf32>
    %1342 = vector.shape_cast %1339 : vector<16x16xf32> to vector<1x1x16x16xf32>
    tpu.vector_store %arg4[%c0_51, %c3_52, %c0_53, %c0_54], %1342 {strides = array<i32>} : memref<1x8x16x16xf32, #tpu.memory_space<vmem>>, vector<1x1x16x16xf32>,
    %c4_55 = arith.constant 4 : index
    %1343 = memref.load %arg3[%c4_55] : memref<8xf32, #tpu.memory_space<smem>>
    %1344 = vector.broadcast %1343 : f32 to vector<16x16xf32>
    %1345 = arith.addf %1230, %1344 : vector<16x16xf32>
    %1346 = vector.shape_cast %1345 : vector<16x16xf32> to vector<1x16x16xf32>
    %cst_56 = arith.constant dense<0.000000e+00> : vector<1xf32>
    %1347 = vector.multi_reduction <add>, %1346, %cst_56 [1, 2] : vector<1x16x16xf32> to vector<1xf32>
    %1348 = vector.shape_cast %1347 : vector<1xf32> to vector<1x1x1xf32>
    %1349 = vector.extract %1348[0, 0, 0] : f32 from vector<1x1x1xf32>
    %cst_57 = arith.constant 3.906250e-03 : f32
    %1350 = arith.mulf %1349, %cst_57 : f32
    %1351 = vector.broadcast %1350 : f32 to vector<16x16xf32>
    %1352 = arith.subf %1345, %1351 : vector<16x16xf32>
    %1353 = arith.mulf %1352, %1352 : vector<16x16xf32>
    %1354 = vector.shape_cast %1353 : vector<16x16xf32> to vector<1x16x16xf32>
    %cst_58 = arith.constant dense<0.000000e+00> : vector<1xf32>
    %1355 = vector.multi_reduction <add>, %1354, %cst_58 [1, 2] : vector<1x16x16xf32> to vector<1xf32>
    %1356 = vector.shape_cast %1355 : vector<1xf32> to vector<1x1x1xf32>
    %1357 = vector.extract %1356[0, 0, 0] : f32 from vector<1x1x1xf32>
    %cst_59 = arith.constant 3.906250e-03 : f32
    %1358 = arith.mulf %1357, %cst_59 : f32
    %cst_60 = arith.constant 9.99999974E-6 : f32
    %1359 = arith.addf %1358, %cst_60 : f32
    %1360 = math.rsqrt %1359 : f32
    %1361 = vector.broadcast %1360 : f32 to vector<16x16xf32>
    %1362 = arith.mulf %1352, %1361 : vector<16x16xf32>
    %cst_61 = arith.constant 0.000000e+00 : f32
    %1363 = vector.broadcast %cst_61 : f32 to vector<16x16xf32>
    %1364 = arith.maximumf %1362, %1363 : vector<16x16xf32>
    %c0_62 = arith.constant 0 : index
    %c4_63 = arith.constant 4 : index
    %c0_64 = arith.constant 0 : index
    %c0_65 = arith.constant 0 : index
    %1365 = vector.load %arg4[%c0_62, %c4_63, %c0_64, %c0_65] : memref<1x8x16x16xf32, #tpu.memory_space<vmem>>, vector<1x1x16x16xf32>
    %1366 = vector.shape_cast %1365 : vector<1x1x16x16xf32> to vector<16x16xf32>
    %1367 = vector.shape_cast %1364 : vector<16x16xf32> to vector<1x1x16x16xf32>
    tpu.vector_store %arg4[%c0_62, %c4_63, %c0_64, %c0_65], %1367 {strides = array<i32>} : memref<1x8x16x16xf32, #tpu.memory_space<vmem>>, vector<1x1x16x16xf32>,
    %c5_66 = arith.constant 5 : index
    %1368 = memref.load %arg3[%c5_66] : memref<8xf32, #tpu.memory_space<smem>>
    %1369 = vector.broadcast %1368 : f32 to vector<16x16xf32>
    %1370 = arith.addf %1234, %1369 : vector<16x16xf32>
    %1371 = vector.shape_cast %1370 : vector<16x16xf32> to vector<1x16x16xf32>
    %cst_67 = arith.constant dense<0.000000e+00> : vector<1xf32>
    %1372 = vector.multi_reduction <add>, %1371, %cst_67 [1, 2] : vector<1x16x16xf32> to vector<1xf32>
    %1373 = vector.shape_cast %1372 : vector<1xf32> to vector<1x1x1xf32>
    %1374 = vector.extract %1373[0, 0, 0] : f32 from vector<1x1x1xf32>
    %cst_68 = arith.constant 3.906250e-03 : f32
    %1375 = arith.mulf %1374, %cst_68 : f32
    %1376 = vector.broadcast %1375 : f32 to vector<16x16xf32>
    %1377 = arith.subf %1370, %1376 : vector<16x16xf32>
    %1378 = arith.mulf %1377, %1377 : vector<16x16xf32>
    %1379 = vector.shape_cast %1378 : vector<16x16xf32> to vector<1x16x16xf32>
    %cst_69 = arith.constant dense<0.000000e+00> : vector<1xf32>
    %1380 = vector.multi_reduction <add>, %1379, %cst_69 [1, 2] : vector<1x16x16xf32> to vector<1xf32>
    %1381 = vector.shape_cast %1380 : vector<1xf32> to vector<1x1x1xf32>
    %1382 = vector.extract %1381[0, 0, 0] : f32 from vector<1x1x1xf32>
    %cst_70 = arith.constant 3.906250e-03 : f32
    %1383 = arith.mulf %1382, %cst_70 : f32
    %cst_71 = arith.constant 9.99999974E-6 : f32
    %1384 = arith.addf %1383, %cst_71 : f32
    %1385 = math.rsqrt %1384 : f32
    %1386 = vector.broadcast %1385 : f32 to vector<16x16xf32>
    %1387 = arith.mulf %1377, %1386 : vector<16x16xf32>
    %cst_72 = arith.constant 0.000000e+00 : f32
    %1388 = vector.broadcast %cst_72 : f32 to vector<16x16xf32>
    %1389 = arith.maximumf %1387, %1388 : vector<16x16xf32>
    %c0_73 = arith.constant 0 : index
    %c5_74 = arith.constant 5 : index
    %c0_75 = arith.constant 0 : index
    %c0_76 = arith.constant 0 : index
    %1390 = vector.load %arg4[%c0_73, %c5_74, %c0_75, %c0_76] : memref<1x8x16x16xf32, #tpu.memory_space<vmem>>, vector<1x1x16x16xf32>
    %1391 = vector.shape_cast %1390 : vector<1x1x16x16xf32> to vector<16x16xf32>
    %1392 = vector.shape_cast %1389 : vector<16x16xf32> to vector<1x1x16x16xf32>
    tpu.vector_store %arg4[%c0_73, %c5_74, %c0_75, %c0_76], %1392 {strides = array<i32>} : memref<1x8x16x16xf32, #tpu.memory_space<vmem>>, vector<1x1x16x16xf32>,
    %c6_77 = arith.constant 6 : index
    %1393 = memref.load %arg3[%c6_77] : memref<8xf32, #tpu.memory_space<smem>>
    %1394 = vector.broadcast %1393 : f32 to vector<16x16xf32>
    %1395 = arith.addf %1238, %1394 : vector<16x16xf32>
    %1396 = vector.shape_cast %1395 : vector<16x16xf32> to vector<1x16x16xf32>
    %cst_78 = arith.constant dense<0.000000e+00> : vector<1xf32>
    %1397 = vector.multi_reduction <add>, %1396, %cst_78 [1, 2] : vector<1x16x16xf32> to vector<1xf32>
    %1398 = vector.shape_cast %1397 : vector<1xf32> to vector<1x1x1xf32>
    %1399 = vector.extract %1398[0, 0, 0] : f32 from vector<1x1x1xf32>
    %cst_79 = arith.constant 3.906250e-03 : f32
    %1400 = arith.mulf %1399, %cst_79 : f32
    %1401 = vector.broadcast %1400 : f32 to vector<16x16xf32>
    %1402 = arith.subf %1395, %1401 : vector<16x16xf32>
    %1403 = arith.mulf %1402, %1402 : vector<16x16xf32>
    %1404 = vector.shape_cast %1403 : vector<16x16xf32> to vector<1x16x16xf32>
    %cst_80 = arith.constant dense<0.000000e+00> : vector<1xf32>
    %1405 = vector.multi_reduction <add>, %1404, %cst_80 [1, 2] : vector<1x16x16xf32> to vector<1xf32>
    %1406 = vector.shape_cast %1405 : vector<1xf32> to vector<1x1x1xf32>
    %1407 = vector.extract %1406[0, 0, 0] : f32 from vector<1x1x1xf32>
    %cst_81 = arith.constant 3.906250e-03 : f32
    %1408 = arith.mulf %1407, %cst_81 : f32
    %cst_82 = arith.constant 9.99999974E-6 : f32
    %1409 = arith.addf %1408, %cst_82 : f32
    %1410 = math.rsqrt %1409 : f32
    %1411 = vector.broadcast %1410 : f32 to vector<16x16xf32>
    %1412 = arith.mulf %1402, %1411 : vector<16x16xf32>
    %cst_83 = arith.constant 0.000000e+00 : f32
    %1413 = vector.broadcast %cst_83 : f32 to vector<16x16xf32>
    %1414 = arith.maximumf %1412, %1413 : vector<16x16xf32>
    %c0_84 = arith.constant 0 : index
    %c6_85 = arith.constant 6 : index
    %c0_86 = arith.constant 0 : index
    %c0_87 = arith.constant 0 : index
    %1415 = vector.load %arg4[%c0_84, %c6_85, %c0_86, %c0_87] : memref<1x8x16x16xf32, #tpu.memory_space<vmem>>, vector<1x1x16x16xf32>
    %1416 = vector.shape_cast %1415 : vector<1x1x16x16xf32> to vector<16x16xf32>
    %1417 = vector.shape_cast %1414 : vector<16x16xf32> to vector<1x1x16x16xf32>
    tpu.vector_store %arg4[%c0_84, %c6_85, %c0_86, %c0_87], %1417 {strides = array<i32>} : memref<1x8x16x16xf32, #tpu.memory_space<vmem>>, vector<1x1x16x16xf32>,
    %c7_88 = arith.constant 7 : index
    %1418 = memref.load %arg3[%c7_88] : memref<8xf32, #tpu.memory_space<smem>>
    %1419 = vector.broadcast %1418 : f32 to vector<16x16xf32>
    %1420 = arith.addf %1242, %1419 : vector<16x16xf32>
    %1421 = vector.shape_cast %1420 : vector<16x16xf32> to vector<1x16x16xf32>
    %cst_89 = arith.constant dense<0.000000e+00> : vector<1xf32>
    %1422 = vector.multi_reduction <add>, %1421, %cst_89 [1, 2] : vector<1x16x16xf32> to vector<1xf32>
    %1423 = vector.shape_cast %1422 : vector<1xf32> to vector<1x1x1xf32>
    %1424 = vector.extract %1423[0, 0, 0] : f32 from vector<1x1x1xf32>
    %cst_90 = arith.constant 3.906250e-03 : f32
    %1425 = arith.mulf %1424, %cst_90 : f32
    %1426 = vector.broadcast %1425 : f32 to vector<16x16xf32>
    %1427 = arith.subf %1420, %1426 : vector<16x16xf32>
    %1428 = arith.mulf %1427, %1427 : vector<16x16xf32>
    %1429 = vector.shape_cast %1428 : vector<16x16xf32> to vector<1x16x16xf32>
    %cst_91 = arith.constant dense<0.000000e+00> : vector<1xf32>
    %1430 = vector.multi_reduction <add>, %1429, %cst_91 [1, 2] : vector<1x16x16xf32> to vector<1xf32>
    %1431 = vector.shape_cast %1430 : vector<1xf32> to vector<1x1x1xf32>
    %1432 = vector.extract %1431[0, 0, 0] : f32 from vector<1x1x1xf32>
    %cst_92 = arith.constant 3.906250e-03 : f32
    %1433 = arith.mulf %1432, %cst_92 : f32
    %cst_93 = arith.constant 9.99999974E-6 : f32
    %1434 = arith.addf %1433, %cst_93 : f32
    %1435 = math.rsqrt %1434 : f32
    %1436 = vector.broadcast %1435 : f32 to vector<16x16xf32>
    %1437 = arith.mulf %1427, %1436 : vector<16x16xf32>
    %cst_94 = arith.constant 0.000000e+00 : f32
    %1438 = vector.broadcast %cst_94 : f32 to vector<16x16xf32>
    %1439 = arith.maximumf %1437, %1438 : vector<16x16xf32>
    %c0_95 = arith.constant 0 : index
    %c7_96 = arith.constant 7 : index
    %c0_97 = arith.constant 0 : index
    %c0_98 = arith.constant 0 : index
    %1440 = vector.load %arg4[%c0_95, %c7_96, %c0_97, %c0_98] : memref<1x8x16x16xf32, #tpu.memory_space<vmem>>, vector<1x1x16x16xf32>
    %1441 = vector.shape_cast %1440 : vector<1x1x16x16xf32> to vector<16x16xf32>
    %1442 = vector.shape_cast %1439 : vector<16x16xf32> to vector<1x1x16x16xf32>
    tpu.vector_store %arg4[%c0_95, %c7_96, %c0_97, %c0_98], %1442 {strides = array<i32>} : memref<1x8x16x16xf32, #tpu.memory_space<vmem>>, vector<1x1x16x16xf32>,
    return
  }
  func.func @transform_0(%arg0: i32) -> (i32, i32, i32, i32) {
    %c0_i32 = arith.constant 0 : i32
    %c0_i32_0 = arith.constant 0 : i32
    %c0_i32_1 = arith.constant 0 : i32
    %c0_i32_2 = arith.constant 0 : i32
    return %arg0, %c0_i32, %c0_i32_0, %c0_i32_1 : i32, i32, i32, i32
  }
  func.func @transform_1(%arg0: i32) -> i32 {
    %c0_i32 = arith.constant 0 : i32
    %c0_i32_0 = arith.constant 0 : i32
    return %c0_i32 : i32
  }
  func.func @transform_2(%arg0: i32) -> i32 {
    %c0_i32 = arith.constant 0 : i32
    %c0_i32_0 = arith.constant 0 : i32
    return %c0_i32 : i32
  }
  func.func @transform_3(%arg0: i32) -> (i32, i32, i32, i32) {
    %c0_i32 = arith.constant 0 : i32
    %c0_i32_0 = arith.constant 0 : i32
    %c0_i32_1 = arith.constant 0 : i32
    %c0_i32_2 = arith.constant 0 : i32
    return %arg0, %c0_i32, %c0_i32_0, %c0_i32_1 : i32, i32, i32, i32
  }
}

</mosaic_0001>

<bundles_post_ra>
// kernel: tpu_custom_call.1
= control target key start
LH: loop header
LB: loop body
LE: loop exit
PB: predicated region body
PF: predicated region fallthrough
CT: control target
= control target key end

     0   :  { %8 = vsyncpa [#allocation4], 0  ;;  %s10058_s0 = inlined_call_operand.vmem [shape: f32[2,4,18,18], index: 0, kind: input, shape index: {}]   ;;  %s10059_s1 = inlined_call_operand.vmem [shape: f32[288], index: 1, kind: input, shape index: {}]   ;;  %s10060_s2 = inlined_call_operand.vmem [shape: f32[8], index: 2, kind: input, shape index: {}]   ;;  %s10061_s3 = inlined_call_operand.hbm [shape: f32[2,8,16,16], index: 3, kind: output, shape index: {}]  }
   0x1   :  { %9 = vsyncpa [#allocation6], 0 }
   0x2   :  { %10 = vsyncpa [#allocation3], 0 }
   0x3   :  { %12 = vsyncpa [#allocation3 + $0x1], 0  ;;  %s6207_s12 = smov 0   ;;  %s6209_s13 = smov 0  }
   0x4   :  { %s6211_s14 = smov 0   ;;  %s6213_s15 = smov 0  }
   0x5 LB: > { %s6228_s16 = sadd.s32 4294967295, %s6178_s15   ;;  %s5548_s17 = sadd.s32 4294967294, %s6178_s15   ;;  %s6178_s15 = sphi %s6213_s15, %s10110_s15   ;;  %s6174_s14 = sphi %s6211_s14, %s10109_s14   ;;  %s6170_s13 = sphi %s6209_s13, %s10108_s13   ;;  %s6166_s12 = sphi %s6207_s12, %s10107_s12  }
   0x6   : > { %s6232_s18 = sadd.s32 1, %s6178_s15   ;;  %s93_s19 = sadd.s32 1, %s6174_s14 }
   0x7   : > { %s90_s20 = ssub.s32 %s6178_s15, %s6232_s18  ;;  %p103_p0 = scmp.ne.s32.totalorder %s6174_s14, %s6170_s13 }
   0x8   : > { %p91_p1 = scmp.eq.s32.totalorder %s90_s20, 0  ;;  %p104_p2 = scmp.eq.s32.totalorder %s6228_s16, 1 }
   0x9   : > { %p109_p3 = scmp.ne.s32.totalorder %s6170_s13, %s6166_s12  ;;  %p110_p4 = scmp.eq.s32.totalorder %s5548_s17, 1 }
   0xa   : > { %s6243_s21 = scalar_select %p91_p1, %s6174_s14, %s93_s19  }
   0xb   : > { %p6245_p5 = por %p104_p2, %p103_p0  ;;  %p6249_p6 = por %p110_p4, %p109_p3 }
   0xc   : > { %p5549_p7 = scmp.ge.s32.totalorder %s6178_s15, 1  ;;  %p117_p8 = scmp.lt.s32.totalorder %s6178_s15, 3 }
   0xd   : > { %s10079_s22 = scalar_select %p6245_p5, 1, 0 }
   0xe   : > { %s10080_s23 = scalar_select %p6249_p6, 1, 0 }
   0xf   : > { %p10062_p9 = scmp.eq.s32.totalorder %s6228_s16, 0  ;;  %p6256_p10 = pnand %p5549_p7, %p117_p8 }
  0x10   : > { %s130_s27 = sshll.u32 %s10059_s1, 4  ;;  %s141_s30 = sshll.u32 %s10060_s2, 4  ;;  %s131_s27 = int_to_ptr.vmem [resolvable:$true] %s130_s27  ;;  %s142_s30 = int_to_ptr.vmem [resolvable:$true] %s141_s30 }
  0x11   : > { %s10081_s24 = scalar_select %p6256_p10, 1, 0 }
  0x12   : > { %p5931_p11 = pneg %p6256_p10  ;;  %s6078_s5 = scalar_lea.vmem %s131_s27, 48 }
  0x13   : > { %p6079_p13 = scmp.ne.s32.totalorder %s131_s27, %s6078_s5  ;;  %s6085_s6 = scalar_lea.vmem %s131_s27, 64 }
  0x14   : > { %p6270_p12 = pnand %p10062_p9, %p5931_p11  ;;  %p6086_p3 = scmp.lt.s32.totalorder %s131_s27, %s131_s27 }
  0x15   : > { %p6087_p4 = scmp.lt.s32.totalorder %s6085_s6, %s6078_s5 }
  0x16   : > { %p6080_p0 = pneg %p6270_p12 }
  0x17   : > { %p6088_p7 = por %p6087_p4, %p6086_p3 }
  0x18   : > { %p6081_p1 = pnand %p6080_p0, %p6079_p13 }
  0x1a   : > { %p6082_p2 = pneg %p6081_p1 }
  0x1c   : > { %p6089_p8 = pnand %p6088_p7, %p6082_p2 }
  0x1e   : > { %6092 = shalt.err (!%p6089_p8)
}
  0x1f   : > { %s6180_s7 = smov [#allocation2]   ;;  %s6093_s8 = scalar_lea.vmem %s142_s30, 16 }
  0x20   : > { %5934 = dma.vmem_to_smem (!%p6270_p12), %s131_s27, 48, %s6180_s7, [#allocation4]  }
  0x21   : > { %p6094_p11 = scmp.ne.s32.totalorder %s142_s30, %s6093_s8  ;;  %p6101_p5 = scmp.lt.s32.totalorder %s142_s30, %s142_s30 }
  0x22   : > { %p6102_p13 = scmp.lt.s32.totalorder %s6093_s8, %s6093_s8 }
  0x23   : > { %p6096_p9 = pnand %p6094_p11, %p6080_p0 }
  0x24   : > { %p6103_p1 = por %p6102_p13, %p6101_p5 }
  0x25   : > { %p6097_p6 = pneg %p6096_p9 }
  0x27   : > { %p6104_p10 = pnand %p6103_p1, %p6097_p6 }
  0x29   : > { %6107 = shalt.err (!%p6104_p10)
}
  0x2a   : > { %s6181_s9 = smov [#allocation5]   ;;  %p10083_p2 = scmp.ne.s32.totalorder %s10081_s24, 0 }
  0x2b   : > { %5937 = dma.vmem_to_smem (!%p6270_p12), %s142_s30, 16, %s6181_s9, [#allocation6]  }
  0x2c   : > { %162 = sbr.rel (%p10083_p2) target bundleno = 2756 (0xac4), region = 32 }
  0x33   : > { %p10084_p3 = scmp.eq.s32.totalorder %s6228_s16, 0 }
  0x35   : > { %6153 = dma.done.wait (%p10084_p3), [#allocation4], 48   ;;  %p10085_p4 = pmov %p10084_p3 }
  0x36   : > { %p10086_p9 = pmov %p10084_p3 }
  0x37   : > { %6155 = vsyncadd (%p10085_p4), [#allocation4], 4294967248 }
  0x38   : > { %6157 = dma.done.wait (%p10086_p9), [#allocation6], 16   ;;  %p10087_p5 = pmov %p10084_p3 }
  0x3a   : > { %6159 = vsyncadd (%p10087_p5), [#allocation6], 4294967280 }
  0x3b   : > { %172 = sfence }
  0x3c   : > { %p191_p6 = scmp.lt.s32.totalorder %s6228_s16, 1  ;;  %s5597_s10 = sld [smem:[#allocation2 + $0xa]]  ;;  %vm1304_vm0 = vcmask 1046528   ;;  %vm3193_vm1 = vcmask 1045504   ;;  %vm5078_vm2 = vcmask 130048  }
  0x3d   : > { %s5589_s11 = sld [smem:[#allocation2 + $0x1]]  ;;  %s5605_s19 = sld [smem:[#allocation2 + $0x13]] }
  0x3e   : > { %s192_s17 = scalar_select %p191_p6, %s6228_s16, 1 }
  0x3f   : > { %s5613_s27 = sld [smem:[#allocation2 + $0x1c]]  ;;  %s6182_s28 = smov 127  }
  0x40   : > { %s5872_s20 = smul.u32 96, %s192_s17  ;;  %s5621_s29 = sld [smem:[#allocation2 + $0x2]] }
  0x41   : > { %s5629_s30 = sld [smem:[#allocation2 + $0xb]]  ;;  %s5637_s4 = sld [smem:[#allocation2 + $0x14]] }
  0x42   : > { %s6301_s26 = scalar_lea.vmem %s10058_s0, %s5872_s20  ;;  %v513_v2 = vstv %s5597_s10  ;;  %s5685_s5 = sld [smem:[#allocation2 + $0x4]] }
  0x43   : > { %v6304_v0 = vld [vmem:[%s6301_s26 + $0x18] sm:$0xff]  ;;  %v6307_v1 = vld [vmem:[%s6301_s26 + $0x20] sm:$0xff]  ;;  %v6314_v5 = vld [vmem:[%s6301_s26 + $0x8] sm:$0xff]  ;;  %v401_v6 = vstv %s5589_s11  ;;  %s5645_s6 = sld [smem:[#allocation2 + $0x1d]]  ;;  %s6183_s8 = smov 126  }
  0x44   : > { %v6310_v3 = vld [vmem:[%s6301_s26] sm:$0xff]  ;;  %v514_v4 = vmul.f32 %v513_v2, %v6304_v0  ;;  %v515_v8 = vmul.f32 %v513_v2, %v6307_v1  ;;  %v403_v9 = vmul.f32 %v401_v6, %v6314_v5  ;;  %v6322_v10 = vld [vmem:[%s6301_s26 + $0x38] sm:$0xff]  ;;  %v625_v11 = vstv %s5605_s19  ;;  %v6325_v12 = vld [vmem:[%s6301_s26 + $0x30] sm:$0xff]  ;;  %s5693_s7 = sld [smem:[#allocation2 + $0xd]]  ;;  %s5701_s9 = sld [smem:[#allocation2 + $0x16]] }
  0x45   : > { %v402_v7 = vmul.f32 %v401_v6, %v6310_v3  ;;  %v627_v13 = vmul.f32 %v625_v11, %v6322_v10  ;;  %v626_v14 = vmul.f32 %v625_v11, %v6325_v12  ;;  %v6332_v15 = vld [vmem:[%s6301_s26 + $0x50] sm:$0xff]  ;;  %v737_v16 = vstv %s5613_s27  ;;  %v6335_v17 = vld [vmem:[%s6301_s26 + $0x48] sm:$0xff]  ;;  %s5709_s10 = sld [smem:[#allocation2 + $0x1f]]  ;;  %v6369_v44 = vld [vmem:[%s6301_s26 + $0x40] sm:$0x3]  ;;  %s5717_s11 = sld [smem:[#allocation2 + $0x5]] }
  0x46   : > { %518 = vrot.lane.b32.xlu1 %v514_v4, %s6182_s28  ;;  %v739_v18 = vmul.f32 %v737_v16, %v6332_v15  ;;  %v738_v19 = vmul.f32 %v737_v16, %v6335_v17  ;;  %v849_v20 = vstv %s5621_s29  ;;  %v6350_v27 = vld [vmem:[%s6301_s26 + $0x10] sm:$0x3]  ;;  %v6360_v35 = vld [vmem:[%s6301_s26 + $0x28] sm:$0x3]  ;;  %s5725_s17 = sld [smem:[#allocation2 + $0xe]]  ;;  %s5733_s19 = sld [smem:[#allocation2 + $0x17]] }
  0x47   : > { %406 = vrot.lane.b32.xlu0 %v402_v7, %s6182_s28  ;;  %v851_v21 = vmul.f32 %v849_v20, %v6314_v5  ;;  %v850_v22 = vmul.f32 %v849_v20, %v6310_v3  ;;  %v961_v23 = vstv %s5629_s30  ;;  %v1073_v26 = vstv %s5637_s4  ;;  %v6380_v56 = vld [vmem:[%s6301_s26 + $0x58] sm:$0x3]  ;;  %s5741_s20 = sld [smem:[#allocation2 + $0x20]]  ;;  %s5781_s24 = sld [smem:[#allocation2 + $0x7]] }
  0x48   : > { %v963_v24 = vmul.f32 %v961_v23, %v6307_v1  ;;  %v962_v25 = vmul.f32 %v961_v23, %v6304_v0  ;;  %v1842_v28 = vstv %s5685_s5  ;;  %v1075_v29 = vmul.f32 %v1073_v26, %v6322_v10  ;;  %s5789_s25 = sld [smem:[#allocation2 + $0x10]]  ;;  %s5797_s27 = sld [smem:[#allocation2 + $0x19]] }
  0x49   : > { %v1074_v30 = vmul.f32 %v1073_v26, %v6325_v12  ;;  %v1185_v31 = vstv %s5645_s6  ;;  %v1844_v32 = vmul.f32 %v1842_v28, %v6314_v5  ;;  %v1845_v33 = vmul.f32 %v1842_v28, %v6350_v27  ;;  %s5805_s29 = sld [smem:[#allocation2 + $0x22]]  ;;  %s5813_s30 = sld [smem:[#allocation2 + $0x8]] }
  0x4a   : > { %520 = vrot.lane.b32.xlu1 %v515_v8, %s6182_s28  ;;  %v1843_v34 = vmul.f32 %v1842_v28, %v6310_v3  ;;  %v2010_v36 = vstv %s5693_s7  ;;  %v1187_v37 = vmul.f32 %v1185_v31, %v6332_v15  ;;  %v1186_v38 = vmul.f32 %v1185_v31, %v6335_v17  ;;  %s5821_s4 = sld [smem:[#allocation2 + $0x11]]  ;;  %s5829_s5 = sld [smem:[#allocation2 + $0x1a]] }
  0x4b   : > { %408 = vrot.lane.b32.xlu0 %v403_v9, %s6182_s28  ;;  %v2178_v39 = vstv %s5701_s9  ;;  %v1850_v40 = vrot.slane %v1844_v32, 1  ;;  %v1852_v41 = vrot.slane %v1845_v33, 1  ;;  %v2012_v42 = vmul.f32 %v2010_v36, %v6307_v1  ;;  %s5837_s6 = sld [smem:[#allocation2 + $0x23]]  ;;  %s5590_s7 = sld [smem:[#allocation2 + $0x25]] }
  0x4c   : > { %v2013_v43 = vmul.f32 %v2010_v36, %v6360_v35  ;;  %v1849_v45 = vrot.slane %v1843_v34, 1  ;;  %v2011_v46 = vmul.f32 %v2010_v36, %v6304_v0  ;;  %v2180_v47 = vmul.f32 %v2178_v39, %v6322_v10  ;;  %s5598_s9 = sld [smem:[#allocation2 + $0x2e]]  ;;  %p10105_p12 = scmp.ne.s32.totalorder %s10079_s22, 0 }
  0x4d   : > { %v2181_v48 = vmul.f32 %v2178_v39, %v6369_v44  ;;  %v1853_v49 = vsel %vm1304_vm0, %v1850_v40, %v1852_v41  ;;  %v2018_v50 = vrot.slane %v2012_v42, 1  ;;  %v2346_v52 = vstv %s5709_s10  ;;  %s5606_s10 = sld [smem:[#allocation2 + $0x37]] }
  0x4e   : > { %632 = vrot.lane.b32.xlu1 %v627_v13, %s6182_s28  ;;  %v2020_v51 = vrot.slane %v2013_v43, 1  ;;  %v1851_v53 = vsel %vm1304_vm0, %v1849_v45, %v1850_v40  ;;  %v2017_v54 = vrot.slane %v2011_v46, 1  ;;  %v2179_v55 = vmul.f32 %v2178_v39, %v6325_v12 }
  0x4f   : > { %630 = vrot.lane.b32.xlu0 %v626_v14, %s6182_s28  ;;  %v2186_v57 = vrot.slane %v2180_v47, 1  ;;  %v2188_v58 = vrot.slane %v2181_v48, 1  ;;  %v2348_v59 = vmul.f32 %v2346_v52, %v6332_v15  ;;  %v2349_v61 = vmul.f32 %v2346_v52, %v6380_v56 }
  0x50   : > { %v2021_v60 = vsel %vm1304_vm0, %v2018_v50, %v2020_v51  ;;  %v2019_v62 = vsel %vm1304_vm0, %v2017_v54, %v2018_v50  ;;  %v2185_v63 = vrot.slane %v2179_v55, 1  ;;  %v2347_v2 = vmul.f32 %v2346_v52, %v6335_v17 }
  0x51   : > { %v2514_v4 = vstv %s5717_s11  ;;  %v2189_v6 = vsel %vm1304_vm0, %v2186_v57, %v2188_v58  ;;  %v2354_v7 = vrot.slane %v2348_v59, 1  ;;  %v2356_v8 = vrot.slane %v2349_v61, 1  ;;  %s208_s11 = sld [smem:[#allocation2]] }
  0x52   : > { %744 = vrot.lane.b32.xlu1 %v739_v18, %s6182_s28  ;;  %v2516_v9 = vmul.f32 %v2514_v4, %v6314_v5  ;;  %v2517_v11 = vmul.f32 %v2514_v4, %v6350_v27  ;;  %v2682_v13 = vstv %s5725_s17  ;;  %v2187_v14 = vsel %vm1304_vm0, %v2185_v63, %v2186_v57  ;;  %s5565_s17 = sld [smem:[#allocation2 + $0x9]] }
  0x53   : > { %742 = vrot.lane.b32.xlu0 %v738_v19, %s6182_s28  ;;  %v2353_v16 = vrot.slane %v2347_v2, 1  ;;  %v2515_v18 = vmul.f32 %v2514_v4, %v6310_v3  ;;  %v2684_v19 = vmul.f32 %v2682_v13, %v6307_v1  ;;  %v2685_v20 = vmul.f32 %v2682_v13, %v6360_v35 }
  0x54   : > { %v2524_v23 = vrot.slane %v2517_v11, 1  ;;  %v2683_v26 = vmul.f32 %v2682_v13, %v6304_v0  ;;  %v2850_v28 = vstv %s5733_s19  ;;  %v3731_v40 = vstv %s5781_s24  ;;  %s5573_s19 = sld [smem:[#allocation2 + $0x12]]  ;;  %s6492_s24 = sld [smem:[#allocation2 + $0x1b]] }
  0x55   : > { %v2852_v32 = vmul.f32 %v2850_v28, %v6322_v10  ;;  %v2853_v33 = vmul.f32 %v2850_v28, %v6369_v44  ;;  %v3734_v50 = vmul.f32 %v3731_v40, %v6350_v27  ;;  %v3732_v57 = vmul.f32 %v3731_v40, %v6310_v3 }
  0x56   : > { %856 = vrot.lane.b32.xlu1 %v851_v21, %s6183_s8  ;;  %v2357_v21 = vsel %vm1304_vm0, %v2354_v7, %v2356_v8  ;;  %v2689_v36 = vrot.slane %v2683_v26, 1  ;;  %v3899_v58 = vstv %s5789_s25  ;;  %v4067_v2 = vstv %s5797_s27  ;;  %s5653_s25 = sld [smem:[#allocation2 + $0x3]]  ;;  %s5661_s27 = sld [smem:[#allocation2 + $0xc]] }
  0x57   : > { %854 = vrot.lane.b32.xlu0 %v850_v22, %s6183_s8  ;;  %v2522_v22 = vrot.slane %v2516_v9, 1  ;;  %v2858_v41 = vrot.slane %v2852_v32, 1  ;;  %v2860_v42 = vrot.slane %v2853_v33, 1  ;;  %v3902_v63 = vmul.f32 %v3899_v58, %v6360_v35 }
  0x58   : > { %v4069_v8 = vmul.f32 %v4067_v2, %v6322_v10  ;;  %v4070_v9 = vmul.f32 %v4067_v2, %v6369_v44  ;;  %v4571_v32 = vstv %s5821_s4  ;;  %s6513_s4 = sld [smem:[#allocation2 + $0x2f]] }
  0x59   : > { %v2525_v31 = vsel %vm1304_vm0, %v2522_v22, %v2524_v23  ;;  %v2861_v51 = vsel %vm1304_vm0, %v2858_v41, %v2860_v42  ;;  %v4574_v42 = vmul.f32 %v4571_v32, %v6360_v35 }
  0x5a   : > { %968 = vrot.lane.b32.xlu1 %v963_v24, %s6183_s8  ;;  %v2355_v24 = vsel %vm1304_vm0, %v2353_v16, %v2354_v7  ;;  %v3900_v7 = vmul.f32 %v3899_v58, %v6304_v0 }
  0x5b   : > { %966 = vrot.lane.b32.xlu0 %v962_v25, %s6183_s8  ;;  %v2521_v25 = vrot.slane %v2515_v18, 1 }
  0x5c   : > { %v3906_v18 = vrot.slane %v3900_v7, 2 }
  0x5d   : > { %v2523_v34 = vsel %vm1304_vm0, %v2521_v25, %v2522_v22  ;;  %v4077_v22 = vrot.slane %v4070_v9, 2 }
  0x5e   : > { %1080 = vrot.lane.b32.xlu1 %v1075_v29, %s6183_s8  ;;  %v2690_v29 = vrot.slane %v2684_v19, 1  ;;  %v4068_v19 = vmul.f32 %v4067_v2, %v6325_v12 }
  0x5f   : > { %1078 = vrot.lane.b32.xlu0 %v1074_v30, %s6183_s8  ;;  %v2692_v30 = vrot.slane %v2685_v20, 1  ;;  %v4235_v20 = vstv %s5805_s29  ;;  %s6504_s29 = sld [smem:[#allocation2 + $0x26]] }
  0x60   : > { %v2691_v46 = vsel %vm1304_vm0, %v2689_v36, %v2690_v29  ;;  %v4238_v25 = vmul.f32 %v4235_v20, %v6380_v56 }
  0x61   : > { %v2693_v39 = vsel %vm1304_vm0, %v2690_v29, %v2692_v30  ;;  %v4236_v29 = vmul.f32 %v4235_v20, %v6335_v17  ;;  %v4403_v30 = vstv %s5813_s30  ;;  %s5686_s30 = sld [smem:[#allocation2 + $0x28]] }
  0x62   : > { %1192 = vrot.lane.b32.xlu1 %v1187_v37, %s6183_s8  ;;  %v2851_v37 = vmul.f32 %v2850_v28, %v6325_v12  ;;  %v4074_v28 = vrot.slane %v4068_v19, 2  ;;  %v4405_v36 = vmul.f32 %v4403_v30, %v6314_v5  ;;  %v415_v19 = vstv %s5590_s7  ;;  %s6522_s7 = sld [smem:[#allocation2 + $0x1e]] }
  0x63   : > { %1190 = vrot.lane.b32.xlu0 %v1186_v38, %s6183_s8  ;;  %v3018_v38 = vstv %s5741_s20  ;;  %s6490_s20 = sld [smem:[#allocation2 + $0x40]] }
  0x64   : > { %v3020_v43 = vmul.f32 %v3018_v38, %v6332_v15  ;;  %v3021_v45 = vmul.f32 %v3018_v38, %v6380_v56  ;;  %v2857_v47 = vrot.slane %v2851_v37, 1  ;;  %v3019_v48 = vmul.f32 %v3018_v38, %v6335_v17 }
  0x65   : > { %v4406_v37 = vmul.f32 %v4403_v30, %v6350_v27 }
  0x66   : > { %1856 = vrot.lane.b32.xlu1 %v1853_v49, %s6182_s28  ;;  %v3733_v49 = vmul.f32 %v3731_v40, %v6314_v5  ;;  %v3026_v52 = vrot.slane %v3020_v43, 1  ;;  %v2859_v54 = vsel %vm1304_vm0, %v2857_v47, %v2858_v41  ;;  %v3025_v55 = vrot.slane %v3019_v48, 1 }
  0x67   : > { %1854 = vrot.lane.b32.xlu0 %v1851_v53, %s6182_s28  ;;  %v3028_v53 = vrot.slane %v3021_v45, 1  ;;  %v4404_v40 = vmul.f32 %v4403_v30, %v6310_v3  ;;  %v4573_v41 = vmul.f32 %v4571_v32, %v6307_v1  ;;  %v4411_v45 = vrot.slane %v4405_v36, 2 }
  0x68   : > { %v3739_v59 = vrot.slane %v3733_v49, 2  ;;  %v3027_v4 = vsel %vm1304_vm0, %v3025_v55, %v3026_v52  ;;  %v4572_v49 = vmul.f32 %v4571_v32, %v6304_v0 }
  0x69   : > { %v3029_v61 = vsel %vm1304_vm0, %v3026_v52, %v3028_v53  ;;  %v4410_v48 = vrot.slane %v4404_v40, 2  ;;  %v4581_v52 = vrot.slane %v4574_v42, 2  ;;  %v751_v40 = vstv %s6490_s20  ;;  %s6597_s20 = sld [smem:[#allocation2 + $0x29]] }
  0x6a   : > { %2024 = vrot.lane.b32.xlu1 %v2021_v60, %s6182_s28  ;;  %v3741_v60 = vrot.slane %v3734_v50, 2  ;;  %v4739_v50 = vstv %s5829_s5  ;;  %v353_v42 = vstv %s6492_s24  ;;  %s5694_s5 = sld [smem:[#allocation2 + $0x31]]  ;;  %s6634_s24 = sld [smem:[#allocation2 + $0x32]] }
  0x6b   : > { %2022 = vrot.lane.b32.xlu0 %v2019_v62, %s6182_s28  ;;  %v3901_v62 = vmul.f32 %v3899_v58, %v6307_v1  ;;  %v4742_v55 = vmul.f32 %v4739_v50, %v6369_v44  ;;  %v4578_v58 = vrot.slane %v4572_v49, 2  ;;  %v752_v49 = vmul.f32 %v751_v40, %v6335_v17 }
  0x6c   : > { %v3742_v11 = vsel %vm3193_vm1, %v3739_v59, %v3741_v60  ;;  %v4907_v60 = vstv %s5837_s6  ;;  %s6517_s6 = sld [smem:[#allocation2 + $0x15]] }
  0x6d   : > { %v3907_v13 = vrot.slane %v3901_v62, 2  ;;  %v4909_v2 = vmul.f32 %v4907_v60, %v6332_v15 }
  0x6e   : > { %2192 = vrot.lane.b32.xlu1 %v2189_v6, %s6182_s28  ;;  %v3738_v6 = vrot.slane %v3732_v57, 2  ;;  %v4412_v57 = vsel %vm3193_vm1, %v4410_v48, %v4411_v45  ;;  %v1434_v48 = vstv %s5661_s27  ;;  %s5734_s27 = sld [smem:[#allocation2 + $0x3b]] }
  0x6f   : > { %2190 = vrot.lane.b32.xlu0 %v2187_v14, %s6182_s28  ;;  %v3909_v14 = vrot.slane %v3902_v63, 2  ;;  %v3908_v26 = vsel %vm3193_vm1, %v3906_v18, %v3907_v13  ;;  %v4749_v63 = vrot.slane %v4742_v55, 2  ;;  %v354_v55 = vmul.f32 %v353_v42, %v6335_v17 }
  0x70   : > { %v3740_v16 = vsel %vm3193_vm1, %v3738_v6, %v3739_v59  ;;  %v4740_v59 = vmul.f32 %v4739_v50, %v6325_v12 }
  0x71   : > { %v3910_v23 = vsel %vm3193_vm1, %v3907_v13, %v3909_v14 }
  0x72   : > { %2360 = vrot.lane.b32.xlu1 %v2357_v21, %s6182_s28  ;;  %v4075_v21 = vrot.slane %v4069_v8, 2  ;;  %v4746_v7 = vrot.slane %v4740_v59, 2  ;;  %v4908_v8 = vmul.f32 %v4907_v60, %v6335_v17  ;;  %v1437_v59 = vmul.f32 %v1434_v48, %v6360_v35 }
  0x73   : > { %2358 = vrot.lane.b32.xlu0 %v2355_v24, %s6182_s28  ;;  %v4237_v24 = vmul.f32 %v4235_v20, %v6332_v15 }
  0x74   : > { %v4076_v38 = vsel %vm3193_vm1, %v4074_v28, %v4075_v21  ;;  %v209_v28 = vstv %s208_s11  ;;  %s6560_s11 = sld [smem:[#allocation2 + $0x43]] }
  0x75   : > { %v4243_v33 = vrot.slane %v4237_v24, 2  ;;  %v210_v36 = vmul.f32 %v209_v28, %v6310_v3 }
  0x76   : > { %2528 = vrot.lane.b32.xlu1 %v2525_v31, %s6183_s8  ;;  %v4078_v31 = vsel %vm3193_vm1, %v4075_v21, %v4077_v22  ;;  %v416_v21 = vmul.f32 %v415_v19, %v6310_v3  ;;  %v417_v22 = vmul.f32 %v415_v19, %v6314_v5 }
  0x77   : > { %2526 = vrot.lane.b32.xlu0 %v2523_v34, %s6183_s8  ;;  %v4245_v34 = vrot.slane %v4238_v25, 2 }
  0x79   : > { %v4246_v43 = vsel %vm3193_vm1, %v4243_v33, %v4245_v34  ;;  %v305_v34 = vstv %s5573_s19  ;;  %s6590_s19 = sld [smem:[#allocation2 + $0xf]] }
  0x7a   : > { %2696 = vrot.lane.b32.xlu1 %v2693_v39, %s6183_s8  ;;  %v4242_v39 = vrot.slane %v4236_v29, 2  ;;  %v257_v29 = vstv %s5565_s17  ;;  %s6571_s17 = sld [smem:[#allocation2 + $0x6]] }
  0x7b   : > { %2694 = vrot.lane.b32.xlu0 %v2691_v46, %s6183_s8  ;;  %v4413_v46 = vrot.slane %v4406_v37, 2  ;;  %v259_v32 = vmul.f32 %v257_v29, %v6307_v1 }
  0x7c   : > { %v4244_v47 = vsel %vm3193_vm1, %v4242_v39, %v4243_v33  ;;  %v258_v33 = vmul.f32 %v257_v29, %v6304_v0  ;;  %v307_v39 = vmul.f32 %v305_v34, %v6322_v10  ;;  %v975_v29 = vstv %s6513_s4  ;;  %s6723_s4 = sld [smem:[#allocation2 + $0x2b]] }
  0x7d   : > { %v4414_v53 = vsel %vm3193_vm1, %v4411_v45, %v4413_v46  ;;  %v1297_v45 = vstv %s5653_s25  ;;  %v306_v46 = vmul.f32 %v305_v34, %v6325_v12  ;;  %v1570_v34 = vstv %s6517_s6  ;;  %s6639_s25 = sld [smem:[#allocation2 + $0x41]]  ;;  %s6756_s6 = sld [smem:[#allocation2 + $0x34]] }
  0x7e   : > { %2864 = vrot.lane.b32.xlu1 %v2861_v51, %s6183_s8  ;;  %v4579_v51 = vrot.slane %v4573_v41, 2 }
  0x7f   : > { %2862 = vrot.lane.b32.xlu0 %v2859_v54, %s6183_s8  ;;  %v4741_v54 = vmul.f32 %v4739_v50, %v6322_v10 }
  0x80   : > { %v4580_v6 = vsel %vm3193_vm1, %v4578_v58, %v4579_v51  ;;  %v1436_v58 = vmul.f32 %v1434_v48, %v6307_v1 }
  0x81   : > { %v4747_v62 = vrot.slane %v4741_v54, 2  ;;  %v1300_v54 = vmul.f32 %v1297_v45, %v6350_v27 }
  0x82   : > { %3032 = vrot.lane.b32.xlu1 %v3029_v61, %s6183_s8  ;;  %v4582_v61 = vsel %vm3193_vm1, %v4579_v51, %v4581_v52  ;;  %v355_v51 = vmul.f32 %v353_v42, %v6332_v15  ;;  %v1442_v19 = vrot.slane %v1436_v58, 1 }
  0x83   : > { %3030 = vrot.lane.b32.xlu0 %v3027_v4, %s6183_s8  ;;  %v4910_v4 = vmul.f32 %v4907_v60, %v6380_v56  ;;  %v4750_v9 = vsel %vm3193_vm1, %v4747_v62, %v4749_v63  ;;  %v4748_v14 = vsel %vm3193_vm1, %v4746_v7, %v4747_v62  ;;  %v6524_v60 = vstv %s5686_s30  ;;  %s6692_s30 = sld [smem:[#allocation2 + $0x44]] }
  0x84   : > { %v753_v62 = vmul.f32 %v751_v40, %v6332_v15  ;;  %v6530_v63 = vmul.f32 %v6524_v60, %v6314_v5  ;;  %v1435_v7 = vmul.f32 %v1434_v48, %v6304_v0 }
  0x85   : > { %v4917_v13 = vrot.slane %v4910_v4, 2 }
  0x86   : > { %3745 = vrot.lane.b32.xlu1 %v3742_v11, %s6182_s28  ;;  %v4915_v11 = vrot.slane %v4909_v2, 2  ;;  %v1866_v2 = vmul.f32 %v6524_v60, %v6350_v27 }
  0x87   : > { %3743 = vrot.lane.b32.xlu0 %v3740_v16, %s6182_s28  ;;  %v4914_v16 = vrot.slane %v4908_v8, 2  ;;  %v10065_v8 = vstv %s6504_s29 }
  0x88   : > { %v4918_v18 = vsel %vm3193_vm1, %v4915_v11, %v4917_v13  ;;  %v1308_v13 = vrot.slane %v1300_v54, 1 }
  0x89   : > { %v4916_v20 = vsel %vm3193_vm1, %v4914_v16, %v4915_v11  ;;  %v1873_v16 = vrot.slane %v1866_v2, 1  ;;  %v6612_v2 = vstv %s6560_s11  ;;  %s6864_s11 = sld [smem:[#allocation2 + $0x2c]] }
  0x8a   : > { %3913 = vrot.lane.b32.xlu1 %v3910_v23, %s6182_s28  ;;  %v527_v23 = vstv %s5598_s9  ;;  %s6537_s9 = sld [smem:[#allocation2 + $0x3a]] }
  0x8b   : > { %3911 = vrot.lane.b32.xlu0 %v3908_v26, %s6182_s28  ;;  %v528_v24 = vmul.f32 %v527_v23, %v6304_v0  ;;  %v529_v25 = vmul.f32 %v527_v23, %v6307_v1  ;;  %v639_v26 = vstv %s5606_s10  ;;  %s6540_s10 = sld [smem:[#allocation2 + $0x38]]  ;;  %v865_v23 = vmul.f32 %v10065_v8, %v6314_v5 }
  0x8c   : > { %v640_v30 = vmul.f32 %v639_v26, %v6325_v12  ;;  %v641_v37 = vmul.f32 %v639_v26, %v6322_v10 }
  0x8e   : > { %4081 = vrot.lane.b32.xlu1 %v4078_v31, %s6182_s28  ;;  %v211_v31 = vmul.f32 %v209_v28, %v6314_v5 }
  0x8f   : > { %4079 = vrot.lane.b32.xlu0 %v4076_v38, %s6182_s28 }
  0x90   : > { %v261_v38 = vadd.f32 %v259_v32, %v211_v31  ;;  %v6574_v42 = vstv %s6537_s9  ;;  %s6788_s9 = sld [smem:[#allocation2 + $0x3d]] }
  0x91   : > { %v2202_v48 = vmul.f32 %v6574_v42, %v6369_v44 }
  0x92   : > { %4249 = vrot.lane.b32.xlu1 %v4246_v43, %s6182_s28  ;;  %v309_v50 = vadd.f32 %v307_v39, %v261_v38  ;;  %v1706_v39 = vstv %s6522_s7  ;;  %s6765_s7 = sld [smem:[#allocation2 + $0x21]] }
  0x93   : > { %4247 = vrot.lane.b32.xlu0 %v4244_v47, %s6182_s28  ;;  %v260_v47 = vadd.f32 %v258_v33, %v210_v36  ;;  %v1441_v33 = vrot.slane %v1435_v7, 1  ;;  %v6623_v7 = vmul.f32 %v6612_v2, %v6332_v15 }
  0x94   : > { %v357_v4 = vadd.f32 %v355_v51, %v309_v50  ;;  %v6588_v51 = vmul.f32 %v1570_v34, %v6322_v10 }
  0x95   : > { %v6600_v54 = vsel %vm1304_vm0, %v1441_v33, %v1442_v19 }
  0x96   : > { %4417 = vrot.lane.b32.xlu1 %v4414_v53, %s6183_s8  ;;  %v1299_v53 = vmul.f32 %v1297_v45, %v6314_v5 }
  0x97   : > { %4415 = vrot.lane.b32.xlu0 %v4412_v57, %s6183_s8 }
  0x98   : > { %v1306_v11 = vrot.slane %v1299_v53, 1 }
  0x9a   : > { %4585 = vrot.lane.b32.xlu1 %v4582_v61, %s6183_s8  ;;  %v308_v61 = vadd.f32 %v306_v46, %v260_v47  ;;  %v6563_v32 = vsel %vm1304_vm0, %v1306_v11, %v1308_v13  ;;  %v976_v46 = vmul.f32 %v975_v29, %v6304_v0  ;;  %v6580_v47 = vmul.f32 %v6574_v42, %v6322_v10 }
  0x9b   : > { %4583 = vrot.lane.b32.xlu0 %v4580_v6, %s6183_s8  ;;  %v1298_v6 = vmul.f32 %v1297_v45, %v6310_v3 }
  0x9d   : > { %v1305_v28 = vrot.slane %v1298_v6, 1 }
  0x9e   : > { %4753 = vrot.lane.b32.xlu1 %v4750_v9, %s6183_s8 }
  0x9f   : > { %4751 = vrot.lane.b32.xlu0 %v4748_v14, %s6183_s8  ;;  %v1871_v14 = vrot.slane %v6530_v63, 1  ;;  %v6585_v50 = vsel %vm1304_vm0, %v1305_v28, %v1306_v11  ;;  %v2370_v11 = vmul.f32 %v6612_v2, %v6380_v56 }
  0xa2   : > { %4921 = vrot.lane.b32.xlu1 %v4918_v18, %s6183_s8 }
  0xa3   : > { %4919 = vrot.lane.b32.xlu0 %v4916_v20, %s6183_s8  ;;  %v1444_v20 = vrot.slane %v1437_v59, 1  ;;  %v6607_v59 = vmul.f32 %v1706_v39, %v6332_v15 }
  0xa5   : > { %v6568_v38 = vsel %vm1304_vm0, %v1442_v19, %v1444_v20  ;;  %v6632_v19 = vmul.f32 %v1570_v34, %v6325_v12 }
  0xa6   : > { %420 = vrot.lane.b32.xlu1 %v416_v21, %s6182_s28  ;;  %v6542_v21 = vstv %s5694_s5  ;;  %s6733_s5 = sld [smem:[#allocation2 + $0x18]] }
  0xaa   : > { %422 = vrot.lane.b32.xlu1 %v417_v22, %s6182_s28  ;;  %v356_v22 = vadd.f32 %v354_v55, %v308_v61  ;;  %v2207_v55 = vrot.slane %v6580_v47, 1  ;;  %v977_v61 = vmul.f32 %v975_v29, %v6307_v1 }
  0xae   : > { %532 = vrot.lane.b32.xlu1 %v528_v24, %s6182_s28  ;;  %v6551_v24 = vsel %vm1304_vm0, %v1871_v14, %v1873_v16  ;;  %v1578_v16 = vrot.slane %v6588_v51, 1 }
  0xb2   : > { %534 = vrot.lane.b32.xlu1 %v529_v25, %s6182_s28  ;;  %v6555_v25 = vmul.f32 %v6542_v21, %v6307_v1 }
  0xb4   : > { %v2039_v36 = vrot.slane %v6555_v25, 1  ;;  %v6794_v25 = vstv %s6733_s5  ;;  %s5662_s5 = sld [smem:[#allocation2 + $0x30]] }
  0xb6   : > { %644 = vrot.lane.b32.xlu1 %v640_v30, %s6182_s28  ;;  %v2034_v30 = vmul.f32 %v6542_v21, %v6360_v35 }
  0xb8   : > { %v6506_v41 = vpop.permute.xlu1 %518  ;;  %v2041_v40 = vrot.slane %v2034_v30, 1  ;;  %v6643_v30 = vstv %s6571_s17  ;;  %s6904_s17 = sld [smem:[#allocation2 + $0x35]] }
  0xb9   : > { %v407_v43 = vpop.permute.xlu0 %406 }
  0xba   : > { %646 = vrot.lane.b32.xlu1 %v641_v37, %s6182_s28  ;;  %v412_v45 = vadd.f32 %v407_v43, %v356_v22  ;;  %v6595_v43 = vsel %vm1304_vm0, %v2039_v36, %v2041_v40 }
  0xbc   : > { %v521_v52 = vpop.permute.xlu1 %520 }
  0xbd   : > { %v409_v57 = vpop.permute.xlu0 %408 }
  0xbe   : > { %756 = vrot.lane.b32.xlu1 %v752_v49, %s6182_s28  ;;  %v413_v26 = vadd.f32 %v409_v57, %v357_v4  ;;  %v2209_v57 = vrot.slane %v2202_v48, 1  ;;  %v524_v4 = vadd.f32 %v6506_v41, %v412_v45  ;;  %v6629_v41 = vmul.f32 %v1706_v39, %v6380_v56 }
  0xbf   : > { %v6664_v48 = vstv %s6590_s19  ;;  %s6948_s19 = sld [smem:[#allocation2 + $0x3e]] }
  0xc0   : > { %v633_v9 = vpop.permute.xlu1 %632  ;;  %v525_v49 = vadd.f32 %v521_v52, %v413_v26  ;;  %v6603_v52 = vmul.f32 %v1570_v34, %v6369_v44  ;;  %v6619_v6 = vsel %vm1304_vm0, %v2207_v55, %v2209_v57  ;;  %v2377_v26 = vrot.slane %v2370_v11, 1 }
  0xc1   : > { %v631_v18 = vpop.permute.xlu0 %630  ;;  %v6647_v34 = vstv %s6597_s20  ;;  %v3326_v63 = vmul.f32 %v6664_v48, %v6360_v35  ;;  %s5074_s20 = sld [smem:[#allocation5]] }
  0xc2   : > { %758 = vrot.lane.b32.xlu1 %v753_v62, %s6182_s28  ;;  %v1087_v62 = vstv %s6540_s10  ;;  %v637_v13 = vadd.f32 %v633_v9, %v525_v49  ;;  %v636_v20 = vadd.f32 %v631_v18, %v524_v4  ;;  %v2375_v9 = vrot.slane %v6623_v7, 1  ;;  %s6818_s10 = sld [smem:[#allocation2 + $0x46]] }
  0xc3   : > { %v1088_v33 = vmul.f32 %v1087_v62, %v6325_v12 }
  0xc4   : > { %v745_v31 = vpop.permute.xlu1 %744  ;;  %v6653_v18 = vsel %vm1304_vm0, %v2375_v9, %v2377_v26  ;;  %v1577_v26 = vrot.slane %v6632_v19, 1 }
  0xc5   : > { %v743_v37 = vpop.permute.xlu0 %742  ;;  %v749_v28 = vadd.f32 %v745_v31, %v637_v13  ;;  %v2538_v31 = vmul.f32 %v6647_v34, %v6350_v27 }
  0xc6   : > { %870 = vrot.lane.b32.xlu1 %v865_v23, %s6183_s8  ;;  %v6637_v23 = vmul.f32 %v1706_v39, %v6335_v17  ;;  %v748_v40 = vadd.f32 %v743_v37, %v636_v20  ;;  %v6657_v39 = vmul.f32 %v6647_v34, %v6314_v5  ;;  %v1714_v37 = vrot.slane %v6607_v59, 1 }
  0xc7   : > { %v2545_v11 = vrot.slane %v2538_v31, 1  ;;  %v10066_v31 = vstv %s6639_s25 }
  0xc8   : > { %v857_v53 = vpop.permute.xlu1 %856  ;;  %v10068_v4 = vrot.slane %v6657_v39, 1 }
  0xc9   : > { %v855_v58 = vpop.permute.xlu0 %854  ;;  %v861_v45 = vadd.f32 %v857_v53, %v749_v28  ;;  %v1089_v53 = vmul.f32 %v1087_v62, %v6322_v10  ;;  %v1713_v62 = vrot.slane %v6637_v23, 1  ;;  %v6688_v28 = vmul.f32 %v6643_v30, %v6314_v5 }
  0xca   : > { %980 = vrot.lane.b32.xlu1 %v976_v46, %s6183_s8  ;;  %v1580_v46 = vrot.slane %v6603_v52, 1  ;;  %v860_v49 = vadd.f32 %v855_v58, %v748_v40  ;;  %v6671_v52 = vstv %s6634_s24  ;;  %v6677_v58 = vsel %vm1304_vm0, %v10068_v4, %v2545_v11  ;;  %s5558_s24 = sld [smem:[#allocation2 + $0x24]] }
  0xcb   : > { %v2706_v19 = vmul.f32 %v6671_v52, %v6360_v35  ;;  %v6698_v23 = vmul.f32 %v6643_v30, %v6350_v27 }
  0xcc   : > { %v969_v22 = vpop.permute.xlu1 %968 }
  0xcd   : > { %v967_v29 = vpop.permute.xlu0 %966  ;;  %v973_v13 = vadd.f32 %v969_v22, %v861_v45 }
  0xce   : > { %982 = vrot.lane.b32.xlu1 %v977_v61, %s6183_s8  ;;  %v1716_v61 = vrot.slane %v6629_v41, 1  ;;  %v972_v59 = vadd.f32 %v967_v29, %v860_v49  ;;  %v6681_v41 = vmul.f32 %v6671_v52, %v6307_v1  ;;  %v1864_v29 = vmul.f32 %v6524_v60, %v6310_v3 }
  0xcf   : > { %v2713_v49 = vrot.slane %v2706_v19, 1 }
  0xd0   : > { %v1081_v57 = vpop.permute.xlu1 %1080  ;;  %v10067_v45 = vrot.slane %v6681_v41, 1 }
  0xd1   : > { %v1079_v20 = vpop.permute.xlu0 %1078  ;;  %v1085_v22 = vadd.f32 %v1081_v57, %v973_v13  ;;  %v1200_v57 = vmul.f32 %v10066_v31, %v6335_v17  ;;  %v6703_v13 = vstv %s5734_s27  ;;  %s5574_s27 = sld [smem:[#allocation2 + $0x36]] }
  0xd2   : > { %1092 = vrot.lane.b32.xlu1 %v1088_v33, %s6183_s8  ;;  %v1084_v33 = vadd.f32 %v1079_v20, %v972_v59  ;;  %v6709_v20 = vsel %vm1304_vm0, %v10067_v45, %v2713_v49  ;;  %v6713_v59 = vmul.f32 %v6703_v13, %v6322_v10  ;;  %v2874_v19 = vmul.f32 %v6703_v13, %v6369_v44 }
  0xd3   : > { %v1717_v49 = vsel %vm1304_vm0, %v1714_v37, %v1716_v61 }
  0xd4   : > { %v1193_v40 = vpop.permute.xlu1 %1192  ;;  %v2879_v45 = vrot.slane %v6713_v59, 1  ;;  %v2881_v4 = vrot.slane %v2874_v19, 1 }
  0xd5   : > { %v1197_v11 = vadd.f32 %v1193_v40, %v1085_v22  ;;  %v1191_v8 = vpop.permute.xlu0 %1190 }
  0xd6   : > { %v1196_v60 = vadd.f32 %v1191_v8, %v1084_v33  ;;  %1094 = vrot.lane.b32.xlu1 %v1089_v53, %s6183_s8  ;;  %v1581_v8 = vsel %vm1304_vm0, %v1578_v16, %v1580_v46  ;;  %v1870_v53 = vrot.slane %v1864_v29, 1  ;;  %v2032_v33 = vmul.f32 %v6542_v21, %v6304_v0 }
  0xd7   : > { %v1313_v22 = vadd.f32 %v6563_v32, %v1197_v11  ;;  %v1579_v46 = vsel %vm1304_vm0, %v1577_v26, %v1578_v16  ;;  %v1715_v29 = vsel %vm1304_vm0, %v1713_v62, %v1714_v37  ;;  %v6736_v21 = vstv %s6692_s30  ;;  %s5582_s30 = sld [smem:[#allocation2 + $0x3f]] }
  0xd8   : > { %v1312_v40 = vadd.f32 %v6585_v50, %v1196_v60  ;;  %v1857_v31 = vpop.permute.xlu1 %1856  ;;  %v6743_v61 = vsel %vm1304_vm0, %v2879_v45, %v2881_v4  ;;  %v3042_v51 = vmul.f32 %v6736_v21, %v6380_v56  ;;  %v2038_v37 = vrot.slane %v2032_v33, 1 }
  0xd9   : > { %v1449_v32 = vadd.f32 %v6568_v38, %v1313_v22  ;;  %v1855_v11 = vpop.permute.xlu0 %1854  ;;  %v6747_v38 = vmul.f32 %v6736_v21, %v6332_v15  ;;  %v2200_v26 = vmul.f32 %v6574_v42, %v6325_v12  ;;  %v6760_v15 = vmul.f32 %v6664_v48, %v6307_v1 }
  0xda   : > { %v1448_v50 = vadd.f32 %v6600_v54, %v1312_v40  ;;  %1204 = vrot.lane.b32.xlu1 %v1200_v57, %s6183_s8  ;;  %v1872_v54 = vsel %vm1304_vm0, %v1870_v53, %v1871_v14  ;;  %v3049_v60 = vrot.slane %v3042_v51, 1  ;;  %v6768_v14 = vstv %s6723_s4  ;;  %s5654_s4 = sld [smem:[#allocation2 + $0x27]] }
  0xdb   : > { %v1585_v16 = vadd.f32 %v1581_v8, %v1449_v32  ;;  %v3047_v57 = vrot.slane %v6747_v38, 1  ;;  %v6778_v8 = vmul.f32 %v6768_v14, %v6314_v5  ;;  %v3755_v53 = vmul.f32 %v6768_v14, %v6350_v27 }
  0xdc   : > { %v1584_v4 = vadd.f32 %v1579_v46, %v1448_v50  ;;  %v2025_v62 = vpop.permute.xlu1 %2024  ;;  %v3195_v33 = vrot.slane %v6688_v28, 2  ;;  %v2040_v40 = vsel %vm1304_vm0, %v2038_v37, %v2039_v36  ;;  %v2368_v32 = vmul.f32 %v6612_v2, %v6335_v17 }
  0xdd   : > { %v1721_v19 = vadd.f32 %v1717_v49, %v1585_v16  ;;  %v2023_v22 = vpop.permute.xlu0 %2022  ;;  %v6774_v42 = vsel %vm1304_vm0, %v3047_v57, %v3049_v60  ;;  %v2206_v49 = vrot.slane %v2200_v26, 1  ;;  %v3197_v5 = vrot.slane %v6698_v23, 2 }
  0xde   : > { %v1720_v12 = vadd.f32 %v1715_v29, %v1584_v4  ;;  %1875 = vrot.lane.b32.xlu1 %v1872_v54, %s6182_s28  ;;  %v3331_v29 = vrot.slane %v6760_v15, 2  ;;  %v10071_v50 = vrot.slane %v6778_v8, 2  ;;  %v3762_v27 = vrot.slane %v3755_v53, 2 }
  0xdf   : > { %v1861_v51 = vadd.f32 %v1857_v31, %v1721_v19  ;;  %v3333_v54 = vrot.slane %v3326_v63, 2  ;;  %v6797_v36 = vstv %s6756_s6  ;;  %v3187_v23 = vmul.f32 %v6643_v30, %v6310_v3  ;;  %s5670_s6 = sld [smem:[#allocation2 + $0x39]] }
  0xe0   : > { %v2193_v46 = vpop.permute.xlu1 %2192  ;;  %v1860_v37 = vadd.f32 %v1855_v11, %v1720_v12  ;;  %v6803_v17 = vsel %vm3193_vm1, %v10071_v50, %v3762_v27  ;;  %v6807_v2 = vmul.f32 %v6797_v36, %v6307_v1  ;;  %v3923_v31 = vmul.f32 %v6797_v36, %v6360_v35 }
  0xe1   : > { %v2191_v16 = vpop.permute.xlu0 %2190  ;;  %v2208_v11 = vsel %vm1304_vm0, %v2206_v49, %v2207_v55  ;;  %v2374_v26 = vrot.slane %v2368_v32, 1  ;;  %v2536_v4 = vmul.f32 %v6647_v34, %v6310_v3  ;;  %v6823_v1 = vsel %vm3193_vm1, %v3195_v33, %v3197_v5  ;;  %v6860_v49 = vld [vmem:[%s6301_s26 + $0x18] sm:$0xff] }
  0xe2   : > { %2043 = vrot.lane.b32.xlu1 %v2040_v40, %s6182_s28  ;;  %v6827_v35 = vmul.f32 %v6664_v48, %v6304_v0  ;;  %v10070_v47 = vrot.slane %v6807_v2, 2  ;;  %v3930_v55 = vrot.slane %v3923_v31, 2  ;;  %v2029_v30 = vadd.f32 %v2025_v62, %v1861_v51  ;;  %v6874_v31 = vld [vmem:[%s6301_s26 + $0x50] sm:$0xff] }
  0xe3   : > { %v6832_v3 = vmul.f32 %v6794_v25, %v6322_v10  ;;  %v6835_v34 = vstv %s6765_s7  ;;  %v6838_v63 = vstv %s6788_s9  ;;  %v2028_v12 = vadd.f32 %v2023_v22, %v1860_v37  ;;  %s5678_s7 = sld [smem:[#allocation2 + $0x42]] }
  0xe4   : > { %v2361_v60 = vpop.permute.xlu1 %2360  ;;  %v6844_v0 = vsel %vm3193_vm1, %v10070_v47, %v3930_v55  ;;  %v6848_v48 = vmul.f32 %v6838_v63, %v6322_v10  ;;  %v4091_v62 = vmul.f32 %v6838_v63, %v6369_v44  ;;  %v6854_v53 = vmul.f32 %v6794_v25, %v6369_v44  ;;  %s5750_s9 = sld [smem:[#allocation2 + $0x2a]] }
  0xe5   : > { %v2359_v19 = vpop.permute.xlu0 %2358  ;;  %v2376_v22 = vsel %vm1304_vm0, %v2374_v26, %v2375_v9  ;;  %v2542_v40 = vrot.slane %v2536_v4, 1  ;;  %v2704_v10 = vmul.f32 %v6860_v49, %v6671_v52  ;;  %v6869_v5 = vsel %vm3193_vm1, %v3331_v29, %v3333_v54 }
  0xe6   : > { %2211 = vrot.lane.b32.xlu1 %v2208_v11, %s6182_s28  ;;  %v3194_v44 = vrot.slane %v3187_v23, 2  ;;  %v10069_v7 = vrot.slane %v6848_v48, 2  ;;  %v4098_v27 = vrot.slane %v4091_v62, 2  ;;  %v2197_v9 = vadd.f32 %v2193_v46, %v2029_v30  ;;  %v6900_v30 = vld [vmem:[%s6301_s26 + $0x30] sm:$0xff] }
  0xe7   : > { %v3330_v37 = vrot.slane %v6827_v35, 2  ;;  %v6878_v52 = vmul.f32 %v6874_v31, %v6835_v34  ;;  %v6881_v11 = vstv %s6818_s10  ;;  %v2196_v26 = vadd.f32 %v2191_v16, %v2028_v12  ;;  %s5758_s10 = sld [smem:[#allocation2 + $0x33]] }
  0xe8   : > { %v2529_v32 = vpop.permute.xlu1 %2528  ;;  %v6887_v54 = vsel %vm3193_vm1, %v10069_v7, %v4098_v27  ;;  %v6891_v46 = vmul.f32 %v6874_v31, %v6881_v11  ;;  %v4259_v23 = vmul.f32 %v6881_v11, %v6380_v56  ;;  %v10088_v35 = vrot.slane %v6657_v39, 1 }
  0xe9   : > { %v2527_v51 = vpop.permute.xlu0 %2526  ;;  %v2710_v55 = vrot.slane %v2704_v10, 1  ;;  %v2872_v12 = vmul.f32 %v6900_v30, %v6703_v13  ;;  %v6909_v27 = vmul.f32 %v6835_v34, %v6380_v56  ;;  %v2365_v10 = vadd.f32 %v2361_v60, %v2197_v9  ;;  %v6929_v60 = vld [vmem:[%s6301_s26 + $0x8] sm:$0xff] }
  0xea   : > { %2379 = vrot.lane.b32.xlu1 %v2376_v22, %s6182_s28  ;;  %v2544_v16 = vsel %vm1304_vm0, %v2542_v40, %v10088_v35  ;;  %v10072_v39 = vrot.slane %v6891_v46, 2  ;;  %v4266_v40 = vrot.slane %v4259_v23, 2  ;;  %v3196_v13 = vsel %vm3193_vm1, %v3194_v44, %v3195_v33  ;;  %v6936_v33 = vld [vmem:[%s6301_s26 + $0x10] sm:$0x3]  ;;  %v6944_v23 = vld [vmem:[%s6301_s26 + $0x48] sm:$0xff] }
  0xeb   : > { %v6917_v7 = vmul.f32 %v6900_v30, %v6794_v25  ;;  %v6920_v47 = vstv %s6864_s11  ;;  %v2364_v50 = vadd.f32 %v2359_v19, %v2196_v26  ;;  %v2533_v19 = vadd.f32 %v2529_v32, %v2365_v10  ;;  %s5766_s11 = sld [smem:[#allocation2 + $0x3c]] }
  0xec   : > { %v2697_v62 = vpop.permute.xlu1 %2696  ;;  %v6926_v56 = vsel %vm3193_vm1, %v10072_v39, %v4266_v40  ;;  %v6933_v28 = vmul.f32 %v6929_v60, %v6920_v47  ;;  %v4427_v25 = vmul.f32 %v6936_v33, %v6920_v47  ;;  %v10089_v44 = vrot.slane %v6681_v41, 1 }
  0xed   : > { %v2695_v35 = vpop.permute.xlu0 %2694  ;;  %v2878_v26 = vrot.slane %v2872_v12, 1  ;;  %v2532_v40 = vadd.f32 %v2527_v51, %v2364_v50  ;;  %v3332_v32 = vsel %vm3193_vm1, %v3330_v37, %v3331_v29  ;;  %v6958_v4 = vstv %s6904_s17  ;;  %v6967_v29 = vld [vmem:[%s6301_s26 + $0x20] sm:$0xff]  ;;  %v6974_v51 = vld [vmem:[%s6301_s26 + $0x28] sm:$0x3]  ;;  %s5774_s17 = sld [smem:[#allocation2 + $0x45]] }
  0xee   : > { %2547 = vrot.lane.b32.xlu1 %v2544_v16, %s6183_s8  ;;  %v2712_v9 = vsel %vm1304_vm0, %v2710_v55, %v10089_v44  ;;  %v3040_v16 = vmul.f32 %v6944_v23, %v6736_v21  ;;  %v10073_v41 = vrot.slane %v6933_v28, 2  ;;  %v4434_v10 = vrot.slane %v4427_v25, 2  ;;  %10090 = vst [vmem:[#allocation11_spill] sm:$0xff] %v6974_v51 }
  0xef   : > { %v2701_v55 = vadd.f32 %v2697_v62, %v2533_v19  ;;  %v3603_v44 = vrot.slane %v6878_v52, 2  ;;  %v3596_v21 = vmul.f32 %v6944_v23, %v6835_v34  ;;  %v2700_v22 = vadd.f32 %v2695_v35, %v2532_v40  ;;  %v6982_v35 = vld [vmem:[%s6301_s26] sm:$0xff] }
  0xf0   : > { %v2865_v39 = vpop.permute.xlu1 %2864  ;;  %v6964_v15 = vsel %vm3193_vm1, %v10073_v41, %v4434_v10  ;;  %v6971_v50 = vmul.f32 %v6967_v29, %v6958_v4  ;;  %v4595_v34 = vmul.f32 %v6974_v51, %v6958_v4  ;;  %v2880_v52 = vsel %vm1304_vm0, %v2878_v26, %v2879_v45 }
  0xf1   : > { %v2863_v12 = vpop.permute.xlu0 %2862  ;;  %v2869_v37 = vadd.f32 %v2865_v39, %v2701_v55  ;;  %v3046_v62 = vrot.slane %v3040_v16, 1  ;;  %v3753_v25 = vmul.f32 %v6982_v35, %v6768_v14  ;;  %v3605_v40 = vrot.slane %v6909_v27, 2 }
  0xf2   : > { %2715 = vrot.lane.b32.xlu1 %v2712_v9, %s6183_s8  ;;  %v2868_v19 = vadd.f32 %v2863_v12, %v2700_v22  ;;  %v10074_v10 = vrot.slane %v6971_v50, 2  ;;  %v4602_v41 = vrot.slane %v4595_v34, 2  ;;  %v3466_v59 = vrot.slane %v6917_v7, 2  ;;  %v6997_v22 = vld [vmem:[%s6301_s26 + $0x38] sm:$0xff]  ;;  %v7003_v12 = vld [vmem:[%s6301_s26 + $0x40] sm:$0x3] }
  0xf3   : > { %v3602_v45 = vrot.slane %v3596_v21, 2  ;;  %v4760_v26 = vstv %s6948_s19  ;;  %10091 = vst [vmem:[#allocation12_spill] sm:$0xff] %v7003_v12  ;;  %v3048_v21 = vsel %vm1304_vm0, %v3046_v62, %v3047_v57 }
  0xf4   : > { %v3033_v9 = vpop.permute.xlu1 %3032  ;;  %v6994_v14 = vsel %vm3193_vm1, %v10074_v10, %v4602_v41  ;;  %v7000_v27 = vmul.f32 %v6997_v22, %v4760_v26  ;;  %v4763_v34 = vmul.f32 %v7003_v12, %v4760_v26  ;;  %v3921_v41 = vmul.f32 %v6860_v49, %v6797_v36 }
  0xf5   : > { %v3037_v39 = vadd.f32 %v3033_v9, %v2869_v37  ;;  %v3031_v55 = vpop.permute.xlu0 %3030  ;;  %v3759_v37 = vrot.slane %v3753_v25, 2  ;;  %v10093_v9 = vrot.slane %v6832_v3, 2  ;;  %v3606_v36 = vsel %vm3193_vm1, %v3603_v44, %v3605_v40 }
  0xf6   : > { %v3036_v16 = vadd.f32 %v3031_v55, %v2868_v19  ;;  %2883 = vrot.lane.b32.xlu1 %v2880_v52, %s6183_s8  ;;  %v10092_v19 = vrot.slane %v6854_v53, 2  ;;  %v4768_v12 = vrot.slane %v7000_v27, 2  ;;  %v4770_v51 = vrot.slane %v4763_v34, 2 }
  0xf7   : > { %v3202_v7 = vadd.f32 %v6823_v1, %v3037_v39  ;;  %v10094_v38 = vmov %v10093_v9  ;;  %v3604_v53 = vsel %vm3193_vm1, %v3602_v45, %v3603_v44 }
  0xf8   : > { %v3201_v52 = vadd.f32 %v3196_v13, %v3036_v16  ;;  %v3470_v55 = vsel %vm3193_vm1, %v10093_v9, %v10092_v19  ;;  %v3746_v10 = vpop.permute.xlu1 %3745  ;;  %v3468_v57 = vsel %vm3193_vm1, %v3466_v59, %v10094_v38  ;;  %v7028_v13 = vsel %vm3193_vm1, %v4768_v12, %v4770_v51 }
  0xf9   : > { %v3338_v1 = vadd.f32 %v6869_v5, %v3202_v7  ;;  %v3744_v62 = vpop.permute.xlu0 %3743  ;;  %v10095_v5 = vrot.slane %v6778_v8, 2  ;;  %v3927_v16 = vrot.slane %v3921_v41, 2  ;;  %v10096_v7 = vrot.slane %v6807_v2, 2 }
  0xfa   : > { %v3337_v25 = vadd.f32 %v3332_v32, %v3201_v52  ;;  %3051 = vrot.lane.b32.xlu1 %v3048_v21, %s6183_s8  ;;  %v4089_v32 = vmul.f32 %v6900_v30, %v6838_v63  ;;  %v4257_v8 = vmul.f32 %v6944_v23, %v6881_v11  ;;  %v10097_v63 = vrot.slane %v6848_v48, 2 }
  0xfb   : > { %v3474_v39 = vadd.f32 %v3470_v55, %v3338_v1  ;;  %v3761_v3 = vsel %vm3193_vm1, %v3759_v37, %v10095_v5  ;;  %v3929_v51 = vsel %vm3193_vm1, %v3927_v16, %v10096_v7  ;;  %v4425_v2 = vmul.f32 %v6982_v35, %v6920_v47 }
  0xfc   : > { %v3473_v59 = vadd.f32 %v3468_v57, %v3337_v25  ;;  %v3914_v40 = vpop.permute.xlu1 %3913  ;;  %v4095_v21 = vrot.slane %v4089_v32, 2  ;;  %v4263_v55 = vrot.slane %v4257_v8, 2  ;;  %v10098_v11 = vrot.slane %v6891_v46, 2 }
  0xfd   : > { %v3610_v34 = vadd.f32 %v3606_v36, %v3474_v39  ;;  %v3912_v44 = vpop.permute.xlu0 %3911  ;;  %v4593_v48 = vmul.f32 %v6860_v49, %v6958_v4  ;;  %v10099_v47 = vrot.slane %v6933_v28, 2  ;;  %v4761_v32 = vmul.f32 %v6900_v30, %v4760_v26 }
  0xfe   : > { %v3609_v45 = vadd.f32 %v3604_v53, %v3473_v59  ;;  %3764 = vrot.lane.b32.xlu1 %v3761_v3, %s6182_s28  ;;  %v4097_v9 = vsel %vm3193_vm1, %v4095_v21, %v10097_v63 }
  0xff   : > { %v3750_v41 = vadd.f32 %v3746_v10, %v3610_v34  ;;  %v4265_v10 = vsel %vm3193_vm1, %v4263_v55, %v10098_v11  ;;  %v4599_v16 = vrot.slane %v4593_v48, 2  ;;  %v4767_v7 = vrot.slane %v4761_v32, 2 }
 0x100   : > { %v4082_v37 = vpop.permute.xlu1 %4081  ;;  %v3749_v19 = vadd.f32 %v3744_v62, %v3609_v45  ;;  %v4431_v62 = vrot.slane %v4425_v2, 2  ;;  %v10102_v11 = vstv %s6639_s25  ;;  %s5566_s25 = sld [smem:[#allocation2 + $0x2d]] }
 0x101   : > { %v4080_v52 = vpop.permute.xlu0 %4079  ;;  %v3918_v38 = vadd.f32 %v3914_v40, %v3750_v41  ;;  %v4769_v41 = vsel %vm3193_vm1, %v4767_v7, %v4768_v12 }
 0x102   : > { %3932 = vrot.lane.b32.xlu1 %v3929_v51, %s6182_s28  ;;  %v3917_v25 = vadd.f32 %v3912_v44, %v3749_v19  ;;  %v4433_v3 = vsel %vm3193_vm1, %v4431_v62, %v10099_v47  ;;  %v10100_v44 = vrot.slane %v6971_v50, 2  ;;  %v5075_v19 = vstv %s5074_s20 }
 0x103   : > { %v4086_v53 = vadd.f32 %v4082_v37, %v3918_v38 }
 0x104   : > { %v4250_v1 = vpop.permute.xlu1 %4249  ;;  %v4085_v5 = vadd.f32 %v4080_v52, %v3917_v25  ;;  %v4601_v45 = vsel %vm3193_vm1, %v4599_v16, %v10100_v44 }
 0x105   : > { %v4248_v57 = vpop.permute.xlu0 %4247  ;;  %v4254_v59 = vadd.f32 %v4250_v1, %v4086_v53 }
 0x106   : > { %4100 = vrot.lane.b32.xlu1 %v4097_v9, %s6182_s28  ;;  %v4253_v34 = vadd.f32 %v4248_v57, %v4085_v5  ;;  %v10101_v57 = vstv %s6504_s29  ;;  %s5838_s29 = sld [smem:[#allocation2 + $0x47]]  ;;  %v263_v16 = vstv %s5566_s25  ;;  %s5599_s25 = sld [smem:[#allocation2 + $0x52]] }
 0x107   : > { %v864_v25 = vmul.f32 %v6982_v35, %v10101_v57 }
 0x108   : > { %v4418_v36 = vpop.permute.xlu1 %4417 }
 0x109   : > { %v4416_v39 = vpop.permute.xlu0 %4415  ;;  %v4422_v4 = vadd.f32 %v4418_v36, %v4254_v59  ;;  %v311_v59 = vstv %s5574_s27  ;;  %s5607_s27 = sld [smem:[#allocation2 + $0x5b]] }
 0x10a   : > { %4268 = vrot.lane.b32.xlu1 %v4265_v10, %s6182_s28  ;;  %v4421_v51 = vadd.f32 %v4416_v39, %v4253_v34  ;;  %v1201_v10 = vmul.f32 %v6874_v31, %v10102_v11  ;;  %v313_v34 = vmul.f32 %v6997_v22, %v311_v59 }
 0x10c   : > { %v4586_v46 = vpop.permute.xlu1 %4585 }
 0x10d   : > { %v4584_v40 = vpop.permute.xlu0 %4583  ;;  %v4590_v21 = vadd.f32 %v4586_v46, %v4422_v4  ;;  %v265_v46 = vmul.f32 %v6967_v29, %v263_v16  ;;  %v359_v4 = vstv %s5582_s30  ;;  %s5615_s30 = sld [smem:[#allocation2 + $0x64]] }
 0x10e   : > { %4436 = vrot.lane.b32.xlu1 %v4433_v3, %s6183_s8  ;;  %v4589_v37 = vadd.f32 %v4584_v40, %v4421_v51  ;;  %v215_v3 = vstv %s5558_s24  ;;  %s5591_s24 = sld [smem:[#allocation2 + $0x49]] }
 0x10f   : > { %v217_v32 = vmul.f32 %v6929_v60, %v215_v3  ;;  %v216_v7 = vmul.f32 %v6982_v35, %v215_v3  ;;  %v1723_v3 = vstv %s5678_s7  ;;  %s5687_s7 = sld [smem:[#allocation2 + $0x4c]] }
 0x110   : > { %v4754_v28 = vpop.permute.xlu1 %4753 }
 0x111   : > { %v4752_v8 = vpop.permute.xlu0 %4751  ;;  %v4758_v26 = vadd.f32 %v4754_v28, %v4590_v21  ;;  %v267_v40 = vadd.f32 %v265_v46, %v217_v32  ;;  %v361_v28 = vmul.f32 %v6874_v31, %v359_v4  ;;  %v312_v21 = vmul.f32 %v6900_v30, %v311_v59  ;;  %v10104_v46 = vld [vmem:[#allocation12_spill] sm:$0xff] }
 0x112   : > { %4604 = vrot.lane.b32.xlu1 %v4601_v45, %s6183_s8  ;;  %v4757_v52 = vadd.f32 %v4752_v8, %v4589_v37  ;;  %v264_v45 = vmul.f32 %v6860_v49, %v263_v16 }
 0x113   : > { %v315_v51 = vadd.f32 %v313_v34, %v267_v40 }
 0x114   : > { %v4922_v50 = vpop.permute.xlu1 %4921  ;;  %v266_v8 = vadd.f32 %v264_v45, %v216_v7  ;;  %v1725_v7 = vmul.f32 %v6874_v31, %v1723_v3 }
 0x115   : > { %v4926_v63 = vadd.f32 %v4922_v50, %v4758_v26  ;;  %v4920_v9 = vpop.permute.xlu0 %4919  ;;  %v363_v26 = vadd.f32 %v361_v28, %v315_v51 }
 0x116   : > { %v4925_v55 = vadd.f32 %v4920_v9, %v4757_v52  ;;  %4772 = vrot.lane.b32.xlu1 %v4769_v41, %s6183_s8  ;;  %v360_v41 = vmul.f32 %v6944_v23, %v359_v4  ;;  %v314_v52 = vadd.f32 %v312_v21, %v266_v8 }
 0x117   : > { %v7067_v2 = vadd.f32 %v5075_v19, %v4926_v63 }
 0x118   : > { %v7069_v1 = vadd.f32 %v5075_v19, %v4925_v55  ;;  %v7089_v62 = vpop.permute.xlu1 %420  ;;  %v362_v63 = vadd.f32 %v360_v41, %v314_v52 }
 0x119   : > { %v5080_v27 = vsel %vm5078_vm2, %v7067_v2, 0.0 }
 0x11a   : > { %v5079_v12 = vsel %vm5078_vm2, %v7069_v1, 0.0  ;;  %v426_v55 = vadd.f32 %v7089_v62, %v362_v63 }
 0x11b   : > { %v5081_v38 = vadd.f32 %v5080_v27, %v5079_v12 }
 0x11c   : > { %v423_v48 = vpop.permute.xlu1 %422 }
 0x11d   : > { %5082 = vadd.xlane.f32.xlu0 %v5081_v38  ;;  %v427_v19 = vadd.f32 %v423_v48, %v363_v26 }
 0x120   : > { %v7097_v36 = vpop.permute.xlu1 %532 }
 0x121   : > { %v538_v38 = vadd.f32 %v7097_v36, %v426_v55 }
 0x133   : > { %868 = vrot.lane.b32.xlu0 %v864_v25, %s6183_s8 }
 0x137   : > { %1206 = vrot.lane.b32.xlu0 %v1201_v10, %s6183_s8  ;;  %v1315_v10 = vstv %s5654_s4  ;;  %s5623_s4 = sld [smem:[#allocation2 + $0x4a]] }
 0x138   : > { %v1318_v62 = vmul.f32 %v6936_v33, %v1315_v10 }
 0x13b   : > { %1877 = vrot.lane.b32.xlu0 %v6551_v24, %s6182_s28  ;;  %v535_v24 = vpop.permute.xlu1 %534 }
 0x13c   : > { %v539_v9 = vadd.f32 %v535_v24, %v427_v19  ;;  %v1317_v24 = vmul.f32 %v6929_v60, %v1315_v10 }
 0x13f   : > { %2045 = vrot.lane.b32.xlu0 %v6595_v43, %s6182_s28  ;;  %v7105_v43 = vpop.permute.xlu1 %644 }
 0x140   : > { %v650_v11 = vadd.f32 %v7105_v43, %v538_v38  ;;  %v1316_v43 = vmul.f32 %v6982_v35, %v1315_v10  ;;  %v1731_v10 = vrot.slane %v1725_v7, 1 }
 0x142   : > { %v1322_v28 = vrot.slane %v1316_v43, 1 }
 0x143   : > { %2213 = vrot.lane.b32.xlu0 %v6619_v6, %s6182_s28  ;;  %v647_v6 = vpop.permute.xlu1 %646 }
 0x144   : > { %v651_v12 = vadd.f32 %v647_v6, %v539_v9 }
 0x147   : > { %2381 = vrot.lane.b32.xlu0 %v6653_v18, %s6182_s28  ;;  %v7113_v18 = vpop.permute.xlu1 %756 }
 0x14b   : > { %2549 = vrot.lane.b32.xlu0 %v6677_v58, %s6183_s8  ;;  %v4928_v58 = vstv %s5838_s29  ;;  %s5845_s29 = sld [smem:[#allocation5 + $0x1]] }
 0x14f   : > { %2717 = vrot.lane.b32.xlu0 %v6709_v20, %s6183_s8  ;;  %v4929_v20 = vmul.f32 %v6944_v23, %v4928_v58 }
 0x153   : > { %2885 = vrot.lane.b32.xlu0 %v6743_v61, %s6183_s8  ;;  %v4930_v61 = vmul.f32 %v6874_v31, %v4928_v58 }
 0x157   : > { %3053 = vrot.lane.b32.xlu0 %v6774_v42, %s6183_s8  ;;  %v759_v42 = vpop.permute.xlu1 %758 }
 0x158   : > { %v763_v57 = vadd.f32 %v759_v42, %v651_v12 }
 0x15b   : > { %3766 = vrot.lane.b32.xlu0 %v6803_v17, %s6182_s28  ;;  %v4935_v17 = vrot.slane %v4929_v20, 2  ;;  %v871_v39 = vpop.permute.xlu1 %870  ;;  %v762_v20 = vadd.f32 %v7113_v18, %v650_v11 }
 0x15c   : > { %v875_v48 = vadd.f32 %v871_v39, %v763_v57  ;;  %v1323_v39 = vrot.slane %v1317_v24, 1 }
 0x15f   : > { %3934 = vrot.lane.b32.xlu0 %v6844_v0, %s6182_s28  ;;  %v4936_v0 = vrot.slane %v4930_v61, 2  ;;  %v7130_v47 = vpop.permute.xlu1 %980 }
 0x161   : > { %v4937_v53 = vsel %vm3193_vm1, %v4935_v17, %v4936_v0 }
 0x163   : > { %4102 = vrot.lane.b32.xlu0 %v6887_v54, %s6182_s28  ;;  %v7122_v54 = vld [vmem:[%s6301_s26 + $0x58] sm:$0x3] }
 0x164   : > { %v1726_v51 = vmul.f32 %v7122_v54, %v1723_v3 }
 0x167   : > { %4270 = vrot.lane.b32.xlu0 %v6926_v56, %s6182_s28  ;;  %v4931_v56 = vmul.f32 %v7122_v54, %v4928_v58  ;;  %v1451_v58 = vstv %s5662_s5  ;;  %s5631_s5 = sld [smem:[#allocation2 + $0x53]] }
 0x168   : > { %v1453_v61 = vmul.f32 %v6967_v29, %v1451_v58  ;;  %v1452_v40 = vmul.f32 %v6860_v49, %v1451_v58 }
 0x16a   : > { %v1459_v32 = vrot.slane %v1453_v61, 1  ;;  %v1458_v55 = vrot.slane %v1452_v40, 1 }
 0x16b   : > { %4438 = vrot.lane.b32.xlu0 %v6964_v15, %s6183_s8  ;;  %v4938_v15 = vrot.slane %v4931_v56, 2 }
 0x16d   : > { %v4939_v5 = vsel %vm3193_vm1, %v4936_v0, %v4938_v15  ;;  %v10103_v0 = vld [vmem:[#allocation11_spill] sm:$0xff] }
 0x16e   : > { %v1454_v56 = vmul.f32 %v10103_v0, %v1451_v58  ;;  %v1324_v58 = vsel %vm1304_vm0, %v1322_v28, %v1323_v39 }
 0x16f   : > { %4606 = vrot.lane.b32.xlu0 %v6994_v14, %s6183_s8  ;;  %v983_v14 = vpop.permute.xlu1 %982 }
 0x170   : > { %v987_v17 = vadd.f32 %v983_v14, %v875_v48  ;;  %v1461_v14 = vrot.slane %v1454_v56, 1  ;;  %v1733_v48 = vrot.slane %v1726_v51, 1  ;;  %v3204_v51 = vstv %s5750_s9  ;;  %s7240_s9 = sld [smem:[#allocation2 + $0x65]] }
 0x172   : > { %v1462_v57 = vsel %vm1304_vm0, %v1459_v32, %v1461_v14  ;;  %v1734_v43 = vsel %vm1304_vm0, %v1731_v10, %v1733_v48 }
 0x173   : > { %4774 = vrot.lane.b32.xlu0 %v7028_v13, %s6183_s8  ;;  %v7133_v13 = vpop.permute.xlu1 %1092 }
 0x177   : > { %4940 = vrot.lane.b32.xlu0 %v4937_v53, %s6183_s8  ;;  %v1095_v44 = vpop.permute.xlu1 %1094  ;;  %v1587_v53 = vstv %s5670_s6  ;;  %s7234_s6 = sld [smem:[#allocation2 + $0x5c]] }
 0x178   : > { %v1589_v18 = vmul.f32 %v6997_v22, %v1587_v53  ;;  %v1590_v59 = vmul.f32 %v10104_v46, %v1587_v53  ;;  %v1099_v4 = vadd.f32 %v1095_v44, %v987_v17  ;;  %v1588_v21 = vmul.f32 %v6900_v30, %v1587_v53 }
 0x179   : > { %v1724_v44 = vmul.f32 %v6944_v23, %v1723_v3 }
 0x17a   : > { %v1595_v63 = vrot.slane %v1589_v18, 1  ;;  %v1597_v9 = vrot.slane %v1590_v59, 1 }
 0x17b   : > { %4942 = vrot.lane.b32.xlu0 %v4939_v5, %s6183_s8  ;;  %v7142_v37 = vpop.permute.xlu1 %1204  ;;  %v1325_v5 = vrot.slane %v1318_v62, 1  ;;  %v1730_v17 = vrot.slane %v1724_v44, 1 }
 0x17d   : > { %v1326_v41 = vsel %vm1304_vm0, %v1323_v39, %v1325_v5 }
 0x17f   : > { %v7145_v50 = vpop.permute.xlu1 %1875 }
 0x183   : > { %v7148_v27 = vpop.permute.xlu1 %2043 }
 0x187   : > { %v7151_v25 = vpop.permute.xlu1 %2211 }
 0x18b   : > { %v7158_v36 = vpop.permute.xlu1 %2379 }
 0x18f   : > { %v2548_v8 = vpop.permute.xlu1 %2547 }
 0x1aa   : > { %v5083_v6 = vpop.xlane.xlu0 %5082 }
 0x1ab   : > { %v5084_v42 = vrot.slane %v5083_v6, 4 }
 0x1ad   : > { %v5085_v15 = vadd.f32 %v5084_v42, %v5083_v6  ;;  %v1598_v6 = vsel %vm1304_vm0, %v1595_v63, %v1597_v9  ;;  %v1460_v42 = vsel %vm1304_vm0, %v1458_v55, %v1459_v32  ;;  %v3476_v55 = vstv %s5766_s11  ;;  %s5703_s11 = sld [smem:[#allocation2 + $0x5e]] }
 0x1ae   : > { %v869_v16 = vpop.permute.xlu0 %868  ;;  %v3477_v48 = vmul.f32 %v6900_v30, %v3476_v55 }
 0x1af   : > { %v874_v34 = vadd.f32 %v869_v16, %v762_v20  ;;  %v5086_v45 = vrot.slane %v5085_v15, 2 }
 0x1b1   : > { %v986_v26 = vadd.f32 %v7130_v47, %v874_v34  ;;  %v5087_v52 = vadd.f32 %v5086_v45, %v5085_v15  ;;  %v1594_v47 = vrot.slane %v1588_v21, 1 }
 0x1b2   : > { %v1207_v19 = vpop.permute.xlu0 %1206 }
 0x1b3   : > { %v1098_v12 = vadd.f32 %v7133_v13, %v986_v26  ;;  %v1211_v38 = vadd.f32 %v1207_v19, %v1099_v4  ;;  %v5088_v11 = vrot.slane %v5087_v52, 1  ;;  %v2716_v13 = vpop.permute.xlu1 %2715  ;;  %v1596_v15 = vsel %vm1304_vm0, %v1594_v47, %v1595_v63 }
 0x1b4   : > { %v3206_v19 = vmul.f32 %v6929_v60, %v3204_v51  ;;  %v3205_v63 = vmul.f32 %v6982_v35, %v3204_v51 }
 0x1b5   : > { %v1330_v24 = vadd.f32 %v1326_v41, %v1211_v38  ;;  %v5089_v62 = vadd.f32 %v5088_v11, %v5087_v52  ;;  %v1210_v20 = vadd.f32 %v7142_v37, %v1098_v12  ;;  %v1732_v37 = vsel %vm1304_vm0, %v1730_v17, %v1731_v10 }
 0x1b6   : > { %v1878_v61 = vpop.permute.xlu0 %1877  ;;  %v3340_v52 = vstv %s5758_s10  ;;  %v3212_v11 = vrot.slane %v3206_v19, 2  ;;  %v3478_v10 = vmul.f32 %v6997_v22, %v3476_v55  ;;  %s5695_s10 = sld [smem:[#allocation2 + $0x55]] }
 0x1b7   : > { %v1466_v56 = vadd.f32 %v1462_v57, %v1330_v24  ;;  %5873 = vpush %v5089_v62  ;;  %v1329_v53 = vadd.f32 %v1324_v58, %v1210_v20  ;;  %v2884_v59 = vpop.permute.xlu1 %2883  ;;  %v3341_v12 = vmul.f32 %v6860_v49, %v3340_v52  ;;  %v3612_v57 = vstv %s5774_s17  ;;  %s5711_s17 = sld [smem:[#allocation2 + $0x67]] }
 0x1b8   : > { %v3207_v24 = vmul.f32 %v6936_v33, %v3204_v51  ;;  %v3614_v20 = vmul.f32 %v6874_v31, %v3612_v57  ;;  %v3343_v17 = vmul.f32 %v10103_v0, %v3340_v52 }
 0x1b9   : > { %v1602_v39 = vadd.f32 %v1598_v6, %v1466_v56  ;;  %v1465_v5 = vadd.f32 %v1460_v42, %v1329_v53  ;;  %v3347_v6 = vrot.slane %v3341_v12, 2  ;;  %v3484_v56 = vrot.slane %v3478_v10, 2 }
 0x1ba   : > { %v2046_v3 = vpop.permute.xlu0 %2045 }
 0x1bb   : > { %v1738_v16 = vadd.f32 %v1734_v43, %v1602_v39  ;;  %v1601_v18 = vadd.f32 %v1596_v15, %v1465_v5  ;;  %v3052_v21 = vpop.permute.xlu1 %3051  ;;  %v3483_v43 = vrot.slane %v3477_v48, 2  ;;  %v3214_v15 = vrot.slane %v3207_v24, 2 }
 0x1bc   : > { %v3479_v5 = vmul.f32 %v10104_v46, %v3476_v55 }
 0x1bd   : > { %v1882_v32 = vadd.f32 %v1878_v61, %v1738_v16  ;;  %v1737_v40 = vadd.f32 %v1732_v37, %v1601_v18  ;;  %v3613_v61 = vmul.f32 %v6944_v23, %v3612_v57 }
 0x1be   : > { %v2214_v34 = vpop.permute.xlu0 %2213  ;;  %v3486_v51 = vrot.slane %v3479_v5, 2 }
 0x1bf   : > { %v2050_v4 = vadd.f32 %v2046_v3, %v1882_v32  ;;  %v1881_v14 = vadd.f32 %v7145_v50, %v1737_v40  ;;  %v3342_v50 = vmul.f32 %v6967_v29, %v3340_v52  ;;  %v3765_v58 = vpop.permute.xlu1 %3764  ;;  %v3620_v3 = vrot.slane %v3614_v20, 2 }
 0x1c0   : > { %v3619_v16 = vrot.slane %v3613_v61, 2  ;;  %v3487_v55 = vsel %vm3193_vm1, %v3484_v56, %v3486_v51 }
 0x1c1   : > { %v2218_v45 = vadd.f32 %v2214_v34, %v2050_v4  ;;  %v2049_v7 = vadd.f32 %v7148_v27, %v1881_v14  ;;  %v3348_v62 = vrot.slane %v3342_v50, 2  ;;  %v3350_v34 = vrot.slane %v3343_v17, 2 }
 0x1c2   : > { %v2382_v28 = vpop.permute.xlu0 %2381  ;;  %v3485_v4 = vsel %vm3193_vm1, %v3483_v43, %v3484_v56 }
 0x1c3   : > { %v2386_v26 = vadd.f32 %v2382_v28, %v2218_v45  ;;  %v2217_v41 = vadd.f32 %v7151_v25, %v2049_v7  ;;  %v3211_v25 = vrot.slane %v3205_v63, 2  ;;  %v3349_v37 = vsel %vm3193_vm1, %v3347_v6, %v3348_v62  ;;  %v3933_v18 = vpop.permute.xlu1 %3932 }
 0x1c4   : > { %v3215_v45 = vsel %vm3193_vm1, %v3212_v11, %v3214_v15  ;;  %v3621_v28 = vsel %vm3193_vm1, %v3619_v16, %v3620_v3 }
 0x1c5   : > { %v2385_v9 = vadd.f32 %v7158_v36, %v2217_v41  ;;  %v3213_v53 = vsel %vm3193_vm1, %v3211_v25, %v3212_v11  ;;  %v3351_v41 = vsel %vm3193_vm1, %v3348_v62, %v3350_v34 }
 0x1c6   : > { %v2550_v44 = vpop.permute.xlu0 %2549 }
 0x1c7   : > { %v2554_v27 = vadd.f32 %v2550_v44, %v2386_v26  ;;  %v2553_v38 = vadd.f32 %v2548_v8, %v2385_v9  ;;  %v4101_v19 = vpop.permute.xlu1 %4100 }
 0x1c9   : > { %v2721_v47 = vadd.f32 %v2716_v13, %v2553_v38 }
 0x1ca   : > { %v2718_v36 = vpop.permute.xlu0 %2717 }
 0x1cb   : > { %v2722_v42 = vadd.f32 %v2718_v36, %v2554_v27  ;;  %v2889_v8 = vadd.f32 %v2884_v59, %v2721_v47  ;;  %v3615_v59 = vmul.f32 %v7122_v54, %v3612_v57  ;;  %v4269_v11 = vpop.permute.xlu1 %4268 }
 0x1cd   : > { %v3057_v39 = vadd.f32 %v3052_v21, %v2889_v8  ;;  %v3622_v52 = vrot.slane %v3615_v59, 2 }
 0x1ce   : > { %v2886_v13 = vpop.permute.xlu0 %2885 }
 0x1cf   : > { %v2890_v32 = vadd.f32 %v2886_v13, %v2722_v42  ;;  %v3218_v40 = vadd.f32 %v3213_v53, %v3057_v39  ;;  %v3623_v27 = vsel %vm3193_vm1, %v3620_v3, %v3622_v52  ;;  %v4437_v62 = vpop.permute.xlu1 %4436  ;;  %v429_v52 = vstv %s5591_s24  ;;  %s5743_s24 = sld [smem:[#allocation2 + $0x68]] }
 0x1d1   : > { %v3354_v14 = vadd.f32 %v3349_v37, %v3218_v40 }
 0x1d2   : > { %v3054_v7 = vpop.permute.xlu0 %3053 }
 0x1d3   : > { %v3058_v21 = vadd.f32 %v3054_v7, %v2890_v32  ;;  %v3490_v26 = vadd.f32 %v3485_v4, %v3354_v14  ;;  %v4605_v8 = vpop.permute.xlu1 %4604  ;;  %v5122_v4 = vstv %s5845_s29  ;;  %s5735_s29 = sld [smem:[#allocation2 + $0x5f]] }
 0x1d5   : > { %v3219_v63 = vadd.f32 %v3215_v45, %v3058_v21  ;;  %v3626_v9 = vadd.f32 %v3621_v28, %v3490_v26 }
 0x1d6   : > { %v3767_v44 = vpop.permute.xlu0 %3766 }
 0x1d7   : > { %v3355_v50 = vadd.f32 %v3351_v41, %v3219_v63  ;;  %v3770_v12 = vadd.f32 %v3765_v58, %v3626_v9  ;;  %v4773_v5 = vpop.permute.xlu1 %4772  ;;  %v541_v63 = vstv %s5599_s25  ;;  %s5783_s25 = sld [smem:[#allocation2 + $0x4f]] }
 0x1d8   : > { %v542_v9 = vmul.f32 %v6860_v49, %v541_v63 }
 0x1d9   : > { %v3491_v38 = vadd.f32 %v3487_v55, %v3355_v50  ;;  %v3938_v25 = vadd.f32 %v3933_v18, %v3770_v12  ;;  %v543_v55 = vmul.f32 %v6967_v29, %v541_v63  ;;  %v765_v12 = vstv %s5615_s30  ;;  %s5799_s30 = sld [smem:[#allocation2 + $0x61]] }
 0x1da   : > { %v3935_v57 = vpop.permute.xlu0 %3934 }
 0x1db   : > { %v3627_v10 = vadd.f32 %v3623_v27, %v3491_v38  ;;  %v4106_v36 = vadd.f32 %v4101_v19, %v3938_v25  ;;  %v430_v19 = vmul.f32 %v6982_v35, %v429_v52  ;;  %v431_v27 = vmul.f32 %v6929_v60, %v429_v52 }
 0x1dc   : > { %v766_v38 = vmul.f32 %v6944_v23, %v765_v12  ;;  %v989_v25 = vstv %s5631_s5  ;;  %s5815_s5 = sld [smem:[#allocation2 + $0x50]] }
 0x1dd   : > { %v3771_v48 = vadd.f32 %v3767_v44, %v3627_v10  ;;  %v4274_v61 = vadd.f32 %v4269_v11, %v4106_v36  ;;  %v653_v44 = vstv %s5607_s27  ;;  %s5791_s27 = sld [smem:[#allocation2 + $0x58]] }
 0x1de   : > { %v4103_v47 = vpop.permute.xlu0 %4102  ;;  %v654_v50 = vmul.f32 %v6900_v30, %v653_v44  ;;  %v655_v11 = vmul.f32 %v6997_v22, %v653_v44 }
 0x1df   : > { %v3939_v24 = vadd.f32 %v3935_v57, %v3771_v48  ;;  %v4442_v56 = vadd.f32 %v4437_v62, %v4274_v61  ;;  %v877_v57 = vstv %s5623_s4  ;;  %v767_v48 = vmul.f32 %v6874_v31, %v765_v12  ;;  %s5807_s4 = sld [smem:[#allocation2 + $0x6a]] }
 0x1e0   : > { %v878_v10 = vmul.f32 %v6982_v35, %v877_v57  ;;  %v879_v36 = vmul.f32 %v6929_v60, %v877_v57  ;;  %v1213_v61 = vstv %s7240_s9  ;;  %v7287_v57 = vld [vmem:[%s6301_s26 + $0x18] sm:$0xff]  ;;  %s5839_s9 = sld [smem:[#allocation2 + $0x6b]] }
 0x1e1   : > { %v4107_v6 = vadd.f32 %v4103_v47, %v3939_v24  ;;  %v4610_v15 = vadd.f32 %v4605_v8, %v4442_v56  ;;  %v990_v47 = vmul.f32 %v6860_v49, %v989_v25  ;;  %v1101_v24 = vstv %s7234_s6  ;;  %s5823_s6 = sld [smem:[#allocation2 + $0x59]] }
 0x1e2   : > { %v4271_v20 = vpop.permute.xlu0 %4270  ;;  %v1102_v62 = vmul.f32 %v6900_v30, %v1101_v24  ;;  %v991_v8 = vmul.f32 %v6967_v29, %v989_v25  ;;  %v2052_v56 = vstv %s5695_s10  ;;  %s5559_s10 = sld [smem:[#allocation2 + $0x48]] }
 0x1e3   : > { %v4275_v17 = vadd.f32 %v4271_v20, %v4107_v6  ;;  %v4778_v32 = vadd.f32 %v4773_v5, %v4610_v15  ;;  %v1884_v20 = vstv %s5687_s7  ;;  %v2054_v15 = vmul.f32 %v6967_v29, %v2052_v56  ;;  %s5831_s7 = sld [smem:[#allocation2 + $0x62]] }
 0x1e4   : > { %v1885_v6 = vmul.f32 %v6982_v35, %v1884_v20  ;;  %v1103_v5 = vmul.f32 %v6997_v22, %v1101_v24 }
 0x1e6   : > { %v4439_v42 = vpop.permute.xlu0 %4438 }
 0x1e7   : > { %v4443_v53 = vadd.f32 %v4439_v42, %v4275_v17  ;;  %v1886_v42 = vmul.f32 %v6929_v60, %v1884_v20  ;;  %v1214_v17 = vmul.f32 %v6944_v23, %v1213_v61 }
 0x1e8   : > { %s5874_s19 = spop %5873 }
 0x1e9   : > { %s5091_s20 = smul.f32 0.00390625, %s5874_s19  ;;  %s5719_s19 = sld [smem:[#allocation2 + $0x4d]] }
 0x1ea   : > { %v4607_v58 = vpop.permute.xlu0 %4606 }
 0x1eb   : > { %v5092_v43 = vstv %s5091_s20  ;;  %v4611_v18 = vadd.f32 %v4607_v58, %v4443_v53  ;;  %v1891_v58 = vrot.slane %v1885_v6, 1  ;;  %v2053_v53 = vmul.f32 %v6860_v49, %v2052_v56  ;;  %s5727_s20 = sld [smem:[#allocation2 + $0x56]] }
 0x1ec   : > { %v7205_v39 = vsub.f32 %v7069_v1, %v5092_v43  ;;  %v7208_v13 = vsub.f32 %v7067_v2, %v5092_v43  ;;  %v1892_v43 = vrot.slane %v1886_v42, 1 }
 0x1ee   : > { %v5095_v3 = vmul.f32 %v7205_v39, %v7205_v39  ;;  %v5096_v37 = vmul.f32 %v7208_v13, %v7208_v13  ;;  %v4775_v16 = vpop.permute.xlu0 %4774 }
 0x1ef   : > { %v4779_v14 = vadd.f32 %v4775_v16, %v4611_v18  ;;  %v1893_v16 = vsel %vm1304_vm0, %v1891_v58, %v1892_v43  ;;  %v2059_v18 = vrot.slane %v2053_v53, 1  ;;  %v7307_v53 = vld [vmem:[%s6301_s26 + $0x48] sm:$0xff] }
 0x1f0   : > { %v5097_v40 = vsel %vm5078_vm2, %v5095_v3, 0.0  ;;  %v5098_v34 = vsel %vm5078_vm2, %v5096_v37, 0.0  ;;  %v1887_v3 = vmul.f32 %v6936_v33, %v1884_v20  ;;  %v2220_v37 = vstv %s5703_s11  ;;  %v7297_v20 = vld [vmem:[%s6301_s26 + $0x30] sm:$0xff]  ;;  %s5567_s11 = sld [smem:[#allocation2 + $0x51]] }
 0x1f1   : > { %v5099_v59 = vadd.f32 %v5098_v34, %v5097_v40  ;;  %v2060_v40 = vrot.slane %v2054_v15, 1  ;;  %v2222_v49 = vmul.f32 %v6997_v22, %v2220_v37  ;;  %v1215_v34 = vmul.f32 %v6874_v31, %v1213_v61  ;;  %v7311_v15 = vld [vmem:[%s6301_s26 + $0x50] sm:$0xff] }
 0x1f2   : > { %v4941_v1 = vpop.permute.xlu0 %4940  ;;  %v2223_v52 = vmul.f32 %v10104_v46, %v2220_v37 }
 0x1f3   : > { %5100 = vadd.xlane.f32.xlu1 %v5099_v59  ;;  %v4946_v2 = vadd.f32 %v4941_v1, %v4778_v32  ;;  %v2221_v32 = vmul.f32 %v6900_v30, %v2220_v37  ;;  %v1894_v59 = vrot.slane %v1887_v3, 1  ;;  %v2055_v1 = vmul.f32 %v10103_v0, %v2052_v56 }
 0x1f4   : > { %v2228_v30 = vrot.slane %v2222_v49, 1  ;;  %v2230_v12 = vrot.slane %v2223_v52, 1  ;;  %v4109_v52 = vstv %s5799_s30  ;;  %s5759_s30 = sld [smem:[#allocation2 + $0x57]] }
 0x1f5   : > { %v7216_v45 = vadd.f32 %v5122_v4, %v4946_v2  ;;  %v2227_v2 = vrot.slane %v2221_v32, 1 }
 0x1f6   : > { %v4943_v7 = vpop.permute.xlu0 %4942  ;;  %v2231_v24 = vsel %vm1304_vm0, %v2228_v30, %v2230_v12 }
 0x1f7   : > { %v4947_v51 = vadd.f32 %v4943_v7, %v4779_v14  ;;  %v5125_v21 = vsel %vm5078_vm2, %v7216_v45, 0.0  ;;  %v2061_v14 = vsel %vm1304_vm0, %v2059_v18, %v2060_v40 }
 0x1f9   : > { %v7218_v28 = vadd.f32 %v5122_v4, %v4947_v51  ;;  %v2388_v4 = vstv %s5711_s17  ;;  %s5575_s17 = sld [smem:[#allocation2 + $0x5a]] }
 0x1fa   : > { %v2389_v7 = vmul.f32 %v6944_v23, %v2388_v4  ;;  %v2390_v51 = vmul.f32 %v6874_v31, %v2388_v4  ;;  %v2391_v44 = vmul.f32 %v7122_v54, %v2388_v4  ;;  %v3941_v4 = vstv %s5791_s27  ;;  %s5751_s27 = sld [smem:[#allocation2 + $0x4e]] }
 0x1fb   : > { %v5126_v26 = vsel %vm5078_vm2, %v7218_v28, 0.0 }
 0x1fc   : > { %v5127_v41 = vadd.f32 %v5126_v26, %v5125_v21  ;;  %v1895_v21 = vsel %vm1304_vm0, %v1892_v43, %v1894_v59  ;;  %v2062_v26 = vrot.slane %v2055_v1, 1  ;;  %v2395_v63 = vrot.slane %v2389_v7, 1 }
 0x1fd   : > { %v2398_v25 = vrot.slane %v2391_v44, 1  ;;  %v3942_v7 = vmul.f32 %v7287_v57, %v3941_v4  ;;  %v7344_v44 = vld [vmem:[%s6301_s26 + $0x38] sm:$0xff] }
 0x1fe   : > { %5128 = vadd.xlane.f32.xlu0 %v5127_v41  ;;  %v2556_v41 = vstv %s5719_s19  ;;  %s5583_s19 = sld [smem:[#allocation2 + $0x63]] }
 0x1ff   : > { %v2557_v23 = vmul.f32 %v6982_v35, %v2556_v41  ;;  %v2558_v31 = vmul.f32 %v6929_v60, %v2556_v41 }
 0x201   : > { %v2564_v60 = vrot.slane %v2558_v31, 1  ;;  %v4110_v31 = vmul.f32 %v7297_v20, %v4109_v52 }
 0x204   : > { %434 = vrot.lane.b32.xlu1 %v430_v19, %s6182_s28  ;;  %v2229_v19 = vsel %vm1304_vm0, %v2227_v2, %v2228_v30 }
 0x208   : > { %546 = vrot.lane.b32.xlu1 %v542_v9, %s6182_s28  ;;  %v2396_v9 = vrot.slane %v2390_v51, 1  ;;  %v7331_v51 = vld [vmem:[%s6301_s26 + $0x20] sm:$0xff] }
 0x20c   : > { %548 = vrot.lane.b32.xlu1 %v543_v55, %s6182_s28  ;;  %v2063_v55 = vsel %vm1304_vm0, %v2060_v40, %v2062_v26 }
 0x210   : > { %658 = vrot.lane.b32.xlu1 %v654_v50, %s6182_s28  ;;  %v2724_v50 = vstv %s5727_s20  ;;  %s5655_s20 = sld [smem:[#allocation2 + $0x4b]] }
 0x214   : > { %436 = vrot.lane.b32.xlu0 %v431_v27, %s6182_s28  ;;  %770 = vrot.lane.b32.xlu1 %v766_v38, %s6182_s28  ;;  %v2397_v27 = vsel %vm1304_vm0, %v2395_v63, %v2396_v9  ;;  %v2563_v38 = vrot.slane %v2557_v23, 1 }
 0x218   : > { %660 = vrot.lane.b32.xlu0 %v655_v11, %s6182_s28  ;;  %882 = vrot.lane.b32.xlu1 %v878_v10, %s6183_s8  ;;  %v2725_v11 = vmul.f32 %v7287_v57, %v2724_v50  ;;  %v2726_v10 = vmul.f32 %v6967_v29, %v2724_v50 }
 0x21a   : > { %v2732_v6 = vrot.slane %v2726_v10, 1 }
 0x21c   : > { %772 = vrot.lane.b32.xlu0 %v767_v48, %s6182_s28  ;;  %994 = vrot.lane.b32.xlu1 %v990_v47, %s6183_s8  ;;  %v2559_v48 = vmul.f32 %v6936_v33, %v2556_v41  ;;  %v2892_v47 = vstv %s5735_s29  ;;  %v2399_v33 = vsel %vm1304_vm0, %v2396_v9, %v2398_v25  ;;  %v3948_v9 = vrot.slane %v3942_v7, 2  ;;  %s5663_s29 = sld [smem:[#allocation2 + $0x54]] }
 0x21d   : > { %v2893_v29 = vmul.f32 %v7297_v20, %v2892_v47  ;;  %v2894_v61 = vmul.f32 %v6997_v22, %v2892_v47  ;;  %v2895_v37 = vmul.f32 %v10104_v46, %v2892_v47  ;;  %v4116_v25 = vrot.slane %v4110_v31, 2 }
 0x21e   : > { %v2566_v42 = vrot.slane %v2559_v48, 1 }
 0x21f   : > { %v2899_v58 = vrot.slane %v2893_v29, 1  ;;  %v2900_v22 = vrot.slane %v2894_v61, 1  ;;  %v2902_v1 = vrot.slane %v2895_v37, 1 }
 0x220   : > { %884 = vrot.lane.b32.xlu0 %v879_v36, %s6183_s8  ;;  %1106 = vrot.lane.b32.xlu1 %v1102_v62, %s6183_s8  ;;  %v2565_v36 = vsel %vm1304_vm0, %v2563_v38, %v2564_v60  ;;  %v2731_v62 = vrot.slane %v2725_v11, 1  ;;  %v2567_v3 = vsel %vm1304_vm0, %v2564_v60, %v2566_v42  ;;  %v4277_v11 = vstv %s5807_s4  ;;  %s5767_s4 = sld [smem:[#allocation2 + $0x60]] }
 0x221   : > { %v2901_v18 = vsel %vm1304_vm0, %v2899_v58, %v2900_v22  ;;  %v2903_v26 = vsel %vm1304_vm0, %v2900_v22, %v2902_v1  ;;  %v4278_v48 = vmul.f32 %v7307_v53, %v4277_v11 }
 0x222   : > { %v2733_v56 = vsel %vm1304_vm0, %v2731_v62, %v2732_v6  ;;  %v7359_v62 = vld [vmem:[%s6301_s26 + $0x40] sm:$0x3] }
 0x223   : > { %v4112_v29 = vmul.f32 %v7359_v62, %v4109_v52  ;;  %v4284_v42 = vrot.slane %v4278_v48, 2 }
 0x224   : > { %996 = vrot.lane.b32.xlu0 %v991_v8, %s6183_s8  ;;  %1218 = vrot.lane.b32.xlu1 %v1214_v17, %s6183_s8  ;;  %v3060_v8 = vstv %s5743_s24  ;;  %v2727_v17 = vmul.f32 %v10103_v0, %v2724_v50  ;;  %v3773_v0 = vstv %s5783_s25  ;;  %v4111_v50 = vmul.f32 %v7344_v44, %v4109_v52  ;;  %s5671_s24 = sld [smem:[#allocation2 + $0x5d]]  ;;  %s5679_s25 = sld [smem:[#allocation2 + $0x66]] }
 0x225   : > { %v3061_v43 = vmul.f32 %v7307_v53, %v3060_v8  ;;  %v3774_v40 = vmul.f32 %v6982_v35, %v3773_v0  ;;  %v3063_v46 = vmul.f32 %v7122_v54, %v3060_v8  ;;  %v4119_v22 = vrot.slane %v4112_v29, 2 }
 0x226   : > { %v4117_v47 = vrot.slane %v4111_v50, 2  ;;  %v221_v29 = vstv %s5559_s10  ;;  %s5848_s10 = sld [smem:[#allocation5 + $0x2]] }
 0x227   : > { %v3067_v32 = vrot.slane %v3061_v43, 1  ;;  %v3780_v35 = vrot.slane %v3774_v40, 2  ;;  %v3070_v41 = vrot.slane %v3063_v46, 1 }
 0x228   : > { %1108 = vrot.lane.b32.xlu0 %v1103_v5, %s6183_s8  ;;  %1896 = vrot.lane.b32.xlu1 %v1893_v16, %s6182_s28  ;;  %v3062_v5 = vmul.f32 %v7311_v15, %v3060_v8  ;;  %v2734_v16 = vrot.slane %v2727_v17, 1  ;;  %v7366_v8 = vld [vmem:[%s6301_s26] sm:$0xff]  ;;  %v4120_v40 = vsel %vm3193_vm1, %v4117_v47, %v4119_v22 }
 0x22a   : > { %v3068_v49 = vrot.slane %v3062_v5, 1  ;;  %v4613_v5 = vstv %s5823_s6 }
 0x22c   : > { %1220 = vrot.lane.b32.xlu0 %v1215_v34, %s6183_s8  ;;  %2064 = vrot.lane.b32.xlu1 %v2061_v14, %s6182_s28  ;;  %v7321_v34 = vld [vmem:[%s6301_s26 + $0x8] sm:$0xff]  ;;  %v2735_v14 = vsel %vm1304_vm0, %v2732_v6, %v2734_v16  ;;  %v3069_v2 = vsel %vm1304_vm0, %v3067_v32, %v3068_v49  ;;  %v3071_v12 = vsel %vm1304_vm0, %v3068_v49, %v3070_v41  ;;  %v4445_v6 = vstv %s5815_s5  ;;  %s5775_s5 = sld [smem:[#allocation2 + $0x69]] }
 0x22d   : > { %v3775_v59 = vmul.f32 %v7321_v34, %v3773_v0  ;;  %v4446_v17 = vmul.f32 %v7366_v8, %v4445_v6  ;;  %v4447_v58 = vmul.f32 %v7321_v34, %v4445_v6  ;;  %v4614_v16 = vmul.f32 %v7287_v57, %v4613_v5 }
 0x22e   : > { %v4615_v32 = vmul.f32 %v7331_v51, %v4613_v5 }
 0x22f   : > { %v3781_v30 = vrot.slane %v3775_v59, 2  ;;  %v4781_v59 = vstv %s5831_s7 }
 0x230   : > { %1898 = vrot.lane.b32.xlu0 %v1895_v21, %s6182_s28  ;;  %2232 = vrot.lane.b32.xlu1 %v2229_v19, %s6182_s28  ;;  %v3943_v21 = vmul.f32 %v7331_v51, %v3941_v4  ;;  %v7338_v19 = vld [vmem:[%s6301_s26 + $0x10] sm:$0x3] }
 0x231   : > { %v3776_v63 = vmul.f32 %v7338_v19, %v3773_v0  ;;  %v3782_v23 = vsel %vm3193_vm1, %v3780_v35, %v3781_v30  ;;  %v4452_v0 = vrot.slane %v4446_v17, 2  ;;  %v4448_v49 = vmul.f32 %v7338_v19, %v4445_v6 }
 0x232   : > { %v4783_v35 = vmul.f32 %v7344_v44, %v4781_v59  ;;  %v269_v6 = vstv %s5567_s11  ;;  %s7470_s11 = sld [smem:[#allocation2 + $0x6d]] }
 0x233   : > { %v3783_v60 = vrot.slane %v3776_v63, 2  ;;  %v4455_v7 = vrot.slane %v4448_v49, 2  ;;  %v271_v22 = vmul.f32 %v7331_v51, %v269_v6 }
 0x234   : > { %2066 = vrot.lane.b32.xlu0 %v2063_v55, %s6182_s28  ;;  %2400 = vrot.lane.b32.xlu1 %v2397_v27, %s6182_s28  ;;  %v3949_v55 = vrot.slane %v3943_v21, 2  ;;  %v7350_v27 = vld [vmem:[%s6301_s26 + $0x28] sm:$0x3]  ;;  %v4789_v52 = vrot.slane %v4783_v35, 2 }
 0x235   : > { %v3944_v38 = vmul.f32 %v7350_v27, %v3941_v4  ;;  %v3784_v61 = vsel %vm3193_vm1, %v3781_v30, %v3783_v60  ;;  %v4620_v4 = vrot.slane %v4614_v16, 2  ;;  %v4616_v21 = vmul.f32 %v7350_v27, %v4613_v5 }
 0x236   : > { %v3950_v10 = vsel %vm3193_vm1, %v3948_v9, %v3949_v55  ;;  %v4784_v9 = vmul.f32 %v7359_v62, %v4781_v59 }
 0x238   : > { %2234 = vrot.lane.b32.xlu0 %v2231_v24, %s6182_s28  ;;  %2568 = vrot.lane.b32.xlu1 %v2565_v36, %s6183_s8  ;;  %v4279_v24 = vmul.f32 %v7311_v15, %v4277_v11  ;;  %v3951_v36 = vrot.slane %v3944_v38, 2 }
 0x23a   : > { %v3952_v43 = vsel %vm3193_vm1, %v3949_v55, %v3951_v36  ;;  %v4949_v55 = vstv %s5839_s9 }
 0x23b   : > { %v4950_v38 = vmul.f32 %v7307_v53, %v4949_v55  ;;  %v4952_v48 = vmul.f32 %v7122_v54, %v4949_v55 }
 0x23c   : > { %2402 = vrot.lane.b32.xlu0 %v2399_v33, %s6182_s28  ;;  %2736 = vrot.lane.b32.xlu1 %v2733_v56, %s6183_s8  ;;  %v4118_v33 = vsel %vm3193_vm1, %v4116_v25, %v4117_v47  ;;  %v4285_v56 = vrot.slane %v4279_v24, 2 }
 0x23d   : > { %v4959_v24 = vrot.slane %v4952_v48, 2 }
 0x23e   : > { %v4286_v37 = vsel %vm3193_vm1, %v4284_v42, %v4285_v56 }
 0x240   : > { %2570 = vrot.lane.b32.xlu0 %v2567_v3, %s6183_s8  ;;  %2904 = vrot.lane.b32.xlu1 %v2901_v18, %s6183_s8  ;;  %v4280_v3 = vmul.f32 %v7122_v54, %v4277_v11  ;;  %v4453_v18 = vrot.slane %v4447_v58, 2  ;;  %v4951_v11 = vmul.f32 %v7311_v15, %v4949_v55  ;;  %v270_v54 = vmul.f32 %v7287_v57, %v269_v6 }
 0x242   : > { %v4287_v1 = vrot.slane %v4280_v3, 2  ;;  %v4454_v46 = vsel %vm3193_vm1, %v4452_v0, %v4453_v18  ;;  %v4456_v63 = vsel %vm3193_vm1, %v4453_v18, %v4455_v7  ;;  %v4957_v25 = vrot.slane %v4951_v11, 2 }
 0x244   : > { %2738 = vrot.lane.b32.xlu0 %v2735_v14, %s6183_s8  ;;  %3072 = vrot.lane.b32.xlu1 %v3069_v2, %s6183_s8  ;;  %v4782_v14 = vmul.f32 %v7297_v20, %v4781_v59  ;;  %v4621_v2 = vrot.slane %v4615_v32, 2  ;;  %v4288_v30 = vsel %vm3193_vm1, %v4285_v56, %v4287_v1  ;;  %v4960_v36 = vsel %vm3193_vm1, %v4957_v25, %v4959_v24 }
 0x245   : > { %v365_v56 = vstv %s5583_s19  ;;  %v1468_v24 = vstv %s5663_s29  ;;  %s7473_s19 = sld [smem:[#allocation2 + $0x7f]] }
 0x246   : > { %v4788_v41 = vrot.slane %v4782_v14, 2 }
 0x248   : > { %2906 = vrot.lane.b32.xlu0 %v2903_v26, %s6183_s8  ;;  %3785 = vrot.lane.b32.xlu1 %v3782_v23, %s6182_s28  ;;  %v4622_v26 = vsel %vm3193_vm1, %v4620_v4, %v4621_v2  ;;  %v4623_v23 = vrot.slane %v4616_v21, 2  ;;  %v4790_v31 = vsel %vm3193_vm1, %v4788_v41, %v4789_v52 }
 0x24a   : > { %v4624_v50 = vsel %vm3193_vm1, %v4621_v2, %v4623_v23 }
 0x24c   : > { %3074 = vrot.lane.b32.xlu0 %v3071_v12, %s6183_s8  ;;  %3953 = vrot.lane.b32.xlu1 %v3950_v10, %s6182_s28  ;;  %v4791_v12 = vrot.slane %v4784_v9, 2  ;;  %v4956_v10 = vrot.slane %v4950_v38, 2 }
 0x24e   : > { %v4792_v60 = vsel %vm3193_vm1, %v4789_v52, %v4791_v12  ;;  %v4958_v47 = vsel %vm3193_vm1, %v4956_v10, %v4957_v25  ;;  %v1332_v10 = vstv %s5655_s20 }
 0x24f   : > { %v1333_v6 = vmul.f32 %v7366_v8, %v1332_v10 }
 0x250   : > { %3787 = vrot.lane.b32.xlu0 %v3784_v61, %s6182_s28  ;;  %4121 = vrot.lane.b32.xlu1 %v4118_v33, %s6182_s28  ;;  %v222_v61 = vmul.f32 %v7366_v8, %v221_v29  ;;  %v317_v33 = vstv %s5575_s17  ;;  %s188_s17 = sand.u32 1, %s6170_s13  }
 0x251   : > { %v318_v17 = vmul.f32 %v7297_v20, %v317_v33  ;;  %v319_v32 = vmul.f32 %v7344_v44, %v317_v33  ;;  %v1470_v33 = vmul.f32 %v7331_v51, %v1468_v24  ;;  %s5556_s20 = sshll.u32 %s188_s17, 7 }
 0x252   : > { %v272_v42 = vadd.f32 %v270_v54, %v222_v61  ;;  %v1604_v54 = vstv %s5671_s24 }
 0x254   : > { %3955 = vrot.lane.b32.xlu0 %v3952_v43, %s6182_s28  ;;  %4289 = vrot.lane.b32.xlu1 %v4286_v37, %s6182_s28  ;;  %v223_v43 = vmul.f32 %v7321_v34, %v221_v29  ;;  %v320_v3 = vadd.f32 %v318_v17, %v272_v42  ;;  %v366_v37 = vmul.f32 %v7307_v53, %v365_v56 }
 0x255   : > { %v1469_v42 = vmul.f32 %v7287_v57, %v1468_v24 }
 0x256   : > { %v273_v18 = vadd.f32 %v271_v22, %v223_v43  ;;  %v368_v49 = vadd.f32 %v366_v37, %v320_v3  ;;  %v1740_v43 = vstv %s5679_s25  ;;  %v1606_v3 = vmul.f32 %v7344_v44, %v1604_v54 }
 0x257   : > { %v1339_v37 = vrot.slane %v1333_v6, 1 }
 0x258   : > { %4123 = vrot.lane.b32.xlu0 %v4120_v40, %s6182_s28  ;;  %4457 = vrot.lane.b32.xlu1 %v4454_v46, %s6183_s8  ;;  %v321_v1 = vadd.f32 %v319_v32, %v273_v18  ;;  %v367_v46 = vmul.f32 %v7311_v15, %v365_v56  ;;  %v1335_v56 = vmul.f32 %v7338_v19, %v1332_v10  ;;  %v1476_v32 = vrot.slane %v1470_v33, 1 }
 0x25c   : > { %4291 = vrot.lane.b32.xlu0 %v4288_v30, %s6182_s28  ;;  %4625 = vrot.lane.b32.xlu1 %v4622_v26, %s6183_s8  ;;  %v369_v30 = vadd.f32 %v367_v46, %v321_v1  ;;  %v1342_v46 = vrot.slane %v1335_v56, 1 }
 0x260   : > { %4459 = vrot.lane.b32.xlu0 %v4456_v63, %s6183_s8  ;;  %4793 = vrot.lane.b32.xlu1 %v4790_v31, %s6183_s8 }
 0x264   : > { %4627 = vrot.lane.b32.xlu0 %v4624_v50, %s6183_s8 }
 0x268   : > { %4795 = vrot.lane.b32.xlu0 %v4792_v60, %s6183_s8 }
 0x26c   : > { %4961 = vrot.lane.b32.xlu0 %v4958_v47, %s6183_s8  ;;  %v1334_v47 = vmul.f32 %v7321_v34, %v1332_v10 }
 0x270   : > { %4963 = vrot.lane.b32.xlu0 %v4960_v36, %s6183_s8 }
 0x280   : > { %v5101_v58 = vpop.xlane.xlu1 %5100 }
 0x281   : > { %v5102_v5 = vrot.slane %v5101_v58, 4 }
 0x283   : > { %v5103_v0 = vadd.f32 %v5102_v5, %v5101_v58  ;;  %v1340_v58 = vrot.slane %v1334_v47, 1 }
 0x284   : > { %v435_v16 = vpop.permute.xlu1 %434 }
 0x285   : > { %v5104_v40 = vrot.slane %v5103_v0, 2  ;;  %v440_v2 = vadd.f32 %v435_v16, %v368_v49  ;;  %v1471_v16 = vmul.f32 %v7350_v27, %v1468_v24  ;;  %v1475_v49 = vrot.slane %v1469_v42, 1 }
 0x287   : > { %v5105_v59 = vadd.f32 %v5104_v40, %v5103_v0  ;;  %v1605_v0 = vmul.f32 %v7297_v20, %v1604_v54  ;;  %v1742_v40 = vmul.f32 %v7311_v15, %v1740_v43 }
 0x288   : > { %v547_v4 = vpop.permute.xlu1 %546 }
 0x289   : > { %v5106_v14 = vrot.slane %v5105_v59, 1  ;;  %v552_v26 = vadd.f32 %v547_v4, %v440_v2  ;;  %v1607_v4 = vmul.f32 %v7359_v62, %v1604_v54  ;;  %v1612_v2 = vrot.slane %v1606_v3, 1 }
 0x28b   : > { %v7415_v35 = vpop.xlane.xlu0 %5128  ;;  %v5107_v7 = vadd.f32 %v5106_v14, %v5105_v59  ;;  %v1741_v59 = vmul.f32 %v7307_v53, %v1740_v43 }
 0x28c   : > { %v549_v21 = vpop.permute.xlu1 %548 }
 0x28d   : > { %5875 = vpush %v5107_v7  ;;  %v1341_v7 = vsel %vm1304_vm0, %v1339_v37, %v1340_v58 }
 0x28f   : > { %v437_v41 = vpop.permute.xlu0 %436 }
 0x290   : > { %v441_v52 = vadd.f32 %v437_v41, %v369_v30  ;;  %v659_v63 = vpop.permute.xlu1 %658  ;;  %v7430_v41 = vld [vmem:[%s6301_s26 + $0x58] sm:$0x3] }
 0x291   : > { %v664_v23 = vadd.f32 %v659_v63, %v552_v26  ;;  %v1478_v26 = vrot.slane %v1471_v16, 1 }
 0x292   : > { %v553_v9 = vadd.f32 %v549_v21, %v441_v52  ;;  %v1611_v21 = vrot.slane %v1605_v0, 1  ;;  %v1743_v52 = vmul.f32 %v7430_v41, %v1740_v43 }
 0x293   : > { %v661_v31 = vpop.permute.xlu0 %660 }
 0x294   : > { %v665_v55 = vadd.f32 %v661_v31, %v553_v9  ;;  %v771_v50 = vpop.permute.xlu1 %770  ;;  %v1477_v9 = vsel %vm1304_vm0, %v1475_v49, %v1476_v32  ;;  %v1747_v31 = vrot.slane %v1741_v59, 1 }
 0x295   : > { %v776_v12 = vadd.f32 %v771_v50, %v664_v23  ;;  %v1748_v23 = vrot.slane %v1742_v40, 1 }
 0x297   : > { %v773_v38 = vpop.permute.xlu0 %772 }
 0x298   : > { %v777_v11 = vadd.f32 %v773_v38, %v665_v55  ;;  %v883_v60 = vpop.permute.xlu1 %882  ;;  %v1343_v55 = vsel %vm1304_vm0, %v1340_v58, %v1342_v46 }
 0x299   : > { %v888_v25 = vadd.f32 %v883_v60, %v776_v12  ;;  %v1614_v12 = vrot.slane %v1607_v4, 1  ;;  %v1613_v60 = vsel %vm1304_vm0, %v1611_v21, %v1612_v2 }
 0x29b   : > { %v885_v48 = vpop.permute.xlu0 %884 }
 0x29c   : > { %v889_v36 = vadd.f32 %v885_v48, %v777_v11  ;;  %v995_v29 = vpop.permute.xlu1 %994  ;;  %v1750_v48 = vrot.slane %v1743_v52, 1 }
 0x29d   : > { %v1000_v61 = vadd.f32 %v995_v29, %v888_v25  ;;  %v1479_v25 = vsel %vm1304_vm0, %v1476_v32, %v1478_v26  ;;  %v1615_v29 = vsel %vm1304_vm0, %v1612_v2, %v1614_v12  ;;  %v5130_v2 = vrot.slane %v7415_v35, 4 }
 0x29e   : > { %v1751_v42 = vsel %vm1304_vm0, %v1748_v23, %v1750_v48 }
 0x29f   : > { %v997_v17 = vpop.permute.xlu0 %996 }
 0x2a0   : > { %v1001_v22 = vadd.f32 %v997_v17, %v889_v36  ;;  %v1107_v5 = vpop.permute.xlu1 %1106  ;;  %v1749_v36 = vsel %vm1304_vm0, %v1747_v31, %v1748_v23 }
 0x2a1   : > { %v1112_v18 = vadd.f32 %v1107_v5, %v1000_v61 }
 0x2a3   : > { %v1109_v1 = vpop.permute.xlu0 %1108 }
 0x2a4   : > { %v1113_v14 = vadd.f32 %v1109_v1, %v1001_v22  ;;  %v1219_v30 = vpop.permute.xlu1 %1218 }
 0x2a5   : > { %v1224_v63 = vadd.f32 %v1219_v30, %v1112_v18 }
 0x2a7   : > { %v1221_v50 = vpop.permute.xlu0 %1220  ;;  %v1346_v38 = vadd.f32 %v1341_v7, %v1224_v63  ;;  %v3357_v7 = vstv %s5759_s30  ;;  %v3493_v63 = vstv %s5767_s4  ;;  %s7489_s30 = scalar_lea.vmem [#allocation7], %s5556_s20  ;;  %s7496_s4 = sld [smem:[#allocation2 + $0x6e]] }
 0x2a8   : > { %v1225_v11 = vadd.f32 %v1221_v50, %v1113_v14  ;;  %v1897_v10 = vpop.permute.xlu1 %1896  ;;  %v3221_v14 = vstv %s5751_s27  ;;  %v3359_v31 = vmul.f32 %v7331_v51, %v3357_v7  ;;  %v3358_v50 = vmul.f32 %v7287_v57, %v3357_v7  ;;  %s7479_s27 = sld [smem:[#allocation2 + $0x88]]  ;;  %s5712_s20 = sld [smem:[#allocation2 + $0x8b]] }
 0x2a9   : > { %v1482_v47 = vadd.f32 %v1477_v9, %v1346_v38  ;;  %v3223_v52 = vmul.f32 %v7321_v34, %v3221_v14  ;;  %v3222_v23 = vmul.f32 %v7366_v8, %v3221_v14  ;;  %v3224_v38 = vmul.f32 %v7338_v19, %v3221_v14 }
 0x2aa   : > { %v1347_v24 = vadd.f32 %v1343_v55, %v1225_v11  ;;  %v5131_v55 = vadd.f32 %v5130_v2, %v7415_v35  ;;  %v3495_v11 = vmul.f32 %v7344_v44, %v3493_v63  ;;  %v3365_v35 = vrot.slane %v3359_v31, 2 }
 0x2ab   : > { %v1899_v6 = vpop.permute.xlu0 %1898  ;;  %v1618_v61 = vadd.f32 %v1613_v60, %v1482_v47  ;;  %v3629_v60 = vstv %s5775_s5  ;;  %v3228_v47 = vrot.slane %v3222_v23, 2  ;;  %s7507_s5 = sld [smem:[#allocation2 + $0x77]] }
 0x2ac   : > { %v1483_v54 = vadd.f32 %v1479_v25, %v1347_v24  ;;  %v2065_v33 = vpop.permute.xlu1 %2064  ;;  %v3229_v25 = vrot.slane %v3223_v52, 2  ;;  %v3494_v24 = vmul.f32 %v7297_v20, %v3493_v63 }
 0x2ad   : > { %v1754_v17 = vadd.f32 %v1749_v36, %v1618_v61  ;;  %v3360_v36 = vmul.f32 %v7350_v27, %v3357_v7  ;;  %v3631_v61 = vmul.f32 %v7311_v15, %v3629_v60 }
 0x2ae   : > { %v1619_v56 = vadd.f32 %v1615_v29, %v1483_v54  ;;  %v3364_v54 = vrot.slane %v3358_v50, 2 }
 0x2af   : > { %v2067_v58 = vpop.permute.xlu0 %2066  ;;  %v1902_v43 = vadd.f32 %v1897_v10, %v1754_v17 }
 0x2b0   : > { %v1755_v22 = vadd.f32 %v1751_v42, %v1619_v56  ;;  %v2233_v5 = vpop.permute.xlu1 %2232  ;;  %v3231_v56 = vrot.slane %v3224_v38, 2 }
 0x2b1   : > { %v2070_v3 = vadd.f32 %v2065_v33, %v1902_v43  ;;  %v3630_v33 = vmul.f32 %v7307_v53, %v3629_v60  ;;  %v3501_v43 = vrot.slane %v3495_v11, 2 }
 0x2b2   : > { %v1903_v37 = vadd.f32 %v1899_v6, %v1755_v22  ;;  %v5132_v6 = vrot.slane %v5131_v55, 2 }
 0x2b3   : > { %v2235_v0 = vpop.permute.xlu0 %2234  ;;  %v2238_v16 = vadd.f32 %v2233_v5, %v2070_v3  ;;  %v3230_v5 = vsel %vm3193_vm1, %v3228_v47, %v3229_v25 }
 0x2b4   : > { %v2071_v18 = vadd.f32 %v2067_v58, %v1903_v37  ;;  %v2401_v32 = vpop.permute.xlu1 %2400  ;;  %v3496_v58 = vmul.f32 %v7359_v62, %v3493_v63  ;;  %v3500_v37 = vrot.slane %v3494_v24, 2 }
 0x2b5   : > { %v2406_v40 = vadd.f32 %v2401_v32, %v2238_v16  ;;  %v3632_v16 = vmul.f32 %v7430_v41, %v3629_v60  ;;  %v5133_v32 = vadd.f32 %v5132_v6, %v5131_v55 }
 0x2b6   : > { %v2239_v49 = vadd.f32 %v2235_v0, %v2071_v18  ;;  %v3367_v0 = vrot.slane %v3360_v36, 2  ;;  %v3502_v7 = vsel %vm3193_vm1, %v3500_v37, %v3501_v43 }
 0x2b7   : > { %v2403_v59 = vpop.permute.xlu0 %2402  ;;  %v5134_v63 = vrot.slane %v5133_v32, 1 }
 0x2b8   : > { %v2407_v1 = vadd.f32 %v2403_v59, %v2239_v49  ;;  %v2569_v46 = vpop.permute.xlu1 %2568  ;;  %v3366_v49 = vsel %vm3193_vm1, %v3364_v54, %v3365_v35  ;;  %v3636_v59 = vrot.slane %v3630_v33, 2 }
 0x2b9   : > { %v2574_v4 = vadd.f32 %v2569_v46, %v2406_v40  ;;  %v3637_v40 = vrot.slane %v3631_v61, 2 }
 0x2bb   : > { %v2571_v30 = vpop.permute.xlu0 %2570 }
 0x2bc   : > { %v2575_v21 = vadd.f32 %v2571_v30, %v2407_v1  ;;  %v2737_v26 = vpop.permute.xlu1 %2736  ;;  %v3232_v1 = vsel %vm3193_vm1, %v3229_v25, %v3231_v56  ;;  %v5135_v25 = vadd.f32 %v5134_v63, %v5133_v32 }
 0x2bd   : > { %v2742_v9 = vadd.f32 %v2737_v26, %v2574_v4  ;;  %v3503_v4 = vrot.slane %v3496_v58, 2  ;;  %v3639_v26 = vrot.slane %v3632_v16, 2 }
 0x2be   : > { %s5876_s6 = spop %5875 }
 0x2bf   : > { %s5109_s7 = smul.f32 0.00390625, %s5876_s6  ;;  %v2739_v12 = vpop.permute.xlu0 %2738  ;;  %v3504_v31 = vsel %vm3193_vm1, %v3501_v43, %v3503_v4  ;;  %v3640_v11 = vsel %vm3193_vm1, %v3637_v40, %v3639_v26  ;;  %s7512_s6 = sld [smem:[#allocation2 + $0x80]] }
 0x2c0   : > { %v2743_v10 = vadd.f32 %v2739_v12, %v2575_v21  ;;  %v2905_v48 = vpop.permute.xlu1 %2904  ;;  %v3368_v21 = vsel %vm3193_vm1, %v3365_v35, %v3367_v0 }
 0x2c1   : > { %s5110_s9 = sadd.f32 1e-05, %s5109_s7  ;;  %v2910_v29 = vadd.f32 %v2905_v48, %v2742_v9  ;;  %v3638_v9 = vsel %vm3193_vm1, %v3636_v59, %v3637_v40  ;;  %s5688_s7 = sld [smem:[#allocation2 + $0x70]] }
 0x2c3   : > { %v5111_v42 = vstv %s5110_s9  ;;  %v2907_v17 = vpop.permute.xlu0 %2906  ;;  %s7514_s9 = sld [smem:[#allocation2 + $0x76]] }
 0x2c4   : > { %5985 = vrsqrt.f32 %v5111_v42  ;;  %v2911_v22 = vadd.f32 %v2907_v17, %v2743_v10  ;;  %v3073_v3 = vpop.permute.xlu1 %3072 }
 0x2c5   : > { %v3078_v18 = vadd.f32 %v3073_v3, %v2910_v29 }
 0x2c7   : > { %v3075_v46 = vpop.permute.xlu0 %3074  ;;  %v3235_v14 = vadd.f32 %v3230_v5, %v3078_v18 }
 0x2c8   : > { %v3079_v2 = vadd.f32 %v3075_v46, %v2911_v22  ;;  %v3786_v30 = vpop.permute.xlu1 %3785  ;;  %v5169_v46 = vstv %s5848_s10  ;;  %s7521_s10 = sld [smem:[#allocation2 + $0x89]] }
 0x2c9   : > { %v3371_v52 = vadd.f32 %v3366_v49, %v3235_v14 }
 0x2ca   : > { %v3236_v23 = vadd.f32 %v3232_v1, %v3079_v2 }
 0x2cb   : > { %v3788_v55 = vpop.permute.xlu0 %3787  ;;  %v3507_v50 = vadd.f32 %v3502_v7, %v3371_v52 }
 0x2cc   : > { %v3372_v12 = vadd.f32 %v3368_v21, %v3236_v23  ;;  %v3954_v38 = vpop.permute.xlu1 %3953 }
 0x2cd   : > { %v3643_v60 = vadd.f32 %v3638_v9, %v3507_v50 }
 0x2ce   : > { %v5986_v10 = vpop.eup %5985  ;;  %v3508_v48 = vadd.f32 %v3504_v31, %v3372_v12 }
 0x2cf   : > { %5877 = vpush %v5986_v10  ;;  %v3956_v47 = vpop.permute.xlu0 %3955  ;;  %v3791_v24 = vadd.f32 %v3786_v30, %v3643_v60 }
 0x2d0   : > { %5879 = vpush %v5135_v25  ;;  %v3644_v36 = vadd.f32 %v3640_v11, %v3508_v48  ;;  %v4122_v35 = vpop.permute.xlu1 %4121 }
 0x2d1   : > { %v3959_v29 = vadd.f32 %v3954_v38, %v3791_v24  ;;  %v443_v38 = vstv %s7470_s11  ;;  %v779_v24 = vstv %s7479_s27  ;;  %s5696_s11 = sld [smem:[#allocation2 + $0x79]]  ;;  %s5744_s27 = sld [smem:[#allocation2 + $0x8c]] }
 0x2d2   : > { %v3792_v6 = vadd.f32 %v3788_v55, %v3644_v36  ;;  %v445_v10 = vmul.f32 %v7321_v34, %v443_v38  ;;  %v781_v36 = vmul.f32 %v7311_v15, %v779_v24 }
 0x2d3   : > { %v4124_v61 = vpop.permute.xlu0 %4123  ;;  %v4127_v33 = vadd.f32 %v4122_v35, %v3959_v29  ;;  %v891_v35 = vstv %s7496_s4  ;;  %s5784_s4 = sld [smem:[#allocation2 + $0x73]] }
 0x2d4   : > { %v3960_v54 = vadd.f32 %v3956_v47, %v3792_v6  ;;  %v4290_v42 = vpop.permute.xlu1 %4289  ;;  %v893_v29 = vmul.f32 %v7321_v34, %v891_v35  ;;  %v1003_v6 = vstv %s7507_s5  ;;  %s5792_s5 = sld [smem:[#allocation2 + $0x7c]] }
 0x2d5   : > { %v4295_v58 = vadd.f32 %v4290_v42, %v4127_v33  ;;  %v7528_v33 = vstv %s5688_s7  ;;  %v444_v42 = vmul.f32 %v7366_v8, %v443_v38  ;;  %s5808_s7 = sld [smem:[#allocation2 + $0x8e]] }
 0x2d6   : > { %v4128_v56 = vadd.f32 %v4124_v61, %v3960_v54  ;;  %v1005_v61 = vmul.f32 %v7331_v51, %v1003_v6  ;;  %v1115_v54 = vstv %s7512_s6  ;;  %s5800_s6 = sld [smem:[#allocation2 + $0x85]] }
 0x2d7   : > { %v4292_v17 = vpop.permute.xlu0 %4291 }
 0x2d8   : > { %v4458_v43 = vpop.permute.xlu1 %4457  ;;  %v4296_v5 = vadd.f32 %v4292_v17, %v4128_v56  ;;  %v555_v17 = vstv %s7514_s9  ;;  %v1117_v56 = vmul.f32 %v7344_v44, %v1115_v54  ;;  %s5816_s9 = sld [smem:[#allocation2 + $0x74]] }
 0x2d9   : > { %v4463_v3 = vadd.f32 %v4458_v43, %v4295_v58  ;;  %v1227_v58 = vstv %s7521_s10  ;;  %v7539_v43 = vmul.f32 %v7321_v34, %v7528_v33  ;;  %s5824_s10 = sld [smem:[#allocation2 + $0x7d]] }
 0x2db   : > { %v4460_v22 = vpop.permute.xlu0 %4459 }
 0x2dc   : > { %v4626_v37 = vpop.permute.xlu1 %4625  ;;  %v4464_v16 = vadd.f32 %v4460_v22, %v4296_v5  ;;  %v1908_v22 = vmul.f32 %v7338_v19, %v7528_v33  ;;  %v7543_v5 = vstv %s5696_s11  ;;  %s5832_s11 = sld [smem:[#allocation2 + $0x86]] }
 0x2dd   : > { %v4631_v18 = vadd.f32 %v4626_v37, %v4463_v3  ;;  %v556_v3 = vmul.f32 %v7287_v57, %v555_v17  ;;  %v1229_v37 = vmul.f32 %v7311_v15, %v1227_v58 }
 0x2df   : > { %v4628_v0 = vpop.permute.xlu0 %4627 }
 0x2e0   : > { %v4794_v32 = vpop.permute.xlu1 %4793  ;;  %v4632_v49 = vadd.f32 %v4628_v0, %v4464_v16  ;;  %v7553_v0 = vmul.f32 %v7331_v51, %v7543_v5  ;;  %v2076_v16 = vmul.f32 %v7350_v27, %v7543_v5 }
 0x2e1   : > { %v4799_v59 = vadd.f32 %v4794_v32, %v4631_v18  ;;  %v1913_v18 = vrot.slane %v7539_v43, 1  ;;  %v1915_v32 = vrot.slane %v1908_v22, 1  ;;  %v7637_v22 = vstv %s5744_s27  ;;  %s5656_s27 = sld [smem:[#allocation2 + $0x6f]] }
 0x2e3   : > { %v4796_v40 = vpop.permute.xlu0 %4795 }
 0x2e4   : > { %v4800_v4 = vadd.f32 %v4796_v40, %v4632_v49  ;;  %v557_v49 = vmul.f32 %v7331_v51, %v555_v17 }
 0x2e7   : > { %v4962_v1 = vpop.permute.xlu0 %4961 }
 0x2e8   : > { %v4967_v14 = vadd.f32 %v4962_v1, %v4799_v59  ;;  %v2081_v59 = vrot.slane %v7553_v0, 1  ;;  %v2083_v1 = vrot.slane %v2076_v16, 1 }
 0x2ea   : > { %v7462_v2 = vadd.f32 %v5169_v46, %v4967_v14 }
 0x2eb   : > { %v4964_v7 = vpop.permute.xlu0 %4963 }
 0x2ec   : > { %v4968_v30 = vadd.f32 %v4964_v7, %v4800_v4  ;;  %v5172_v26 = vsel %vm5078_vm2, %v7462_v2, 0.0  ;;  %v1916_v4 = vsel %vm1304_vm0, %v1913_v18, %v1915_v32  ;;  %v7573_v7 = vstv %s5712_s20  ;;  %s5560_s20 = sld [smem:[#allocation2 + $0x6c]] }
 0x2ed   : > { %v7656_v32 = vstv %s5784_s4  ;;  %s5664_s4 = sld [smem:[#allocation2 + $0x78]] }
 0x2ee   : > { %v7464_v21 = vadd.f32 %v5169_v46, %v4968_v30 }
 0x2f0   : > { %v5173_v52 = vsel %vm5078_vm2, %v7464_v21, 0.0 }
 0x2f1   : > { %v5174_v63 = vadd.f32 %v5173_v52, %v5172_v26  ;;  %v2084_v26 = vsel %vm1304_vm0, %v2081_v59, %v2083_v1 }
 0x2f3   : > { %5175 = vadd.xlane.f32.xlu0 %v5174_v63 }
 0x300   : > { %s5878_s29 = spop %5877 }
 0x301   : > { %v5114_v23 = vstv %s5878_s29  ;;  %s5880_s24 = spop %5879  ;;  %s5720_s29 = sld [smem:[#allocation2 + $0x71]] }
 0x302   : > { %v5115_v9 = vmul.f32 %v5114_v23, %v7205_v39  ;;  %v5116_v31 = vmul.f32 %v5114_v23, %v7208_v13  ;;  %s5137_s25 = smul.f32 0.00390625, %s5880_s24  ;;  %v667_v39 = vstv %s7473_s19  ;;  %s5704_s19 = sld [smem:[#allocation2 + $0x82]]  ;;  %v7584_v23 = vmul.f32 %v7311_v15, %v7573_v7 }
 0x303   : > { %v669_v48 = vmul.f32 %v7344_v44, %v667_v39  ;;  %s5728_s24 = sld [smem:[#allocation2 + $0x7a]]  ;;  %v668_v30 = vmul.f32 %v7297_v20, %v667_v39 }
 0x304   : > { %v5117_v55 = vmax.f32 %v5115_v9, 0.0  ;;  %v5118_v50 = vmax.f32 %v5116_v31, 0.0  ;;  %v5138_v12 = vstv %s5137_s25  ;;  %v2412_v9 = vmul.f32 %v7430_v41, %v7573_v7  ;;  %s5736_s25 = sld [smem:[#allocation2 + $0x83]] }
 0x305   : > { %v7483_v11 = vsub.f32 %v7216_v45, %v5138_v12  ;;  %v7486_v60 = vsub.f32 %v7218_v28, %v5138_v12 }
 0x306   : > { %5119 = vst.msk [vmem:[%s7489_s30] sm:$0xff] %vm5078_vm2, %v5117_v55  ;;  %5120 = vst.msk [vmem:[%s7489_s30 + $0x8] sm:$0xff] %vm5078_vm2, %v5118_v50  ;;  %v780_v55 = vmul.f32 %v7307_v53, %v779_v24  ;;  %v2419_v39 = vrot.slane %v2412_v9, 1 }
 0x307   : > { %v5141_v13 = vmul.f32 %v7483_v11, %v7483_v11  ;;  %v5142_v45 = vmul.f32 %v7486_v60, %v7486_v60  ;;  %v7588_v31 = vstv %s5720_s29  ;;  %s5568_s29 = sld [smem:[#allocation2 + $0x75]] }
 0x308   : > { %v7558_v40 = vstv %s5704_s19  ;;  %v7595_v50 = vmul.f32 %v7321_v34, %v7588_v31  ;;  %v2580_v12 = vmul.f32 %v7338_v19, %v7588_v31  ;;  %s5840_s19 = sld [smem:[#allocation2 + $0x8f]] }
 0x309   : > { %v5143_v28 = vsel %vm5078_vm2, %v5141_v13, 0.0  ;;  %v5144_v25 = vsel %vm5078_vm2, %v5142_v45, 0.0  ;;  %450 = vrot.lane.b32.xlu0 %v445_v10, %s6182_s28  ;;  %v7566_v46 = vmul.f32 %v7344_v44, %v7558_v40  ;;  %v2244_v14 = vmul.f32 %v7359_v62, %v7558_v40 }
 0x30a   : > { %v5145_v47 = vadd.f32 %v5144_v25, %v5143_v28  ;;  %v2417_v10 = vrot.slane %v7584_v23, 1  ;;  %v7603_v13 = vstv %s5728_s24  ;;  %v892_v45 = vmul.f32 %v7366_v8, %v891_v35  ;;  %s5576_s24 = sld [smem:[#allocation2 + $0x7e]] }
 0x30b   : > { %v2249_v52 = vrot.slane %v7566_v46, 1  ;;  %v2251_v63 = vrot.slane %v2244_v14, 1  ;;  %v2585_v28 = vrot.slane %v7595_v50, 1  ;;  %v2587_v25 = vrot.slane %v2580_v12, 1 }
 0x30c   : > { %5146 = vadd.xlane.f32.xlu1 %v5145_v47  ;;  %v2420_v47 = vsel %vm1304_vm0, %v2417_v10, %v2419_v39  ;;  %v2748_v24 = vmul.f32 %v7350_v27, %v7603_v13  ;;  %v1004_v35 = vmul.f32 %v7287_v57, %v1003_v6  ;;  %v1116_v57 = vmul.f32 %v7297_v20, %v1115_v54  ;;  %v7707_v39 = vld [vmem:[%s6301_s26 + $0x48] sm:$0xff] }
 0x30d   : > { %674 = vrot.lane.b32.xlu0 %v669_v48, %s6182_s28  ;;  %v2252_v38 = vsel %vm1304_vm0, %v2249_v52, %v2251_v63  ;;  %v7613_v48 = vmul.f32 %v7331_v51, %v7603_v13  ;;  %v1906_v6 = vmul.f32 %v7366_v8, %v7528_v33  ;;  %v1228_v33 = vmul.f32 %v7307_v53, %v1227_v58 }
 0x30e   : > { %v3797_v58 = vmul.f32 %v7338_v19, %v7656_v32 }
 0x30f   : > { %v1912_v1 = vrot.slane %v1906_v6, 1 }
 0x310   : > { %v3804_v12 = vrot.slane %v3797_v58, 2 }
 0x311   : > { %786 = vrot.lane.b32.xlu0 %v781_v36, %s6182_s28  ;;  %v7620_v36 = vstv %s5736_s25  ;;  %v1914_v63 = vsel %vm1304_vm0, %v1912_v1, %v1913_v18  ;;  %v7700_v18 = vstv %s5800_s6  ;;  %s5584_s25 = sld [smem:[#allocation2 + $0x87]]  ;;  %s5680_s6 = sld [smem:[#allocation2 + $0x8a]] }
 0x312   : > { %v7633_v17 = vmul.f32 %v7344_v44, %v7620_v36 }
 0x314   : > { %v2921_v20 = vrot.slane %v7633_v17, 1 }
 0x315   : > { %898 = vrot.lane.b32.xlu0 %v893_v29, %s6183_s8  ;;  %v2588_v29 = vsel %vm1304_vm0, %v2585_v28, %v2587_v25 }
 0x319   : > { %1010 = vrot.lane.b32.xlu0 %v1005_v61, %s6183_s8  ;;  %v2753_v61 = vrot.slane %v7613_v48, 1 }
 0x31d   : > { %448 = vrot.lane.b32.xlu1 %v444_v42, %s6182_s28  ;;  %1122 = vrot.lane.b32.xlu0 %v1117_v56, %s6183_s8  ;;  %v2755_v42 = vrot.slane %v2748_v24, 1  ;;  %v2916_v56 = vmul.f32 %v7359_v62, %v7620_v36  ;;  %v2578_v24 = vmul.f32 %v7366_v8, %v7588_v31 }
 0x31f   : > { %v2756_v16 = vsel %vm1304_vm0, %v2753_v61, %v2755_v42  ;;  %v2923_v54 = vrot.slane %v2916_v56, 1  ;;  %v7736_v56 = vld [vmem:[%s6301_s26 + $0x50] sm:$0xff]  ;;  %v2584_v46 = vrot.slane %v2578_v24, 1  ;;  %v7808_v24 = vld [vmem:[%s6301_s26 + $0x40] sm:$0x3] }
 0x321   : > { %560 = vrot.lane.b32.xlu1 %v556_v3, %s6182_s28  ;;  %1234 = vrot.lane.b32.xlu0 %v1229_v37, %s6183_s8  ;;  %v7648_v3 = vmul.f32 %v7311_v15, %v7637_v22  ;;  %v3084_v37 = vmul.f32 %v7430_v41, %v7637_v22  ;;  %v2924_v53 = vsel %vm1304_vm0, %v2921_v20, %v2923_v54 }
 0x322   : > { %v2586_v1 = vsel %vm1304_vm0, %v2584_v46, %v2585_v28 }
 0x323   : > { %v3091_v14 = vrot.slane %v3084_v37, 1 }
 0x325   : > { %562 = vrot.lane.b32.xlu1 %v557_v49, %s6182_s28  ;;  %1919 = vrot.lane.b32.xlu0 %v1916_v4, %s6182_s28  ;;  %v7662_v49 = vld [vmem:[%s6301_s26 + $0x18] sm:$0xff]  ;;  %v3089_v4 = vrot.slane %v7648_v3, 1 }
 0x326   : > { %v2074_v15 = vmul.f32 %v7662_v49, %v7543_v5  ;;  %v7678_v5 = vstv %s5792_s5  ;;  %v2746_v6 = vmul.f32 %v7662_v49, %v7603_v13  ;;  %s5672_s5 = sld [smem:[#allocation2 + $0x81]] }
 0x327   : > { %v3092_v19 = vsel %vm1304_vm0, %v3089_v4, %v3091_v14  ;;  %v3965_v43 = vmul.f32 %v7350_v27, %v7678_v5  ;;  %v4133_v27 = vmul.f32 %v7359_v62, %v7700_v18 }
 0x328   : > { %v2752_v28 = vrot.slane %v2746_v6, 1 }
 0x329   : > { %672 = vrot.lane.b32.xlu1 %v668_v30, %s6182_s28  ;;  %2087 = vrot.lane.b32.xlu0 %v2084_v26, %s6182_s28  ;;  %v7671_v30 = vmul.f32 %v7321_v34, %v7656_v32  ;;  %v2080_v26 = vrot.slane %v2074_v15, 1  ;;  %v7685_v34 = vld [vmem:[%s6301_s26 + $0x30] sm:$0xff]  ;;  %v7760_v15 = vld [vmem:[%s6301_s26 + $0x8] sm:$0xff] }
 0x32a   : > { %v2242_v9 = vmul.f32 %v7685_v34, %v7558_v40  ;;  %v2914_v14 = vmul.f32 %v7685_v34, %v7620_v36 }
 0x32b   : > { %v2082_v40 = vsel %vm1304_vm0, %v2080_v26, %v2081_v59  ;;  %v7786_v26 = vld [vmem:[%s6301_s26 + $0x28] sm:$0x3] }
 0x32c   : > { %v2248_v0 = vrot.slane %v2242_v9, 1 }
 0x32d   : > { %784 = vrot.lane.b32.xlu1 %v780_v55, %s6182_s28  ;;  %2255 = vrot.lane.b32.xlu0 %v2252_v38, %s6182_s28  ;;  %v3802_v55 = vrot.slane %v7671_v30, 2  ;;  %v7696_v38 = vmul.f32 %v7331_v51, %v7678_v5  ;;  %v7714_v51 = vmul.f32 %v7344_v44, %v7700_v18 }
 0x32f   : > { %v3805_v59 = vsel %vm3193_vm1, %v3802_v55, %v3804_v12  ;;  %v3970_v25 = vrot.slane %v7696_v38, 2  ;;  %v4138_v62 = vrot.slane %v7714_v51, 2  ;;  %v2920_v12 = vrot.slane %v2914_v14, 1 }
 0x331   : > { %896 = vrot.lane.b32.xlu1 %v892_v45, %s6183_s8  ;;  %2423 = vrot.lane.b32.xlu0 %v2420_v47, %s6182_s28  ;;  %v2410_v45 = vmul.f32 %v7707_v39, %v7573_v7  ;;  %v3972_v47 = vrot.slane %v3965_v43, 2  ;;  %v7722_v7 = vstv %s5808_s7  ;;  %v3082_v43 = vmul.f32 %v7707_v39, %v7637_v22  ;;  %s5752_s7 = sld [smem:[#allocation2 + $0x72]] }
 0x332   : > { %v7740_v8 = vmul.f32 %v7736_v56, %v7722_v7  ;;  %v4301_v31 = vmul.f32 %v7430_v41, %v7722_v7  ;;  %v4970_v22 = vstv %s5840_s19  ;;  %v4299_v30 = vmul.f32 %v7707_v39, %v7722_v7 }
 0x333   : > { %v2416_v44 = vrot.slane %v2410_v45, 1  ;;  %v3973_v42 = vsel %vm3193_vm1, %v3970_v25, %v3972_v47  ;;  %v3088_v48 = vrot.slane %v3082_v43, 1  ;;  %v4972_v6 = vmul.f32 %v7736_v56, %v4970_v22 }
 0x334   : > { %v4306_v54 = vrot.slane %v7740_v8, 2 }
 0x335   : > { %1008 = vrot.lane.b32.xlu1 %v1004_v35, %s6183_s8  ;;  %2591 = vrot.lane.b32.xlu0 %v2588_v29, %s6183_s8  ;;  %v4140_v35 = vrot.slane %v4133_v27, 2  ;;  %v2250_v29 = vsel %vm1304_vm0, %v2248_v0, %v2249_v52  ;;  %v2418_v52 = vsel %vm1304_vm0, %v2416_v44, %v2417_v10  ;;  %v7767_v10 = vld [vmem:[%s6301_s26 + $0x10] sm:$0x3]  ;;  %v2754_v27 = vsel %vm1304_vm0, %v2752_v28, %v2753_v61 }
 0x336   : > { %v3090_v17 = vsel %vm1304_vm0, %v3088_v48, %v3089_v4  ;;  %v4131_v4 = vmul.f32 %v7685_v34, %v7700_v18  ;;  %v4305_v28 = vrot.slane %v4299_v30, 2  ;;  %v371_v48 = vstv %s5584_s25  ;;  %s7951_s25 = sld [smem:[#allocation2 + $0x91]] }
 0x337   : > { %v4141_v37 = vsel %vm3193_vm1, %v4138_v62, %v4140_v35  ;;  %v2922_v35 = vsel %vm1304_vm0, %v2920_v12, %v2921_v20 }
 0x339   : > { %1120 = vrot.lane.b32.xlu1 %v1116_v57, %s6183_s8  ;;  %2759 = vrot.lane.b32.xlu0 %v2756_v16, %s6183_s8  ;;  %v7744_v57 = vstv %s5816_s9  ;;  %v7756_v16 = vstv %s5824_s10  ;;  %s5760_s9 = sld [smem:[#allocation2 + $0x7b]]  ;;  %s5768_s10 = sld [smem:[#allocation2 + $0x84]] }
 0x33a   : > { %v7764_v23 = vmul.f32 %v7760_v15, %v7744_v57  ;;  %v4469_v13 = vmul.f32 %v7767_v10, %v7744_v57  ;;  %v4637_v50 = vmul.f32 %v7786_v26, %v7756_v16 }
 0x33c   : > { %v4476_v9 = vrot.slane %v4469_v13, 2  ;;  %v4644_v45 = vrot.slane %v4637_v50, 2  ;;  %v4973_v13 = vmul.f32 %v7430_v41, %v4970_v22  ;;  %v4137_v50 = vrot.slane %v4131_v4, 2 }
 0x33d   : > { %1232 = vrot.lane.b32.xlu1 %v1228_v33, %s6183_s8  ;;  %2927 = vrot.lane.b32.xlu0 %v2924_v53, %s6183_s8  ;;  %v4308_v33 = vrot.slane %v4301_v31, 2  ;;  %v7779_v53 = vld [vmem:[%s6301_s26 + $0x20] sm:$0xff] }
 0x33e   : > { %v7783_v58 = vmul.f32 %v7779_v53, %v7756_v16  ;;  %v4980_v14 = vrot.slane %v4973_v13, 2  ;;  %v4139_v18 = vsel %vm3193_vm1, %v4137_v50, %v4138_v62 }
 0x33f   : > { %v4309_v36 = vsel %vm3193_vm1, %v4306_v54, %v4308_v33 }
 0x341   : > { %1917 = vrot.lane.b32.xlu1 %v1914_v63, %s6182_s28  ;;  %3095 = vrot.lane.b32.xlu0 %v3092_v19, %s6183_s8  ;;  %v4474_v63 = vrot.slane %v7764_v23, 2  ;;  %v4802_v19 = vstv %s5832_s11  ;;  %v4978_v23 = vrot.slane %v4972_v6, 2  ;;  %s5776_s11 = sld [smem:[#allocation2 + $0x8d]] }
 0x342   : > { %v4805_v44 = vmul.f32 %v7808_v24, %v4802_v19  ;;  %v4803_v62 = vmul.f32 %v7685_v34, %v4802_v19 }
 0x343   : > { %v4477_v0 = vsel %vm3193_vm1, %v4474_v63, %v4476_v9 }
 0x344   : > { %v4812_v46 = vrot.slane %v4805_v44, 2  ;;  %v4809_v12 = vrot.slane %v4803_v62, 2  ;;  %v1485_v62 = vstv %s5664_s4  ;;  %s7955_s4 = sld [smem:[#allocation2 + $0xac]] }
 0x345   : > { %2085 = vrot.lane.b32.xlu1 %v2082_v40, %s6182_s28  ;;  %3808 = vrot.lane.b32.xlu0 %v3805_v59, %s6182_s28  ;;  %v4642_v40 = vrot.slane %v7783_v58, 2  ;;  %v7804_v59 = vld [vmem:[%s6301_s26 + $0x38] sm:$0xff] }
 0x346   : > { %v4804_v47 = vmul.f32 %v7804_v59, %v4802_v19  ;;  %v227_v19 = vstv %s5560_s20 }
 0x348   : > { %v4810_v31 = vrot.slane %v4804_v47, 2  ;;  %v229_v47 = vmul.f32 %v7760_v15, %v227_v19 }
 0x349   : > { %2253 = vrot.lane.b32.xlu1 %v2250_v29, %s6182_s28  ;;  %3976 = vrot.lane.b32.xlu0 %v3973_v42, %s6182_s28  ;;  %v7816_v29 = vld [vmem:[%s6301_s26] sm:$0xff]  ;;  %v4645_v42 = vsel %vm3193_vm1, %v4642_v40, %v4644_v45  ;;  %v275_v45 = vstv %s5568_s29 }
 0x34a   : > { %v3795_v61 = vmul.f32 %v7816_v29, %v7656_v32  ;;  %v3963_v32 = vmul.f32 %v7662_v49, %v7678_v5  ;;  %v4467_v38 = vmul.f32 %v7816_v29, %v7744_v57  ;;  %v4811_v8 = vsel %vm3193_vm1, %v4809_v12, %v4810_v31 }
 0x34b   : > { %v277_v44 = vmul.f32 %v7779_v53, %v275_v45 }
 0x34c   : > { %v3801_v20 = vrot.slane %v3795_v61, 2  ;;  %v4473_v7 = vrot.slane %v4467_v38, 2 }
 0x34d   : > { %2421 = vrot.lane.b32.xlu1 %v2418_v52, %s6182_s28  ;;  %4144 = vrot.lane.b32.xlu0 %v4141_v37, %s6182_s28  ;;  %v4971_v52 = vmul.f32 %v7707_v39, %v4970_v22  ;;  %v4813_v37 = vsel %vm3193_vm1, %v4810_v31, %v4812_v46  ;;  %v323_v22 = vstv %s5576_s24  ;;  %v279_v31 = vadd.f32 %v277_v44, %v229_v47  ;;  %s5851_s24 = sld [smem:[#allocation5 + $0x3]] }
 0x34e   : > { %v3803_v3 = vsel %vm3193_vm1, %v3801_v20, %v3802_v55  ;;  %v4981_v55 = vsel %vm3193_vm1, %v4978_v23, %v4980_v14  ;;  %v4475_v51 = vsel %vm3193_vm1, %v4473_v7, %v4474_v63  ;;  %v325_v46 = vmul.f32 %v7804_v59, %v323_v22 }
 0x34f   : > { %v4977_v33 = vrot.slane %v4971_v52, 2  ;;  %v1488_v47 = vmul.f32 %v7786_v26, %v1485_v62 }
 0x351   : > { %2589 = vrot.lane.b32.xlu1 %v2586_v1, %s6183_s8  ;;  %4312 = vrot.lane.b32.xlu0 %v4309_v36, %s6182_s28  ;;  %v3969_v1 = vrot.slane %v3963_v32, 2  ;;  %v4979_v5 = vsel %vm3193_vm1, %v4977_v33, %v4978_v23  ;;  %v4635_v36 = vmul.f32 %v7662_v49, %v7756_v16  ;;  %v373_v33 = vmul.f32 %v7736_v56, %v371_v48 }
 0x353   : > { %v3971_v58 = vsel %vm3193_vm1, %v3969_v1, %v3970_v25  ;;  %v4307_v25 = vsel %vm3193_vm1, %v4305_v28, %v4306_v54  ;;  %v4641_v9 = vrot.slane %v4635_v36, 2 }
 0x355   : > { %2757 = vrot.lane.b32.xlu1 %v2754_v27, %s6183_s8  ;;  %4480 = vrot.lane.b32.xlu0 %v4477_v0, %s6183_s8  ;;  %v4643_v57 = vsel %vm3193_vm1, %v4641_v9, %v4642_v40  ;;  %v228_v40 = vmul.f32 %v7816_v29, %v227_v19  ;;  %v276_v0 = vmul.f32 %v7662_v49, %v275_v45 }
 0x357   : > { %v278_v61 = vadd.f32 %v276_v0, %v228_v40  ;;  %v1621_v40 = vstv %s5672_s5  ;;  %v1487_v0 = vmul.f32 %v7779_v53, %v1485_v62  ;;  %s7960_s5 = sld [smem:[#allocation2 + $0x92]] }
 0x359   : > { %2925 = vrot.lane.b32.xlu1 %v2922_v35, %s6183_s8  ;;  %4648 = vrot.lane.b32.xlu0 %v4645_v42, %s6183_s8  ;;  %v324_v42 = vmul.f32 %v7685_v34, %v323_v22  ;;  %v1757_v22 = vstv %s5680_s6 }
 0x35b   : > { %v326_v32 = vadd.f32 %v324_v42, %v278_v61 }
 0x35d   : > { %3093 = vrot.lane.b32.xlu1 %v3090_v17, %s6183_s8  ;;  %4816 = vrot.lane.b32.xlu0 %v4813_v37, %s6183_s8  ;;  %v372_v17 = vmul.f32 %v7707_v39, %v371_v48  ;;  %v327_v37 = vadd.f32 %v325_v46, %v279_v31  ;;  %v1623_v31 = vmul.f32 %v7804_v59, %v1621_v40 }
 0x35e   : > { %v1624_v46 = vmul.f32 %v7808_v24, %v1621_v40 }
 0x35f   : > { %v374_v4 = vadd.f32 %v372_v17, %v326_v32  ;;  %v1759_v32 = vmul.f32 %v7736_v56, %v1757_v22 }
 0x361   : > { %3806 = vrot.lane.b32.xlu1 %v3803_v3, %s6182_s28  ;;  %4982 = vrot.lane.b32.xlu0 %v4979_v5, %s6183_s8  ;;  %v375_v5 = vadd.f32 %v373_v33, %v327_v37  ;;  %v1760_v37 = vmul.f32 %v7430_v41, %v1757_v22 }
 0x365   : > { %3974 = vrot.lane.b32.xlu1 %v3971_v58, %s6182_s28  ;;  %4984 = vrot.lane.b32.xlu0 %v4981_v55, %s6183_s8 }
 0x369   : > { %4142 = vrot.lane.b32.xlu1 %v4139_v18, %s6182_s28 }
 0x36d   : > { %4310 = vrot.lane.b32.xlu1 %v4307_v25, %s6182_s28 }
 0x371   : > { %4478 = vrot.lane.b32.xlu1 %v4475_v51, %s6183_s8  ;;  %v1349_v51 = vstv %s5656_s27  ;;  %s7953_s27 = sld [smem:[#allocation2 + $0xa3]] }
 0x372   : > { %v1352_v19 = vmul.f32 %v7767_v10, %v1349_v51  ;;  %v1350_v41 = vmul.f32 %v7816_v29, %v1349_v51 }
 0x374   : > { %v1359_v42 = vrot.slane %v1352_v19, 1  ;;  %v1356_v19 = vrot.slane %v1350_v41, 1 }
 0x375   : > { %4646 = vrot.lane.b32.xlu1 %v4643_v57, %s6183_s8 }
 0x379   : > { %4814 = vrot.lane.b32.xlu1 %v4811_v8, %s6183_s8  ;;  %v1351_v8 = vmul.f32 %v7760_v15, %v1349_v51 }
 0x37b   : > { %v1357_v61 = vrot.slane %v1351_v8, 1 }
 0x380   : > { %v7870_v54 = vpop.xlane.xlu0 %5175 }
 0x384   : > { %v451_v16 = vpop.permute.xlu0 %450 }
 0x385   : > { %v455_v18 = vadd.f32 %v451_v16, %v375_v5 }
 0x388   : > { %v675_v63 = vpop.permute.xlu0 %674 }
 0x38c   : > { %v787_v43 = vpop.permute.xlu0 %786 }
 0x390   : > { %v899_v27 = vpop.permute.xlu0 %898 }
 0x394   : > { %v1011_v35 = vpop.permute.xlu0 %1010 }
 0x398   : > { %v1123_v52 = vpop.permute.xlu0 %1122 }
 0x399   : > { %v5147_v6 = vpop.xlane.xlu1 %5146 }
 0x39a   : > { %v5148_v20 = vrot.slane %v5147_v6, 4 }
 0x39c   : > { %v5149_v23 = vadd.f32 %v5148_v20, %v5147_v6  ;;  %v1235_v13 = vpop.permute.xlu0 %1234  ;;  %v1495_v20 = vrot.slane %v1488_v47, 1 }
 0x39d   : > { %v449_v1 = vpop.permute.xlu1 %448 }
 0x39e   : > { %v5150_v3 = vrot.slane %v5149_v23, 2  ;;  %v454_v55 = vadd.f32 %v449_v1, %v374_v4  ;;  %v1360_v1 = vsel %vm1304_vm0, %v1357_v61, %v1359_v42  ;;  %v1631_v4 = vrot.slane %v1624_v46, 1 }
 0x3a0   : > { %v5151_v14 = vadd.f32 %v5150_v3, %v5149_v23  ;;  %v7880_v58 = vpop.permute.xlu0 %1919  ;;  %v1629_v3 = vrot.slane %v1623_v31, 1 }
 0x3a1   : > { %v561_v50 = vpop.permute.xlu1 %560 }
 0x3a2   : > { %v5152_v30 = vrot.slane %v5151_v14, 1  ;;  %v566_v7 = vadd.f32 %v561_v50, %v454_v55  ;;  %v1767_v55 = vrot.slane %v1760_v37, 1 }
 0x3a4   : > { %v5153_v28 = vadd.f32 %v5152_v30, %v5151_v14  ;;  %v7882_v38 = vpop.permute.xlu0 %2087  ;;  %v1765_v30 = vrot.slane %v1759_v32, 1 }
 0x3a5   : > { %v563_v25 = vpop.permute.xlu1 %562 }
 0x3a6   : > { %5881 = vpush %v5153_v28  ;;  %v567_v36 = vadd.f32 %v563_v25, %v455_v18  ;;  %v1632_v25 = vsel %vm1304_vm0, %v1629_v3, %v1631_v4 }
 0x3a8   : > { %v679_v9 = vadd.f32 %v675_v63, %v567_v36  ;;  %v7884_v57 = vpop.permute.xlu0 %2255  ;;  %v1768_v36 = vsel %vm1304_vm0, %v1765_v30, %v1767_v55 }
 0x3a9   : > { %v673_v12 = vpop.permute.xlu1 %672 }
 0x3aa   : > { %v791_v16 = vadd.f32 %v787_v43, %v679_v9  ;;  %v678_v45 = vadd.f32 %v673_v12, %v566_v7  ;;  %v1493_v43 = vrot.slane %v1487_v0, 1  ;;  %v1486_v9 = vmul.f32 %v7662_v49, %v1485_v62 }
 0x3ac   : > { %v903_v44 = vadd.f32 %v899_v27, %v791_v16  ;;  %v7890_v48 = vpop.permute.xlu0 %2423  ;;  %v1496_v50 = vsel %vm1304_vm0, %v1493_v43, %v1495_v20  ;;  %v1622_v16 = vmul.f32 %v7685_v34, %v1621_v40  ;;  %v1492_v47 = vrot.slane %v1486_v9, 1 }
 0x3ad   : > { %v785_v63 = vpop.permute.xlu1 %784 }
 0x3ae   : > { %v790_v6 = vadd.f32 %v785_v63, %v678_v45  ;;  %v1015_v17 = vadd.f32 %v1011_v35, %v903_v44  ;;  %v1758_v44 = vmul.f32 %v7707_v39, %v1757_v22  ;;  %v1358_v63 = vsel %vm1304_vm0, %v1356_v19, %v1357_v61 }
 0x3af   : > { %v1628_v31 = vrot.slane %v1622_v16, 1  ;;  %v1494_v40 = vsel %vm1304_vm0, %v1492_v47, %v1493_v43  ;;  %v3374_v22 = vstv %s5760_s9  ;;  %s7967_s9 = sld [smem:[#allocation2 + $0x9b]] }
 0x3b0   : > { %v1127_v33 = vadd.f32 %v1123_v52, %v1015_v17  ;;  %v2592_v27 = vpop.permute.xlu0 %2591  ;;  %v3238_v17 = vstv %s5752_s7  ;;  %v1764_v20 = vrot.slane %v1758_v44, 1  ;;  %v7917_v43 = vmul.f32 %v7779_v53, %v3374_v22 }
 0x3b1   : > { %v897_v23 = vpop.permute.xlu1 %896  ;;  %v7911_v61 = vmul.f32 %v7760_v15, %v3238_v17 }
 0x3b2   : > { %v902_v5 = vadd.f32 %v897_v23, %v790_v6  ;;  %v1239_v14 = vadd.f32 %v1235_v13, %v1127_v33  ;;  %v3241_v23 = vmul.f32 %v7767_v10, %v3238_v17  ;;  %v1766_v4 = vsel %vm1304_vm0, %v1764_v20, %v1765_v30 }
 0x3b4   : > { %v1364_v35 = vadd.f32 %v1360_v1, %v1239_v14  ;;  %v2760_v18 = vpop.permute.xlu0 %2759 }
 0x3b5   : > { %v1009_v28 = vpop.permute.xlu1 %1008 }
 0x3b6   : > { %v1014_v52 = vadd.f32 %v1009_v28, %v902_v5  ;;  %v1500_v7 = vadd.f32 %v1496_v50, %v1364_v35  ;;  %v3377_v5 = vmul.f32 %v7786_v26, %v3374_v22  ;;  %v3246_v35 = vrot.slane %v7911_v61, 2 }
 0x3b7   : > { %v3248_v28 = vrot.slane %v3241_v23, 2  ;;  %v5177_v61 = vrot.slane %v7870_v54, 4 }
 0x3b8   : > { %v1636_v12 = vadd.f32 %v1632_v25, %v1500_v7  ;;  %v2928_v13 = vpop.permute.xlu0 %2927  ;;  %v3384_v30 = vrot.slane %v3377_v5, 2 }
 0x3b9   : > { %v1121_v8 = vpop.permute.xlu1 %1120 }
 0x3ba   : > { %v1126_v45 = vadd.f32 %v1121_v8, %v1014_v52  ;;  %v1772_v0 = vadd.f32 %v1768_v36, %v1636_v12  ;;  %v3646_v52 = vstv %s5776_s11  ;;  %s7982_s11 = sld [smem:[#allocation2 + $0xa4]] }
 0x3bc   : > { %v1924_v51 = vadd.f32 %v7880_v58, %v1772_v0  ;;  %v3096_v62 = vpop.permute.xlu0 %3095  ;;  %v1630_v58 = vsel %vm1304_vm0, %v1628_v31, %v1629_v3  ;;  %v3510_v3 = vstv %s5768_s10  ;;  %v3648_v0 = vmul.f32 %v7736_v56, %v3646_v52 }
 0x3bd   : > { %v1233_v42 = vpop.permute.xlu1 %1232  ;;  %v3512_v7 = vmul.f32 %v7804_v59, %v3510_v3  ;;  %v3513_v36 = vmul.f32 %v7808_v24, %v3510_v3 }
 0x3be   : > { %v1238_v46 = vadd.f32 %v1233_v42, %v1126_v45  ;;  %v2092_v6 = vadd.f32 %v7882_v38, %v1924_v51  ;;  %v7928_v51 = vld [vmem:[%s6301_s26 + $0x58] sm:$0x3]  ;;  %v3654_v20 = vrot.slane %v3648_v0, 2 }
 0x3bf   : > { %v3518_v47 = vrot.slane %v3512_v7, 2  ;;  %v3520_v44 = vrot.slane %v3513_v36, 2 }
 0x3c0   : > { %v1363_v32 = vadd.f32 %v1358_v63, %v1238_v46  ;;  %v2260_v37 = vadd.f32 %v7884_v57, %v2092_v6  ;;  %v3809_v57 = vpop.permute.xlu0 %3808  ;;  %v3649_v63 = vmul.f32 %v7928_v51, %v3646_v52 }
 0x3c1   : > { %v1918_v33 = vpop.permute.xlu1 %1917 }
 0x3c2   : > { %v1499_v1 = vadd.f32 %v1494_v40, %v1363_v32  ;;  %v2428_v38 = vadd.f32 %v7890_v48, %v2260_v37  ;;  %v3382_v48 = vrot.slane %v7917_v43, 2  ;;  %v3521_v40 = vsel %vm3193_vm1, %v3518_v47, %v3520_v44 }
 0x3c3   : > { %v3656_v32 = vrot.slane %v3649_v63, 2 }
 0x3c4   : > { %v1635_v14 = vadd.f32 %v1630_v58, %v1499_v1  ;;  %v2596_v50 = vadd.f32 %v2592_v27, %v2428_v38  ;;  %v3249_v27 = vsel %vm3193_vm1, %v3246_v35, %v3248_v28  ;;  %v3977_v19 = vpop.permute.xlu0 %3976  ;;  %v3239_v38 = vmul.f32 %v7816_v29, %v3238_v17 }
 0x3c5   : > { %v2086_v55 = vpop.permute.xlu1 %2085  ;;  %v3657_v23 = vsel %vm3193_vm1, %v3654_v20, %v3656_v32  ;;  %v3647_v17 = vmul.f32 %v7707_v39, %v3646_v52 }
 0x3c6   : > { %v1771_v25 = vadd.f32 %v1766_v4, %v1635_v14  ;;  %v2764_v41 = vadd.f32 %v2760_v18, %v2596_v50  ;;  %v3385_v18 = vsel %vm3193_vm1, %v3382_v48, %v3384_v30  ;;  %v5178_v14 = vadd.f32 %v5177_v61, %v7870_v54 }
 0x3c7   : > { %v3375_v50 = vmul.f32 %v7662_v49, %v3374_v22  ;;  %v3245_v28 = vrot.slane %v3239_v38, 2 }
 0x3c8   : > { %v1923_v9 = vadd.f32 %v1918_v33, %v1771_v25  ;;  %v2932_v12 = vadd.f32 %v2928_v13, %v2764_v41  ;;  %v3511_v25 = vmul.f32 %v7685_v34, %v3510_v3  ;;  %v5179_v7 = vrot.slane %v5178_v14, 2 }
 0x3c9   : > { %v2254_v8 = vpop.permute.xlu1 %2253  ;;  %v3381_v36 = vrot.slane %v3375_v50, 2  ;;  %v3247_v54 = vsel %vm3193_vm1, %v3245_v28, %v3246_v35  ;;  %v3653_v3 = vrot.slane %v3647_v17, 2  ;;  %v5216_v28 = vstv %s5851_s24  ;;  %s5705_s24 = sld [smem:[#allocation2 + $0xa6]] }
 0x3ca   : > { %v2091_v16 = vadd.f32 %v2086_v55, %v1923_v9  ;;  %v3100_v45 = vadd.f32 %v3096_v62, %v2932_v12  ;;  %v4145_v62 = vpop.permute.xlu0 %4144 }
 0x3cb   : > { %v3383_v0 = vsel %vm3193_vm1, %v3381_v36, %v3382_v48 }
 0x3cc   : > { %v2259_v42 = vadd.f32 %v2254_v8, %v2091_v16  ;;  %v3253_v31 = vadd.f32 %v3249_v27, %v3100_v45  ;;  %v3517_v27 = vrot.slane %v3511_v25, 2  ;;  %v5180_v45 = vadd.f32 %v5179_v7, %v5178_v14 }
 0x3cd   : > { %v2422_v46 = vpop.permute.xlu1 %2421 }
 0x3ce   : > { %v2427_v13 = vadd.f32 %v2422_v46, %v2259_v42  ;;  %v3389_v6 = vadd.f32 %v3385_v18, %v3253_v31  ;;  %v4313_v4 = vpop.permute.xlu0 %4312  ;;  %v5181_v31 = vrot.slane %v5180_v45, 1  ;;  %v3655_v46 = vsel %vm3193_vm1, %v3653_v3, %v3654_v20 }
 0x3d0   : > { %v3525_v33 = vadd.f32 %v3521_v40, %v3389_v6 }
 0x3d1   : > { %v2590_v37 = vpop.permute.xlu1 %2589 }
 0x3d2   : > { %v2595_v58 = vadd.f32 %v2590_v37, %v2427_v13  ;;  %v3661_v5 = vadd.f32 %v3657_v23, %v3525_v33  ;;  %v4481_v9 = vpop.permute.xlu0 %4480 }
 0x3d4   : > { %v3813_v30 = vadd.f32 %v3809_v57, %v3661_v5  ;;  %v3519_v57 = vsel %vm3193_vm1, %v3517_v27, %v3518_v47  ;;  %v681_v27 = vstv %s7953_s27  ;;  %s5793_s27 = sld [smem:[#allocation2 + $0xa0]] }
 0x3d5   : > { %v2758_v1 = vpop.permute.xlu1 %2757 }
 0x3d6   : > { %v2763_v43 = vadd.f32 %v2758_v1, %v2595_v58  ;;  %v3981_v16 = vadd.f32 %v3977_v19, %v3813_v30  ;;  %v4649_v63 = vpop.permute.xlu0 %4648  ;;  %v5182_v19 = vadd.f32 %v5181_v31, %v5180_v45  ;;  %v793_v45 = vstv %s7955_s4  ;;  %s5801_s4 = sld [smem:[#allocation2 + $0xa9]] }
 0x3d7   : > { %s5882_s19 = spop %5881 }
 0x3d8   : > { %s5155_s20 = smul.f32 0.00390625, %s5882_s19  ;;  %v4149_v52 = vadd.f32 %v4145_v62, %v3981_v16  ;;  %s5689_s19 = sld [smem:[#allocation2 + $0x94]] }
 0x3d9   : > { %v2926_v55 = vpop.permute.xlu1 %2925 }
 0x3da   : > { %s5156_s29 = sadd.f32 1e-05, %s5155_s20  ;;  %v2931_v41 = vadd.f32 %v2926_v55, %v2763_v43  ;;  %v4317_v40 = vadd.f32 %v4313_v4, %v4149_v52  ;;  %v4817_v37 = vpop.permute.xlu0 %4816  ;;  %s7999_s20 = sld [smem:[#allocation2 + $0xad]] }
 0x3dc   : > { %v5157_v12 = vstv %s5156_s29  ;;  %v4485_v47 = vadd.f32 %v4481_v9, %v4317_v40  ;;  %s5697_s29 = sld [smem:[#allocation2 + $0x9d]]  ;;  %v1129_v40 = vstv %s7982_s11  ;;  %s5825_s11 = sld [smem:[#allocation2 + $0xa1]] }
 0x3dd   : > { %5987 = vrsqrt.f32 %v5157_v12  ;;  %v3094_v8 = vpop.permute.xlu1 %3093 }
 0x3de   : > { %v3099_v22 = vadd.f32 %v3094_v8, %v2931_v41  ;;  %v4983_v1 = vpop.permute.xlu0 %4982  ;;  %v4653_v38 = vadd.f32 %v4649_v63, %v4485_v47  ;;  %v795_v63 = vmul.f32 %v7736_v56, %v793_v45 }
 0x3e0   : > { %v3252_v18 = vadd.f32 %v3247_v54, %v3099_v22  ;;  %v4821_v5 = vadd.f32 %v4817_v37, %v4653_v38  ;;  %v457_v54 = vstv %s7951_s25  ;;  %v683_v22 = vmul.f32 %v7804_v59, %v681_v27  ;;  %s8012_s25 = sld [smem:[#allocation2 + $0x9a]] }
 0x3e1   : > { %v3807_v44 = vpop.permute.xlu1 %3806  ;;  %v459_v8 = vmul.f32 %v7760_v15, %v457_v54  ;;  %v1241_v37 = vstv %s7999_s20  ;;  %v8034_v38 = vstv %s5705_s24  ;;  %s5785_s24 = sld [smem:[#allocation2 + $0x97]]  ;;  %s5833_s20 = sld [smem:[#allocation2 + $0xaa]] }
 0x3e2   : > { %v3388_v42 = vadd.f32 %v3383_v0, %v3252_v18  ;;  %v4985_v14 = vpop.permute.xlu0 %4984  ;;  %v1243_v47 = vmul.f32 %v7736_v56, %v1241_v37 }
 0x3e3   : > { %v4989_v55 = vadd.f32 %v4985_v14, %v4821_v5  ;;  %v8040_v5 = vmul.f32 %v7804_v59, %v8034_v38  ;;  %v458_v14 = vmul.f32 %v7816_v29, %v457_v54 }
 0x3e4   : > { %v3524_v13 = vadd.f32 %v3519_v57, %v3388_v42 }
 0x3e5   : > { %v3975_v35 = vpop.permute.xlu1 %3974  ;;  %v7943_v30 = vadd.f32 %v5216_v28, %v4989_v55  ;;  %v2265_v55 = vmul.f32 %v7808_v24, %v8034_v38 }
 0x3e6   : > { %v3660_v6 = vadd.f32 %v3655_v46, %v3524_v13  ;;  %v1017_v13 = vstv %s7967_s9  ;;  %s5817_s9 = sld [smem:[#allocation2 + $0x98]] }
 0x3e7   : > { %v5988_v32 = vpop.eup %5987  ;;  %v5220_v17 = vsel %vm5078_vm2, %v7943_v30, 0.0 }
 0x3e8   : > { %5883 = vpush %v5988_v32  ;;  %v3812_v48 = vadd.f32 %v3807_v44, %v3660_v6  ;;  %v1019_v6 = vmul.f32 %v7779_v53, %v1017_v13  ;;  %v8006_v32 = vstv %s5689_s19  ;;  %s5737_s19 = sld [smem:[#allocation2 + $0xa7]] }
 0x3e9   : > { %5885 = vpush %v5182_v19  ;;  %v4143_v58 = vpop.permute.xlu1 %4142  ;;  %v1131_v19 = vmul.f32 %v7804_v59, %v1129_v40 }
 0x3ea   : > { %v3980_v33 = vadd.f32 %v3975_v35, %v3812_v48  ;;  %v8017_v48 = vmul.f32 %v7760_v15, %v8006_v32 }
 0x3ec   : > { %v4148_v61 = vadd.f32 %v4143_v58, %v3980_v33  ;;  %v1929_v58 = vmul.f32 %v7767_v10, %v8006_v32  ;;  %v8021_v33 = vstv %s5697_s29  ;;  %s5745_s29 = sld [smem:[#allocation2 + $0xb0]] }
 0x3ed   : > { %v4311_v23 = vpop.permute.xlu1 %4310 }
 0x3ee   : > { %v4316_v62 = vadd.f32 %v4311_v23, %v4148_v61  ;;  %v8029_v61 = vmul.f32 %v7779_v53, %v8021_v33  ;;  %v2097_v23 = vmul.f32 %v7786_v26, %v8021_v33 }
 0x3f1   : > { %v4479_v20 = vpop.permute.xlu1 %4478 }
 0x3f2   : > { %v4484_v43 = vadd.f32 %v4479_v20, %v4316_v62  ;;  %v1936_v62 = vrot.slane %v1929_v58, 1  ;;  %v2102_v20 = vrot.slane %v8029_v61, 1 }
 0x3f5   : > { %v4647_v4 = vpop.permute.xlu1 %4646 }
 0x3f6   : > { %v4652_v50 = vadd.f32 %v4647_v4, %v4484_v43  ;;  %v2104_v43 = vrot.slane %v2097_v23, 1  ;;  %v569_v4 = vstv %s8012_s25  ;;  %v8113_v23 = vstv %s5745_s29  ;;  %s5841_s25 = sld [smem:[#allocation2 + $0xb3]] }
 0x3f7   : > { %s5657_s29 = sld [smem:[#allocation2 + $0x93]] }
 0x3f9   : > { %v4815_v25 = vpop.permute.xlu1 %4814 }
 0x3fa   : > { %v4820_v41 = vadd.f32 %v4815_v25, %v4652_v50  ;;  %v570_v25 = vmul.f32 %v7662_v49, %v569_v4 }
 0x3fc   : > { %v4988_v7 = vadd.f32 %v4983_v1, %v4820_v41  ;;  %v1934_v1 = vrot.slane %v8017_v48, 1  ;;  %v2105_v41 = vsel %vm1304_vm0, %v2102_v20, %v2104_v43  ;;  %v3105_v43 = vmul.f32 %v7928_v51, %v8113_v23 }
 0x3fe   : > { %v7945_v36 = vadd.f32 %v5216_v28, %v4988_v7  ;;  %v1937_v50 = vsel %vm1304_vm0, %v1934_v1, %v1936_v62  ;;  %v2270_v7 = vrot.slane %v8040_v5, 1  ;;  %v8121_v62 = vmul.f32 %v7736_v56, %v8113_v23 }
 0x400   : > { %v5219_v9 = vsel %vm5078_vm2, %v7945_v36, 0.0 }
 0x401   : > { %v5221_v12 = vadd.f32 %v5220_v17, %v5219_v9  ;;  %v2272_v17 = vrot.slane %v2265_v55, 1  ;;  %v3110_v55 = vrot.slane %v8121_v62, 1 }
 0x403   : > { %5222 = vadd.xlane.f32.xlu0 %v5221_v12 }
 0x419   : > { %s5884_s6 = spop %5883  ;;  %464 = vrot.lane.b32.xlu0 %v459_v8, %s6182_s28  ;;  %v571_v8 = vmul.f32 %v7779_v53, %v569_v4 }
 0x41a   : > { %v5160_v16 = vstv %s5884_s6  ;;  %s5886_s7 = spop %5885  ;;  %s5713_s6 = sld [smem:[#allocation2 + $0xaf]] }
 0x41b   : > { %v5161_v0 = vmul.f32 %v5160_v16, %v7483_v11  ;;  %v5162_v3 = vmul.f32 %v5160_v16, %v7486_v60  ;;  %s5184_s10 = smul.f32 0.00390625, %s5886_s7  ;;  %v905_v11 = vstv %s7960_s5  ;;  %s5721_s7 = sld [smem:[#allocation2 + $0x95]] }
 0x41c   : > { %s5809_s5 = sld [smem:[#allocation2 + $0xb2]] }
 0x41d   : > { %v5163_v18 = vmax.f32 %v5161_v0, 0.0  ;;  %v5164_v57 = vmax.f32 %v5162_v3, 0.0  ;;  %v5185_v44 = vstv %s5184_s10  ;;  %688 = vrot.lane.b32.xlu0 %v683_v22, %s6182_s28  ;;  %s5729_s10 = sld [smem:[#allocation2 + $0x9e]]  ;;  %v2273_v0 = vsel %vm1304_vm0, %v2270_v7, %v2272_v17 }
 0x41e   : > { %v7976_v42 = vsub.f32 %v7462_v2, %v5185_v44  ;;  %v7979_v52 = vsub.f32 %v7464_v21, %v5185_v44  ;;  %v907_v21 = vmul.f32 %v7760_v15, %v905_v11  ;;  %v1018_v17 = vmul.f32 %v7662_v49, %v1017_v13 }
 0x41f   : > { %5846 = vst.msk [vmem:[%s7489_s30 + $0x10] sm:$0xff] %vm5078_vm2, %v5163_v18  ;;  %5847 = vst.msk [vmem:[%s7489_s30 + $0x18] sm:$0xff] %vm5078_vm2, %v5164_v57 }
 0x420   : > { %v5188_v60 = vmul.f32 %v7976_v42, %v7976_v42  ;;  %v5189_v2 = vmul.f32 %v7979_v52, %v7979_v52  ;;  %v8049_v28 = vstv %s5713_s6  ;;  %s5561_s6 = sld [smem:[#allocation2 + $0x90]] }
 0x421   : > { %800 = vrot.lane.b32.xlu0 %v795_v63, %s6182_s28  ;;  %v8060_v9 = vmul.f32 %v7736_v56, %v8049_v28  ;;  %v2433_v12 = vmul.f32 %v7928_v51, %v8049_v28  ;;  %v8064_v54 = vstv %s5721_s7  ;;  %s5569_s7 = sld [smem:[#allocation2 + $0x99]] }
 0x422   : > { %v5190_v31 = vsel %vm5078_vm2, %v5188_v60, 0.0  ;;  %v5191_v46 = vsel %vm5078_vm2, %v5189_v2, 0.0  ;;  %v8070_v22 = vmul.f32 %v7760_v15, %v8064_v54  ;;  %v2601_v16 = vmul.f32 %v7767_v10, %v8064_v54 }
 0x423   : > { %v5192_v35 = vadd.f32 %v5191_v46, %v5190_v31  ;;  %v2438_v3 = vrot.slane %v8060_v9, 1  ;;  %v2440_v18 = vrot.slane %v2433_v12, 1  ;;  %v8079_v57 = vstv %s5729_s10  ;;  %s5577_s10 = sld [smem:[#allocation2 + $0xa2]] }
 0x424   : > { %v2606_v44 = vrot.slane %v8070_v22, 1  ;;  %v2608_v63 = vrot.slane %v2601_v16, 1  ;;  %v8085_v60 = vmul.f32 %v7779_v53, %v8079_v57  ;;  %v682_v2 = vmul.f32 %v7685_v34, %v681_v27 }
 0x425   : > { %5193 = vadd.xlane.f32.xlu1 %v5192_v35  ;;  %912 = vrot.lane.b32.xlu0 %v907_v21, %s6183_s8  ;;  %v2441_v21 = vsel %vm1304_vm0, %v2438_v3, %v2440_v18  ;;  %v2769_v31 = vmul.f32 %v7786_v26, %v8079_v57  ;;  %v8096_v46 = vstv %s5737_s19  ;;  %v794_v35 = vmul.f32 %v7707_v39, %v793_v45  ;;  %s5585_s19 = sld [smem:[#allocation2 + $0xab]] }
 0x426   : > { %v2774_v27 = vrot.slane %v8085_v60, 1  ;;  %v8109_v58 = vmul.f32 %v7804_v59, %v8096_v46  ;;  %v906_v45 = vmul.f32 %v7816_v29, %v905_v11  ;;  %v8130_v11 = vstv %s5785_s24  ;;  %s5665_s24 = sld [smem:[#allocation2 + $0x9c]] }
 0x427   : > { %v8147_v16 = vstv %s5793_s27  ;;  %s5673_s27 = sld [smem:[#allocation2 + $0xa5]] }
 0x428   : > { %v2942_v4 = vrot.slane %v8109_v58, 1 }
 0x429   : > { %1024 = vrot.lane.b32.xlu0 %v1019_v6, %s6183_s8  ;;  %v2609_v6 = vsel %vm1304_vm0, %v2606_v44, %v2608_v63  ;;  %v8160_v63 = vmul.f32 %v7779_v53, %v8147_v16 }
 0x42d   : > { %1136 = vrot.lane.b32.xlu0 %v1131_v19, %s6183_s8  ;;  %v2776_v19 = vrot.slane %v2769_v31, 1 }
 0x431   : > { %1248 = vrot.lane.b32.xlu0 %v1243_v47, %s6183_s8  ;;  %v2937_v47 = vmul.f32 %v7808_v24, %v8096_v46 }
 0x435   : > { %1940 = vrot.lane.b32.xlu0 %v1937_v50, %s6182_s28  ;;  %v2944_v50 = vrot.slane %v2937_v47, 1 }
 0x436   : > { %462 = vrot.lane.b32.xlu1 %v458_v14, %s6182_s28  ;;  %v2777_v14 = vsel %vm1304_vm0, %v2774_v27, %v2776_v19 }
 0x437   : > { %v2945_v12 = vsel %vm1304_vm0, %v2942_v4, %v2944_v50 }
 0x439   : > { %2108 = vrot.lane.b32.xlu0 %v2105_v41, %s6182_s28  ;;  %v8136_v41 = vmul.f32 %v7760_v15, %v8130_v11 }
 0x43a   : > { %574 = vrot.lane.b32.xlu1 %v570_v25, %s6182_s28  ;;  %v3112_v25 = vrot.slane %v3105_v43, 1 }
 0x43b   : > { %v3823_v13 = vrot.slane %v8136_v41, 2 }
 0x43c   : > { %v3113_v49 = vsel %vm1304_vm0, %v3110_v55, %v3112_v25 }
 0x43d   : > { %2276 = vrot.lane.b32.xlu0 %v2273_v0, %s6182_s28  ;;  %v1130_v0 = vmul.f32 %v7685_v34, %v1129_v40  ;;  %v8164_v34 = vstv %s5801_s4  ;;  %v1927_v40 = vmul.f32 %v7816_v29, %v8006_v32  ;;  %v3991_v32 = vrot.slane %v8160_v63, 2  ;;  %s5681_s4 = sld [smem:[#allocation2 + $0xae]] }
 0x43e   : > { %576 = vrot.lane.b32.xlu1 %v571_v8, %s6182_s28  ;;  %v3818_v8 = vmul.f32 %v7767_v10, %v8130_v11  ;;  %v4154_v31 = vmul.f32 %v7808_v24, %v8164_v34 }
 0x43f   : > { %v1933_v47 = vrot.slane %v1927_v40, 1 }
 0x440   : > { %v3825_v18 = vrot.slane %v3818_v8, 2 }
 0x441   : > { %2444 = vrot.lane.b32.xlu0 %v2441_v21, %s6182_s28  ;;  %v8171_v21 = vmul.f32 %v7804_v59, %v8164_v34 }
 0x442   : > { %686 = vrot.lane.b32.xlu1 %v682_v2, %s6182_s28  ;;  %v3986_v2 = vmul.f32 %v7786_v26, %v8147_v16 }
 0x444   : > { %v3993_v19 = vrot.slane %v3986_v2, 2 }
 0x445   : > { %2612 = vrot.lane.b32.xlu0 %v2609_v6, %s6183_s8  ;;  %v3826_v6 = vsel %vm3193_vm1, %v3823_v13, %v3825_v18 }
 0x446   : > { %798 = vrot.lane.b32.xlu1 %v794_v35, %s6182_s28  ;;  %v1242_v35 = vmul.f32 %v7707_v39, %v1241_v37  ;;  %v4159_v39 = vrot.slane %v8171_v21, 2  ;;  %v4161_v37 = vrot.slane %v4154_v31, 2  ;;  %v3994_v50 = vsel %vm3193_vm1, %v3991_v32, %v3993_v19 }
 0x449   : > { %2780 = vrot.lane.b32.xlu0 %v2777_v14, %s6183_s8  ;;  %v8188_v14 = vstv %s5809_s5  ;;  %s5753_s5 = sld [smem:[#allocation2 + $0x96]] }
 0x44a   : > { %910 = vrot.lane.b32.xlu1 %v906_v45, %s6183_s8  ;;  %v8184_v45 = vld [vmem:[%s6301_s26 + $0x18] sm:$0xff]  ;;  %v8198_v25 = vmul.f32 %v7736_v56, %v8188_v14  ;;  %v4162_v56 = vsel %vm3193_vm1, %v4159_v39, %v4161_v37 }
 0x44b   : > { %v2095_v43 = vmul.f32 %v8184_v45, %v8021_v33  ;;  %v4322_v33 = vmul.f32 %v7928_v51, %v8188_v14  ;;  %v3984_v58 = vmul.f32 %v8184_v45, %v8147_v16 }
 0x44c   : > { %v4327_v48 = vrot.slane %v8198_v25, 2 }
 0x44d   : > { %2948 = vrot.lane.b32.xlu0 %v2945_v12, %s6183_s8  ;;  %v1935_v12 = vsel %vm1304_vm0, %v1933_v47, %v1934_v1  ;;  %v2101_v8 = vrot.slane %v2095_v43, 1  ;;  %v4329_v1 = vrot.slane %v4322_v33, 2  ;;  %v8251_v43 = vstv %s5833_s20  ;;  %s5777_s20 = sld [smem:[#allocation2 + $0xb1]] }
 0x44e   : > { %1022 = vrot.lane.b32.xlu1 %v1018_v17, %s6183_s8  ;;  %v8202_v17 = vstv %s5817_s9  ;;  %v2767_v33 = vmul.f32 %v8184_v45, %v8079_v57  ;;  %s5761_s9 = sld [smem:[#allocation2 + $0x9f]] }
 0x44f   : > { %v8218_v18 = vmul.f32 %v7760_v15, %v8202_v17  ;;  %v4490_v2 = vmul.f32 %v7767_v10, %v8202_v17  ;;  %v2103_v40 = vsel %vm1304_vm0, %v2101_v8, %v2102_v20  ;;  %v4330_v61 = vsel %vm3193_vm1, %v4327_v48, %v4329_v1 }
 0x451   : > { %3116 = vrot.lane.b32.xlu0 %v3113_v49, %s6183_s8  ;;  %v4495_v20 = vrot.slane %v8218_v18, 2  ;;  %v4497_v19 = vrot.slane %v4490_v2, 2 }
 0x452   : > { %1134 = vrot.lane.b32.xlu1 %v1130_v0, %s6183_s8  ;;  %v8208_v0 = vld [vmem:[%s6301_s26 + $0x30] sm:$0xff] }
 0x453   : > { %v2263_v49 = vmul.f32 %v8208_v0, %v8034_v38  ;;  %v8224_v38 = vstv %s5825_s11  ;;  %v4498_v5 = vsel %vm3193_vm1, %v4495_v20, %v4497_v19  ;;  %v2935_v1 = vmul.f32 %v8208_v0, %v8096_v46  ;;  %s5769_s11 = sld [smem:[#allocation2 + $0xa8]] }
 0x454   : > { %v4658_v10 = vmul.f32 %v7786_v26, %v8224_v38 }
 0x455   : > { %3829 = vrot.lane.b32.xlu0 %v3826_v6, %s6182_s28  ;;  %v2269_v31 = vrot.slane %v2263_v49, 1  ;;  %v8237_v6 = vmul.f32 %v7779_v53, %v8224_v38  ;;  %v2599_v53 = vmul.f32 %v7816_v29, %v8064_v54  ;;  %v4826_v29 = vmul.f32 %v7808_v24, %v8251_v43  ;;  %v8278_v49 = vld [vmem:[%s6301_s26 + $0x50] sm:$0xff] }
 0x456   : > { %1246 = vrot.lane.b32.xlu1 %v1242_v35, %s6183_s8  ;;  %v8230_v35 = vld [vmem:[%s6301_s26 + $0x48] sm:$0xff]  ;;  %v4665_v37 = vrot.slane %v4658_v10, 2 }
 0x457   : > { %v2431_v15 = vmul.f32 %v8230_v35, %v8049_v28  ;;  %v2271_v28 = vsel %vm1304_vm0, %v2269_v31, %v2270_v7  ;;  %v4663_v26 = vrot.slane %v8237_v6, 2  ;;  %v8261_v7 = vmul.f32 %v7804_v59, %v8251_v43 }
 0x458   : > { %v4833_v24 = vrot.slane %v4826_v29, 2  ;;  %v3103_v10 = vmul.f32 %v8230_v35, %v8113_v23  ;;  %v4320_v16 = vmul.f32 %v8230_v35, %v8188_v14  ;;  %v4656_v14 = vmul.f32 %v8184_v45, %v8224_v38 }
 0x459   : > { %3997 = vrot.lane.b32.xlu0 %v3994_v50, %s6182_s28  ;;  %v2437_v47 = vrot.slane %v2431_v15, 1  ;;  %v2605_v50 = vrot.slane %v2599_v53, 1  ;;  %v4666_v8 = vsel %vm3193_vm1, %v4663_v26, %v4665_v37  ;;  %v4831_v59 = vrot.slane %v8261_v7, 2 }
 0x45a   : > { %1938 = vrot.lane.b32.xlu1 %v1935_v12, %s6182_s28  ;;  %v4991_v12 = vstv %s5841_s25  ;;  %v4152_v37 = vmul.f32 %v8208_v0, %v8164_v34  ;;  %v281_v29 = vstv %s5569_s7 }
 0x45b   : > { %v2439_v54 = vsel %vm1304_vm0, %v2437_v47, %v2438_v3  ;;  %v4992_v9 = vmul.f32 %v8230_v35, %v4991_v12  ;;  %v4993_v3 = vmul.f32 %v8278_v49, %v4991_v12  ;;  %v2607_v57 = vsel %vm1304_vm0, %v2605_v50, %v2606_v44  ;;  %v8302_v47 = vld [vmem:[%s6301_s26] sm:$0xff] }
 0x45c   : > { %v4834_v2 = vsel %vm3193_vm1, %v4831_v59, %v4833_v24  ;;  %v4994_v15 = vmul.f32 %v7928_v51, %v4991_v12  ;;  %v2941_v44 = vrot.slane %v2935_v1, 1  ;;  %v3816_v60 = vmul.f32 %v8302_v47, %v8130_v11  ;;  %v8363_v12 = vld [vmem:[%s6301_s26 + $0x8] sm:$0xff] }
 0x45d   : > { %4165 = vrot.lane.b32.xlu0 %v4162_v56, %s6182_s28  ;;  %v2773_v56 = vrot.slane %v2767_v33, 1  ;;  %v4999_v31 = vrot.slane %v4993_v3, 2  ;;  %v3990_v11 = vrot.slane %v3984_v58, 2  ;;  %v4488_v34 = vmul.f32 %v8302_v47, %v8202_v17 }
 0x45e   : > { %2106 = vrot.lane.b32.xlu1 %v2103_v40, %s6182_s28  ;;  %v4998_v40 = vrot.slane %v4992_v9, 2  ;;  %v2943_v19 = vsel %vm1304_vm0, %v2941_v44, %v2942_v4  ;;  %v3822_v53 = vrot.slane %v3816_v60, 2  ;;  %v4824_v17 = vmul.f32 %v8208_v0, %v8251_v43 }
 0x45f   : > { %v2775_v22 = vsel %vm1304_vm0, %v2773_v56, %v2774_v27  ;;  %v3992_v62 = vsel %vm3193_vm1, %v3990_v11, %v3991_v32  ;;  %v4494_v32 = vrot.slane %v4488_v34, 2  ;;  %v282_v33 = vmul.f32 %v8184_v45, %v281_v29 }
 0x460   : > { %v5000_v46 = vsel %vm3193_vm1, %v4998_v40, %v4999_v31  ;;  %v3824_v4 = vsel %vm3193_vm1, %v3822_v53, %v3823_v13  ;;  %v4326_v13 = vrot.slane %v4320_v16, 2  ;;  %v329_v9 = vstv %s5577_s10  ;;  %v8374_v40 = vld [vmem:[%s6301_s26 + $0x38] sm:$0xff]  ;;  %s5854_s10 = sld [smem:[#allocation5 + $0x4]] }
 0x461   : > { %4333 = vrot.lane.b32.xlu0 %v4330_v61, %s6182_s28  ;;  %v5001_v61 = vrot.slane %v4994_v15, 2  ;;  %v4496_v21 = vsel %vm3193_vm1, %v4494_v32, %v4495_v20  ;;  %v330_v1 = vmul.f32 %v8208_v0, %v329_v9 }
 0x462   : > { %2274 = vrot.lane.b32.xlu1 %v2271_v28, %s6182_s28  ;;  %v3109_v28 = vrot.slane %v3103_v10, 1  ;;  %v4328_v63 = vsel %vm3193_vm1, %v4326_v13, %v4327_v48  ;;  %v4830_v48 = vrot.slane %v4824_v17, 2 }
 0x463   : > { %v5002_v27 = vsel %vm3193_vm1, %v4999_v31, %v5001_v61  ;;  %v331_v31 = vmul.f32 %v8374_v40, %v329_v9  ;;  %v1774_v9 = vstv %s5681_s4 }
 0x464   : > { %v3111_v23 = vsel %vm1304_vm0, %v3109_v28, %v3110_v55  ;;  %v4158_v55 = vrot.slane %v4152_v37, 2  ;;  %v4832_v38 = vsel %vm3193_vm1, %v4830_v48, %v4831_v59  ;;  %v8367_v59 = vld [vmem:[%s6301_s26 + $0x20] sm:$0xff]  ;;  %v8389_v48 = vld [vmem:[%s6301_s26 + $0x10] sm:$0x3] }
 0x465   : > { %4501 = vrot.lane.b32.xlu0 %v4498_v5, %s6183_s8  ;;  %v283_v24 = vmul.f32 %v8367_v59, %v281_v29  ;;  %v1638_v29 = vstv %s5673_s27  ;;  %s8472_s27 = sld [smem:[#allocation2 + $0xb6]] }
 0x466   : > { %2442 = vrot.lane.b32.xlu1 %v2439_v54, %s6182_s28  ;;  %v4160_v41 = vsel %vm3193_vm1, %v4158_v55, %v4159_v39  ;;  %v4662_v39 = vrot.slane %v4656_v14, 2  ;;  %v1366_v14 = vstv %s5657_s29  ;;  %s8465_s29 = sld [smem:[#allocation2 + $0xc7]] }
 0x468   : > { %v4664_v25 = vsel %vm3193_vm1, %v4662_v39, %v4663_v26  ;;  %v233_v26 = vstv %s5561_s6  ;;  %v1502_v39 = vstv %s5665_s24  ;;  %s8467_s24 = sld [smem:[#allocation2 + $0xd0]] }
 0x469   : > { %4669 = vrot.lane.b32.xlu0 %v4666_v8, %s6183_s8  ;;  %v234_v50 = vmul.f32 %v8302_v47, %v233_v26  ;;  %v235_v8 = vmul.f32 %v8363_v12, %v233_v26 }
 0x46a   : > { %2610 = vrot.lane.b32.xlu1 %v2607_v57, %s6183_s8  ;;  %v377_v57 = vstv %s5585_s19  ;;  %s8463_s19 = sld [smem:[#allocation2 + $0xb5]] }
 0x46b   : > { %v284_v56 = vadd.f32 %v282_v33, %v234_v50  ;;  %v378_v44 = vmul.f32 %v8230_v35, %v377_v57  ;;  %v1504_v50 = vmul.f32 %v8367_v59, %v1502_v39  ;;  %v8394_v33 = vld [vmem:[%s6301_s26 + $0x28] sm:$0x3] }
 0x46d   : > { %4837 = vrot.lane.b32.xlu0 %v4834_v2, %s6183_s8  ;;  %v285_v2 = vadd.f32 %v283_v24, %v235_v8  ;;  %v1505_v8 = vmul.f32 %v8394_v33, %v1502_v39 }
 0x46e   : > { %2778 = vrot.lane.b32.xlu1 %v2775_v22, %s6183_s8 }
 0x46f   : > { %v333_v61 = vadd.f32 %v331_v31, %v285_v2  ;;  %v1640_v2 = vmul.f32 %v8374_v40, %v1638_v29  ;;  %v8402_v31 = vld [vmem:[%s6301_s26 + $0x40] sm:$0x3] }
 0x471   : > { %5003 = vrot.lane.b32.xlu0 %v5000_v46, %s6183_s8  ;;  %v332_v46 = vadd.f32 %v330_v1, %v284_v56 }
 0x472   : > { %2946 = vrot.lane.b32.xlu1 %v2943_v19, %s6183_s8  ;;  %v379_v19 = vmul.f32 %v8278_v49, %v377_v57 }
 0x473   : > { %v380_v53 = vadd.f32 %v378_v44, %v332_v46  ;;  %v1512_v46 = vrot.slane %v1505_v8, 1 }
 0x474   : > { %v381_v58 = vadd.f32 %v379_v19, %v333_v61  ;;  %v1776_v61 = vmul.f32 %v8278_v49, %v1774_v9  ;;  %v1777_v19 = vmul.f32 %v7928_v51, %v1774_v9 }
 0x475   : > { %5005 = vrot.lane.b32.xlu0 %v5002_v27, %s6183_s8 }
 0x476   : > { %3114 = vrot.lane.b32.xlu1 %v3111_v23, %s6183_s8 }
 0x47a   : > { %3827 = vrot.lane.b32.xlu1 %v3824_v4, %s6182_s28 }
 0x47e   : > { %3995 = vrot.lane.b32.xlu1 %v3992_v62, %s6182_s28 }
 0x482   : > { %4163 = vrot.lane.b32.xlu1 %v4160_v41, %s6182_s28 }
 0x486   : > { %4331 = vrot.lane.b32.xlu1 %v4328_v63, %s6182_s28 }
 0x48a   : > { %4499 = vrot.lane.b32.xlu1 %v4496_v21, %s6183_s8 }
 0x48e   : > { %4667 = vrot.lane.b32.xlu1 %v4664_v25, %s6183_s8  ;;  %v1368_v25 = vmul.f32 %v8363_v12, %v1366_v14 }
 0x490   : > { %v8351_v5 = vpop.xlane.xlu0 %5222  ;;  %v1374_v56 = vrot.slane %v1368_v25, 1 }
 0x492   : > { %4835 = vrot.lane.b32.xlu1 %v4832_v38, %s6183_s8  ;;  %v1369_v38 = vmul.f32 %v8389_v48, %v1366_v14 }
 0x494   : > { %v465_v18 = vpop.permute.xlu0 %464  ;;  %v1376_v1 = vrot.slane %v1369_v38, 1 }
 0x495   : > { %v469_v16 = vadd.f32 %v465_v18, %v381_v58 }
 0x498   : > { %v689_v20 = vpop.permute.xlu0 %688 }
 0x49c   : > { %v801_v43 = vpop.permute.xlu0 %800 }
 0x4a0   : > { %v8354_v7 = vpop.permute.xlu0 %912 }
 0x4a4   : > { %v8356_v6 = vpop.permute.xlu0 %1024 }
 0x4a8   : > { %v8358_v54 = vpop.permute.xlu0 %1136 }
 0x4ac   : > { %v8370_v3 = vpop.permute.xlu0 %1248 }
 0x4b0   : > { %v8377_v15 = vpop.permute.xlu0 %1940 }
 0x4b2   : > { %v5194_v22 = vpop.xlane.xlu1 %5193 }
 0x4b3   : > { %v5195_v10 = vrot.slane %v5194_v22, 4 }
 0x4b4   : > { %v8381_v28 = vpop.permute.xlu0 %2108 }
 0x4b5   : > { %v5196_v60 = vadd.f32 %v5195_v10, %v5194_v22  ;;  %v1510_v10 = vrot.slane %v1504_v50, 1 }
 0x4b6   : > { %v463_v27 = vpop.permute.xlu1 %462 }
 0x4b7   : > { %v5197_v23 = vrot.slane %v5196_v60, 2  ;;  %v468_v55 = vadd.f32 %v463_v27, %v380_v53  ;;  %v1377_v27 = vsel %vm1304_vm0, %v1374_v56, %v1376_v1 }
 0x4b8   : > { %v8383_v4 = vpop.permute.xlu0 %2276 }
 0x4b9   : > { %v5198_v11 = vadd.f32 %v5197_v23, %v5196_v60  ;;  %v1646_v23 = vrot.slane %v1640_v2, 1 }
 0x4ba   : > { %v575_v37 = vpop.permute.xlu1 %574 }
 0x4bb   : > { %v5199_v62 = vrot.slane %v5198_v11, 1  ;;  %v580_v63 = vadd.f32 %v575_v37, %v468_v55  ;;  %v1784_v55 = vrot.slane %v1777_v19, 1  ;;  %v3391_v19 = vstv %s5761_s9  ;;  %s8479_s9 = sld [smem:[#allocation2 + $0xbf]] }
 0x4bc   : > { %v8385_v34 = vpop.permute.xlu0 %2444 }
 0x4bd   : > { %v5200_v41 = vadd.f32 %v5199_v62, %v5198_v11  ;;  %v1513_v62 = vsel %vm1304_vm0, %v1510_v10, %v1512_v46  ;;  %v3255_v46 = vstv %s5753_s5 }
 0x4be   : > { %v577_v13 = vpop.permute.xlu1 %576 }
 0x4bf   : > { %5887 = vpush %v5200_v41  ;;  %v581_v32 = vadd.f32 %v577_v13, %v469_v16 }
 0x4c0   : > { %v8397_v24 = vpop.permute.xlu0 %2612 }
 0x4c1   : > { %v693_v21 = vadd.f32 %v689_v20, %v581_v32 }
 0x4c2   : > { %v687_v17 = vpop.permute.xlu1 %686 }
 0x4c3   : > { %v805_v18 = vadd.f32 %v801_v43, %v693_v21  ;;  %v692_v26 = vadd.f32 %v687_v17, %v580_v63  ;;  %v1641_v43 = vmul.f32 %v8402_v31, %v1638_v29  ;;  %v1367_v63 = vmul.f32 %v8302_v47, %v1366_v14 }
 0x4c4   : > { %v2781_v58 = vpop.permute.xlu0 %2780  ;;  %v1503_v17 = vmul.f32 %v8184_v45, %v1502_v39 }
 0x4c5   : > { %v917_v20 = vadd.f32 %v8354_v7, %v805_v18  ;;  %v1648_v53 = vrot.slane %v1641_v43, 1  ;;  %v1373_v18 = vrot.slane %v1367_v63, 1 }
 0x4c6   : > { %v799_v57 = vpop.permute.xlu1 %798 }
 0x4c7   : > { %v804_v22 = vadd.f32 %v799_v57, %v692_v26  ;;  %v1029_v44 = vadd.f32 %v8356_v6, %v917_v20  ;;  %v1782_v6 = vrot.slane %v1776_v61, 1  ;;  %v1649_v13 = vsel %vm1304_vm0, %v1646_v23, %v1648_v53 }
 0x4c8   : > { %v2949_v25 = vpop.permute.xlu0 %2948  ;;  %v1639_v26 = vmul.f32 %v8208_v0, %v1638_v29  ;;  %v1509_v20 = vrot.slane %v1503_v17, 1  ;;  %v1775_v57 = vmul.f32 %v8230_v35, %v1774_v9  ;;  %v1375_v1 = vsel %vm1304_vm0, %v1373_v18, %v1374_v56 }
 0x4c9   : > { %v1141_v7 = vadd.f32 %v8358_v54, %v1029_v44  ;;  %v1785_v21 = vsel %vm1304_vm0, %v1782_v6, %v1784_v55  ;;  %v8425_v56 = vmul.f32 %v8363_v12, %v3255_v46  ;;  %v3527_v55 = vstv %s5769_s11 }
 0x4ca   : > { %v911_v60 = vpop.permute.xlu1 %910  ;;  %v1645_v43 = vrot.slane %v1639_v26, 1  ;;  %v1511_v61 = vsel %vm1304_vm0, %v1509_v20, %v1510_v10  ;;  %v1781_v29 = vrot.slane %v1775_v57, 1  ;;  %v3394_v10 = vmul.f32 %v8394_v33, %v3391_v19 }
 0x4cb   : > { %v916_v11 = vadd.f32 %v911_v60, %v804_v22  ;;  %v1253_v37 = vadd.f32 %v8370_v3, %v1141_v7  ;;  %v3530_v17 = vmul.f32 %v8402_v31, %v3527_v55 }
 0x4cc   : > { %v3117_v39 = vpop.permute.xlu0 %3116 }
 0x4cd   : > { %v1381_v16 = vadd.f32 %v1377_v27, %v1253_v37  ;;  %v3258_v27 = vmul.f32 %v8389_v48, %v3255_v46  ;;  %v1783_v37 = vsel %vm1304_vm0, %v1781_v29, %v1782_v6 }
 0x4ce   : > { %v1023_v41 = vpop.permute.xlu1 %1022 }
 0x4cf   : > { %v1028_v54 = vadd.f32 %v1023_v41, %v916_v11  ;;  %v1517_v32 = vadd.f32 %v1513_v62, %v1381_v16  ;;  %v8430_v11 = vmul.f32 %v8367_v59, %v3391_v19  ;;  %v3263_v41 = vrot.slane %v8425_v56, 2 }
 0x4d1   : > { %v1653_v3 = vadd.f32 %v1649_v13, %v1517_v32  ;;  %v3265_v13 = vrot.slane %v3258_v27, 2  ;;  %v3401_v32 = vrot.slane %v3394_v10, 2 }
 0x4d2   : > { %v1135_v38 = vpop.permute.xlu1 %1134 }
 0x4d3   : > { %v1140_v50 = vadd.f32 %v1135_v38, %v1028_v54  ;;  %v1789_v8 = vadd.f32 %v1785_v21, %v1653_v3  ;;  %v3529_v21 = vmul.f32 %v8374_v40, %v3527_v55  ;;  %v3663_v38 = vstv %s5777_s20  ;;  %s8494_s20 = sld [smem:[#allocation2 + $0xc8]] }
 0x4d5   : > { %v1945_v14 = vadd.f32 %v8377_v15, %v1789_v8  ;;  %v1647_v15 = vsel %vm1304_vm0, %v1645_v43, %v1646_v23  ;;  %v3535_v57 = vrot.slane %v3529_v21, 2 }
 0x4d6   : > { %v1247_v2 = vpop.permute.xlu1 %1246 }
 0x4d7   : > { %v1252_v22 = vadd.f32 %v1247_v2, %v1140_v50  ;;  %v2113_v44 = vadd.f32 %v8381_v28, %v1945_v14  ;;  %v3665_v14 = vmul.f32 %v8278_v49, %v3663_v38 }
 0x4d9   : > { %v1380_v7 = vadd.f32 %v1375_v1, %v1252_v22  ;;  %v2281_v60 = vadd.f32 %v8383_v4, %v2113_v44  ;;  %v3830_v4 = vpop.permute.xlu0 %3829  ;;  %v3666_v1 = vmul.f32 %v7928_v51, %v3663_v38  ;;  %v3671_v29 = vrot.slane %v3665_v14, 2 }
 0x4da   : > { %v1939_v9 = vpop.permute.xlu1 %1938  ;;  %v3256_v51 = vmul.f32 %v8302_v47, %v3255_v46  ;;  %v3664_v46 = vmul.f32 %v8230_v35, %v3663_v38 }
 0x4db   : > { %v1516_v53 = vadd.f32 %v1511_v61, %v1380_v7  ;;  %v2449_v28 = vadd.f32 %v8385_v34, %v2281_v60  ;;  %v3399_v34 = vrot.slane %v8430_v11, 2  ;;  %v3673_v7 = vrot.slane %v3666_v1, 2 }
 0x4dd   : > { %v1652_v62 = vadd.f32 %v1647_v15, %v1516_v53  ;;  %v2617_v23 = vadd.f32 %v8397_v24, %v2449_v28  ;;  %v3266_v24 = vsel %vm3193_vm1, %v3263_v41, %v3265_v13  ;;  %v3998_v26 = vpop.permute.xlu0 %3997  ;;  %v3402_v8 = vsel %vm3193_vm1, %v3399_v34, %v3401_v32 }
 0x4de   : > { %v2107_v16 = vpop.permute.xlu1 %2106  ;;  %v3674_v27 = vsel %vm3193_vm1, %v3671_v29, %v3673_v7  ;;  %v3528_v13 = vmul.f32 %v8208_v0, %v3527_v55  ;;  %v3670_v55 = vrot.slane %v3664_v46, 2 }
 0x4df   : > { %v1788_v63 = vadd.f32 %v1783_v37, %v1652_v62  ;;  %v2785_v54 = vadd.f32 %v2781_v58, %v2617_v23  ;;  %v3537_v58 = vrot.slane %v3530_v17, 2  ;;  %v3392_v62 = vmul.f32 %v8184_v45, %v3391_v19 }
 0x4e1   : > { %v1944_v3 = vadd.f32 %v1939_v9, %v1788_v63  ;;  %v2953_v6 = vadd.f32 %v2949_v25, %v2785_v54  ;;  %v3538_v61 = vsel %vm3193_vm1, %v3535_v57, %v3537_v58  ;;  %v4166_v60 = vpop.permute.xlu0 %4165  ;;  %v3398_v21 = vrot.slane %v3392_v62, 2 }
 0x4e2   : > { %v2275_v18 = vpop.permute.xlu1 %2274 }
 0x4e3   : > { %v2112_v50 = vadd.f32 %v2107_v16, %v1944_v3  ;;  %v3121_v20 = vadd.f32 %v3117_v39, %v2953_v6  ;;  %v5224_v39 = vrot.slane %v8351_v5, 4  ;;  %v3262_v16 = vrot.slane %v3256_v51, 2 }
 0x4e5   : > { %v2280_v2 = vadd.f32 %v2275_v18, %v2112_v50  ;;  %v3270_v43 = vadd.f32 %v3266_v24, %v3121_v20  ;;  %v4334_v28 = vpop.permute.xlu0 %4333  ;;  %v5225_v37 = vadd.f32 %v5224_v39, %v8351_v5  ;;  %v3264_v5 = vsel %vm3193_vm1, %v3262_v16, %v3263_v41 }
 0x4e6   : > { %v2443_v22 = vpop.permute.xlu1 %2442  ;;  %v3534_v18 = vrot.slane %v3528_v13, 2 }
 0x4e7   : > { %v2448_v44 = vadd.f32 %v2443_v22, %v2280_v2  ;;  %v3406_v25 = vadd.f32 %v3402_v8, %v3270_v43  ;;  %v5226_v32 = vrot.slane %v5225_v37, 2  ;;  %v3400_v8 = vsel %vm3193_vm1, %v3398_v21, %v3399_v34 }
 0x4e8   : > { %v3672_v43 = vsel %vm3193_vm1, %v3670_v55, %v3671_v29 }
 0x4e9   : > { %v3542_v56 = vadd.f32 %v3538_v61, %v3406_v25  ;;  %v4502_v17 = vpop.permute.xlu0 %4501  ;;  %v5227_v50 = vadd.f32 %v5226_v32, %v5225_v37 }
 0x4ea   : > { %v2611_v15 = vpop.permute.xlu1 %2610 }
 0x4eb   : > { %v2616_v9 = vadd.f32 %v2611_v15, %v2448_v44  ;;  %v3678_v10 = vadd.f32 %v3674_v27, %v3542_v56  ;;  %v5228_v2 = vrot.slane %v5227_v50, 1 }
 0x4ed   : > { %v3834_v54 = vadd.f32 %v3830_v4, %v3678_v10  ;;  %v3536_v4 = vsel %vm3193_vm1, %v3534_v18, %v3535_v57  ;;  %v4670_v14 = vpop.permute.xlu0 %4669 }
 0x4ee   : > { %v2779_v53 = vpop.permute.xlu1 %2778 }
 0x4ef   : > { %v2784_v11 = vadd.f32 %v2779_v53, %v2616_v9  ;;  %v4002_v24 = vadd.f32 %v3998_v26, %v3834_v54  ;;  %v5229_v26 = vadd.f32 %v5228_v2, %v5227_v50 }
 0x4f0   : > { %s5888_s25 = spop %5887 }
 0x4f1   : > { %s5202_s6 = smul.f32 0.00390625, %s5888_s25  ;;  %v4170_v38 = vadd.f32 %v4166_v60, %v4002_v24  ;;  %v4838_v7 = vpop.permute.xlu0 %4837  ;;  %v807_v24 = vstv %s8467_s24  ;;  %s5690_s25 = sld [smem:[#allocation2 + $0xb8]] }
 0x4f2   : > { %v2947_v23 = vpop.permute.xlu1 %2946  ;;  %s5802_s24 = sld [smem:[#allocation2 + $0xcd]] }
 0x4f3   : > { %s5203_s7 = sadd.f32 1e-05, %s5202_s6  ;;  %v2952_v63 = vadd.f32 %v2947_v23, %v2784_v11  ;;  %v4338_v25 = vadd.f32 %v4334_v28, %v4170_v38  ;;  %v5263_v23 = vstv %s5854_s10  ;;  %s8511_s6 = sld [smem:[#allocation2 + $0xd1]] }
 0x4f4   : > { %s5706_s10 = sld [smem:[#allocation2 + $0xca]] }
 0x4f5   : > { %v5204_v3 = vstv %s5203_s7  ;;  %v4506_v57 = vadd.f32 %v4502_v17, %v4338_v25  ;;  %v5004_v27 = vpop.permute.xlu0 %5003  ;;  %s5698_s7 = sld [smem:[#allocation2 + $0xc1]] }
 0x4f6   : > { %5989 = vrsqrt.f32 %v5204_v3  ;;  %v3115_v6 = vpop.permute.xlu1 %3114  ;;  %v471_v3 = vstv %s8463_s19  ;;  %s8524_s19 = sld [smem:[#allocation2 + $0xbe]] }
 0x4f7   : > { %v3120_v19 = vadd.f32 %v3115_v6, %v2952_v63  ;;  %v4674_v53 = vadd.f32 %v4670_v14, %v4506_v57  ;;  %v695_v6 = vstv %s8465_s29  ;;  %v8518_v25 = vstv %s5690_s25  ;;  %s5738_s25 = sld [smem:[#allocation2 + $0xcb]]  ;;  %s5794_s29 = sld [smem:[#allocation2 + $0xc4]] }
 0x4f8   : > { %v697_v18 = vmul.f32 %v8374_v40, %v695_v6 }
 0x4f9   : > { %v3269_v20 = vadd.f32 %v3264_v5, %v3120_v19  ;;  %v4842_v11 = vadd.f32 %v4838_v7, %v4674_v53  ;;  %v5006_v10 = vpop.permute.xlu0 %5005  ;;  %v473_v5 = vmul.f32 %v8363_v12, %v471_v3  ;;  %v8529_v7 = vmul.f32 %v8363_v12, %v8518_v25 }
 0x4fa   : > { %v3828_v58 = vpop.permute.xlu1 %3827 }
 0x4fb   : > { %v3405_v1 = vadd.f32 %v3400_v8, %v3269_v20  ;;  %v5010_v62 = vadd.f32 %v5006_v10, %v4842_v11  ;;  %v472_v11 = vmul.f32 %v8302_v47, %v471_v3 }
 0x4fc   : > { %v583_v10 = vstv %s8524_s19  ;;  %s5842_s19 = sld [smem:[#allocation2 + $0xd7]] }
 0x4fd   : > { %v3541_v22 = vadd.f32 %v3536_v4, %v3405_v1  ;;  %v8455_v63 = vadd.f32 %v5263_v23, %v5010_v62 }
 0x4fe   : > { %v3996_v41 = vpop.permute.xlu1 %3995 }
 0x4ff   : > { %v3677_v44 = vadd.f32 %v3672_v43, %v3541_v22  ;;  %v5267_v21 = vsel %vm5078_vm2, %v8455_v63, 0.0  ;;  %v1031_v43 = vstv %s8479_s9  ;;  %s5818_s9 = sld [smem:[#allocation2 + $0xbc]] }
 0x500   : > { %v5990_v61 = vpop.eup %5989 }
 0x501   : > { %5889 = vpush %v5990_v61  ;;  %v3833_v34 = vadd.f32 %v3828_v58, %v3677_v44  ;;  %v809_v58 = vmul.f32 %v8278_v49, %v807_v24  ;;  %v1143_v44 = vstv %s8494_s20  ;;  %s5826_s20 = sld [smem:[#allocation2 + $0xc5]] }
 0x502   : > { %5891 = vpush %v5229_v26  ;;  %v4164_v15 = vpop.permute.xlu1 %4163  ;;  %v1145_v61 = vmul.f32 %v8374_v40, %v1143_v44  ;;  %v1255_v26 = vstv %s8511_s6  ;;  %s5834_s6 = sld [smem:[#allocation2 + $0xce]] }
 0x503   : > { %v4001_v9 = vadd.f32 %v3996_v41, %v3833_v34  ;;  %v1033_v41 = vmul.f32 %v8367_v59, %v1031_v43  ;;  %v1950_v34 = vmul.f32 %v8389_v48, %v8518_v25 }
 0x505   : > { %v4169_v56 = vadd.f32 %v4164_v15, %v4001_v9  ;;  %v8533_v15 = vstv %s5698_s7  ;;  %v1257_v9 = vmul.f32 %v8278_v49, %v1255_v26  ;;  %s5746_s7 = sld [smem:[#allocation2 + $0xd4]] }
 0x506   : > { %v4332_v39 = vpop.permute.xlu1 %4331  ;;  %v8541_v57 = vmul.f32 %v8367_v59, %v8533_v15 }
 0x507   : > { %v4337_v60 = vadd.f32 %v4332_v39, %v4169_v56  ;;  %v2118_v56 = vmul.f32 %v8394_v33, %v8533_v15  ;;  %v1955_v39 = vrot.slane %v8529_v7, 1 }
 0x508   : > { %v2123_v53 = vrot.slane %v8541_v57, 1 }
 0x50a   : > { %v4500_v29 = vpop.permute.xlu1 %4499 }
 0x50b   : > { %v4505_v51 = vadd.f32 %v4500_v29, %v4337_v60  ;;  %v8546_v60 = vstv %s5706_s10  ;;  %v2125_v29 = vrot.slane %v2118_v56, 1  ;;  %s5786_s10 = sld [smem:[#allocation2 + $0xbb]]  ;;  %v8628_v56 = vstv %s5746_s7  ;;  %s5658_s7 = sld [smem:[#allocation2 + $0xb7]] }
 0x50e   : > { %v4668_v28 = vpop.permute.xlu1 %4667 }
 0x50f   : > { %v4673_v37 = vadd.f32 %v4668_v28, %v4505_v51  ;;  %v8552_v51 = vmul.f32 %v8374_v40, %v8546_v60 }
 0x512   : > { %v4836_v16 = vpop.permute.xlu1 %4835 }
 0x513   : > { %v4841_v13 = vadd.f32 %v4836_v16, %v4673_v37  ;;  %v2286_v37 = vmul.f32 %v8402_v31, %v8546_v60  ;;  %v2126_v16 = vsel %vm1304_vm0, %v2123_v53, %v2125_v29 }
 0x515   : > { %v5009_v54 = vadd.f32 %v5004_v27, %v4841_v13  ;;  %v1957_v27 = vrot.slane %v1950_v34, 1  ;;  %v2291_v13 = vrot.slane %v8552_v51, 1 }
 0x517   : > { %v8457_v32 = vadd.f32 %v5263_v23, %v5009_v54  ;;  %v1958_v28 = vsel %vm1304_vm0, %v1955_v39, %v1957_v27  ;;  %v584_v23 = vmul.f32 %v8184_v45, %v583_v10  ;;  %v2293_v54 = vrot.slane %v2286_v37, 1 }
 0x518   : > { %v8636_v27 = vmul.f32 %v8278_v49, %v8628_v56 }
 0x519   : > { %v5266_v46 = vsel %vm5078_vm2, %v8457_v32, 0.0 }
 0x51a   : > { %v5268_v17 = vadd.f32 %v5267_v21, %v5266_v46  ;;  %v8575_v46 = vld [vmem:[%s6301_s26 + $0x58] sm:$0x3]  ;;  %v3131_v37 = vrot.slane %v8636_v27, 1 }
 0x51b   : > { %v3126_v29 = vmul.f32 %v8575_v46, %v8628_v56 }
 0x51c   : > { %5269 = vadd.xlane.f32.xlu0 %v5268_v17 }
 0x532   : > { %s5890_s4 = spop %5889  ;;  %478 = vrot.lane.b32.xlu0 %v473_v5, %s6182_s28  ;;  %v585_v5 = vmul.f32 %v8367_v59, %v583_v10 }
 0x533   : > { %v5207_v19 = vstv %s5890_s4  ;;  %s5892_s5 = spop %5891  ;;  %s5714_s4 = sld [smem:[#allocation2 + $0xd3]] }
 0x534   : > { %v5208_v50 = vmul.f32 %v5207_v19, %v7976_v42  ;;  %v5209_v8 = vmul.f32 %v5207_v19, %v7979_v52  ;;  %s5231_s11 = smul.f32 0.00390625, %s5892_s5  ;;  %v919_v42 = vstv %s8472_s27  ;;  %s5722_s5 = sld [smem:[#allocation2 + $0xb9]] }
 0x535   : > { %s5810_s27 = sld [smem:[#allocation2 + $0xd6]] }
 0x536   : > { %v5210_v55 = vmax.f32 %v5208_v50, 0.0  ;;  %v5211_v20 = vmax.f32 %v5209_v8, 0.0  ;;  %v5232_v4 = vstv %s5231_s11  ;;  %702 = vrot.lane.b32.xlu0 %v697_v18, %s6182_s28  ;;  %s5730_s11 = sld [smem:[#allocation2 + $0xc2]]  ;;  %v2294_v50 = vsel %vm1304_vm0, %v2291_v13, %v2293_v54 }
 0x537   : > { %v8488_v14 = vsub.f32 %v7945_v36, %v5232_v4  ;;  %v8491_v1 = vsub.f32 %v7943_v30, %v5232_v4  ;;  %v921_v30 = vmul.f32 %v8363_v12, %v919_v42  ;;  %v1032_v54 = vmul.f32 %v8184_v45, %v1031_v43 }
 0x538   : > { %5849 = vst.msk [vmem:[%s7489_s30 + $0x20] sm:$0xff] %vm5078_vm2, %v5210_v55  ;;  %5850 = vst.msk [vmem:[%s7489_s30 + $0x28] sm:$0xff] %vm5078_vm2, %v5211_v20 }
 0x539   : > { %v5235_v52 = vmul.f32 %v8488_v14, %v8488_v14  ;;  %v5236_v36 = vmul.f32 %v8491_v1, %v8491_v1  ;;  %v8561_v62 = vstv %s5714_s4  ;;  %s5562_s4 = sld [smem:[#allocation2 + $0xb4]] }
 0x53a   : > { %814 = vrot.lane.b32.xlu0 %v809_v58, %s6182_s28  ;;  %v8572_v21 = vmul.f32 %v8278_v49, %v8561_v62  ;;  %v2454_v17 = vmul.f32 %v8575_v46, %v8561_v62  ;;  %v8579_v3 = vstv %s5722_s5  ;;  %s5570_s5 = sld [smem:[#allocation2 + $0xbd]] }
 0x53b   : > { %v5237_v38 = vsel %vm5078_vm2, %v5235_v52, 0.0  ;;  %v5238_v2 = vsel %vm5078_vm2, %v5236_v36, 0.0  ;;  %v8585_v18 = vmul.f32 %v8363_v12, %v8579_v3  ;;  %v2622_v19 = vmul.f32 %v8389_v48, %v8579_v3 }
 0x53c   : > { %v5239_v22 = vadd.f32 %v5238_v2, %v5237_v38  ;;  %v2459_v8 = vrot.slane %v8572_v21, 1  ;;  %v2461_v55 = vrot.slane %v2454_v17, 1  ;;  %v8594_v20 = vstv %s5730_s11  ;;  %s5578_s11 = sld [smem:[#allocation2 + $0xc6]] }
 0x53d   : > { %v2627_v4 = vrot.slane %v8585_v18, 1  ;;  %v2629_v58 = vrot.slane %v2622_v19, 1  ;;  %v8600_v52 = vmul.f32 %v8367_v59, %v8594_v20  ;;  %v696_v36 = vmul.f32 %v8208_v0, %v695_v6 }
 0x53e   : > { %5240 = vadd.xlane.f32.xlu1 %v5239_v22  ;;  %926 = vrot.lane.b32.xlu0 %v921_v30, %s6183_s8  ;;  %v2462_v30 = vsel %vm1304_vm0, %v2459_v8, %v2461_v55  ;;  %v2790_v38 = vmul.f32 %v8394_v33, %v8594_v20  ;;  %v8611_v2 = vstv %s5738_s25  ;;  %v808_v22 = vmul.f32 %v8230_v35, %v807_v24  ;;  %s5586_s25 = sld [smem:[#allocation2 + $0xcf]] }
 0x53f   : > { %v2795_v6 = vrot.slane %v8600_v52, 1  ;;  %v8624_v34 = vmul.f32 %v8374_v40, %v8611_v2  ;;  %v920_v24 = vmul.f32 %v8302_v47, %v919_v42  ;;  %v8645_v42 = vstv %s5786_s10  ;;  %s5666_s10 = sld [smem:[#allocation2 + $0xc0]] }
 0x540   : > { %v8662_v19 = vstv %s5794_s29  ;;  %v3837_v52 = vmul.f32 %v8302_v47, %v8645_v42  ;;  %s5674_s29 = sld [smem:[#allocation2 + $0xc9]] }
 0x541   : > { %v2963_v10 = vrot.slane %v8624_v34, 1 }
 0x542   : > { %1038 = vrot.lane.b32.xlu0 %v1033_v41, %s6183_s8  ;;  %v2630_v41 = vsel %vm1304_vm0, %v2627_v4, %v2629_v58 }
 0x546   : > { %1150 = vrot.lane.b32.xlu0 %v1145_v61, %s6183_s8  ;;  %v2797_v61 = vrot.slane %v2790_v38, 1  ;;  %v8679_v38 = vstv %s5802_s24  ;;  %s5682_s24 = sld [smem:[#allocation2 + $0xd2]] }
 0x54a   : > { %1262 = vrot.lane.b32.xlu0 %v1257_v9, %s6183_s8  ;;  %v2958_v9 = vmul.f32 %v8402_v31, %v8611_v2 }
 0x54e   : > { %1961 = vrot.lane.b32.xlu0 %v1958_v28, %s6182_s28  ;;  %v2965_v28 = vrot.slane %v2958_v9, 1 }
 0x54f   : > { %476 = vrot.lane.b32.xlu1 %v472_v11, %s6182_s28  ;;  %v2798_v11 = vsel %vm1304_vm0, %v2795_v6, %v2797_v61  ;;  %v1256_v61 = vmul.f32 %v8230_v35, %v1255_v26 }
 0x550   : > { %v2966_v17 = vsel %vm1304_vm0, %v2963_v10, %v2965_v28  ;;  %v8700_v28 = vstv %s5810_s27  ;;  %s5754_s27 = sld [smem:[#allocation2 + $0xba]] }
 0x552   : > { %2129 = vrot.lane.b32.xlu0 %v2126_v16, %s6182_s28  ;;  %v8651_v16 = vmul.f32 %v8363_v12, %v8645_v42 }
 0x553   : > { %588 = vrot.lane.b32.xlu1 %v584_v23, %s6182_s28  ;;  %v3133_v23 = vrot.slane %v3126_v29, 1 }
 0x554   : > { %v3844_v55 = vrot.slane %v8651_v16, 2 }
 0x555   : > { %v3134_v43 = vsel %vm1304_vm0, %v3131_v37, %v3133_v23 }
 0x556   : > { %2297 = vrot.lane.b32.xlu0 %v2294_v50, %s6182_s28  ;;  %v1144_v50 = vmul.f32 %v8208_v0, %v1143_v44  ;;  %v1948_v44 = vmul.f32 %v8302_v47, %v8518_v25 }
 0x557   : > { %590 = vrot.lane.b32.xlu1 %v585_v5, %s6182_s28  ;;  %v3839_v5 = vmul.f32 %v8389_v48, %v8645_v42 }
 0x558   : > { %v1954_v29 = vrot.slane %v1948_v44, 1 }
 0x559   : > { %v3846_v58 = vrot.slane %v3839_v5, 2 }
 0x55a   : > { %2465 = vrot.lane.b32.xlu0 %v2462_v30, %s6182_s28  ;;  %v4007_v30 = vmul.f32 %v8394_v33, %v8662_v19  ;;  %v1956_v5 = vsel %vm1304_vm0, %v1954_v29, %v1955_v39 }
 0x55b   : > { %700 = vrot.lane.b32.xlu1 %v696_v36, %s6182_s28  ;;  %v8675_v36 = vmul.f32 %v8367_v59, %v8662_v19  ;;  %v3847_v9 = vsel %vm3193_vm1, %v3844_v55, %v3846_v58 }
 0x55d   : > { %v4012_v25 = vrot.slane %v8675_v36, 2 }
 0x55e   : > { %2633 = vrot.lane.b32.xlu0 %v2630_v41, %s6183_s8  ;;  %v4175_v41 = vmul.f32 %v8402_v31, %v8679_v38 }
 0x55f   : > { %812 = vrot.lane.b32.xlu1 %v808_v22, %s6182_s28  ;;  %v8686_v22 = vmul.f32 %v8374_v40, %v8679_v38 }
 0x561   : > { %v4180_v23 = vrot.slane %v8686_v22, 2 }
 0x562   : > { %2801 = vrot.lane.b32.xlu0 %v2798_v11, %s6183_s8  ;;  %v2116_v11 = vmul.f32 %v8184_v45, %v8533_v15  ;;  %v4343_v45 = vmul.f32 %v8575_v46, %v8700_v28  ;;  %v8714_v15 = vstv %s5818_s9  ;;  %s5762_s9 = sld [smem:[#allocation2 + $0xc3]] }
 0x563   : > { %924 = vrot.lane.b32.xlu1 %v920_v24, %s6183_s8  ;;  %v4014_v24 = vrot.slane %v4007_v30, 2  ;;  %v8727_v30 = vmul.f32 %v8363_v12, %v8714_v15  ;;  %v4511_v44 = vmul.f32 %v8389_v48, %v8714_v15 }
 0x564   : > { %v4350_v39 = vrot.slane %v4343_v45, 2 }
 0x565   : > { %v4015_v26 = vsel %vm3193_vm1, %v4012_v25, %v4014_v24 }
 0x566   : > { %2969 = vrot.lane.b32.xlu0 %v2966_v17, %s6183_s8  ;;  %v8710_v17 = vmul.f32 %v8278_v49, %v8700_v28 }
 0x567   : > { %1036 = vrot.lane.b32.xlu1 %v1032_v54, %s6183_s8  ;;  %v4182_v54 = vrot.slane %v4175_v41, 2 }
 0x568   : > { %v4348_v7 = vrot.slane %v8710_v17, 2 }
 0x569   : > { %v4183_v58 = vsel %vm3193_vm1, %v4180_v23, %v4182_v54  ;;  %v8757_v54 = vstv %s5834_s6  ;;  %s5778_s6 = sld [smem:[#allocation2 + $0xd5]] }
 0x56a   : > { %3137 = vrot.lane.b32.xlu0 %v3134_v43, %s6183_s8  ;;  %v2284_v43 = vmul.f32 %v8208_v0, %v8546_v60  ;;  %v8733_v0 = vstv %s5826_s20  ;;  %v4351_v57 = vsel %vm3193_vm1, %v4348_v7, %v4350_v39  ;;  %v5012_v39 = vstv %s5842_s19  ;;  %s5770_s20 = sld [smem:[#allocation2 + $0xcc]] }
 0x56b   : > { %1148 = vrot.lane.b32.xlu1 %v1144_v50, %s6183_s8  ;;  %v2122_v50 = vrot.slane %v2116_v11, 1  ;;  %v4679_v24 = vmul.f32 %v8394_v33, %v8733_v0  ;;  %v2620_v11 = vmul.f32 %v8302_v47, %v8579_v3  ;;  %v4847_v3 = vmul.f32 %v8402_v31, %v8757_v54 }
 0x56c   : > { %v2290_v41 = vrot.slane %v2284_v43, 1  ;;  %v8775_v43 = vld [vmem:[%s6301_s26 + $0x18] sm:$0xff] }
 0x56d   : > { %v2124_v60 = vsel %vm1304_vm0, %v2122_v50, %v2123_v53  ;;  %v4516_v53 = vrot.slane %v8727_v30, 2  ;;  %v4686_v45 = vrot.slane %v4679_v24, 2  ;;  %v2626_v50 = vrot.slane %v2620_v11, 1 }
 0x56e   : > { %3850 = vrot.lane.b32.xlu0 %v3847_v9, %s6182_s28  ;;  %v8743_v9 = vmul.f32 %v8367_v59, %v8733_v0  ;;  %v4005_v34 = vmul.f32 %v8775_v43, %v8662_v19 }
 0x56f   : > { %1260 = vrot.lane.b32.xlu1 %v1256_v61, %s6183_s8  ;;  %v2452_v61 = vmul.f32 %v8230_v35, %v8561_v62  ;;  %v4518_v35 = vrot.slane %v4511_v44, 2  ;;  %v2292_v62 = vsel %vm1304_vm0, %v2290_v41, %v2291_v13  ;;  %v8767_v13 = vmul.f32 %v8374_v40, %v8757_v54  ;;  %v8786_v41 = vld [vmem:[%s6301_s26 + $0x48] sm:$0xff] }
 0x570   : > { %v4341_v19 = vmul.f32 %v8786_v41, %v8700_v28  ;;  %v4677_v28 = vmul.f32 %v8775_v43, %v8733_v0 }
 0x571   : > { %v2458_v29 = vrot.slane %v2452_v61, 1  ;;  %v4519_v51 = vsel %vm3193_vm1, %v4516_v53, %v4518_v35  ;;  %v4852_v21 = vrot.slane %v8767_v13, 2  ;;  %v5014_v61 = vmul.f32 %v8278_v49, %v5012_v39 }
 0x572   : > { %4018 = vrot.lane.b32.xlu0 %v4015_v26, %s6182_s28  ;;  %v4684_v26 = vrot.slane %v8743_v9, 2  ;;  %v5015_v49 = vmul.f32 %v8575_v46, %v5012_v39  ;;  %v239_v9 = vstv %s5562_s4 }
 0x573   : > { %1959 = vrot.lane.b32.xlu1 %v1956_v5, %s6182_s28  ;;  %v2460_v5 = vsel %vm1304_vm0, %v2458_v29, %v2459_v8  ;;  %v5013_v8 = vmul.f32 %v8786_v41, %v5012_v39  ;;  %v5020_v11 = vrot.slane %v5014_v61, 2  ;;  %v241_v61 = vmul.f32 %v8363_v12, %v239_v9 }
 0x574   : > { %v4687_v44 = vsel %vm3193_vm1, %v4684_v26, %v4686_v45  ;;  %v3124_v45 = vmul.f32 %v8786_v41, %v8628_v56 }
 0x575   : > { %v5019_v29 = vrot.slane %v5013_v8, 2 }
 0x576   : > { %4186 = vrot.lane.b32.xlu0 %v4183_v58, %s6182_s28  ;;  %v2788_v58 = vmul.f32 %v8775_v43, %v8594_v20  ;;  %v2628_v20 = vsel %vm1304_vm0, %v2626_v50, %v2627_v4  ;;  %v8841_v50 = vld [vmem:[%s6301_s26] sm:$0xff] }
 0x577   : > { %2127 = vrot.lane.b32.xlu1 %v2124_v60, %s6182_s28  ;;  %v4854_v60 = vrot.slane %v4847_v3, 2  ;;  %v3130_v3 = vrot.slane %v3124_v45, 1 }
 0x578   : > { %v2794_v24 = vrot.slane %v2788_v58, 1 }
 0x579   : > { %v3132_v56 = vsel %vm1304_vm0, %v3130_v3, %v3131_v37  ;;  %v8882_v3 = vld [vmem:[%s6301_s26 + $0x50] sm:$0xff] }
 0x57a   : > { %4354 = vrot.lane.b32.xlu0 %v4351_v57, %s6182_s28  ;;  %v8794_v57 = vld [vmem:[%s6301_s26 + $0x30] sm:$0xff]  ;;  %v2796_v18 = vsel %vm1304_vm0, %v2794_v24, %v2795_v6  ;;  %v335_v24 = vstv %s5578_s11  ;;  %s5857_s11 = sld [smem:[#allocation5 + $0x5]] }
 0x57b   : > { %2295 = vrot.lane.b32.xlu1 %v2292_v62, %s6182_s28  ;;  %v2956_v35 = vmul.f32 %v8794_v57, %v8611_v2  ;;  %v4855_v62 = vsel %vm3193_vm1, %v4852_v21, %v4854_v60  ;;  %v5021_v2 = vsel %vm3193_vm1, %v5019_v29, %v5020_v11  ;;  %v4173_v42 = vmul.f32 %v8794_v57, %v8679_v38 }
 0x57c   : > { %v4509_v38 = vmul.f32 %v8841_v50, %v8714_v15  ;;  %v4845_v15 = vmul.f32 %v8794_v57, %v8757_v54 }
 0x57d   : > { %v2962_v4 = vrot.slane %v2956_v35, 1  ;;  %v4179_v37 = vrot.slane %v4173_v42, 2 }
 0x57e   : > { %4522 = vrot.lane.b32.xlu0 %v4519_v51, %s6183_s8  ;;  %v5022_v51 = vrot.slane %v5015_v49, 2 }
 0x57f   : > { %2463 = vrot.lane.b32.xlu1 %v2460_v5, %s6182_s28  ;;  %v2964_v13 = vsel %vm1304_vm0, %v2962_v4, %v2963_v10  ;;  %v3843_v5 = vrot.slane %v3837_v52, 2  ;;  %v4011_v10 = vrot.slane %v4005_v34, 2  ;;  %v4181_v16 = vsel %vm3193_vm1, %v4179_v37, %v4180_v23 }
 0x580   : > { %v5023_v6 = vsel %vm3193_vm1, %v5020_v11, %v5022_v51  ;;  %v4683_v23 = vrot.slane %v4677_v28, 2  ;;  %v336_v11 = vmul.f32 %v8794_v57, %v335_v24  ;;  %v1383_v28 = vstv %s5658_s7  ;;  %s8982_s7 = sld [smem:[#allocation2 + $0xeb]] }
 0x581   : > { %v3845_v47 = vsel %vm3193_vm1, %v3843_v5, %v3844_v55  ;;  %v4013_v27 = vsel %vm3193_vm1, %v4011_v10, %v4012_v25  ;;  %v4347_v55 = vrot.slane %v4341_v19, 2  ;;  %v4515_v25 = vrot.slane %v4509_v38, 2 }
 0x582   : > { %4690 = vrot.lane.b32.xlu0 %v4687_v44, %s6183_s8  ;;  %v4685_v17 = vsel %vm3193_vm1, %v4683_v23, %v4684_v26  ;;  %v287_v26 = vstv %s5570_s5  ;;  %v1519_v23 = vstv %s5666_s10  ;;  %s8984_s10 = sld [smem:[#allocation2 + $0xf4]] }
 0x583   : > { %2631 = vrot.lane.b32.xlu1 %v2628_v20, %s6183_s8  ;;  %v4349_v36 = vsel %vm3193_vm1, %v4347_v55, %v4348_v7  ;;  %v4517_v22 = vsel %vm3193_vm1, %v4515_v25, %v4516_v53  ;;  %v4851_v7 = vrot.slane %v4845_v15, 2  ;;  %v288_v8 = vmul.f32 %v8775_v43, %v287_v26 }
 0x584   : > { %v289_v20 = vmul.f32 %v8367_v59, %v287_v26  ;;  %v1655_v26 = vstv %s5674_s29  ;;  %s8989_s29 = sld [smem:[#allocation2 + $0xda]] }
 0x585   : > { %v4853_v0 = vsel %vm3193_vm1, %v4851_v7, %v4852_v21  ;;  %v240_v21 = vmul.f32 %v8841_v50, %v239_v9 }
 0x586   : > { %4858 = vrot.lane.b32.xlu0 %v4855_v62, %s6183_s8  ;;  %v383_v62 = vstv %s5586_s25  ;;  %v291_v49 = vadd.f32 %v289_v20, %v241_v61  ;;  %v1522_v61 = vmul.f32 %v8394_v33, %v1519_v23  ;;  %s8980_s25 = sld [smem:[#allocation2 + $0xd9]] }
 0x587   : > { %2799 = vrot.lane.b32.xlu1 %v2796_v18, %s6183_s8  ;;  %v290_v29 = vadd.f32 %v288_v8, %v240_v21  ;;  %v337_v18 = vmul.f32 %v8374_v40, %v335_v24  ;;  %v385_v59 = vmul.f32 %v8882_v3, %v383_v62  ;;  %v8897_v21 = vld [vmem:[%s6301_s26 + $0x20] sm:$0xff]  ;;  %v1791_v24 = vstv %s5682_s24 }
 0x588   : > { %v1521_v8 = vmul.f32 %v8897_v21, %v1519_v23  ;;  %v1793_v33 = vmul.f32 %v8882_v3, %v1791_v24 }
 0x589   : > { %v339_v12 = vadd.f32 %v337_v18, %v291_v49  ;;  %v8904_v49 = vld [vmem:[%s6301_s26 + $0x38] sm:$0xff] }
 0x58a   : > { %5024 = vrot.lane.b32.xlu0 %v5021_v2, %s6183_s8  ;;  %v384_v2 = vmul.f32 %v8786_v41, %v383_v62 }
 0x58b   : > { %2967 = vrot.lane.b32.xlu1 %v2964_v13, %s6183_s8  ;;  %v338_v13 = vadd.f32 %v336_v11, %v290_v29 }
 0x58d   : > { %v386_v34 = vadd.f32 %v384_v2, %v338_v13  ;;  %v1527_v2 = vrot.slane %v1521_v8, 1  ;;  %v1794_v13 = vmul.f32 %v8575_v46, %v1791_v24  ;;  %v1792_v8 = vmul.f32 %v8786_v41, %v1791_v24 }
 0x58e   : > { %5026 = vrot.lane.b32.xlu0 %v5023_v6, %s6183_s8 }
 0x58f   : > { %3135 = vrot.lane.b32.xlu1 %v3132_v56, %s6183_s8 }
 0x593   : > { %3848 = vrot.lane.b32.xlu1 %v3845_v47, %s6182_s28  ;;  %v387_v47 = vadd.f32 %v385_v59, %v339_v12 }
 0x597   : > { %4016 = vrot.lane.b32.xlu1 %v4013_v27, %s6182_s28 }
 0x59b   : > { %4184 = vrot.lane.b32.xlu1 %v4181_v16, %s6182_s28 }
 0x59f   : > { %4352 = vrot.lane.b32.xlu1 %v4349_v36, %s6182_s28 }
 0x5a3   : > { %4520 = vrot.lane.b32.xlu1 %v4517_v22, %s6183_s8 }
 0x5a7   : > { %4688 = vrot.lane.b32.xlu1 %v4685_v17, %s6183_s8  ;;  %v8892_v17 = vld [vmem:[%s6301_s26 + $0x8] sm:$0xff] }
 0x5a8   : > { %v1385_v7 = vmul.f32 %v8892_v17, %v1383_v28 }
 0x5a9   : > { %v8863_v58 = vpop.xlane.xlu0 %5269 }
 0x5aa   : > { %v1391_v29 = vrot.slane %v1385_v7, 1  ;;  %v1656_v7 = vmul.f32 %v8794_v57, %v1655_v26 }
 0x5ab   : > { %4856 = vrot.lane.b32.xlu1 %v4853_v0, %s6183_s8  ;;  %v1386_v0 = vmul.f32 %v8389_v48, %v1383_v28  ;;  %v1657_v48 = vmul.f32 %v8904_v49, %v1655_v26 }
 0x5ad   : > { %v479_v30 = vpop.permute.xlu0 %478  ;;  %v1393_v11 = vrot.slane %v1386_v0, 1 }
 0x5ae   : > { %v483_v19 = vadd.f32 %v479_v30, %v387_v47 }
 0x5af   : > { %v1394_v59 = vsel %vm1304_vm0, %v1391_v29, %v1393_v11 }
 0x5b1   : > { %v703_v53 = vpop.permute.xlu0 %702 }
 0x5b5   : > { %v815_v39 = vpop.permute.xlu0 %814 }
 0x5b9   : > { %v927_v54 = vpop.permute.xlu0 %926 }
 0x5bd   : > { %v8866_v44 = vpop.permute.xlu0 %1038 }
 0x5c1   : > { %v8868_v60 = vpop.permute.xlu0 %1150 }
 0x5c5   : > { %v8874_v35 = vpop.permute.xlu0 %1262 }
 0x5c9   : > { %v8878_v4 = vpop.permute.xlu0 %1961 }
 0x5cb   : > { %v5241_v45 = vpop.xlane.xlu1 %5240 }
 0x5cc   : > { %v5242_v51 = vrot.slane %v5241_v45, 4 }
 0x5cd   : > { %v8885_v52 = vpop.permute.xlu0 %2129 }
 0x5ce   : > { %v5243_v6 = vadd.f32 %v5242_v51, %v5241_v45  ;;  %v1529_v51 = vrot.slane %v1522_v61, 1 }
 0x5cf   : > { %v477_v56 = vpop.permute.xlu1 %476 }
 0x5d0   : > { %v5244_v5 = vrot.slane %v5243_v6, 2  ;;  %v482_v37 = vadd.f32 %v477_v56, %v386_v34  ;;  %v1530_v47 = vsel %vm1304_vm0, %v1527_v2, %v1529_v51 }
 0x5d1   : > { %v8887_v40 = vpop.permute.xlu0 %2297 }
 0x5d2   : > { %v5245_v10 = vadd.f32 %v5244_v5, %v5243_v6  ;;  %v1663_v6 = vrot.slane %v1657_v48, 1 }
 0x5d3   : > { %v589_v42 = vpop.permute.xlu1 %588 }
 0x5d4   : > { %v5246_v27 = vrot.slane %v5245_v10, 1  ;;  %v594_v36 = vadd.f32 %v589_v42, %v482_v37 }
 0x5d5   : > { %v8889_v38 = vpop.permute.xlu0 %2465 }
 0x5d6   : > { %v5247_v16 = vadd.f32 %v5246_v27, %v5245_v10  ;;  %v1801_v10 = vrot.slane %v1794_v13, 1  ;;  %v8933_v13 = vld [vmem:[%s6301_s26 + $0x10] sm:$0x3] }
 0x5d7   : > { %v591_v55 = vpop.permute.xlu1 %590 }
 0x5d8   : > { %5893 = vpush %v5247_v16  ;;  %v595_v25 = vadd.f32 %v591_v55, %v483_v19  ;;  %v1384_v19 = vmul.f32 %v8841_v50, %v1383_v28 }
 0x5d9   : > { %v8901_v20 = vpop.permute.xlu0 %2633 }
 0x5da   : > { %v707_v22 = vadd.f32 %v703_v53, %v595_v25 }
 0x5db   : > { %v701_v15 = vpop.permute.xlu1 %700 }
 0x5dc   : > { %v819_v30 = vadd.f32 %v815_v39, %v707_v22  ;;  %v706_v9 = vadd.f32 %v701_v15, %v594_v36  ;;  %v1658_v39 = vmul.f32 %v8402_v31, %v1655_v26  ;;  %v1520_v36 = vmul.f32 %v8775_v43, %v1519_v23 }
 0x5dd   : > { %v2802_v5 = vpop.permute.xlu0 %2801  ;;  %v1390_v15 = vrot.slane %v1384_v19, 1  ;;  %v1662_v23 = vrot.slane %v1656_v7, 1 }
 0x5de   : > { %v931_v53 = vadd.f32 %v927_v54, %v819_v30  ;;  %v1665_v56 = vrot.slane %v1658_v39, 1  ;;  %v3272_v39 = vstv %s5754_s27 }
 0x5df   : > { %v813_v62 = vpop.permute.xlu1 %812  ;;  %v1392_v61 = vsel %vm1304_vm0, %v1390_v15, %v1391_v29  ;;  %v1664_v29 = vsel %vm1304_vm0, %v1662_v23, %v1663_v6 }
 0x5e0   : > { %v818_v18 = vadd.f32 %v813_v62, %v706_v9  ;;  %v1043_v45 = vadd.f32 %v8866_v44, %v931_v53  ;;  %v1799_v44 = vrot.slane %v1793_v33, 1  ;;  %v1666_v37 = vsel %vm1304_vm0, %v1663_v6, %v1665_v56 }
 0x5e1   : > { %v2970_v25 = vpop.permute.xlu0 %2969  ;;  %v1526_v9 = vrot.slane %v1520_v36, 1  ;;  %v8930_v33 = vmul.f32 %v8892_v17, %v3272_v39 }
 0x5e2   : > { %v1155_v54 = vadd.f32 %v8868_v60, %v1043_v45  ;;  %v1802_v55 = vsel %vm1304_vm0, %v1799_v44, %v1801_v10  ;;  %v8925_v45 = vstv %s5762_s9  ;;  %s8996_s9 = sld [smem:[#allocation2 + $0xe3]] }
 0x5e3   : > { %v925_v12 = vpop.permute.xlu1 %924  ;;  %v1528_v26 = vsel %vm1304_vm0, %v1526_v9, %v1527_v2 }
 0x5e4   : > { %v930_v34 = vadd.f32 %v925_v12, %v818_v18  ;;  %v1267_v31 = vadd.f32 %v8874_v35, %v1155_v54  ;;  %v1798_v18 = vrot.slane %v1792_v8, 1  ;;  %v8939_v12 = vmul.f32 %v8897_v21, %v8925_v45 }
 0x5e5   : > { %v3138_v62 = vpop.permute.xlu0 %3137 }
 0x5e6   : > { %v1398_v42 = vadd.f32 %v1394_v59, %v1267_v31  ;;  %v1800_v6 = vsel %vm1304_vm0, %v1798_v18, %v1799_v44  ;;  %v3416_v19 = vrot.slane %v8939_v12, 2 }
 0x5e7   : > { %v1037_v27 = vpop.permute.xlu1 %1036 }
 0x5e8   : > { %v1042_v60 = vadd.f32 %v1037_v27, %v930_v34  ;;  %v1534_v16 = vadd.f32 %v1530_v47, %v1398_v42  ;;  %v3544_v47 = vstv %s5770_s20 }
 0x5e9   : > { %v3851_v56 = vpop.permute.xlu0 %3850 }
 0x5ea   : > { %v1670_v35 = vadd.f32 %v1666_v37, %v1534_v16  ;;  %v3546_v16 = vmul.f32 %v8904_v49, %v3544_v47 }
 0x5eb   : > { %v1149_v22 = vpop.permute.xlu1 %1148 }
 0x5ec   : > { %v1154_v0 = vadd.f32 %v1149_v22, %v1042_v60  ;;  %v1806_v30 = vadd.f32 %v1802_v55, %v1670_v35  ;;  %v8952_v55 = vld [vmem:[%s6301_s26 + $0x40] sm:$0x3]  ;;  %v3680_v22 = vstv %s5778_s6  ;;  %v3552_v9 = vrot.slane %v3546_v16, 2  ;;  %s9011_s6 = sld [smem:[#allocation2 + $0xec]] }
 0x5ed   : > { %v3547_v44 = vmul.f32 %v8952_v55, %v3544_v47  ;;  %v4019_v7 = vpop.permute.xlu0 %4018 }
 0x5ee   : > { %v1966_v28 = vadd.f32 %v8878_v4, %v1806_v30 }
 0x5ef   : > { %v1261_v53 = vpop.permute.xlu1 %1260  ;;  %v3554_v8 = vrot.slane %v3547_v44, 2 }
 0x5f0   : > { %v1266_v11 = vadd.f32 %v1261_v53, %v1154_v0  ;;  %v2134_v48 = vadd.f32 %v8885_v52, %v1966_v28  ;;  %v3275_v52 = vmul.f32 %v8933_v13, %v3272_v39  ;;  %v3682_v28 = vmul.f32 %v8882_v3, %v3680_v22 }
 0x5f2   : > { %v1397_v24 = vadd.f32 %v1392_v61, %v1266_v11  ;;  %v2302_v4 = vadd.f32 %v8887_v40, %v2134_v48  ;;  %v8942_v40 = vld [vmem:[%s6301_s26 + $0x28] sm:$0x3]  ;;  %v3282_v42 = vrot.slane %v3275_v52, 2  ;;  %v3683_v61 = vmul.f32 %v8575_v46, %v3680_v22 }
 0x5f3   : > { %v1960_v51 = vpop.permute.xlu1 %1959  ;;  %v3411_v59 = vmul.f32 %v8942_v40, %v8925_v45  ;;  %v3688_v18 = vrot.slane %v3682_v28, 2 }
 0x5f4   : > { %v1533_v54 = vadd.f32 %v1528_v26, %v1397_v24  ;;  %v2470_v2 = vadd.f32 %v8889_v38, %v2302_v4  ;;  %v3280_v38 = vrot.slane %v8930_v33, 2  ;;  %v3555_v26 = vsel %vm3193_vm1, %v3552_v9, %v3554_v8  ;;  %v4187_v4 = vpop.permute.xlu0 %4186 }
 0x5f5   : > { %v3418_v60 = vrot.slane %v3411_v59, 2  ;;  %v3690_v24 = vrot.slane %v3683_v61, 2 }
 0x5f6   : > { %v1669_v34 = vadd.f32 %v1664_v29, %v1533_v54  ;;  %v2638_v31 = vadd.f32 %v8901_v20, %v2470_v2  ;;  %v3283_v15 = vsel %vm3193_vm1, %v3280_v38, %v3282_v42  ;;  %v3273_v2 = vmul.f32 %v8841_v50, %v3272_v39 }
 0x5f7   : > { %v2128_v10 = vpop.permute.xlu1 %2127  ;;  %v3419_v30 = vsel %vm3193_vm1, %v3416_v19, %v3418_v60  ;;  %v3691_v52 = vsel %vm3193_vm1, %v3688_v18, %v3690_v24  ;;  %v3681_v39 = vmul.f32 %v8786_v41, %v3680_v22 }
 0x5f8   : > { %v1805_v27 = vadd.f32 %v1800_v6, %v1669_v34  ;;  %v2806_v37 = vadd.f32 %v2802_v5, %v2638_v31  ;;  %v4355_v12 = vpop.permute.xlu0 %4354  ;;  %v3409_v31 = vmul.f32 %v8775_v43, %v8925_v45  ;;  %v3279_v42 = vrot.slane %v3273_v2, 2 }
 0x5fa   : > { %v1965_v36 = vadd.f32 %v1960_v51, %v1805_v27  ;;  %v2974_v35 = vadd.f32 %v2970_v25, %v2806_v37  ;;  %v3545_v27 = vmul.f32 %v8794_v57, %v3544_v47  ;;  %v3415_v44 = vrot.slane %v3409_v31, 2 }
 0x5fb   : > { %v2296_v20 = vpop.permute.xlu1 %2295  ;;  %v3687_v47 = vrot.slane %v3681_v39, 2 }
 0x5fc   : > { %v2133_v0 = vadd.f32 %v2128_v10, %v1965_v36  ;;  %v3142_v5 = vadd.f32 %v3138_v62, %v2974_v35  ;;  %v5271_v62 = vrot.slane %v8863_v58, 4  ;;  %v4523_v36 = vpop.permute.xlu0 %4522 }
 0x5fe   : > { %v2301_v53 = vadd.f32 %v2296_v20, %v2133_v0  ;;  %v3287_v23 = vadd.f32 %v3283_v15, %v3142_v5  ;;  %v5272_v34 = vadd.f32 %v5271_v62, %v8863_v58  ;;  %v3281_v58 = vsel %vm3193_vm1, %v3279_v42, %v3280_v38 }
 0x5ff   : > { %v2464_v11 = vpop.permute.xlu1 %2463  ;;  %v3551_v15 = vrot.slane %v3545_v27, 2  ;;  %v3417_v5 = vsel %vm3193_vm1, %v3415_v44, %v3416_v19  ;;  %v5310_v42 = vstv %s5857_s11  ;;  %s5707_s11 = sld [smem:[#allocation2 + $0xee]] }
 0x600   : > { %v2469_v48 = vadd.f32 %v2464_v11, %v2301_v53  ;;  %v3423_v25 = vadd.f32 %v3419_v30, %v3287_v23  ;;  %v5273_v16 = vrot.slane %v5272_v34, 2  ;;  %v4691_v61 = vpop.permute.xlu0 %4690  ;;  %v3689_v11 = vsel %vm3193_vm1, %v3687_v47, %v3688_v18 }
 0x602   : > { %v3559_v33 = vadd.f32 %v3555_v26, %v3423_v25  ;;  %v5274_v30 = vadd.f32 %v5273_v16, %v5272_v34 }
 0x603   : > { %v2632_v29 = vpop.permute.xlu1 %2631 }
 0x604   : > { %v2637_v51 = vadd.f32 %v2632_v29, %v2469_v48  ;;  %v3695_v6 = vadd.f32 %v3691_v52, %v3559_v33  ;;  %v5275_v23 = vrot.slane %v5274_v30, 1  ;;  %v4859_v29 = vpop.permute.xlu0 %4858 }
 0x606   : > { %v3855_v60 = vadd.f32 %v3851_v56, %v3695_v6  ;;  %v3553_v56 = vsel %vm3193_vm1, %v3551_v15, %v3552_v9  ;;  %v709_v15 = vstv %s8982_s7  ;;  %s5795_s7 = sld [smem:[#allocation2 + $0xe8]] }
 0x607   : > { %v2800_v54 = vpop.permute.xlu1 %2799 }
 0x608   : > { %v2805_v59 = vadd.f32 %v2800_v54, %v2637_v51  ;;  %v4023_v0 = vadd.f32 %v4019_v7, %v3855_v60  ;;  %v5276_v7 = vadd.f32 %v5275_v23, %v5274_v30  ;;  %v5025_v54 = vpop.permute.xlu0 %5024  ;;  %v821_v30 = vstv %s8984_s10  ;;  %s5803_s10 = sld [smem:[#allocation2 + $0xf1]] }
 0x609   : > { %s5894_s19 = spop %5893 }
 0x60a   : > { %s5249_s4 = smul.f32 0.00390625, %s5894_s19  ;;  %v4191_v22 = vadd.f32 %v4187_v4, %v4023_v0  ;;  %s5691_s19 = sld [smem:[#allocation2 + $0xdc]] }
 0x60b   : > { %v2968_v10 = vpop.permute.xlu1 %2967 }
 0x60c   : > { %s5250_s5 = sadd.f32 1e-05, %s5249_s4  ;;  %v2973_v37 = vadd.f32 %v2968_v10, %v2805_v59  ;;  %v4359_v26 = vadd.f32 %v4355_v12, %v4191_v22  ;;  %v5027_v34 = vpop.permute.xlu0 %5026  ;;  %s9028_s4 = sld [smem:[#allocation2 + $0xf5]] }
 0x60e   : > { %v5251_v35 = vstv %s5250_s5  ;;  %v4527_v9 = vadd.f32 %v4523_v36, %v4359_v26  ;;  %s5699_s5 = sld [smem:[#allocation2 + $0xe5]]  ;;  %v1157_v26 = vstv %s9011_s6  ;;  %s5827_s6 = sld [smem:[#allocation2 + $0xe9]] }
 0x60f   : > { %5991 = vrsqrt.f32 %v5251_v35  ;;  %v3136_v20 = vpop.permute.xlu1 %3135 }
 0x610   : > { %v3141_v45 = vadd.f32 %v3136_v20, %v2973_v37  ;;  %v4695_v2 = vadd.f32 %v4691_v61, %v4527_v9  ;;  %v823_v61 = vmul.f32 %v8882_v3, %v821_v30 }
 0x612   : > { %v3286_v8 = vadd.f32 %v3281_v58, %v3141_v45  ;;  %v4863_v6 = vadd.f32 %v4859_v29, %v4695_v2  ;;  %v485_v58 = vstv %s8980_s25  ;;  %v711_v45 = vmul.f32 %v8904_v49, %v709_v15  ;;  %s9041_s25 = sld [smem:[#allocation2 + $0xe2]] }
 0x613   : > { %v3849_v28 = vpop.permute.xlu1 %3848  ;;  %v487_v20 = vmul.f32 %v8892_v17, %v485_v58  ;;  %v1269_v29 = vstv %s9028_s4  ;;  %v9063_v2 = vstv %s5707_s11  ;;  %s5787_s11 = sld [smem:[#allocation2 + $0xdf]]  ;;  %s5835_s4 = sld [smem:[#allocation2 + $0xf2]] }
 0x614   : > { %v3422_v53 = vadd.f32 %v3417_v5, %v3286_v8  ;;  %v5031_v10 = vadd.f32 %v5027_v34, %v4863_v6  ;;  %v1271_v9 = vmul.f32 %v8882_v3, %v1269_v29  ;;  %v9069_v6 = vmul.f32 %v8904_v49, %v9063_v2 }
 0x615   : > { %v486_v34 = vmul.f32 %v8841_v50, %v485_v58 }
 0x616   : > { %v3558_v48 = vadd.f32 %v3553_v56, %v3422_v53  ;;  %v8972_v60 = vadd.f32 %v5310_v42, %v5031_v10  ;;  %v2307_v10 = vmul.f32 %v8952_v55, %v9063_v2 }
 0x617   : > { %v4017_v38 = vpop.permute.xlu1 %4016 }
 0x618   : > { %v3694_v25 = vadd.f32 %v3689_v11, %v3558_v48  ;;  %v5314_v39 = vsel %vm5078_vm2, %v8972_v60, 0.0  ;;  %v1045_v48 = vstv %s8996_s9  ;;  %s5819_s9 = sld [smem:[#allocation2 + $0xe0]] }
 0x619   : > { %v5992_v24 = vpop.eup %5991 }
 0x61a   : > { %5895 = vpush %v5992_v24  ;;  %v3854_v19 = vadd.f32 %v3849_v28, %v3694_v25  ;;  %v1047_v25 = vmul.f32 %v8897_v21, %v1045_v48  ;;  %v9035_v24 = vstv %s5691_s19  ;;  %s5739_s19 = sld [smem:[#allocation2 + $0xef]] }
 0x61b   : > { %5897 = vpush %v5276_v7  ;;  %v4185_v51 = vpop.permute.xlu1 %4184  ;;  %v1159_v7 = vmul.f32 %v8904_v49, %v1157_v26 }
 0x61c   : > { %v4022_v33 = vadd.f32 %v4017_v38, %v3854_v19  ;;  %v9046_v19 = vmul.f32 %v8892_v17, %v9035_v24 }
 0x61e   : > { %v4190_v62 = vadd.f32 %v4185_v51, %v4022_v33  ;;  %v1971_v51 = vmul.f32 %v8933_v13, %v9035_v24  ;;  %v9050_v33 = vstv %s5699_s5  ;;  %s5747_s5 = sld [smem:[#allocation2 + $0xf8]] }
 0x61f   : > { %v4353_v52 = vpop.permute.xlu1 %4352 }
 0x620   : > { %v4358_v4 = vadd.f32 %v4353_v52, %v4190_v62  ;;  %v9058_v62 = vmul.f32 %v8897_v21, %v9050_v33  ;;  %v2139_v52 = vmul.f32 %v8942_v40, %v9050_v33 }
 0x623   : > { %v4521_v18 = vpop.permute.xlu1 %4520 }
 0x624   : > { %v4526_v59 = vadd.f32 %v4521_v18, %v4358_v4  ;;  %v1978_v4 = vrot.slane %v1971_v51, 1  ;;  %v2144_v18 = vrot.slane %v9058_v62, 1 }
 0x627   : > { %v4689_v12 = vpop.permute.xlu1 %4688 }
 0x628   : > { %v4694_v31 = vadd.f32 %v4689_v12, %v4526_v59  ;;  %v2146_v59 = vrot.slane %v2139_v52, 1  ;;  %v597_v12 = vstv %s9041_s25  ;;  %s5843_s25 = sld [smem:[#allocation2 + $0xfb]] }
 0x62b   : > { %v4857_v27 = vpop.permute.xlu1 %4856 }
 0x62c   : > { %v4862_v37 = vadd.f32 %v4857_v27, %v4694_v31  ;;  %v598_v27 = vmul.f32 %v8775_v43, %v597_v12 }
 0x62e   : > { %v5030_v16 = vadd.f32 %v5025_v54, %v4862_v37  ;;  %v1976_v54 = vrot.slane %v9046_v19, 1  ;;  %v2147_v37 = vsel %vm1304_vm0, %v2144_v18, %v2146_v59 }
 0x630   : > { %v8974_v44 = vadd.f32 %v5310_v42, %v5030_v16  ;;  %v1979_v31 = vsel %vm1304_vm0, %v1976_v54, %v1978_v4  ;;  %v2312_v16 = vrot.slane %v9069_v6, 1  ;;  %v9153_v4 = vld [vmem:[%s6301_s26 + $0x58] sm:$0x3] }
 0x632   : > { %v5313_v36 = vsel %vm5078_vm2, %v8974_v44, 0.0 }
 0x633   : > { %v5315_v35 = vadd.f32 %v5314_v39, %v5313_v36  ;;  %v2314_v39 = vrot.slane %v2307_v10, 1 }
 0x635   : > { %5316 = vadd.xlane.f32.xlu0 %v5315_v35 }
 0x64b   : > { %s5896_s24 = spop %5895  ;;  %492 = vrot.lane.b32.xlu0 %v487_v20, %s6182_s28  ;;  %v599_v20 = vmul.f32 %v8897_v21, %v597_v12 }
 0x64c   : > { %v5254_v0 = vstv %s5896_s24  ;;  %s5898_s27 = spop %5897  ;;  %s5715_s24 = sld [smem:[#allocation2 + $0xf7]] }
 0x64d   : > { %v5255_v5 = vmul.f32 %v5254_v0, %v8488_v14  ;;  %v5256_v47 = vmul.f32 %v5254_v0, %v8491_v1  ;;  %s5278_s20 = smul.f32 0.00390625, %s5898_s27  ;;  %v933_v14 = vstv %s8989_s29  ;;  %s5723_s27 = sld [smem:[#allocation2 + $0xdd]] }
 0x64e   : > { %s5811_s29 = sld [smem:[#allocation2 + $0xfa]] }
 0x64f   : > { %v5257_v8 = vmax.f32 %v5255_v5, 0.0  ;;  %v5258_v56 = vmax.f32 %v5256_v47, 0.0  ;;  %v5279_v28 = vstv %s5278_s20  ;;  %716 = vrot.lane.b32.xlu0 %v711_v45, %s6182_s28  ;;  %s5731_s20 = sld [smem:[#allocation2 + $0xe6]] }
 0x650   : > { %v9005_v53 = vsub.f32 %v8457_v32, %v5279_v28  ;;  %v9008_v22 = vsub.f32 %v8455_v63, %v5279_v28  ;;  %v935_v63 = vmul.f32 %v8892_v17, %v933_v14 }
 0x651   : > { %5852 = vst.msk [vmem:[%s7489_s30 + $0x30] sm:$0xff] %vm5078_vm2, %v5257_v8  ;;  %5853 = vst.msk [vmem:[%s7489_s30 + $0x38] sm:$0xff] %vm5078_vm2, %v5258_v56 }
 0x652   : > { %v5282_v1 = vmul.f32 %v9005_v53, %v9005_v53  ;;  %v5283_v32 = vmul.f32 %v9008_v22, %v9008_v22  ;;  %v9078_v42 = vstv %s5715_s24  ;;  %s5563_s24 = sld [smem:[#allocation2 + $0xd8]] }
 0x653   : > { %828 = vrot.lane.b32.xlu0 %v823_v61, %s6182_s28  ;;  %v9089_v36 = vmul.f32 %v8882_v3, %v9078_v42  ;;  %v2475_v35 = vmul.f32 %v8575_v46, %v9078_v42  ;;  %v9093_v58 = vstv %s5723_s27  ;;  %v2315_v46 = vsel %vm1304_vm0, %v2312_v16, %v2314_v39  ;;  %s5571_s27 = sld [smem:[#allocation2 + $0xe1]] }
 0x654   : > { %v5284_v23 = vsel %vm5078_vm2, %v5282_v1, 0.0  ;;  %v5285_v11 = vsel %vm5078_vm2, %v5283_v32, 0.0  ;;  %v9099_v45 = vmul.f32 %v8892_v17, %v9093_v58  ;;  %v2643_v0 = vmul.f32 %v8933_v13, %v9093_v58 }
 0x655   : > { %v5286_v38 = vadd.f32 %v5285_v11, %v5284_v23  ;;  %v2480_v5 = vrot.slane %v9089_v36, 1  ;;  %v2482_v47 = vrot.slane %v2475_v35, 1  ;;  %v9108_v8 = vstv %s5731_s20  ;;  %s5579_s20 = sld [smem:[#allocation2 + $0xea]] }
 0x656   : > { %v2648_v56 = vrot.slane %v9099_v45, 1  ;;  %v2650_v28 = vrot.slane %v2643_v0, 1  ;;  %v9114_v61 = vmul.f32 %v8897_v21, %v9108_v8  ;;  %v710_v1 = vmul.f32 %v8794_v57, %v709_v15 }
 0x657   : > { %5287 = vadd.xlane.f32.xlu1 %v5286_v38  ;;  %940 = vrot.lane.b32.xlu0 %v935_v63, %s6183_s8  ;;  %v2483_v32 = vsel %vm1304_vm0, %v2480_v5, %v2482_v47  ;;  %v2811_v63 = vmul.f32 %v8942_v40, %v9108_v8  ;;  %v9125_v23 = vstv %s5739_s19  ;;  %v822_v11 = vmul.f32 %v8786_v41, %v821_v30  ;;  %s5587_s19 = sld [smem:[#allocation2 + $0xf3]] }
 0x658   : > { %v2651_v15 = vsel %vm1304_vm0, %v2648_v56, %v2650_v28  ;;  %v2816_v38 = vrot.slane %v9114_v61, 1  ;;  %v2979_v51 = vmul.f32 %v8952_v55, %v9125_v23  ;;  %v934_v30 = vmul.f32 %v8841_v50, %v933_v14 }
 0x659   : > { %v1046_v39 = vmul.f32 %v8775_v43, %v1045_v48  ;;  %v9179_v0 = vstv %s5795_s7  ;;  %s5675_s7 = sld [smem:[#allocation2 + $0xed]] }
 0x65a   : > { %v2986_v12 = vrot.slane %v2979_v51, 1 }
 0x65b   : > { %1052 = vrot.lane.b32.xlu0 %v1047_v25, %s6183_s8  ;;  %v2818_v25 = vrot.slane %v2811_v63, 1  ;;  %v9196_v63 = vstv %s5803_s10  ;;  %s5683_s10 = sld [smem:[#allocation2 + $0xf6]] }
 0x65f   : > { %1164 = vrot.lane.b32.xlu0 %v1159_v7, %s6183_s8  ;;  %v9138_v7 = vmul.f32 %v8904_v49, %v9125_v23 }
 0x661   : > { %v2984_v14 = vrot.slane %v9138_v7, 1 }
 0x663   : > { %1276 = vrot.lane.b32.xlu0 %v1271_v9, %s6183_s8  ;;  %v9142_v9 = vstv %s5747_s5  ;;  %v2987_v35 = vsel %vm1304_vm0, %v2984_v14, %v2986_v12  ;;  %v9217_v12 = vstv %s5811_s29  ;;  %s5659_s5 = sld [smem:[#allocation2 + $0xdb]]  ;;  %s5755_s29 = sld [smem:[#allocation2 + $0xde]] }
 0x664   : > { %v9150_v52 = vmul.f32 %v8882_v3, %v9142_v9  ;;  %v3147_v59 = vmul.f32 %v9153_v4, %v9142_v9 }
 0x666   : > { %v3152_v10 = vrot.slane %v9150_v52, 1 }
 0x667   : > { %1982 = vrot.lane.b32.xlu0 %v1979_v31, %s6182_s28  ;;  %v9162_v31 = vstv %s5787_s11  ;;  %s5667_s11 = sld [smem:[#allocation2 + $0xe4]] }
 0x668   : > { %490 = vrot.lane.b32.xlu1 %v486_v34, %s6182_s28  ;;  %v2819_v34 = vsel %vm1304_vm0, %v2816_v38, %v2818_v25  ;;  %v1270_v25 = vmul.f32 %v8786_v41, %v1269_v29 }
 0x66b   : > { %2150 = vrot.lane.b32.xlu0 %v2147_v37, %s6182_s28  ;;  %v9168_v37 = vmul.f32 %v8892_v17, %v9162_v31 }
 0x66c   : > { %602 = vrot.lane.b32.xlu1 %v598_v27, %s6182_s28  ;;  %v3154_v27 = vrot.slane %v3147_v59, 1 }
 0x66d   : > { %v3865_v47 = vrot.slane %v9168_v37, 2 }
 0x66e   : > { %v3155_v48 = vsel %vm1304_vm0, %v3152_v10, %v3154_v27 }
 0x66f   : > { %2318 = vrot.lane.b32.xlu0 %v2315_v46, %s6182_s28  ;;  %v1158_v46 = vmul.f32 %v8794_v57, %v1157_v26  ;;  %v1969_v26 = vmul.f32 %v8841_v50, %v9035_v24 }
 0x670   : > { %604 = vrot.lane.b32.xlu1 %v599_v20, %s6182_s28  ;;  %v3860_v20 = vmul.f32 %v8933_v13, %v9162_v31 }
 0x671   : > { %v1975_v59 = vrot.slane %v1969_v26, 1 }
 0x672   : > { %v3867_v28 = vrot.slane %v3860_v20, 2  ;;  %v9231_v20 = vstv %s5819_s9  ;;  %s5763_s9 = sld [smem:[#allocation2 + $0xe7]] }
 0x673   : > { %2486 = vrot.lane.b32.xlu0 %v2483_v32, %s6182_s28  ;;  %v4028_v32 = vmul.f32 %v8942_v40, %v9179_v0  ;;  %v9244_v26 = vmul.f32 %v8892_v17, %v9231_v20 }
 0x674   : > { %714 = vrot.lane.b32.xlu1 %v710_v1, %s6182_s28  ;;  %v9192_v1 = vmul.f32 %v8897_v21, %v9179_v0  ;;  %v3868_v51 = vsel %vm3193_vm1, %v3865_v47, %v3867_v28  ;;  %v2305_v28 = vmul.f32 %v8794_v57, %v9063_v2  ;;  %v9250_v2 = vstv %s5827_s6  ;;  %s5771_s6 = sld [smem:[#allocation2 + $0xf0]] }
 0x676   : > { %v4033_v24 = vrot.slane %v9192_v1, 2 }
 0x677   : > { %2654 = vrot.lane.b32.xlu0 %v2651_v15, %s6183_s8  ;;  %v4196_v15 = vmul.f32 %v8952_v55, %v9196_v63 }
 0x678   : > { %826 = vrot.lane.b32.xlu1 %v822_v11, %s6182_s28  ;;  %v9203_v11 = vmul.f32 %v8904_v49, %v9196_v63 }
 0x67a   : > { %v4201_v27 = vrot.slane %v9203_v11, 2 }
 0x67b   : > { %2822 = vrot.lane.b32.xlu0 %v2819_v34, %s6183_s8  ;;  %v2137_v34 = vmul.f32 %v8775_v43, %v9050_v33  ;;  %v4364_v33 = vmul.f32 %v9153_v4, %v9217_v12 }
 0x67c   : > { %938 = vrot.lane.b32.xlu1 %v934_v30, %s6183_s8  ;;  %v4035_v30 = vrot.slane %v4028_v32, 2 }
 0x67e   : > { %v4036_v29 = vsel %vm3193_vm1, %v4033_v24, %v4035_v30  ;;  %v2473_v30 = vmul.f32 %v8786_v41, %v9078_v42 }
 0x67f   : > { %2990 = vrot.lane.b32.xlu0 %v2987_v35, %s6183_s8  ;;  %v9227_v35 = vmul.f32 %v8882_v3, %v9217_v12 }
 0x680   : > { %1050 = vrot.lane.b32.xlu1 %v1046_v39, %s6183_s8  ;;  %v4203_v39 = vrot.slane %v4196_v15, 2  ;;  %v4532_v15 = vmul.f32 %v8933_v13, %v9231_v20 }
 0x681   : > { %v4369_v19 = vrot.slane %v9227_v35, 2 }
 0x682   : > { %v4204_v32 = vsel %vm3193_vm1, %v4201_v27, %v4203_v39  ;;  %v4539_v39 = vrot.slane %v4532_v15, 2  ;;  %v2809_v15 = vmul.f32 %v8775_v43, %v9108_v8 }
 0x683   : > { %3158 = vrot.lane.b32.xlu0 %v3155_v48, %s6183_s8  ;;  %v2143_v48 = vrot.slane %v2137_v34, 1  ;;  %v4700_v34 = vmul.f32 %v8942_v40, %v9250_v2 }
 0x684   : > { %1162 = vrot.lane.b32.xlu1 %v1158_v46, %s6183_s8  ;;  %v1977_v46 = vsel %vm1304_vm0, %v1975_v59, %v1976_v54  ;;  %v4371_v54 = vrot.slane %v4364_v33, 2  ;;  %v9260_v59 = vmul.f32 %v8897_v21, %v9250_v2  ;;  %v2641_v33 = vmul.f32 %v8841_v50, %v9093_v58 }
 0x685   : > { %v2815_v8 = vrot.slane %v2809_v15, 1 }
 0x686   : > { %v4372_v62 = vsel %vm3193_vm1, %v4369_v19, %v4371_v54  ;;  %v2647_v54 = vrot.slane %v2641_v33, 1  ;;  %v9314_v33 = vld [vmem:[%s6301_s26 + $0x48] sm:$0xff] }
 0x687   : > { %3871 = vrot.lane.b32.xlu0 %v3868_v51, %s6182_s28  ;;  %v2311_v51 = vrot.slane %v2305_v28, 1  ;;  %v4707_v28 = vrot.slane %v4700_v34, 2  ;;  %v2817_v45 = vsel %vm1304_vm0, %v2815_v8, %v2816_v38  ;;  %v4362_v15 = vmul.f32 %v9314_v33, %v9217_v12 }
 0x688   : > { %1274 = vrot.lane.b32.xlu1 %v1270_v25, %s6183_s8  ;;  %v2145_v25 = vsel %vm1304_vm0, %v2143_v48, %v2144_v18  ;;  %v4537_v18 = vrot.slane %v9244_v26, 2  ;;  %v4705_v48 = vrot.slane %v9260_v59, 2  ;;  %v2649_v43 = vsel %vm1304_vm0, %v2647_v54, %v2648_v56  ;;  %v9343_v54 = vld [vmem:[%s6301_s26 + $0x30] sm:$0xff] }
 0x689   : > { %v2313_v42 = vsel %vm1304_vm0, %v2311_v51, %v2312_v16  ;;  %v4194_v52 = vmul.f32 %v9343_v54, %v9196_v63  ;;  %v4530_v63 = vmul.f32 %v8841_v50, %v9231_v20 }
 0x68a   : > { %v4708_v51 = vsel %vm3193_vm1, %v4705_v48, %v4707_v28 }
 0x68b   : > { %4039 = vrot.lane.b32.xlu0 %v4036_v29, %s6182_s28  ;;  %v2479_v29 = vrot.slane %v2473_v30, 1 }
 0x68c   : > { %1980 = vrot.lane.b32.xlu1 %v1977_v46, %s6182_s28  ;;  %v9274_v46 = vstv %s5835_s4  ;;  %s5779_s4 = sld [smem:[#allocation2 + $0xf9]] }
 0x68d   : > { %v9284_v6 = vmul.f32 %v8904_v49, %v9274_v46  ;;  %v4868_v16 = vmul.f32 %v8952_v55, %v9274_v46  ;;  %v2481_v58 = vsel %vm1304_vm0, %v2479_v29, %v2480_v5 }
 0x68f   : > { %4207 = vrot.lane.b32.xlu0 %v4204_v32, %s6182_s28  ;;  %v4540_v32 = vsel %vm3193_vm1, %v4537_v18, %v4539_v39  ;;  %v4873_v30 = vrot.slane %v9284_v6, 2  ;;  %v4875_v34 = vrot.slane %v4868_v16, 2 }
 0x690   : > { %2148 = vrot.lane.b32.xlu1 %v2145_v25, %s6182_s28  ;;  %v5033_v25 = vstv %s5843_s25 }
 0x691   : > { %v5034_v36 = vmul.f32 %v8786_v41, %v5033_v25  ;;  %v5035_v5 = vmul.f32 %v8882_v3, %v5033_v25  ;;  %v4876_v39 = vsel %vm3193_vm1, %v4873_v30, %v4875_v34  ;;  %v5036_v41 = vmul.f32 %v9153_v4, %v5033_v25 }
 0x693   : > { %4375 = vrot.lane.b32.xlu0 %v4372_v62, %s6182_s28  ;;  %v2977_v62 = vmul.f32 %v8794_v57, %v9125_v23  ;;  %v5041_v29 = vrot.slane %v5035_v5, 2  ;;  %v3145_v57 = vmul.f32 %v9314_v33, %v9142_v9  ;;  %v5043_v28 = vrot.slane %v5036_v41, 2 }
 0x694   : > { %2316 = vrot.lane.b32.xlu1 %v2313_v42, %s6182_s28  ;;  %v5040_v42 = vrot.slane %v5034_v36, 2  ;;  %v9385_v36 = vld [vmem:[%s6301_s26] sm:$0xff] }
 0x695   : > { %v2983_v56 = vrot.slane %v2977_v62, 1  ;;  %v3151_v38 = vrot.slane %v3145_v57, 1  ;;  %v5044_v9 = vsel %vm3193_vm1, %v5041_v29, %v5043_v28  ;;  %v341_v62 = vstv %s5579_s20  ;;  %s5860_s20 = sld [smem:[#allocation5 + $0x6]] }
 0x696   : > { %v5042_v23 = vsel %vm3193_vm1, %v5040_v42, %v5041_v29  ;;  %v389_v42 = vstv %s5587_s19  ;;  %v342_v41 = vmul.f32 %v9343_v54, %v341_v62  ;;  %s9488_s19 = sld [smem:[#allocation2 + $0xfd]] }
 0x697   : > { %4543 = vrot.lane.b32.xlu0 %v4540_v32, %s6183_s8  ;;  %v2985_v61 = vsel %vm1304_vm0, %v2983_v56, %v2984_v14  ;;  %v3858_v32 = vmul.f32 %v8841_v50, %v9162_v31  ;;  %v3153_v6 = vsel %vm1304_vm0, %v3151_v38, %v3152_v10  ;;  %v4866_v50 = vmul.f32 %v9343_v54, %v9274_v46 }
 0x698   : > { %2484 = vrot.lane.b32.xlu1 %v2481_v58, %s6182_s28  ;;  %v9333_v58 = vld [vmem:[%s6301_s26 + $0x18] sm:$0xff]  ;;  %v343_v56 = vmul.f32 %v8904_v49, %v341_v62  ;;  %v390_v28 = vmul.f32 %v9314_v33, %v389_v42 }
 0x699   : > { %v3864_v16 = vrot.slane %v3858_v32, 2  ;;  %v4026_v7 = vmul.f32 %v9333_v58, %v9179_v0  ;;  %v4200_v0 = vrot.slane %v4194_v52, 2  ;;  %v4698_v12 = vmul.f32 %v9333_v58, %v9250_v2 }
 0x69a   : > { %v4872_v20 = vrot.slane %v4866_v50, 2 }
 0x69b   : > { %4711 = vrot.lane.b32.xlu0 %v4708_v51, %s6183_s8  ;;  %v3866_v14 = vsel %vm3193_vm1, %v3864_v16, %v3865_v47  ;;  %v4032_v31 = vrot.slane %v4026_v7, 2  ;;  %v4202_v37 = vsel %vm3193_vm1, %v4200_v0, %v4201_v27  ;;  %v4368_v47 = vrot.slane %v4362_v15, 2 }
 0x69c   : > { %2652 = vrot.lane.b32.xlu1 %v2649_v43, %s6183_s8  ;;  %v4704_v27 = vrot.slane %v4698_v12, 2  ;;  %v293_v51 = vstv %s5571_s27 }
 0x69d   : > { %v4034_v10 = vsel %vm3193_vm1, %v4032_v31, %v4033_v24  ;;  %v4370_v1 = vsel %vm3193_vm1, %v4368_v47, %v4369_v19  ;;  %v4536_v24 = vrot.slane %v4530_v63, 2  ;;  %v4874_v19 = vsel %vm3193_vm1, %v4872_v20, %v4873_v30 }
 0x69e   : > { %v4706_v35 = vsel %vm3193_vm1, %v4704_v27, %v4705_v48  ;;  %v245_v48 = vstv %s5563_s24  ;;  %v294_v5 = vmul.f32 %v9333_v58, %v293_v51  ;;  %v295_v8 = vmul.f32 %v8897_v21, %v293_v51 }
 0x69f   : > { %4879 = vrot.lane.b32.xlu0 %v4876_v39, %s6183_s8  ;;  %v4538_v11 = vsel %vm3193_vm1, %v4536_v24, %v4537_v18  ;;  %v246_v30 = vmul.f32 %v9385_v36, %v245_v48  ;;  %v247_v43 = vmul.f32 %v8892_v17, %v245_v48  ;;  %v1400_v27 = vstv %s5659_s5  ;;  %s9490_s5 = sld [smem:[#allocation2 + $0x10f]] }
 0x6a0   : > { %2820 = vrot.lane.b32.xlu1 %v2817_v45, %s6183_s8  ;;  %v1403_v48 = vmul.f32 %v8933_v13, %v1400_v27 }
 0x6a1   : > { %v296_v29 = vadd.f32 %v294_v5, %v246_v30  ;;  %v297_v45 = vadd.f32 %v295_v8, %v247_v43 }
 0x6a3   : > { %5045 = vrot.lane.b32.xlu0 %v5042_v23, %s6183_s8  ;;  %v344_v38 = vadd.f32 %v342_v41, %v296_v29  ;;  %v345_v32 = vadd.f32 %v343_v56, %v297_v45  ;;  %v1410_v41 = vrot.slane %v1403_v48, 1 }
 0x6a4   : > { %2988 = vrot.lane.b32.xlu1 %v2985_v61, %s6183_s8 }
 0x6a5   : > { %v392_v31 = vadd.f32 %v390_v28, %v344_v38 }
 0x6a7   : > { %5047 = vrot.lane.b32.xlu0 %v5044_v9, %s6183_s8  ;;  %v391_v9 = vmul.f32 %v8882_v3, %v389_v42  ;;  %v1808_v42 = vstv %s5683_s10 }
 0x6a8   : > { %3156 = vrot.lane.b32.xlu1 %v3153_v6, %s6183_s8  ;;  %v1811_v38 = vmul.f32 %v9153_v4, %v1808_v42 }
 0x6a9   : > { %v393_v52 = vadd.f32 %v391_v9, %v345_v32 }
 0x6ac   : > { %3869 = vrot.lane.b32.xlu1 %v3866_v14, %s6182_s28 }
 0x6b0   : > { %4037 = vrot.lane.b32.xlu1 %v4034_v10, %s6182_s28 }
 0x6b4   : > { %4205 = vrot.lane.b32.xlu1 %v4202_v37, %s6182_s28 }
 0x6b8   : > { %4373 = vrot.lane.b32.xlu1 %v4370_v1, %s6182_s28 }
 0x6bc   : > { %4541 = vrot.lane.b32.xlu1 %v4538_v11, %s6183_s8 }
 0x6c0   : > { %4709 = vrot.lane.b32.xlu1 %v4706_v35, %s6183_s8  ;;  %v1536_v35 = vstv %s5667_s11  ;;  %s9492_s11 = sld [smem:[#allocation2 + $0x118]] }
 0x6c1   : > { %v1538_v5 = vmul.f32 %v8897_v21, %v1536_v35  ;;  %v1539_v43 = vmul.f32 %v8942_v40, %v1536_v35 }
 0x6c2   : > { %v9377_v2 = vpop.xlane.xlu0 %5316 }
 0x6c3   : > { %v1546_v28 = vrot.slane %v1539_v43, 1 }
 0x6c4   : > { %4877 = vrot.lane.b32.xlu1 %v4874_v19, %s6183_s8  ;;  %v1402_v19 = vmul.f32 %v8892_v17, %v1400_v27 }
 0x6c6   : > { %v493_v26 = vpop.permute.xlu0 %492 }
 0x6c7   : > { %v497_v63 = vadd.f32 %v493_v26, %v393_v52  ;;  %v1672_v26 = vstv %s5675_s7  ;;  %s9499_s7 = sld [smem:[#allocation2 + $0xfe]] }
 0x6c8   : > { %v1674_v45 = vmul.f32 %v8904_v49, %v1672_v26  ;;  %v1675_v17 = vmul.f32 %v8952_v55, %v1672_v26 }
 0x6ca   : > { %v717_v18 = vpop.permute.xlu0 %716  ;;  %v1682_v49 = vrot.slane %v1675_v17, 1  ;;  %v3289_v17 = vstv %s5755_s29 }
 0x6ce   : > { %v829_v25 = vpop.permute.xlu0 %828 }
 0x6d2   : > { %v941_v46 = vpop.permute.xlu0 %940 }
 0x6d6   : > { %v9380_v59 = vpop.permute.xlu0 %1052 }
 0x6da   : > { %v9382_v34 = vpop.permute.xlu0 %1164 }
 0x6de   : > { %v9391_v39 = vpop.permute.xlu0 %1276 }
 0x6e2   : > { %v9395_v57 = vpop.permute.xlu0 %1982 }
 0x6e4   : > { %v5288_v23 = vpop.xlane.xlu1 %5287 }
 0x6e5   : > { %v5289_v61 = vrot.slane %v5288_v23, 4 }
 0x6e6   : > { %v9399_v6 = vpop.permute.xlu0 %2150 }
 0x6e7   : > { %v5290_v16 = vadd.f32 %v5289_v61, %v5288_v23  ;;  %v1544_v23 = vrot.slane %v1538_v5, 1  ;;  %v9415_v61 = vld [vmem:[%s6301_s26 + $0x50] sm:$0xff]  ;;  %v1809_v5 = vmul.f32 %v9314_v33, %v1808_v42 }
 0x6e8   : > { %v491_v7 = vpop.permute.xlu1 %490  ;;  %v1810_v21 = vmul.f32 %v9415_v61, %v1808_v42 }
 0x6e9   : > { %v5291_v14 = vrot.slane %v5290_v16, 2  ;;  %v496_v47 = vadd.f32 %v491_v7, %v392_v31 }
 0x6ea   : > { %v9401_v10 = vpop.permute.xlu0 %2318  ;;  %v1816_v52 = vrot.slane %v1810_v21, 1  ;;  %v9438_v21 = vld [vmem:[%s6301_s26 + $0x8] sm:$0xff] }
 0x6eb   : > { %v5292_v0 = vadd.f32 %v5291_v14, %v5290_v16  ;;  %v1680_v16 = vrot.slane %v1674_v45, 1 }
 0x6ec   : > { %v603_v15 = vpop.permute.xlu1 %602 }
 0x6ed   : > { %v5293_v37 = vrot.slane %v5292_v0, 1  ;;  %v608_v12 = vadd.f32 %v603_v15, %v496_v47  ;;  %v1683_v47 = vsel %vm1304_vm0, %v1680_v16, %v1682_v49 }
 0x6ee   : > { %v9403_v24 = vpop.permute.xlu0 %2486 }
 0x6ef   : > { %v5294_v1 = vadd.f32 %v5293_v37, %v5292_v0  ;;  %v1818_v0 = vrot.slane %v1811_v38, 1  ;;  %v9441_v38 = vmul.f32 %v9438_v21, %v3289_v17 }
 0x6f0   : > { %v605_v3 = vpop.permute.xlu1 %604 }
 0x6f1   : > { %5899 = vpush %v5294_v1  ;;  %v609_v11 = vadd.f32 %v605_v3, %v497_v63  ;;  %v1401_v63 = vmul.f32 %v9385_v36, %v1400_v27  ;;  %v1819_v3 = vsel %vm1304_vm0, %v1816_v52, %v1818_v0 }
 0x6f2   : > { %v9409_v8 = vpop.permute.xlu0 %2654 }
 0x6f3   : > { %v721_v50 = vadd.f32 %v717_v18, %v609_v11  ;;  %v1408_v18 = vrot.slane %v1402_v19, 1  ;;  %v1673_v19 = vmul.f32 %v9343_v54, %v1672_v26 }
 0x6f4   : > { %v715_v20 = vpop.permute.xlu1 %714 }
 0x6f5   : > { %v833_v51 = vadd.f32 %v829_v25, %v721_v50  ;;  %v720_v30 = vadd.f32 %v715_v20, %v608_v12  ;;  %v1411_v9 = vsel %vm1304_vm0, %v1408_v18, %v1410_v41  ;;  %v1537_v12 = vmul.f32 %v9333_v58, %v1536_v35 }
 0x6f6   : > { %v2823_v7 = vpop.permute.xlu0 %2822  ;;  %v1407_v20 = vrot.slane %v1401_v63, 1  ;;  %v1679_v35 = vrot.slane %v1673_v19, 1 }
 0x6f7   : > { %v945_v62 = vadd.f32 %v941_v46, %v833_v51 }
 0x6f8   : > { %v827_v29 = vpop.permute.xlu1 %826  ;;  %v1409_v43 = vsel %vm1304_vm0, %v1407_v20, %v1408_v18 }
 0x6f9   : > { %v832_v56 = vadd.f32 %v827_v29, %v720_v30  ;;  %v1057_v25 = vadd.f32 %v9380_v59, %v945_v62  ;;  %v1547_v59 = vsel %vm1304_vm0, %v1544_v23, %v1546_v28  ;;  %v1543_v30 = vrot.slane %v1537_v12, 1 }
 0x6fa   : > { %v2991_v11 = vpop.permute.xlu0 %2990  ;;  %v1681_v28 = vsel %vm1304_vm0, %v1679_v35, %v1680_v16  ;;  %v3697_v12 = vstv %s5779_s4  ;;  %s9521_s4 = sld [smem:[#allocation2 + $0x110]] }
 0x6fb   : > { %v1169_v46 = vadd.f32 %v9382_v34, %v1057_v25  ;;  %v1545_v26 = vsel %vm1304_vm0, %v1543_v30, %v1544_v23  ;;  %v9433_v25 = vstv %s5763_s9  ;;  %v3699_v30 = vmul.f32 %v9415_v61, %v3697_v12  ;;  %s9506_s9 = sld [smem:[#allocation2 + $0x107]] }
 0x6fc   : > { %v939_v32 = vpop.permute.xlu1 %938 }
 0x6fd   : > { %v944_v14 = vadd.f32 %v939_v32, %v832_v56  ;;  %v1281_v31 = vadd.f32 %v9391_v39, %v1169_v46  ;;  %v1815_v56 = vrot.slane %v1809_v5, 1  ;;  %v9446_v32 = vld [vmem:[%s6301_s26 + $0x20] sm:$0xff]  ;;  %v3700_v5 = vmul.f32 %v9153_v4, %v3697_v12 }
 0x6fe   : > { %v3159_v29 = vpop.permute.xlu0 %3158 }
 0x6ff   : > { %v1415_v15 = vadd.f32 %v1411_v9, %v1281_v31  ;;  %v3428_v9 = vmul.f32 %v8942_v40, %v9433_v25  ;;  %v1817_v16 = vsel %vm1304_vm0, %v1815_v56, %v1816_v52 }
 0x700   : > { %v1051_v37 = vpop.permute.xlu1 %1050 }
 0x701   : > { %v1056_v34 = vadd.f32 %v1051_v37, %v944_v14  ;;  %v1551_v1 = vadd.f32 %v1547_v59, %v1415_v15  ;;  %v3435_v63 = vrot.slane %v3428_v9, 2  ;;  %v3426_v9 = vmul.f32 %v9333_v58, %v9433_v25 }
 0x702   : > { %v3872_v49 = vpop.permute.xlu0 %3871 }
 0x703   : > { %v1687_v39 = vadd.f32 %v1683_v47, %v1551_v1 }
 0x704   : > { %v1163_v50 = vpop.permute.xlu1 %1162 }
 0x705   : > { %v1168_v48 = vadd.f32 %v1163_v50, %v1056_v34  ;;  %v1823_v51 = vadd.f32 %v1819_v3, %v1687_v39  ;;  %v9459_v34 = vld [vmem:[%s6301_s26 + $0x38] sm:$0xff] }
 0x706   : > { %v4040_v50 = vpop.permute.xlu0 %4039 }
 0x707   : > { %v1987_v27 = vadd.f32 %v9395_v57, %v1823_v51 }
 0x708   : > { %v1275_v62 = vpop.permute.xlu1 %1274 }
 0x709   : > { %v1280_v41 = vadd.f32 %v1275_v62, %v1168_v48  ;;  %v2155_v45 = vadd.f32 %v9399_v6, %v1987_v27  ;;  %v3292_v6 = vmul.f32 %v8933_v13, %v3289_v17  ;;  %v3561_v13 = vstv %s5771_s6 }
 0x70a   : > { %v3563_v40 = vmul.f32 %v9459_v34, %v3561_v13  ;;  %v3564_v52 = vmul.f32 %v8952_v55, %v3561_v13 }
 0x70b   : > { %v1414_v42 = vadd.f32 %v1409_v43, %v1280_v41  ;;  %v2323_v57 = vadd.f32 %v9401_v10, %v2155_v45  ;;  %v9450_v10 = vmul.f32 %v9446_v32, %v9433_v25  ;;  %v3299_v0 = vrot.slane %v3292_v6, 2 }
 0x70c   : > { %v1981_v18 = vpop.permute.xlu1 %1980  ;;  %v3569_v48 = vrot.slane %v3563_v40, 2  ;;  %v3571_v51 = vrot.slane %v3564_v52, 2  ;;  %v3705_v41 = vrot.slane %v3699_v30, 2  ;;  %v3707_v45 = vrot.slane %v3700_v5, 2 }
 0x70d   : > { %v1550_v46 = vadd.f32 %v1545_v26, %v1414_v42  ;;  %v2491_v23 = vadd.f32 %v9403_v24, %v2323_v57  ;;  %v3297_v24 = vrot.slane %v9441_v38, 2  ;;  %v3433_v47 = vrot.slane %v9450_v10, 2  ;;  %v4208_v26 = vpop.permute.xlu0 %4207 }
 0x70e   : > { %v3572_v35 = vsel %vm3193_vm1, %v3569_v48, %v3571_v51  ;;  %v3290_v38 = vmul.f32 %v9385_v36, %v3289_v17  ;;  %v3698_v17 = vmul.f32 %v9314_v33, %v3697_v12 }
 0x70f   : > { %v1686_v14 = vadd.f32 %v1681_v28, %v1550_v46  ;;  %v2659_v31 = vadd.f32 %v9409_v8, %v2491_v23  ;;  %v3300_v39 = vsel %vm3193_vm1, %v3297_v24, %v3299_v0  ;;  %v3436_v19 = vsel %vm3193_vm1, %v3433_v47, %v3435_v63 }
 0x710   : > { %v2149_v59 = vpop.permute.xlu1 %2148  ;;  %v3708_v28 = vsel %vm3193_vm1, %v3705_v41, %v3707_v45 }
 0x711   : > { %v1822_v15 = vadd.f32 %v1817_v16, %v1686_v14  ;;  %v2827_v37 = vadd.f32 %v2823_v7, %v2659_v31  ;;  %v4376_v6 = vpop.permute.xlu0 %4375  ;;  %v3296_v14 = vrot.slane %v3290_v38, 2  ;;  %v3562_v31 = vmul.f32 %v9343_v54, %v3561_v13 }
 0x712   : > { %v3704_v13 = vrot.slane %v3698_v17, 2  ;;  %v499_v17 = vstv %s9488_s19  ;;  %s5740_s19 = sld [smem:[#allocation2 + $0x113]] }
 0x713   : > { %v1986_v1 = vadd.f32 %v1981_v18, %v1822_v15  ;;  %v2995_v3 = vadd.f32 %v2991_v11, %v2827_v37  ;;  %v3432_v37 = vrot.slane %v3426_v9, 2 }
 0x714   : > { %v2317_v8 = vpop.permute.xlu1 %2316  ;;  %v3706_v5 = vsel %vm3193_vm1, %v3704_v13, %v3705_v41 }
 0x715   : > { %v2154_v20 = vadd.f32 %v2149_v59, %v1986_v1  ;;  %v3163_v7 = vadd.f32 %v3159_v29, %v2995_v3  ;;  %v5318_v29 = vrot.slane %v9377_v2, 4  ;;  %v4544_v63 = vpop.permute.xlu0 %4543  ;;  %v3568_v1 = vrot.slane %v3562_v31, 2 }
 0x717   : > { %v2322_v27 = vadd.f32 %v2317_v8, %v2154_v20  ;;  %v3304_v43 = vadd.f32 %v3300_v39, %v3163_v7  ;;  %v5319_v10 = vadd.f32 %v5318_v29, %v9377_v2  ;;  %v3298_v2 = vsel %vm3193_vm1, %v3296_v14, %v3297_v24 }
 0x718   : > { %v2485_v55 = vpop.permute.xlu1 %2484  ;;  %v3434_v39 = vsel %vm3193_vm1, %v3432_v37, %v3433_v47 }
 0x719   : > { %v2490_v62 = vadd.f32 %v2485_v55, %v2322_v27  ;;  %v3440_v11 = vadd.f32 %v3436_v19, %v3304_v43  ;;  %v5320_v15 = vrot.slane %v5319_v10, 2  ;;  %v4712_v7 = vpop.permute.xlu0 %4711 }
 0x71b   : > { %v3576_v57 = vadd.f32 %v3572_v35, %v3440_v11  ;;  %v5321_v8 = vadd.f32 %v5320_v15, %v5319_v10  ;;  %v5357_v10 = vstv %s5860_s20  ;;  %s5708_s20 = sld [smem:[#allocation2 + $0x112]] }
 0x71c   : > { %v2653_v56 = vpop.permute.xlu1 %2652 }
 0x71d   : > { %v2658_v42 = vadd.f32 %v2653_v56, %v2490_v62  ;;  %v3712_v23 = vadd.f32 %v3708_v28, %v3576_v57  ;;  %v5322_v30 = vrot.slane %v5321_v8, 1  ;;  %v4880_v11 = vpop.permute.xlu0 %4879 }
 0x71f   : > { %v3876_v0 = vadd.f32 %v3872_v49, %v3712_v23  ;;  %v3570_v49 = vsel %vm3193_vm1, %v3568_v1, %v3569_v48  ;;  %v835_v1 = vstv %s9492_s11  ;;  %s5804_s11 = sld [smem:[#allocation2 + $0x115]] }
 0x720   : > { %v2821_v18 = vpop.permute.xlu1 %2820 }
 0x721   : > { %v2826_v46 = vadd.f32 %v2821_v18, %v2658_v42  ;;  %v4044_v3 = vadd.f32 %v4040_v50, %v3876_v0  ;;  %v5323_v50 = vadd.f32 %v5322_v30, %v5321_v8  ;;  %v5046_v57 = vpop.permute.xlu0 %5045 }
 0x722   : > { %s5900_s25 = spop %5899 }
 0x723   : > { %s5296_s24 = smul.f32 0.00390625, %s5900_s25  ;;  %v4212_v12 = vadd.f32 %v4208_v26, %v4044_v3  ;;  %s5692_s25 = sld [smem:[#allocation2 + $0x100]] }
 0x724   : > { %v2989_v16 = vpop.permute.xlu1 %2988 }
 0x725   : > { %s5297_s27 = sadd.f32 1e-05, %s5296_s24  ;;  %v2994_v59 = vadd.f32 %v2989_v16, %v2826_v46  ;;  %v4380_v55 = vadd.f32 %v4376_v6, %v4212_v12  ;;  %v5048_v38 = vpop.permute.xlu0 %5047  ;;  %v1059_v12 = vstv %s9506_s9  ;;  %s9538_s24 = sld [smem:[#allocation2 + $0x119]] }
 0x726   : > { %s5820_s9 = sld [smem:[#allocation2 + $0x104]] }
 0x727   : > { %v5298_v40 = vstv %s5297_s27  ;;  %v4548_v48 = vadd.f32 %v4544_v63, %v4380_v55  ;;  %v501_v63 = vmul.f32 %v9438_v21, %v499_v17  ;;  %s5700_s27 = sld [smem:[#allocation2 + $0x109]] }
 0x728   : > { %5993 = vrsqrt.f32 %v5298_v40  ;;  %v3157_v52 = vpop.permute.xlu1 %3156  ;;  %v723_v40 = vstv %s9490_s5  ;;  %s5796_s5 = sld [smem:[#allocation2 + $0x10c]] }
 0x729   : > { %v3162_v25 = vadd.f32 %v3157_v52, %v2994_v59  ;;  %v4716_v29 = vadd.f32 %v4712_v7, %v4548_v48  ;;  %v9574_v48 = vld [vmem:[%s6301_s26 + $0x28] sm:$0x3] }
 0x72b   : > { %v3303_v20 = vadd.f32 %v3298_v2, %v3162_v25  ;;  %v4884_v18 = vadd.f32 %v4880_v11, %v4716_v29  ;;  %v725_v2 = vmul.f32 %v9459_v34, %v723_v40  ;;  %v1283_v55 = vstv %s9538_s24  ;;  %s5836_s24 = sld [smem:[#allocation2 + $0x116]] }
 0x72c   : > { %v3870_v19 = vpop.permute.xlu1 %3869 }
 0x72d   : > { %v3439_v51 = vadd.f32 %v3434_v39, %v3303_v20  ;;  %v5052_v23 = vadd.f32 %v5048_v38, %v4884_v18  ;;  %v837_v20 = vmul.f32 %v9415_v61, %v835_v1  ;;  %v500_v18 = vmul.f32 %v9385_v36, %v499_v17 }
 0x72f   : > { %v3575_v27 = vadd.f32 %v3570_v49, %v3439_v51  ;;  %v9480_v14 = vadd.f32 %v5357_v10, %v5052_v23 }
 0x730   : > { %v4038_v24 = vpop.permute.xlu1 %4037 }
 0x731   : > { %v3711_v43 = vadd.f32 %v3706_v5, %v3575_v27  ;;  %v5361_v0 = vsel %vm5078_vm2, %v9480_v14, 0.0  ;;  %v1061_v5 = vmul.f32 %v9446_v32, %v1059_v12  ;;  %v1171_v27 = vstv %s9521_s4  ;;  %s5828_s4 = sld [smem:[#allocation2 + $0x10d]] }
 0x732   : > { %v5994_v62 = vpop.eup %5993 }
 0x733   : > { %5901 = vpush %v5994_v62  ;;  %v3875_v47 = vadd.f32 %v3870_v19, %v3711_v43  ;;  %v1173_v43 = vmul.f32 %v9459_v34, %v1171_v27 }
 0x734   : > { %5903 = vpush %v5323_v50  ;;  %v4206_v35 = vpop.permute.xlu1 %4205  ;;  %v9559_v50 = vld [vmem:[%s6301_s26 + $0x10] sm:$0x3] }
 0x735   : > { %v4043_v45 = vadd.f32 %v4038_v24, %v3875_v47  ;;  %v9545_v24 = vstv %s5692_s25  ;;  %v9563_v47 = vstv %s5700_s27  ;;  %s5732_s25 = sld [smem:[#allocation2 + $0x10a]]  ;;  %s5748_s27 = sld [smem:[#allocation2 + $0x11c]] }
 0x736   : > { %v9556_v62 = vmul.f32 %v9438_v21, %v9545_v24  ;;  %v1992_v11 = vmul.f32 %v9559_v50, %v9545_v24 }
 0x737   : > { %v4211_v56 = vadd.f32 %v4206_v35, %v4043_v45  ;;  %v1285_v35 = vmul.f32 %v9415_v61, %v1283_v55  ;;  %v9571_v45 = vmul.f32 %v9446_v32, %v9563_v47 }
 0x738   : > { %v4374_v42 = vpop.permute.xlu1 %4373 }
 0x739   : > { %v4379_v26 = vadd.f32 %v4374_v42, %v4211_v56  ;;  %v2160_v56 = vmul.f32 %v9574_v48, %v9563_v47  ;;  %v1997_v42 = vrot.slane %v9556_v62, 1  ;;  %v2165_v29 = vrot.slane %v9571_v45, 1 }
 0x73c   : > { %v4542_v41 = vpop.permute.xlu1 %4541 }
 0x73d   : > { %v4547_v28 = vadd.f32 %v4542_v41, %v4379_v26  ;;  %v9579_v26 = vstv %s5708_s20  ;;  %v2167_v41 = vrot.slane %v2160_v56, 1  ;;  %s5788_s20 = sld [smem:[#allocation2 + $0x103]]  ;;  %v9663_v56 = vstv %s5748_s27  ;;  %s5676_s27 = sld [smem:[#allocation2 + $0x111]] }
 0x740   : > { %v4710_v6 = vpop.permute.xlu1 %4709 }
 0x741   : > { %v4715_v46 = vadd.f32 %v4710_v6, %v4547_v28  ;;  %v9585_v28 = vmul.f32 %v9459_v34, %v9579_v26 }
 0x744   : > { %v4878_v9 = vpop.permute.xlu1 %4877 }
 0x745   : > { %v4883_v16 = vadd.f32 %v4878_v9, %v4715_v46  ;;  %v9595_v46 = vld [vmem:[%s6301_s26 + $0x40] sm:$0x3] }
 0x746   : > { %v2328_v23 = vmul.f32 %v9595_v46, %v9579_v26 }
 0x747   : > { %v5051_v31 = vadd.f32 %v5046_v57, %v4883_v16  ;;  %v1999_v57 = vrot.slane %v1992_v11, 1  ;;  %v2168_v16 = vsel %vm1304_vm0, %v2165_v29, %v2167_v41  ;;  %v3168_v41 = vmul.f32 %v9153_v4, %v9663_v56 }
 0x749   : > { %v9482_v59 = vadd.f32 %v5357_v10, %v5051_v31  ;;  %v2000_v6 = vsel %vm1304_vm0, %v1997_v42, %v1999_v57  ;;  %v2333_v31 = vrot.slane %v9585_v28, 1  ;;  %v9671_v57 = vmul.f32 %v9415_v61, %v9663_v56 }
 0x74b   : > { %v5360_v15 = vsel %vm5078_vm2, %v9482_v59, 0.0 }
 0x74c   : > { %v5362_v37 = vadd.f32 %v5361_v0, %v5360_v15  ;;  %v2335_v0 = vrot.slane %v2328_v23, 1  ;;  %v3173_v23 = vrot.slane %v9671_v57, 1 }
 0x74e   : > { %5363 = vadd.xlane.f32.xlu0 %v5362_v37 }
 0x764   : > { %s5902_s10 = spop %5901  ;;  %506 = vrot.lane.b32.xlu0 %v501_v63, %s6182_s28 }
 0x765   : > { %v5301_v52 = vstv %s5902_s10  ;;  %s5904_s29 = spop %5903  ;;  %s9551_s10 = sld [smem:[#allocation2 + $0x106]] }
 0x766   : > { %v5302_v25 = vmul.f32 %v5301_v52, %v9005_v53  ;;  %v5303_v3 = vmul.f32 %v5301_v52, %v9008_v22  ;;  %s5325_s6 = smul.f32 0.00390625, %s5904_s29  ;;  %v947_v53 = vstv %s9499_s7  ;;  %s5716_s29 = sld [smem:[#allocation2 + $0x11b]] }
 0x767   : > { %s5812_s7 = sld [smem:[#allocation2 + $0x11e]] }
 0x768   : > { %v5304_v8 = vmax.f32 %v5302_v25, 0.0  ;;  %v5305_v39 = vmax.f32 %v5303_v3, 0.0  ;;  %v5326_v13 = vstv %s5325_s6  ;;  %730 = vrot.lane.b32.xlu0 %v725_v2, %s6182_s28  ;;  %s5724_s6 = sld [smem:[#allocation2 + $0x101]]  ;;  %v2336_v25 = vsel %vm1304_vm0, %v2333_v31, %v2335_v0 }
 0x769   : > { %v9515_v49 = vsub.f32 %v8974_v44, %v5326_v13  ;;  %v9518_v19 = vsub.f32 %v8972_v60, %v5326_v13  ;;  %v949_v60 = vmul.f32 %v9438_v21, %v947_v53 }
 0x76a   : > { %5855 = vst.msk [vmem:[%s7489_s30 + $0x40] sm:$0xff] %vm5078_vm2, %v5304_v8  ;;  %5856 = vst.msk [vmem:[%s7489_s30 + $0x48] sm:$0xff] %vm5078_vm2, %v5305_v39  ;;  %v9629_v39 = vstv %s5732_s25  ;;  %s5588_s25 = sld [smem:[#allocation2 + $0x117]] }
 0x76b   : > { %v5329_v22 = vmul.f32 %v9515_v49, %v9515_v49  ;;  %v5330_v44 = vmul.f32 %v9518_v19, %v9518_v19  ;;  %v611_v38 = vstv %s9551_s10  ;;  %s5844_s10 = sld [smem:[#allocation2 + $0x11f]] }
 0x76c   : > { %842 = vrot.lane.b32.xlu0 %v837_v20, %s6182_s28  ;;  %v9599_v10 = vstv %s5716_s29  ;;  %v612_v9 = vmul.f32 %v9333_v58, %v611_v38  ;;  %v613_v63 = vmul.f32 %v9446_v32, %v611_v38  ;;  %s5572_s29 = sld [smem:[#allocation2 + $0x105]] }
 0x76d   : > { %v5331_v7 = vsel %vm5078_vm2, %v5329_v22, 0.0  ;;  %v5332_v51 = vsel %vm5078_vm2, %v5330_v44, 0.0  ;;  %v9610_v15 = vmul.f32 %v9415_v61, %v9599_v10  ;;  %v2496_v37 = vmul.f32 %v9153_v4, %v9599_v10 }
 0x76e   : > { %v5333_v30 = vadd.f32 %v5332_v51, %v5331_v7  ;;  %v9614_v17 = vstv %s5724_s6  ;;  %v9635_v22 = vmul.f32 %v9446_v32, %v9629_v39  ;;  %v724_v44 = vmul.f32 %v9343_v54, %v723_v40  ;;  %s5580_s6 = sld [smem:[#allocation2 + $0x10e]] }
 0x76f   : > { %v9620_v2 = vmul.f32 %v9438_v21, %v9614_v17  ;;  %v2664_v52 = vmul.f32 %v9559_v50, %v9614_v17  ;;  %v2501_v3 = vrot.slane %v9610_v15, 1  ;;  %v2503_v8 = vrot.slane %v2496_v37, 1 }
 0x770   : > { %5334 = vadd.xlane.f32.xlu1 %v5333_v30  ;;  %954 = vrot.lane.b32.xlu0 %v949_v60, %s6183_s8  ;;  %v2832_v7 = vmul.f32 %v9574_v48, %v9629_v39  ;;  %v9646_v51 = vstv %s5740_s19  ;;  %v836_v30 = vmul.f32 %v9314_v33, %v835_v1  ;;  %v2837_v40 = vrot.slane %v9635_v22, 1  ;;  %s5668_s19 = sld [smem:[#allocation2 + $0x108]] }
 0x771   : > { %v2669_v13 = vrot.slane %v9620_v2, 1  ;;  %v2671_v20 = vrot.slane %v2664_v52, 1  ;;  %v2504_v60 = vsel %vm1304_vm0, %v2501_v3, %v2503_v8  ;;  %v9659_v11 = vmul.f32 %v9459_v34, %v9646_v51 }
 0x772   : > { %v948_v1 = vmul.f32 %v9385_v36, %v947_v53  ;;  %v9680_v53 = vstv %s5788_s20  ;;  %v1172_v52 = vmul.f32 %v9343_v54, %v1171_v27  ;;  %v1990_v27 = vmul.f32 %v9385_v36, %v9545_v24  ;;  %s5684_s20 = sld [smem:[#allocation2 + $0x11a]] }
 0x773   : > { %v3005_v38 = vrot.slane %v9659_v11, 1  ;;  %v9686_v4 = vmul.f32 %v9438_v21, %v9680_v53  ;;  %v3881_v37 = vmul.f32 %v9559_v50, %v9680_v53  ;;  %v3879_v22 = vmul.f32 %v9385_v36, %v9680_v53 }
 0x774   : > { %1066 = vrot.lane.b32.xlu0 %v1061_v5, %s6183_s8  ;;  %v2672_v5 = vsel %vm1304_vm0, %v2669_v13, %v2671_v20 }
 0x775   : > { %v3888_v8 = vrot.slane %v3881_v37, 2  ;;  %v9752_v37 = vstv %s5820_s9  ;;  %s5780_s9 = sld [smem:[#allocation2 + $0x11d]] }
 0x778   : > { %1178 = vrot.lane.b32.xlu0 %v1173_v43, %s6183_s8  ;;  %v2839_v43 = vrot.slane %v2832_v7, 1 }
 0x77c   : > { %1290 = vrot.lane.b32.xlu0 %v1285_v35, %s6183_s8  ;;  %v3000_v35 = vmul.f32 %v9595_v46, %v9646_v51 }
 0x780   : > { %2003 = vrot.lane.b32.xlu0 %v2000_v6, %s6182_s28  ;;  %v3007_v6 = vrot.slane %v3000_v35, 1 }
 0x781   : > { %504 = vrot.lane.b32.xlu1 %v500_v18, %s6182_s28  ;;  %v2840_v18 = vsel %vm1304_vm0, %v2837_v40, %v2839_v43 }
 0x782   : > { %v3008_v0 = vsel %vm1304_vm0, %v3005_v38, %v3007_v6 }
 0x784   : > { %2171 = vrot.lane.b32.xlu0 %v2168_v16, %s6182_s28  ;;  %v1060_v16 = vmul.f32 %v9333_v58, %v1059_v12 }
 0x785   : > { %616 = vrot.lane.b32.xlu1 %v612_v9, %s6182_s28  ;;  %v3175_v9 = vrot.slane %v3168_v41, 1  ;;  %v2158_v41 = vmul.f32 %v9333_v58, %v9563_v47 }
 0x787   : > { %v3176_v12 = vsel %vm1304_vm0, %v3173_v23, %v3175_v9 }
 0x788   : > { %2339 = vrot.lane.b32.xlu0 %v2336_v25, %s6182_s28  ;;  %v3886_v25 = vrot.slane %v9686_v4, 2 }
 0x789   : > { %618 = vrot.lane.b32.xlu1 %v613_v63, %s6182_s28  ;;  %v9697_v63 = vstv %s5796_s5  ;;  %s5756_s5 = sld [smem:[#allocation2 + $0x102]] }
 0x78a   : > { %v9710_v20 = vmul.f32 %v9446_v32, %v9697_v63  ;;  %v3889_v43 = vsel %vm3193_vm1, %v3886_v25, %v3888_v8  ;;  %v2326_v8 = vmul.f32 %v9343_v54, %v9579_v26  ;;  %v9771_v26 = vstv %s5828_s4 }
 0x78b   : > { %v4047_v11 = vmul.f32 %v9333_v58, %v9697_v63 }
 0x78c   : > { %2507 = vrot.lane.b32.xlu0 %v2504_v60, %s6182_s28  ;;  %v9714_v60 = vstv %s5804_s11  ;;  %v4054_v24 = vrot.slane %v9710_v20, 2  ;;  %s5764_s11 = sld [smem:[#allocation2 + $0x10b]] }
 0x78d   : > { %728 = vrot.lane.b32.xlu1 %v724_v44, %s6182_s28  ;;  %v4049_v44 = vmul.f32 %v9574_v48, %v9697_v63  ;;  %v9721_v7 = vmul.f32 %v9459_v34, %v9714_v60  ;;  %v4053_v53 = vrot.slane %v4047_v11, 2 }
 0x78f   : > { %v4056_v35 = vrot.slane %v4049_v44, 2  ;;  %v4222_v6 = vrot.slane %v9721_v7, 2  ;;  %v4055_v57 = vsel %vm3193_vm1, %v4053_v53, %v4054_v24 }
 0x790   : > { %2675 = vrot.lane.b32.xlu0 %v2672_v5, %s6183_s8  ;;  %v1284_v5 = vmul.f32 %v9314_v33, %v1283_v55 }
 0x791   : > { %840 = vrot.lane.b32.xlu1 %v836_v30, %s6182_s28  ;;  %v4217_v30 = vmul.f32 %v9595_v46, %v9714_v60  ;;  %v4057_v55 = vsel %vm3193_vm1, %v4054_v24, %v4056_v35  ;;  %v2494_v35 = vmul.f32 %v9314_v33, %v9599_v10  ;;  %v9879_v24 = vld [vmem:[%s6301_s26 + $0x18] sm:$0xff] }
 0x793   : > { %v4224_v9 = vrot.slane %v4217_v30, 2  ;;  %v4553_v30 = vmul.f32 %v9559_v50, %v9752_v37 }
 0x794   : > { %2843 = vrot.lane.b32.xlu0 %v2840_v18, %s6183_s8  ;;  %v9735_v18 = vstv %s5812_s7  ;;  %s5772_s7 = sld [smem:[#allocation2 + $0x114]] }
 0x795   : > { %952 = vrot.lane.b32.xlu1 %v948_v1, %s6183_s8  ;;  %v1996_v1 = vrot.slane %v1990_v27, 1  ;;  %v4225_v44 = vsel %vm3193_vm1, %v4222_v6, %v4224_v9  ;;  %v9765_v27 = vmul.f32 %v9438_v21, %v9752_v37  ;;  %v4560_v9 = vrot.slane %v4553_v30, 2 }
 0x796   : > { %v2830_v30 = vmul.f32 %v9333_v58, %v9629_v39 }
 0x798   : > { %3011 = vrot.lane.b32.xlu0 %v3008_v0, %s6183_s8  ;;  %v9748_v0 = vld [vmem:[%s6301_s26 + $0x58] sm:$0x3] }
 0x799   : > { %1064 = vrot.lane.b32.xlu1 %v1060_v16, %s6183_s8  ;;  %v9745_v16 = vmul.f32 %v9415_v61, %v9735_v18  ;;  %v4385_v47 = vmul.f32 %v9748_v0, %v9735_v18 }
 0x79b   : > { %v4390_v62 = vrot.slane %v9745_v16, 2 }
 0x79c   : > { %3179 = vrot.lane.b32.xlu0 %v3176_v12, %s6183_s8  ;;  %v2164_v12 = vrot.slane %v2158_v41, 1  ;;  %v4721_v41 = vmul.f32 %v9574_v48, %v9771_v26 }
 0x79d   : > { %1176 = vrot.lane.b32.xlu1 %v1172_v52, %s6183_s8  ;;  %v1998_v52 = vsel %vm1304_vm0, %v1996_v1, %v1997_v42  ;;  %v4392_v42 = vrot.slane %v4385_v47, 2  ;;  %v9781_v1 = vmul.f32 %v9446_v32, %v9771_v26  ;;  %v2662_v47 = vmul.f32 %v9385_v36, %v9614_v17 }
 0x79f   : > { %v4393_v45 = vsel %vm3193_vm1, %v4390_v62, %v4392_v42  ;;  %v2668_v42 = vrot.slane %v2662_v47, 1 }
 0x7a0   : > { %3892 = vrot.lane.b32.xlu0 %v3889_v43, %s6182_s28  ;;  %v2332_v43 = vrot.slane %v2326_v8, 1  ;;  %v4728_v8 = vrot.slane %v4721_v41, 2 }
 0x7a1   : > { %1288 = vrot.lane.b32.xlu1 %v1284_v5, %s6183_s8  ;;  %v2166_v5 = vsel %vm1304_vm0, %v2164_v12, %v2165_v29  ;;  %v4558_v29 = vrot.slane %v9765_v27, 2  ;;  %v4726_v12 = vrot.slane %v9781_v1, 2  ;;  %v2670_v39 = vsel %vm1304_vm0, %v2668_v42, %v2669_v13 }
 0x7a2   : > { %v2334_v10 = vsel %vm1304_vm0, %v2332_v43, %v2333_v31  ;;  %v3166_v13 = vmul.f32 %v9314_v33, %v9663_v56  ;;  %v3885_v56 = vrot.slane %v3879_v22, 2  ;;  %v4215_v42 = vmul.f32 %v9343_v54, %v9714_v60 }
 0x7a3   : > { %v4729_v43 = vsel %vm3193_vm1, %v4726_v12, %v4728_v8 }
 0x7a4   : > { %4060 = vrot.lane.b32.xlu0 %v4057_v55, %s6182_s28  ;;  %v2500_v55 = vrot.slane %v2494_v35, 1  ;;  %v4221_v58 = vrot.slane %v4215_v42, 2 }
 0x7a5   : > { %2001 = vrot.lane.b32.xlu1 %v1998_v52, %s6182_s28  ;;  %v9795_v52 = vstv %s5836_s24 }
 0x7a6   : > { %v9805_v28 = vmul.f32 %v9459_v34, %v9795_v52  ;;  %v4889_v31 = vmul.f32 %v9595_v46, %v9795_v52  ;;  %v2502_v17 = vsel %vm1304_vm0, %v2500_v55, %v2501_v3  ;;  %v4223_v63 = vsel %vm3193_vm1, %v4221_v58, %v4222_v6 }
 0x7a8   : > { %4228 = vrot.lane.b32.xlu0 %v4225_v44, %s6182_s28  ;;  %v4561_v44 = vsel %vm3193_vm1, %v4558_v29, %v4560_v9  ;;  %v4894_v35 = vrot.slane %v9805_v28, 2  ;;  %v4896_v41 = vrot.slane %v4889_v31, 2  ;;  %v2998_v9 = vmul.f32 %v9343_v54, %v9646_v51 }
 0x7a9   : > { %2169 = vrot.lane.b32.xlu1 %v2166_v5, %s6182_s28  ;;  %v5054_v5 = vstv %s5844_s10  ;;  %s5863_s10 = sld [smem:[#allocation5 + $0x7]] }
 0x7aa   : > { %v5055_v15 = vmul.f32 %v9314_v33, %v5054_v5  ;;  %v5056_v3 = vmul.f32 %v9415_v61, %v5054_v5  ;;  %v5057_v8 = vmul.f32 %v9748_v0, %v5054_v5 }
 0x7ac   : > { %4396 = vrot.lane.b32.xlu0 %v4393_v45, %s6182_s28  ;;  %v2836_v45 = vrot.slane %v2830_v30, 1  ;;  %v5061_v55 = vrot.slane %v5055_v15, 2  ;;  %v5062_v47 = vrot.slane %v5056_v3, 2  ;;  %v5064_v28 = vrot.slane %v5057_v8, 2 }
 0x7ad   : > { %2337 = vrot.lane.b32.xlu1 %v2334_v10, %s6182_s28  ;;  %v4897_v10 = vsel %vm3193_vm1, %v4894_v35, %v4896_v41 }
 0x7ae   : > { %v2838_v2 = vsel %vm1304_vm0, %v2836_v45, %v2837_v40  ;;  %v5063_v51 = vsel %vm3193_vm1, %v5061_v55, %v5062_v47  ;;  %v5065_v33 = vsel %vm3193_vm1, %v5062_v47, %v5064_v28  ;;  %v395_v55 = vstv %s5588_s25 }
 0x7af   : > { %v397_v22 = vmul.f32 %v9415_v61, %v395_v55 }
 0x7b0   : > { %4564 = vrot.lane.b32.xlu0 %v4561_v44, %s6183_s8  ;;  %v3004_v44 = vrot.slane %v2998_v9, 1  ;;  %v347_v9 = vstv %s5580_s6 }
 0x7b1   : > { %2505 = vrot.lane.b32.xlu1 %v2502_v17, %s6182_s28  ;;  %v3172_v17 = vrot.slane %v3166_v13, 1 }
 0x7b2   : > { %v3006_v31 = vsel %vm1304_vm0, %v3004_v44, %v3005_v38  ;;  %v3887_v38 = vsel %vm3193_vm1, %v3885_v56, %v3886_v25  ;;  %v4551_v25 = vmul.f32 %v9385_v36, %v9752_v37  ;;  %v9888_v37 = vld [vmem:[%s6301_s26 + $0x30] sm:$0xff]  ;;  %v349_v44 = vmul.f32 %v9459_v34, %v347_v9 }
 0x7b3   : > { %v3174_v40 = vsel %vm1304_vm0, %v3172_v17, %v3173_v23  ;;  %v9864_v23 = vld [vmem:[%s6301_s26 + $0x48] sm:$0xff]  ;;  %v4887_v16 = vmul.f32 %v9888_v37, %v9795_v52  ;;  %v348_v8 = vmul.f32 %v9888_v37, %v347_v9 }
 0x7b4   : > { %4732 = vrot.lane.b32.xlu0 %v4729_v43, %s6183_s8  ;;  %v4383_v4 = vmul.f32 %v9864_v23, %v9735_v18  ;;  %v4557_v60 = vrot.slane %v4551_v25, 2  ;;  %v4719_v18 = vmul.f32 %v9879_v24, %v9771_v26 }
 0x7b5   : > { %2673 = vrot.lane.b32.xlu1 %v2670_v39, %s6183_s8  ;;  %v4893_v30 = vrot.slane %v4887_v16, 2 }
 0x7b6   : > { %v4389_v54 = vrot.slane %v4383_v4, 2  ;;  %v4559_v7 = vsel %vm3193_vm1, %v4557_v60, %v4558_v29  ;;  %v4725_v6 = vrot.slane %v4719_v18, 2 }
 0x7b7   : > { %v4895_v26 = vsel %vm3193_vm1, %v4893_v30, %v4894_v35 }
 0x7b8   : > { %4900 = vrot.lane.b32.xlu0 %v4897_v10, %s6183_s8  ;;  %v4391_v20 = vsel %vm3193_vm1, %v4389_v54, %v4390_v62  ;;  %v4727_v62 = vsel %vm3193_vm1, %v4725_v6, %v4726_v12  ;;  %v299_v12 = vstv %s5572_s29 }
 0x7b9   : > { %2841 = vrot.lane.b32.xlu1 %v2838_v2, %s6183_s8  ;;  %v300_v3 = vmul.f32 %v9879_v24, %v299_v12  ;;  %v301_v45 = vmul.f32 %v9446_v32, %v299_v12 }
 0x7bc   : > { %5066 = vrot.lane.b32.xlu0 %v5063_v51, %s6183_s8 }
 0x7bd   : > { %3009 = vrot.lane.b32.xlu1 %v3006_v31, %s6183_s8 }
 0x7c0   : > { %5068 = vrot.lane.b32.xlu0 %v5065_v33, %s6183_s8 }
 0x7c1   : > { %3177 = vrot.lane.b32.xlu1 %v3174_v40, %s6183_s8 }
 0x7c5   : > { %3890 = vrot.lane.b32.xlu1 %v3887_v38, %s6182_s28 }
 0x7c9   : > { %4058 = vrot.lane.b32.xlu1 %v4055_v57, %s6182_s28 }
 0x7cd   : > { %4226 = vrot.lane.b32.xlu1 %v4223_v63, %s6182_s28 }
 0x7d1   : > { %4394 = vrot.lane.b32.xlu1 %v4391_v20, %s6182_s28  ;;  %s5564_s28 = sld [smem:[#allocation2 + $0xfc]] }
 0x7d5   : > { %4562 = vrot.lane.b32.xlu1 %v4559_v7, %s6183_s8 }
 0x7d7   : > { %v251_v1 = vstv %s5564_s28 }
 0x7d8   : > { %v252_v35 = vmul.f32 %v9385_v36, %v251_v1  ;;  %v253_v39 = vmul.f32 %v9438_v21, %v251_v1  ;;  %v396_v36 = vmul.f32 %v9864_v23, %v395_v55  ;;  %v1825_v55 = vstv %s5684_s20 }
 0x7d9   : > { %4730 = vrot.lane.b32.xlu1 %v4727_v62, %s6183_s8  ;;  %v1553_v62 = vstv %s5668_s19 }
 0x7da   : > { %v302_v47 = vadd.f32 %v300_v3, %v252_v35  ;;  %v303_v2 = vadd.f32 %v301_v45, %v253_v39  ;;  %v1555_v3 = vmul.f32 %v9446_v32, %v1553_v62  ;;  %v1556_v39 = vmul.f32 %v9574_v48, %v1553_v62 }
 0x7db   : > { %v9898_v27 = vpop.xlane.xlu0 %5363 }
 0x7dc   : > { %v350_v31 = vadd.f32 %v348_v8, %v302_v47  ;;  %v351_v17 = vadd.f32 %v349_v44, %v303_v2 }
 0x7dd   : > { %4898 = vrot.lane.b32.xlu1 %v4895_v26, %s6183_s8  ;;  %s5660_s8 = sld [smem:[#allocation2 + $0xff]] }
 0x7de   : > { %v398_v38 = vadd.f32 %v396_v36, %v350_v31  ;;  %v399_v53 = vadd.f32 %v397_v22, %v351_v17  ;;  %v1561_v36 = vrot.slane %v1555_v3, 1  ;;  %v1827_v31 = vmul.f32 %v9415_v61, %v1825_v55 }
 0x7df   : > { %v507_v29 = vpop.permute.xlu0 %506  ;;  %v1828_v17 = vmul.f32 %v9748_v0, %v1825_v55 }
 0x7e0   : > { %v511_v54 = vadd.f32 %v507_v29, %v399_v53  ;;  %v1689_v29 = vstv %s5676_s27 }
 0x7e1   : > { %v1691_v2 = vmul.f32 %v9459_v34, %v1689_v29  ;;  %v1692_v44 = vmul.f32 %v9595_v46, %v1689_v29 }
 0x7e3   : > { %v731_v5 = vpop.permute.xlu0 %730  ;;  %v1417_v6 = vstv %s5660_s8 }
 0x7e4   : > { %v1419_v26 = vmul.f32 %v9438_v21, %v1417_v6  ;;  %v1420_v1 = vmul.f32 %v9559_v50, %v1417_v6 }
 0x7e6   : > { %v1425_v8 = vrot.slane %v1419_v26, 1 }
 0x7e7   : > { %v843_v43 = vpop.permute.xlu0 %842 }
 0x7eb   : > { %v955_v52 = vpop.permute.xlu0 %954 }
 0x7ef   : > { %v9901_v41 = vpop.permute.xlu0 %1066 }
 0x7f3   : > { %v9903_v15 = vpop.permute.xlu0 %1178 }
 0x7f7   : > { %v9909_v10 = vpop.permute.xlu0 %1290 }
 0x7fb   : > { %v9913_v13 = vpop.permute.xlu0 %2003 }
 0x7fd   : > { %v5335_v51 = vpop.xlane.xlu1 %5334 }
 0x7fe   : > { %v5336_v28 = vrot.slane %v5335_v51, 4 }
 0x7ff   : > { %v9917_v33 = vpop.permute.xlu0 %2171 }
 0x800   : > { %v5337_v40 = vadd.f32 %v5336_v28, %v5335_v51  ;;  %v1563_v28 = vrot.slane %v1556_v39, 1 }
 0x801   : > { %v505_v56 = vpop.permute.xlu1 %504 }
 0x802   : > { %v5338_v11 = vrot.slane %v5337_v40, 2  ;;  %v510_v63 = vadd.f32 %v505_v56, %v398_v38  ;;  %v1697_v56 = vrot.slane %v1691_v2, 1 }
 0x803   : > { %v9919_v42 = vpop.permute.xlu0 %2339 }
 0x804   : > { %v5339_v57 = vadd.f32 %v5338_v11, %v5337_v40  ;;  %v1699_v11 = vrot.slane %v1692_v44, 1 }
 0x805   : > { %v617_v58 = vpop.permute.xlu1 %616 }
 0x806   : > { %v5340_v4 = vrot.slane %v5339_v57, 1  ;;  %v622_v18 = vadd.f32 %v617_v58, %v510_v63  ;;  %v1833_v58 = vrot.slane %v1827_v31, 1  ;;  %v3442_v31 = vstv %s5764_s11 }
 0x807   : > { %v9921_v60 = vpop.permute.xlu0 %2507 }
 0x808   : > { %v5341_v25 = vadd.f32 %v5340_v4, %v5339_v57  ;;  %v1835_v4 = vrot.slane %v1828_v17, 1 }
 0x809   : > { %v619_v20 = vpop.permute.xlu1 %618 }
 0x80a   : > { %5905 = vpush %v5341_v25  ;;  %v623_v7 = vadd.f32 %v619_v20, %v511_v54  ;;  %v1700_v54 = vsel %vm1304_vm0, %v1697_v56, %v1699_v11  ;;  %v9940_v25 = vld [vmem:[%s6301_s26] sm:$0xff]  ;;  %v9959_v11 = vmul.f32 %v9446_v32, %v3442_v31 }
 0x80b   : > { %v9927_v45 = vpop.permute.xlu0 %2675 }
 0x80c   : > { %v735_v16 = vadd.f32 %v731_v5, %v623_v7  ;;  %v1427_v5 = vrot.slane %v1420_v1, 1  ;;  %v1836_v7 = vsel %vm1304_vm0, %v1833_v58, %v1835_v4 }
 0x80d   : > { %v729_v30 = vpop.permute.xlu1 %728 }
 0x80e   : > { %v847_v12 = vadd.f32 %v843_v43, %v735_v16  ;;  %v734_v35 = vadd.f32 %v729_v30, %v622_v18  ;;  %v1428_v40 = vsel %vm1304_vm0, %v1425_v8, %v1427_v5  ;;  %v1554_v16 = vmul.f32 %v9879_v24, %v1553_v62 }
 0x80f   : > { %v2844_v38 = vpop.permute.xlu0 %2843 }
 0x810   : > { %v959_v9 = vadd.f32 %v955_v52, %v847_v12  ;;  %v1690_v12 = vmul.f32 %v9888_v37, %v1689_v29  ;;  %v1560_v39 = vrot.slane %v1554_v16, 1 }
 0x811   : > { %v841_v47 = vpop.permute.xlu1 %840 }
 0x812   : > { %v846_v51 = vadd.f32 %v841_v47, %v734_v35  ;;  %v1071_v43 = vadd.f32 %v9901_v41, %v959_v9  ;;  %v1564_v41 = vsel %vm1304_vm0, %v1561_v36, %v1563_v28  ;;  %v1826_v9 = vmul.f32 %v9864_v23, %v1825_v55 }
 0x813   : > { %v1696_v2 = vrot.slane %v1690_v12, 1  ;;  %v1562_v28 = vsel %vm1304_vm0, %v1560_v39, %v1561_v36  ;;  %v3445_v36 = vmul.f32 %v9574_v48, %v3442_v31  ;;  %v6077_v12 = vld [vmem:[%s6301_s26 + $0x50] sm:$0xff] }
 0x814   : > { %v1183_v52 = vadd.f32 %v9903_v15, %v1071_v43  ;;  %v1418_v15 = vmul.f32 %v9940_v25, %v1417_v6  ;;  %v3306_v43 = vstv %s5756_s5  ;;  %v1832_v29 = vrot.slane %v1826_v9, 1 }
 0x815   : > { %v953_v22 = vpop.permute.xlu1 %952  ;;  %v3452_v32 = vrot.slane %v3445_v36, 2 }
 0x816   : > { %v958_v53 = vadd.f32 %v953_v22, %v846_v51  ;;  %v1295_v57 = vadd.f32 %v9909_v10, %v1183_v52  ;;  %v3012_v10 = vpop.permute.xlu0 %3011  ;;  %v1424_v1 = vrot.slane %v1418_v15, 1  ;;  %v3309_v22 = vmul.f32 %v9559_v50, %v3306_v43 }
 0x818   : > { %v1432_v63 = vadd.f32 %v1428_v40, %v1295_v57  ;;  %v1426_v47 = vsel %vm1304_vm0, %v1424_v1, %v1425_v8  ;;  %v9954_v8 = vmul.f32 %v9438_v21, %v3306_v43 }
 0x819   : > { %v1065_v61 = vpop.permute.xlu1 %1064 }
 0x81a   : > { %v1070_v20 = vadd.f32 %v1065_v61, %v958_v53  ;;  %v1568_v18 = vadd.f32 %v1564_v41, %v1432_v63  ;;  %v3180_v62 = vpop.permute.xlu0 %3179  ;;  %v1834_v53 = vsel %vm1304_vm0, %v1832_v29, %v1833_v58  ;;  %v3578_v41 = vstv %s5772_s7 }
 0x81b   : > { %v3314_v21 = vrot.slane %v9954_v8, 2  ;;  %v3316_v63 = vrot.slane %v3309_v22, 2  ;;  %v3581_v48 = vmul.f32 %v9595_v46, %v3578_v41  ;;  %v3443_v22 = vmul.f32 %v9879_v24, %v3442_v31 }
 0x81c   : > { %v1704_v30 = vadd.f32 %v1700_v54, %v1568_v18  ;;  %v3580_v54 = vmul.f32 %v9459_v34, %v3578_v41 }
 0x81d   : > { %v1177_v26 = vpop.permute.xlu1 %1176  ;;  %v3588_v1 = vrot.slane %v3581_v48, 2 }
 0x81e   : > { %v1182_v35 = vadd.f32 %v1177_v26, %v1070_v20  ;;  %v1840_v3 = vadd.f32 %v1836_v7, %v1704_v30  ;;  %v3714_v20 = vstv %s5780_s9 }
 0x820   : > { %v2008_v6 = vadd.f32 %v9913_v13, %v1840_v3  ;;  %v1698_v13 = vsel %vm1304_vm0, %v1696_v2, %v1697_v56  ;;  %v3717_v3 = vmul.f32 %v9748_v0, %v3714_v20  ;;  %v3307_v0 = vmul.f32 %v9940_v25, %v3306_v43 }
 0x821   : > { %v1289_v5 = vpop.permute.xlu1 %1288  ;;  %v3715_v25 = vmul.f32 %v9864_v23, %v3714_v20 }
 0x822   : > { %v1294_v44 = vadd.f32 %v1289_v5, %v1182_v35  ;;  %v2176_v51 = vadd.f32 %v9917_v33, %v2008_v6  ;;  %v3716_v35 = vmul.f32 %v6077_v12, %v3714_v20  ;;  %v3724_v5 = vrot.slane %v3717_v3, 2 }
 0x824   : > { %v1431_v17 = vadd.f32 %v1426_v47, %v1294_v44  ;;  %v2344_v52 = vadd.f32 %v9919_v42, %v2176_v51  ;;  %v3893_v42 = vpop.permute.xlu0 %3892  ;;  %v3722_v47 = vrot.slane %v3716_v35, 2 }
 0x825   : > { %v2002_v55 = vpop.permute.xlu1 %2001 }
 0x826   : > { %v1567_v40 = vadd.f32 %v1562_v28, %v1431_v17  ;;  %v2512_v33 = vadd.f32 %v9921_v60, %v2344_v52  ;;  %v3450_v60 = vrot.slane %v9959_v11, 2  ;;  %v3725_v29 = vsel %vm3193_vm1, %v3722_v47, %v3724_v5 }
 0x827   : > { %v3579_v11 = vmul.f32 %v9888_v37, %v3578_v41  ;;  %v3721_v37 = vrot.slane %v3715_v25, 2 }
 0x828   : > { %v1703_v57 = vadd.f32 %v1698_v13, %v1567_v40  ;;  %v2680_v56 = vadd.f32 %v9927_v45, %v2512_v33  ;;  %v3317_v45 = vsel %vm3193_vm1, %v3314_v21, %v3316_v63  ;;  %v4061_v7 = vpop.permute.xlu0 %4060  ;;  %v3453_v30 = vsel %vm3193_vm1, %v3450_v60, %v3452_v32 }
 0x829   : > { %v2170_v4 = vpop.permute.xlu1 %2169  ;;  %v3313_v33 = vrot.slane %v3307_v0, 2  ;;  %v3723_v20 = vsel %vm3193_vm1, %v3721_v37, %v3722_v47 }
 0x82a   : > { %v1839_v50 = vadd.f32 %v1834_v53, %v1703_v57  ;;  %v2848_v61 = vadd.f32 %v2844_v38, %v2680_v56  ;;  %v3586_v38 = vrot.slane %v3580_v54, 2  ;;  %v3449_v56 = vrot.slane %v3443_v22, 2 }
 0x82c   : > { %v2007_v58 = vadd.f32 %v2002_v55, %v1839_v50  ;;  %v3016_v15 = vadd.f32 %v3012_v10, %v2848_v61  ;;  %v3589_v6 = vsel %vm3193_vm1, %v3586_v38, %v3588_v1  ;;  %v4229_v2 = vpop.permute.xlu0 %4228  ;;  %v3585_v50 = vrot.slane %v3579_v11, 2 }
 0x82d   : > { %v2338_v18 = vpop.permute.xlu1 %2337  ;;  %v3451_v32 = vsel %vm3193_vm1, %v3449_v56, %v3450_v60 }
 0x82e   : > { %v2175_v16 = vadd.f32 %v2170_v4, %v2007_v58  ;;  %v3184_v26 = vadd.f32 %v3180_v62, %v3016_v15  ;;  %v5365_v62 = vrot.slane %v9898_v27, 4 }
 0x830   : > { %v2343_v34 = vadd.f32 %v2338_v18, %v2175_v16  ;;  %v3321_v39 = vadd.f32 %v3317_v45, %v3184_v26  ;;  %v4397_v52 = vpop.permute.xlu0 %4396  ;;  %v5366_v8 = vadd.f32 %v5365_v62, %v9898_v27  ;;  %v3315_v27 = vsel %vm3193_vm1, %v3313_v33, %v3314_v21 }
 0x831   : > { %v2506_v46 = vpop.permute.xlu1 %2505 }
 0x832   : > { %v2511_v9 = vadd.f32 %v2506_v46, %v2343_v34  ;;  %v3457_v10 = vadd.f32 %v3453_v30, %v3321_v39  ;;  %v5367_v57 = vrot.slane %v5366_v8, 2 }
 0x834   : > { %v3593_v28 = vadd.f32 %v3589_v6, %v3457_v10  ;;  %v4565_v43 = vpop.permute.xlu0 %4564  ;;  %v5368_v61 = vadd.f32 %v5367_v57, %v5366_v8 }
 0x835   : > { %v2674_v44 = vpop.permute.xlu1 %2673 }
 0x836   : > { %v2679_v51 = vadd.f32 %v2674_v44, %v2511_v9  ;;  %v3729_v55 = vadd.f32 %v3725_v29, %v3593_v28  ;;  %v5369_v15 = vrot.slane %v5368_v61, 1 }
 0x838   : > { %v3897_v53 = vadd.f32 %v3893_v42, %v3729_v55  ;;  %v3587_v42 = vsel %vm3193_vm1, %v3585_v50, %v3586_v38  ;;  %v4733_v48 = vpop.permute.xlu0 %4732 }
 0x839   : > { %v2842_v17 = vpop.permute.xlu1 %2841 }
 0x83a   : > { %v2847_v13 = vadd.f32 %v2842_v17, %v2679_v51  ;;  %v4065_v31 = vadd.f32 %v4061_v7, %v3897_v53  ;;  %v5370_v7 = vadd.f32 %v5369_v15, %v5368_v61  ;;  %v5404_v51 = vstv %s5863_s10 }
 0x83b   : > { %s5906_s26 = spop %5905 }
 0x83c   : > { %s5343_s4 = smul.f32 0.00390625, %s5906_s26  ;;  %v4233_v23 = vadd.f32 %v4229_v2, %v4065_v31  ;;  %v4901_v26 = vpop.permute.xlu0 %4900  ;;  %s5871_s26 = sshll.u32 %s6228_s16, 11 }
 0x83d   : > { %v3010_v40 = vpop.permute.xlu1 %3009  ;;  %s10017_s16 = scalar_lea.sflag [#allocation3], %s188_s17 }
 0x83e   : > { %s5344_s24 = sadd.f32 1e-05, %s5343_s4  ;;  %v3015_v36 = vadd.f32 %v3010_v40, %v2847_v13  ;;  %v4401_v16 = vadd.f32 %v4397_v52, %v4233_v23 }
 0x840   : > { %v5345_v4 = vstv %s5344_s24  ;;  %v4569_v38 = vadd.f32 %v4565_v43, %v4401_v16  ;;  %v5067_v34 = vpop.permute.xlu0 %5066  ;;  %s5464_s24 = sshll.u32 %s7489_s30, 4  ;;  %s10009_s24 = int_to_ptr.vmem [resolvable:$true] %s5464_s24 }
 0x841   : > { %5995 = vrsqrt.f32 %v5345_v4  ;;  %v3178_v63 = vpop.permute.xlu1 %3177 }
 0x842   : > { %v3183_v24 = vadd.f32 %v3178_v63, %v3015_v36  ;;  %v4737_v46 = vadd.f32 %v4733_v48, %v4569_v38 }
 0x844   : > { %v3320_v41 = vadd.f32 %v3315_v27, %v3183_v24  ;;  %v4905_v6 = vadd.f32 %v4901_v26, %v4737_v46  ;;  %v5069_v47 = vpop.permute.xlu0 %5068 }
 0x845   : > { %v3891_v54 = vpop.permute.xlu1 %3890 }
 0x846   : > { %v3456_v58 = vadd.f32 %v3451_v32, %v3320_v41  ;;  %v5073_v44 = vadd.f32 %v5069_v47, %v4905_v6 }
 0x848   : > { %v3592_v18 = vadd.f32 %v3587_v42, %v3456_v58  ;;  %v5406_v29 = vadd.f32 %v5404_v51, %v5073_v44 }
 0x849   : > { %v4059_v21 = vpop.permute.xlu1 %4058 }
 0x84a   : > { %v3728_v45 = vadd.f32 %v3723_v20, %v3592_v18  ;;  %v5408_v52 = vsel %vm5078_vm2, %v5406_v29, 0.0 }
 0x84b   : > { %v5996_v30 = vpop.eup %5995 }
 0x84c   : > { %5907 = vpush %v5996_v30  ;;  %v3896_v60 = vadd.f32 %v3891_v54, %v3728_v45 }
 0x84d   : > { %5909 = vpush %v5370_v7  ;;  %v4227_v1 = vpop.permute.xlu1 %4226 }
 0x84e   : > { %v4064_v12 = vadd.f32 %v4059_v21, %v3896_v60 }
 0x850   : > { %v4232_v35 = vadd.f32 %v4227_v1, %v4064_v12 }
 0x851   : > { %v4395_v3 = vpop.permute.xlu1 %4394 }
 0x852   : > { %v4400_v39 = vadd.f32 %v4395_v3, %v4232_v35 }
 0x855   : > { %v4563_v9 = vpop.permute.xlu1 %4562 }
 0x856   : > { %v4568_v10 = vadd.f32 %v4563_v9, %v4400_v39 }
 0x859   : > { %v4731_v5 = vpop.permute.xlu1 %4730 }
 0x85a   : > { %v4736_v2 = vadd.f32 %v4731_v5, %v4568_v10 }
 0x85d   : > { %v4899_v28 = vpop.permute.xlu1 %4898 }
 0x85e   : > { %v4904_v62 = vadd.f32 %v4899_v28, %v4736_v2 }
 0x860   : > { %v5072_v17 = vadd.f32 %v5067_v34, %v4904_v62 }
 0x862   : > { %v5405_v0 = vadd.f32 %v5404_v51, %v5072_v17 }
 0x864   : > { %v5407_v13 = vsel %vm5078_vm2, %v5405_v0, 0.0 }
 0x865   : > { %v5409_v55 = vadd.f32 %v5408_v52, %v5407_v13 }
 0x867   : > { %5410 = vadd.xlane.f32.xlu0 %v5409_v55 }
 0x87d   : > { %s5908_s28 = spop %5907 }
 0x87e   : > { %v5348_v8 = vstv %s5908_s28  ;;  %s5910_s29 = spop %5909 }
 0x87f   : > { %v5349_v22 = vmul.f32 %v5348_v8, %v9515_v49  ;;  %v5350_v40 = vmul.f32 %v5348_v8, %v9518_v19  ;;  %s5372_s6 = smul.f32 0.00390625, %s5910_s29  ;;  %s10007_s29 = scalar_lea.hbm %s10061_s3, %s5871_s26 }
 0x881   : > { %v5351_v33 = vmax.f32 %v5349_v22, 0.0  ;;  %v5352_v11 = vmax.f32 %v5350_v40, 0.0  ;;  %v5373_v36 = vstv %s5372_s6  ;;  %s6108_s6 = scalar_lea.vmem %s10009_s24, 2048 }
 0x882   : > { %v5374_v53 = vsub.f32 %v9482_v59, %v5373_v36  ;;  %v5375_v57 = vsub.f32 %v9480_v14, %v5373_v36  ;;  %p6109_p10 = scmp.ne.s32.totalorder %s10009_s24, %s6108_s6 }
 0x883   : > { %5858 = vst.msk [vmem:[%s7489_s30 + $0x50] sm:$0xff] %vm5078_vm2, %v5351_v33  ;;  %5859 = vst.msk [vmem:[%s7489_s30 + $0x58] sm:$0xff] %vm5078_vm2, %v5352_v11 }
 0x884   : > { %v5376_v56 = vmul.f32 %v5374_v53, %v5374_v53  ;;  %v5377_v25 = vmul.f32 %v5375_v57, %v5375_v57  ;;  %p6110_p0 = pnand %p6109_p10, %p10105_p12 }
 0x886   : > { %v5378_v43 = vsel %vm5078_vm2, %v5376_v56, 0.0  ;;  %v5379_v49 = vsel %vm5078_vm2, %v5377_v25, 0.0  ;;  %p6111_p7 = pneg %p6110_p0 }
 0x887   : > { %v5380_v4 = vadd.f32 %v5379_v49, %v5378_v43 }
 0x889   : > { %5381 = vadd.xlane.f32.xlu1 %v5380_v4 }
 0x8f4   : > { %v5411_v14 = vpop.xlane.xlu0 %5410 }
 0x8f5   : > { %v5412_v61 = vrot.slane %v5411_v14, 4 }
 0x8f7   : > { %v5413_v32 = vadd.f32 %v5412_v61, %v5411_v14 }
 0x8f9   : > { %v5414_v37 = vrot.slane %v5413_v32, 2 }
 0x8fb   : > { %v5415_v42 = vadd.f32 %v5414_v37, %v5413_v32 }
 0x8fd   : > { %v5416_v54 = vrot.slane %v5415_v42, 1 }
 0x8ff   : > { %v5417_v58 = vadd.f32 %v5416_v54, %v5415_v42 }
 0x916   : > { %v5382_v19 = vpop.xlane.xlu1 %5381 }
 0x917   : > { %v5383_v27 = vrot.slane %v5382_v19, 4 }
 0x919   : > { %v5384_v63 = vadd.f32 %v5383_v27, %v5382_v19 }
 0x91b   : > { %v5385_v50 = vrot.slane %v5384_v63, 2 }
 0x91d   : > { %v5386_v24 = vadd.f32 %v5385_v50, %v5384_v63 }
 0x91f   : > { %v5387_v59 = vrot.slane %v5386_v24, 1 }
 0x921   : > { %v5388_v31 = vadd.f32 %v5387_v59, %v5386_v24 }
 0x923   : > { %5911 = vpush %v5388_v31 }
 0x954   : > { %s5912_s25 = spop %5911 }
 0x955   : > { %s5390_s8 = smul.f32 0.00390625, %s5912_s25  ;;  %s6184_s25 = smov [#allocation7]  }
 0x957   : > { %s5391_s19 = sadd.f32 1e-05, %s5390_s8  ;;  %s6112_s8 = sshll.u32 %s6184_s25, 4  ;;  %s6113_s8 = int_to_ptr.vmem [resolvable:$false] %s6112_s8 }
 0x958   : > { %p6115_p8 = scmp.lt.s32.totalorder %s10009_s24, %s6113_s8 }
 0x959   : > { %v5392_v41 = vstv %s5391_s19  ;;  %s6114_s19 = scalar_lea.vmem %s6113_s8, 4096 }
 0x95a   : > { %5997 = vrsqrt.f32 %v5392_v41  ;;  %p6116_p11 = scmp.lt.s32.totalorder %s6114_s19, %s6108_s6 }
 0x95c   : > { %p6117_p13 = por %p6116_p11, %p6115_p8 }
 0x95e   : > { %p6118_p1 = pnand %p6117_p13, %p6111_p7 }
 0x964   : > { %v5998_v48 = vpop.eup %5997 }
 0x965   : > { %5913 = vpush %v5998_v48 }
 0x966   : > { %5915 = vpush %v5417_v58 }
 0x996   : > { %s5914_s27 = spop %5913 }
 0x997   : > { %v5395_v23 = vstv %s5914_s27  ;;  %s5916_s20 = spop %5915 }
 0x998   : > { %v5396_v15 = vmul.f32 %v5395_v23, %v5374_v53  ;;  %v5397_v20 = vmul.f32 %v5395_v23, %v5375_v57  ;;  %s5419_s5 = smul.f32 0.00390625, %s5916_s20 }
 0x99a   : > { %v5398_v18 = vmax.f32 %v5396_v15, 0.0  ;;  %v5399_v21 = vmax.f32 %v5397_v20, 0.0  ;;  %v5420_v45 = vstv %s5419_s5 }
 0x99b   : > { %v5421_v16 = vsub.f32 %v5405_v0, %v5420_v45  ;;  %v5422_v30 = vsub.f32 %v5406_v29, %v5420_v45 }
 0x99c   : > { %5861 = vst.msk [vmem:[%s7489_s30 + $0x60] sm:$0xff] %vm5078_vm2, %v5398_v18  ;;  %5862 = vst.msk [vmem:[%s7489_s30 + $0x68] sm:$0xff] %vm5078_vm2, %v5399_v21 }
 0x99d   : > { %v5423_v7 = vmul.f32 %v5421_v16, %v5421_v16  ;;  %v5424_v26 = vmul.f32 %v5422_v30, %v5422_v30 }
 0x99f   : > { %v5425_v60 = vsel %vm5078_vm2, %v5423_v7, 0.0  ;;  %v5426_v1 = vsel %vm5078_vm2, %v5424_v26, 0.0 }
 0x9a0   : > { %v5427_v12 = vadd.f32 %v5426_v1, %v5425_v60 }
 0x9a2   : > { %5428 = vadd.xlane.f32.xlu1 %v5427_v12 }
 0xa2f   : > { %v5429_v38 = vpop.xlane.xlu1 %5428 }
 0xa30   : > { %v5430_v35 = vrot.slane %v5429_v38, 4 }
 0xa32   : > { %v5431_v3 = vadd.f32 %v5430_v35, %v5429_v38 }
 0xa34   : > { %v5432_v34 = vrot.slane %v5431_v3, 2 }
 0xa36   : > { %v5433_v39 = vadd.f32 %v5432_v34, %v5431_v3 }
 0xa38   : > { %v5434_v46 = vrot.slane %v5433_v39, 1 }
 0xa3a   : > { %v5435_v9 = vadd.f32 %v5434_v46, %v5433_v39 }
 0xa3c   : > { %5917 = vpush %v5435_v9 }
 0xa6d   : > { %s5918_s11 = spop %5917 }
 0xa6e   : > { %s5437_s7 = smul.f32 0.00390625, %s5918_s11 }
 0xa70   : > { %s5438_s9 = sadd.f32 1e-05, %s5437_s7 }
 0xa72   : > { %v5439_v10 = vstv %s5438_s9 }
 0xa73   : > { %5999 = vrsqrt.f32 %v5439_v10 }
 0xa7d   : > { %v6000_v6 = vpop.eup %5999 }
 0xa7e   : > { %5919 = vpush %v6000_v6 }
 0xaaf   : > { %s5920_s4 = spop %5919 }
 0xab0   : > { %v5442_v47 = vstv %s5920_s4 }
 0xab1   : > { %v5443_v5 = vmul.f32 %v5442_v47, %v5421_v16  ;;  %v5444_v2 = vmul.f32 %v5442_v47, %v5422_v30 }
 0xab3   : > { %v5445_v44 = vmax.f32 %v5443_v5, 0.0  ;;  %v5446_v51 = vmax.f32 %v5444_v2, 0.0 }
 0xab5   : > { %5864 = vst.msk [vmem:[%s7489_s30 + $0x70] sm:$0xff] %vm5078_vm2, %v5445_v44  ;;  %5865 = vst.msk [vmem:[%s7489_s30 + $0x78] sm:$0xff] %vm5078_vm2, %v5446_v51 }
 0xab6   : > { %6121 = shalt.err (!%p6118_p1)
}
 0xab7   : > { %s6122_s17 = scalar_lea.hbm %s10007_s29, 2048  ;;  %s6126_s20 = scalar_lea.hbm %s10061_s3, 4096 }
 0xab8   : > { %p6123_p2 = scmp.ne.s32.totalorder %s10007_s29, %s6122_s17  ;;  %p6127_p9 = scmp.lt.u32.totalorder %s10007_s29, %s10061_s3 }
 0xab9   : > { %p6128_p5 = scmp.lt.u32.totalorder %s6126_s20, %s6122_s17  ;;  %p6130_p10 = scmp.lt.u32.totalorder %s6122_s17, %s10007_s29 }
 0xaba   : > { %p6124_p3 = pnand %p6123_p2, %p10105_p12 }
 0xabb   : > { %p6129_p6 = por %p6128_p5, %p6127_p9 }
 0xabc   : > { %p6125_p4 = pneg %p6124_p3 }
 0xabd   : > { %p6131_p0 = por %p6130_p10, %p6129_p6 }
 0xabf   : > { %p6132_p7 = pnand %p6131_p0, %p6125_p4 }
 0xac1   : > { %6135 = shalt.err (!%p6132_p7)
}
 0xac2   : > { %s6185_s7 = smov 128   ;;  %s6186_s9 = smov 8  }
 0xac3   : > { %5929 = dma.vmem_to_hbm [thread:$0]  (%p10105_p12), %s10009_s24, 2048, %s10007_s29, %s10017_s16, %s6185_s7, %s6185_s7, %s6186_s9  }
 0xac4 PF: > { %p5946_p8 = scmp.ge.s32.totalorder %s6178_s15, 2  ;;  %s5479_s26 = sand.u32 1, %s6166_s12  }
 0xac5   : > { %p10106_p11 = scmp.ne.s32.totalorder %s10080_s23, 0  ;;  %s5480_s4 = scalar_lea.sflag [#allocation3], %s5479_s26 }
 0xac7   : > { %p5939_p13 = pnand %p5946_p8, %p10106_p11 }
 0xac9   : > { %6161 = dma.done.wait (!%p5939_p13), %s5480_s4, 2048  }
 0xaca   : > { %6163 = vsyncadd (!%p5939_p13), %s5480_s4, 4294965248  ;;  %p15_p1 = scmp.ge.s32.totalorder %s6232_s18, 4   ;;  %s10107_s12 = smov %s6170_s13 }
 0xacb   : > { %s10108_s13 = smov %s6174_s14  ;;  %s10109_s14 = smov %s6243_s21 }
 0xacc   : > { %s10110_s15 = smov %s6232_s18  ;;  %17 = sbr.rel (!%p15_p1) target bundleno = 5 (0x5), region = 83 }
 0xad3   :  { %5485 = vsyncpa [#allocation3], 1 }
 0xad4   :  { %5487 = vsyncpa [#allocation3 + $0x1], 1 }
 0xad5   :  { %5488 = vsyncpa [#allocation4], 1 }
 0xad6   :  { %5490 = vsyncpa [#allocation4 + $0x1], 1 }
 0xad7   :  { %5491 = vsyncpa [#allocation6], 1 }

</bundles_post_ra>
